<compile_context>
chip_gen: v7x
topology: tpu7x:2x2x1
jax: 0.10.0
libtpu: 0.0.40
codegen_flags: <defaults>
</compile_context>

<pallas_src>
import functools

import numpy as np
import jax
import jax.numpy as jnp
from jax import lax
from jax.experimental import pallas as pl
from jax.experimental.pallas import tpu as pltpu


# ----------------------------------------------------------------------------
# Pallas kernel: fused QKV projection + per-head softmax attention + out proj.
# ----------------------------------------------------------------------------
def _attention_kernel(x_ref, wqkv_ref, wproj_ref, bproj_ref, o_ref,
                      qkv_ref, ctx_ref, *, num_heads, scale):
    x = x_ref[0]                       # (N, C)
    wqkv = wqkv_ref[...]               # (C, 3C)
    wproj = wproj_ref[...]             # (C, C)
    bproj = bproj_ref[...]             # (1, C)

    N, C = x.shape
    dh = C // num_heads

    # Fused QKV projection (one big MXU matmul), kept in VMEM scratch.
    qkv_ref[...] = jnp.dot(x, wqkv, preferred_element_type=jnp.float32)  # (N, 3C)

    # Per-head scaled softmax attention (heads statically unrolled).
    for h in range(num_heads):
        q = qkv_ref[:, h * dh:(h + 1) * dh] * scale              # (N, dh)
        k = qkv_ref[:, C + h * dh:C + (h + 1) * dh]              # (N, dh)
        v = qkv_ref[:, 2 * C + h * dh:2 * C + (h + 1) * dh]      # (N, dh)

        # scores = q @ k^T  (contract head dim of both; no explicit transpose)
        s = lax.dot_general(q, k, (((1,), (1,)), ((), ())),
                            preferred_element_type=jnp.float32)  # (N, N)
        s = s - jnp.max(s, axis=-1, keepdims=True)
        p = jnp.exp(s)
        p = p * pl.reciprocal(jnp.sum(p, axis=-1, keepdims=True), approx=False)

        ctx_ref[:, h * dh:(h + 1) * dh] = jnp.dot(
            p, v, preferred_element_type=jnp.float32)            # (N, dh)

    # Output projection + bias, single lane-dense store to HBM.
    out = jnp.dot(ctx_ref[...], wproj, preferred_element_type=jnp.float32) + bproj
    o_ref[0] = out.astype(o_ref.dtype)


# ----------------------------------------------------------------------------
# Wrapper
# ----------------------------------------------------------------------------
def attention_forward(x, wqkv, wproj, bproj, *, num_heads, qk_scale=None):
    """Pallas implementation of Attention.forward (eval mode, dropout p=0).

    x     : (B, N, C)
    wqkv  : (C, 3C)   (already transposed w.r.t. the nn.Linear parameter)
    wproj : (C, C)
    bproj : (C,)
    """
    B, N, C = x.shape
    assert C % num_heads == 0
    head_dim = C // num_heads
    scale = qk_scale if qk_scale is not None else head_dim ** (-0.5)

    bproj2d = bproj.reshape(1, C)

    kernel = functools.partial(_attention_kernel, num_heads=num_heads, scale=scale)

    return pl.pallas_call(
        kernel,
        out_shape=jax.ShapeDtypeStruct((B, N, C), x.dtype),
        grid_spec=pltpu.PrefetchScalarGridSpec(
            num_scalar_prefetch=0,
            grid=(B,),
            in_specs=[
                pl.BlockSpec((1, N, C), lambda b: (b, 0, 0)),       # x
                pl.BlockSpec((C, 3 * C), lambda b: (0, 0)),         # Wqkv
                pl.BlockSpec((C, C), lambda b: (0, 0)),             # Wproj
                pl.BlockSpec((1, C), lambda b: (0, 0)),             # bproj
            ],
            out_specs=pl.BlockSpec((1, N, C), lambda b: (b, 0, 0)),
            scratch_shapes=[
                pltpu.VMEM((N, 3 * C), jnp.float32),                # qkv scratch
                pltpu.VMEM((N, C), jnp.float32),                    # ctx scratch
            ],
        ),
        compiler_params=pltpu.CompilerParams(
            dimension_semantics=("parallel",),        # megacore: batch across TCs
            vmem_limit_bytes=32 * 1024 * 1024,
        ),
    )(x, wqkv, wproj, bproj2d)


# ----------------------------------------------------------------------------
# Pure-JAX reference (mirrors the PyTorch forward) for correctness checking.
# ----------------------------------------------------------------------------
def reference_forward(x, wqkv, wproj, bproj, num_heads, scale):
    B, N, C = x.shape
    dh = C // num_heads
    hp = jax.lax.Precision.HIGHEST
    qkv = jnp.einsum("bnc,cd->bnd", x, wqkv, precision=hp)
    qkv = qkv.reshape(B, N, 3, num_heads, dh).transpose(2, 0, 3, 1, 4)
    q, k, v = qkv[0], qkv[1], qkv[2]
    q = q * scale
    attn = jnp.einsum("bhqd,bhkd->bhqk", q, k, precision=hp)
    attn = jax.nn.softmax(attn, axis=-1)
    out = jnp.einsum("bhqk,bhkd->bhqd", attn, v, precision=hp)
    out = out.transpose(0, 2, 1, 3).reshape(B, N, C)
    out = jnp.einsum("bnc,cd->bnd", out, wproj, precision=hp) + bproj[None, None, :]
    return out


# ----------------------------------------------------------------------------
if __name__ == "__main__":
    # Small, TPU-friendly shapes: batch=2, seq=128, dim=128, heads=8 (head_dim=16).
    B, N, C, H = 2, 128, 128, 8
    head_dim = C // H
    scale = head_dim ** (-0.5)

    key = jax.random.PRNGKey(0)
    kx, kqkv, kproj, kb = jax.random.split(key, 4)
    x = jax.random.normal(kx, (B, N, C), dtype=jnp.float32)
    wqkv = jax.random.normal(kqkv, (C, 3 * C), dtype=jnp.float32) * (C ** -0.5)
    wproj = jax.random.normal(kproj, (C, C), dtype=jnp.float32) * (C ** -0.5)
    bproj = jax.random.normal(kb, (C,), dtype=jnp.float32) * 0.02

    out = attention_forward(x, wqkv, wproj, bproj, num_heads=H)
    out = jax.block_until_ready(out)

    ref = jax.block_until_ready(reference_forward(x, wqkv, wproj, bproj, H, scale))
    np.testing.assert_allclose(np.asarray(out), np.asarray(ref), rtol=2e-3, atol=2e-3)

    print("KERNEL_OK")
</pallas_src>

<mosaic_0001>
module attributes {stable_mosaic.version = 11 : i64} {
  func.func @_attention_kernel(%arg0: i32, %arg1: memref<1x128x128xf32, #tpu.memory_space<vmem>>, %arg2: memref<128x384xf32, #tpu.memory_space<vmem>>, %arg3: memref<128x128xf32, #tpu.memory_space<vmem>>, %arg4: memref<1x128xf32, #tpu.memory_space<vmem>>, %arg5: memref<1x128x128xf32, #tpu.memory_space<vmem>>, %arg6: memref<128x384xf32, #tpu.memory_space<vmem>>, %arg7: memref<128x128xf32, #tpu.memory_space<vmem>>) attributes {dimension_semantics = [#tpu.dimension_semantics<parallel>], iteration_bounds = array<i64: 2>, scalar_prefetch = 0 : i64, scratch_operands = 2 : i64, tpu.core_type = #tpu.core_type<tc>, window_params = [{transform_indices = @transform_0, window_bounds = array<i64: 1, 128, 128>}, {pipeline_mode = #tpu.pipeline_mode<synchronous>, transform_indices = @transform_1, window_bounds = array<i64: 128, 384>}, {pipeline_mode = #tpu.pipeline_mode<synchronous>, transform_indices = @transform_2, window_bounds = array<i64: 128, 128>}, {pipeline_mode = #tpu.pipeline_mode<synchronous>, transform_indices = @transform_3, window_bounds = array<i64: 1, 128>}, {transform_indices = @transform_4, window_bounds = array<i64: 1, 128, 128>}]} {
    %c0 = arith.constant 0 : index
    %c0_0 = arith.constant 0 : index
    %c0_1 = arith.constant 0 : index
    %0 = vector.load %arg1[%c0, %c0_0, %c0_1] : memref<1x128x128xf32, #tpu.memory_space<vmem>>, vector<1x128x128xf32>
    %1 = vector.shape_cast %0 : vector<1x128x128xf32> to vector<128x128xf32>
    %c0_2 = arith.constant 0 : index
    %c0_3 = arith.constant 0 : index
    %2 = vector.load %arg2[%c0_2, %c0_3] : memref<128x384xf32, #tpu.memory_space<vmem>>, vector<128x384xf32>
    %c0_4 = arith.constant 0 : index
    %c0_5 = arith.constant 0 : index
    %3 = vector.load %arg3[%c0_4, %c0_5] : memref<128x128xf32, #tpu.memory_space<vmem>>, vector<128x128xf32>
    %c0_6 = arith.constant 0 : index
    %c0_7 = arith.constant 0 : index
    %4 = vector.load %arg4[%c0_6, %c0_7] : memref<1x128xf32, #tpu.memory_space<vmem>>, vector<1x128xf32>
    %cst = arith.constant dense<0.000000e+00> : vector<128x384xf32>
    %5 = tpu.matmul %1, %2, %cst {dimension_numbers = #tpu.dot_dimension_numbers<[1], [0], [0], [1], [0, 0, 1, 1], [], []>} : vector<128x128xf32>, vector<128x384xf32>, vector<128x384xf32> -> vector<128x384xf32>
    %c0_8 = arith.constant 0 : index
    %c0_9 = arith.constant 0 : index
    %6 = vector.load %arg6[%c0_8, %c0_9] : memref<128x384xf32, #tpu.memory_space<vmem>>, vector<128x384xf32>
    tpu.vector_store %arg6[%c0_8, %c0_9], %5 {strides = array<i32>} : memref<128x384xf32, #tpu.memory_space<vmem>>, vector<128x384xf32>,
    %c0_10 = arith.constant 0 : index
    %c0_11 = arith.constant 0 : index
    %7 = vector.load %arg6[%c0_10, %c0_11] : memref<128x384xf32, #tpu.memory_space<vmem>>, vector<128x16xf32>
    %cst_12 = arith.constant 2.500000e-01 : f32
    %8 = vector.broadcast %cst_12 : f32 to vector<128x16xf32>
    %9 = arith.mulf %7, %8 : vector<128x16xf32>
    %c0_13 = arith.constant 0 : index
    %c128 = arith.constant 128 : index
    %10 = vector.load %arg6[%c0_13, %c128] : memref<128x384xf32, #tpu.memory_space<vmem>>, vector<128x16xf32>
    %c0_14 = arith.constant 0 : index
    %c256 = arith.constant 256 : index
    %11 = vector.load %arg6[%c0_14, %c256] : memref<128x384xf32, #tpu.memory_space<vmem>>, vector<128x16xf32>
    %cst_15 = arith.constant dense<0.000000e+00> : vector<128x128xf32>
    %12 = tpu.matmul %9, %10, %cst_15 {dimension_numbers = #tpu.dot_dimension_numbers<[1], [1], [0], [0], [0, 0, 1, 0], [], []>} : vector<128x16xf32>, vector<128x16xf32>, vector<128x128xf32> -> vector<128x128xf32>
    %cst_16 = arith.constant dense<0xFF800000> : vector<128xf32>
    %13 = vector.multi_reduction <maximumf>, %12, %cst_16 [1] : vector<128x128xf32> to vector<128xf32>
    %14 = vector.shape_cast %13 : vector<128xf32> to vector<128x1xf32>
    %15 = vector.broadcast %14 : vector<128x1xf32> to vector<128x128xf32>
    %16 = arith.subf %12, %15 : vector<128x128xf32>
    %17 = math.exp %16 : vector<128x128xf32>
    %cst_17 = arith.constant dense<0.000000e+00> : vector<128xf32>
    %18 = vector.multi_reduction <add>, %17, %cst_17 [1] : vector<128x128xf32> to vector<128xf32>
    %19 = vector.shape_cast %18 : vector<128xf32> to vector<128x1xf32>
    %20 = tpu.reciprocal %19 : vector<128x1xf32> -> vector<128x1xf32>
    %21 = vector.broadcast %20 : vector<128x1xf32> to vector<128x128xf32>
    %22 = arith.mulf %17, %21 : vector<128x128xf32>
    %cst_18 = arith.constant dense<0.000000e+00> : vector<128x16xf32>
    %23 = tpu.matmul %22, %11, %cst_18 {dimension_numbers = #tpu.dot_dimension_numbers<[1], [0], [0], [1], [0, 0, 1, 1], [], []>} : vector<128x128xf32>, vector<128x16xf32>, vector<128x16xf32> -> vector<128x16xf32>
    %c0_19 = arith.constant 0 : index
    %c0_20 = arith.constant 0 : index
    %24 = vector.load %arg7[%c0_19, %c0_20] : memref<128x128xf32, #tpu.memory_space<vmem>>, vector<128x16xf32>
    tpu.vector_store %arg7[%c0_19, %c0_20], %23 {strides = array<i32>} : memref<128x128xf32, #tpu.memory_space<vmem>>, vector<128x16xf32>,
    %c0_21 = arith.constant 0 : index
    %c16 = arith.constant 16 : index
    %25 = vector.load %arg6[%c0_21, %c16] : memref<128x384xf32, #tpu.memory_space<vmem>>, vector<128x16xf32>
    %cst_22 = arith.constant 2.500000e-01 : f32
    %26 = vector.broadcast %cst_22 : f32 to vector<128x16xf32>
    %27 = arith.mulf %25, %26 : vector<128x16xf32>
    %c0_23 = arith.constant 0 : index
    %c144 = arith.constant 144 : index
    %28 = vector.load %arg6[%c0_23, %c144] : memref<128x384xf32, #tpu.memory_space<vmem>>, vector<128x16xf32>
    %c0_24 = arith.constant 0 : index
    %c272 = arith.constant 272 : index
    %29 = vector.load %arg6[%c0_24, %c272] : memref<128x384xf32, #tpu.memory_space<vmem>>, vector<128x16xf32>
    %cst_25 = arith.constant dense<0.000000e+00> : vector<128x128xf32>
    %30 = tpu.matmul %27, %28, %cst_25 {dimension_numbers = #tpu.dot_dimension_numbers<[1], [1], [0], [0], [0, 0, 1, 0], [], []>} : vector<128x16xf32>, vector<128x16xf32>, vector<128x128xf32> -> vector<128x128xf32>
    %cst_26 = arith.constant dense<0xFF800000> : vector<128xf32>
    %31 = vector.multi_reduction <maximumf>, %30, %cst_26 [1] : vector<128x128xf32> to vector<128xf32>
    %32 = vector.shape_cast %31 : vector<128xf32> to vector<128x1xf32>
    %33 = vector.broadcast %32 : vector<128x1xf32> to vector<128x128xf32>
    %34 = arith.subf %30, %33 : vector<128x128xf32>
    %35 = math.exp %34 : vector<128x128xf32>
    %cst_27 = arith.constant dense<0.000000e+00> : vector<128xf32>
    %36 = vector.multi_reduction <add>, %35, %cst_27 [1] : vector<128x128xf32> to vector<128xf32>
    %37 = vector.shape_cast %36 : vector<128xf32> to vector<128x1xf32>
    %38 = tpu.reciprocal %37 : vector<128x1xf32> -> vector<128x1xf32>
    %39 = vector.broadcast %38 : vector<128x1xf32> to vector<128x128xf32>
    %40 = arith.mulf %35, %39 : vector<128x128xf32>
    %cst_28 = arith.constant dense<0.000000e+00> : vector<128x16xf32>
    %41 = tpu.matmul %40, %29, %cst_28 {dimension_numbers = #tpu.dot_dimension_numbers<[1], [0], [0], [1], [0, 0, 1, 1], [], []>} : vector<128x128xf32>, vector<128x16xf32>, vector<128x16xf32> -> vector<128x16xf32>
    %c0_29 = arith.constant 0 : index
    %c16_30 = arith.constant 16 : index
    %42 = vector.load %arg7[%c0_29, %c16_30] : memref<128x128xf32, #tpu.memory_space<vmem>>, vector<128x16xf32>
    tpu.vector_store %arg7[%c0_29, %c16_30], %41 {strides = array<i32>} : memref<128x128xf32, #tpu.memory_space<vmem>>, vector<128x16xf32>,
    %c0_31 = arith.constant 0 : index
    %c32 = arith.constant 32 : index
    %43 = vector.load %arg6[%c0_31, %c32] : memref<128x384xf32, #tpu.memory_space<vmem>>, vector<128x16xf32>
    %cst_32 = arith.constant 2.500000e-01 : f32
    %44 = vector.broadcast %cst_32 : f32 to vector<128x16xf32>
    %45 = arith.mulf %43, %44 : vector<128x16xf32>
    %c0_33 = arith.constant 0 : index
    %c160 = arith.constant 160 : index
    %46 = vector.load %arg6[%c0_33, %c160] : memref<128x384xf32, #tpu.memory_space<vmem>>, vector<128x16xf32>
    %c0_34 = arith.constant 0 : index
    %c288 = arith.constant 288 : index
    %47 = vector.load %arg6[%c0_34, %c288] : memref<128x384xf32, #tpu.memory_space<vmem>>, vector<128x16xf32>
    %cst_35 = arith.constant dense<0.000000e+00> : vector<128x128xf32>
    %48 = tpu.matmul %45, %46, %cst_35 {dimension_numbers = #tpu.dot_dimension_numbers<[1], [1], [0], [0], [0, 0, 1, 0], [], []>} : vector<128x16xf32>, vector<128x16xf32>, vector<128x128xf32> -> vector<128x128xf32>
    %cst_36 = arith.constant dense<0xFF800000> : vector<128xf32>
    %49 = vector.multi_reduction <maximumf>, %48, %cst_36 [1] : vector<128x128xf32> to vector<128xf32>
    %50 = vector.shape_cast %49 : vector<128xf32> to vector<128x1xf32>
    %51 = vector.broadcast %50 : vector<128x1xf32> to vector<128x128xf32>
    %52 = arith.subf %48, %51 : vector<128x128xf32>
    %53 = math.exp %52 : vector<128x128xf32>
    %cst_37 = arith.constant dense<0.000000e+00> : vector<128xf32>
    %54 = vector.multi_reduction <add>, %53, %cst_37 [1] : vector<128x128xf32> to vector<128xf32>
    %55 = vector.shape_cast %54 : vector<128xf32> to vector<128x1xf32>
    %56 = tpu.reciprocal %55 : vector<128x1xf32> -> vector<128x1xf32>
    %57 = vector.broadcast %56 : vector<128x1xf32> to vector<128x128xf32>
    %58 = arith.mulf %53, %57 : vector<128x128xf32>
    %cst_38 = arith.constant dense<0.000000e+00> : vector<128x16xf32>
    %59 = tpu.matmul %58, %47, %cst_38 {dimension_numbers = #tpu.dot_dimension_numbers<[1], [0], [0], [1], [0, 0, 1, 1], [], []>} : vector<128x128xf32>, vector<128x16xf32>, vector<128x16xf32> -> vector<128x16xf32>
    %c0_39 = arith.constant 0 : index
    %c32_40 = arith.constant 32 : index
    %60 = vector.load %arg7[%c0_39, %c32_40] : memref<128x128xf32, #tpu.memory_space<vmem>>, vector<128x16xf32>
    tpu.vector_store %arg7[%c0_39, %c32_40], %59 {strides = array<i32>} : memref<128x128xf32, #tpu.memory_space<vmem>>, vector<128x16xf32>,
    %c0_41 = arith.constant 0 : index
    %c48 = arith.constant 48 : index
    %61 = vector.load %arg6[%c0_41, %c48] : memref<128x384xf32, #tpu.memory_space<vmem>>, vector<128x16xf32>
    %cst_42 = arith.constant 2.500000e-01 : f32
    %62 = vector.broadcast %cst_42 : f32 to vector<128x16xf32>
    %63 = arith.mulf %61, %62 : vector<128x16xf32>
    %c0_43 = arith.constant 0 : index
    %c176 = arith.constant 176 : index
    %64 = vector.load %arg6[%c0_43, %c176] : memref<128x384xf32, #tpu.memory_space<vmem>>, vector<128x16xf32>
    %c0_44 = arith.constant 0 : index
    %c304 = arith.constant 304 : index
    %65 = vector.load %arg6[%c0_44, %c304] : memref<128x384xf32, #tpu.memory_space<vmem>>, vector<128x16xf32>
    %cst_45 = arith.constant dense<0.000000e+00> : vector<128x128xf32>
    %66 = tpu.matmul %63, %64, %cst_45 {dimension_numbers = #tpu.dot_dimension_numbers<[1], [1], [0], [0], [0, 0, 1, 0], [], []>} : vector<128x16xf32>, vector<128x16xf32>, vector<128x128xf32> -> vector<128x128xf32>
    %cst_46 = arith.constant dense<0xFF800000> : vector<128xf32>
    %67 = vector.multi_reduction <maximumf>, %66, %cst_46 [1] : vector<128x128xf32> to vector<128xf32>
    %68 = vector.shape_cast %67 : vector<128xf32> to vector<128x1xf32>
    %69 = vector.broadcast %68 : vector<128x1xf32> to vector<128x128xf32>
    %70 = arith.subf %66, %69 : vector<128x128xf32>
    %71 = math.exp %70 : vector<128x128xf32>
    %cst_47 = arith.constant dense<0.000000e+00> : vector<128xf32>
    %72 = vector.multi_reduction <add>, %71, %cst_47 [1] : vector<128x128xf32> to vector<128xf32>
    %73 = vector.shape_cast %72 : vector<128xf32> to vector<128x1xf32>
    %74 = tpu.reciprocal %73 : vector<128x1xf32> -> vector<128x1xf32>
    %75 = vector.broadcast %74 : vector<128x1xf32> to vector<128x128xf32>
    %76 = arith.mulf %71, %75 : vector<128x128xf32>
    %cst_48 = arith.constant dense<0.000000e+00> : vector<128x16xf32>
    %77 = tpu.matmul %76, %65, %cst_48 {dimension_numbers = #tpu.dot_dimension_numbers<[1], [0], [0], [1], [0, 0, 1, 1], [], []>} : vector<128x128xf32>, vector<128x16xf32>, vector<128x16xf32> -> vector<128x16xf32>
    %c0_49 = arith.constant 0 : index
    %c48_50 = arith.constant 48 : index
    %78 = vector.load %arg7[%c0_49, %c48_50] : memref<128x128xf32, #tpu.memory_space<vmem>>, vector<128x16xf32>
    tpu.vector_store %arg7[%c0_49, %c48_50], %77 {strides = array<i32>} : memref<128x128xf32, #tpu.memory_space<vmem>>, vector<128x16xf32>,
    %c0_51 = arith.constant 0 : index
    %c64 = arith.constant 64 : index
    %79 = vector.load %arg6[%c0_51, %c64] : memref<128x384xf32, #tpu.memory_space<vmem>>, vector<128x16xf32>
    %cst_52 = arith.constant 2.500000e-01 : f32
    %80 = vector.broadcast %cst_52 : f32 to vector<128x16xf32>
    %81 = arith.mulf %79, %80 : vector<128x16xf32>
    %c0_53 = arith.constant 0 : index
    %c192 = arith.constant 192 : index
    %82 = vector.load %arg6[%c0_53, %c192] : memref<128x384xf32, #tpu.memory_space<vmem>>, vector<128x16xf32>
    %c0_54 = arith.constant 0 : index
    %c320 = arith.constant 320 : index
    %83 = vector.load %arg6[%c0_54, %c320] : memref<128x384xf32, #tpu.memory_space<vmem>>, vector<128x16xf32>
    %cst_55 = arith.constant dense<0.000000e+00> : vector<128x128xf32>
    %84 = tpu.matmul %81, %82, %cst_55 {dimension_numbers = #tpu.dot_dimension_numbers<[1], [1], [0], [0], [0, 0, 1, 0], [], []>} : vector<128x16xf32>, vector<128x16xf32>, vector<128x128xf32> -> vector<128x128xf32>
    %cst_56 = arith.constant dense<0xFF800000> : vector<128xf32>
    %85 = vector.multi_reduction <maximumf>, %84, %cst_56 [1] : vector<128x128xf32> to vector<128xf32>
    %86 = vector.shape_cast %85 : vector<128xf32> to vector<128x1xf32>
    %87 = vector.broadcast %86 : vector<128x1xf32> to vector<128x128xf32>
    %88 = arith.subf %84, %87 : vector<128x128xf32>
    %89 = math.exp %88 : vector<128x128xf32>
    %cst_57 = arith.constant dense<0.000000e+00> : vector<128xf32>
    %90 = vector.multi_reduction <add>, %89, %cst_57 [1] : vector<128x128xf32> to vector<128xf32>
    %91 = vector.shape_cast %90 : vector<128xf32> to vector<128x1xf32>
    %92 = tpu.reciprocal %91 : vector<128x1xf32> -> vector<128x1xf32>
    %93 = vector.broadcast %92 : vector<128x1xf32> to vector<128x128xf32>
    %94 = arith.mulf %89, %93 : vector<128x128xf32>
    %cst_58 = arith.constant dense<0.000000e+00> : vector<128x16xf32>
    %95 = tpu.matmul %94, %83, %cst_58 {dimension_numbers = #tpu.dot_dimension_numbers<[1], [0], [0], [1], [0, 0, 1, 1], [], []>} : vector<128x128xf32>, vector<128x16xf32>, vector<128x16xf32> -> vector<128x16xf32>
    %c0_59 = arith.constant 0 : index
    %c64_60 = arith.constant 64 : index
    %96 = vector.load %arg7[%c0_59, %c64_60] : memref<128x128xf32, #tpu.memory_space<vmem>>, vector<128x16xf32>
    tpu.vector_store %arg7[%c0_59, %c64_60], %95 {strides = array<i32>} : memref<128x128xf32, #tpu.memory_space<vmem>>, vector<128x16xf32>,
    %c0_61 = arith.constant 0 : index
    %c80 = arith.constant 80 : index
    %97 = vector.load %arg6[%c0_61, %c80] : memref<128x384xf32, #tpu.memory_space<vmem>>, vector<128x16xf32>
    %cst_62 = arith.constant 2.500000e-01 : f32
    %98 = vector.broadcast %cst_62 : f32 to vector<128x16xf32>
    %99 = arith.mulf %97, %98 : vector<128x16xf32>
    %c0_63 = arith.constant 0 : index
    %c208 = arith.constant 208 : index
    %100 = vector.load %arg6[%c0_63, %c208] : memref<128x384xf32, #tpu.memory_space<vmem>>, vector<128x16xf32>
    %c0_64 = arith.constant 0 : index
    %c336 = arith.constant 336 : index
    %101 = vector.load %arg6[%c0_64, %c336] : memref<128x384xf32, #tpu.memory_space<vmem>>, vector<128x16xf32>
    %cst_65 = arith.constant dense<0.000000e+00> : vector<128x128xf32>
    %102 = tpu.matmul %99, %100, %cst_65 {dimension_numbers = #tpu.dot_dimension_numbers<[1], [1], [0], [0], [0, 0, 1, 0], [], []>} : vector<128x16xf32>, vector<128x16xf32>, vector<128x128xf32> -> vector<128x128xf32>
    %cst_66 = arith.constant dense<0xFF800000> : vector<128xf32>
    %103 = vector.multi_reduction <maximumf>, %102, %cst_66 [1] : vector<128x128xf32> to vector<128xf32>
    %104 = vector.shape_cast %103 : vector<128xf32> to vector<128x1xf32>
    %105 = vector.broadcast %104 : vector<128x1xf32> to vector<128x128xf32>
    %106 = arith.subf %102, %105 : vector<128x128xf32>
    %107 = math.exp %106 : vector<128x128xf32>
    %cst_67 = arith.constant dense<0.000000e+00> : vector<128xf32>
    %108 = vector.multi_reduction <add>, %107, %cst_67 [1] : vector<128x128xf32> to vector<128xf32>
    %109 = vector.shape_cast %108 : vector<128xf32> to vector<128x1xf32>
    %110 = tpu.reciprocal %109 : vector<128x1xf32> -> vector<128x1xf32>
    %111 = vector.broadcast %110 : vector<128x1xf32> to vector<128x128xf32>
    %112 = arith.mulf %107, %111 : vector<128x128xf32>
    %cst_68 = arith.constant dense<0.000000e+00> : vector<128x16xf32>
    %113 = tpu.matmul %112, %101, %cst_68 {dimension_numbers = #tpu.dot_dimension_numbers<[1], [0], [0], [1], [0, 0, 1, 1], [], []>} : vector<128x128xf32>, vector<128x16xf32>, vector<128x16xf32> -> vector<128x16xf32>
    %c0_69 = arith.constant 0 : index
    %c80_70 = arith.constant 80 : index
    %114 = vector.load %arg7[%c0_69, %c80_70] : memref<128x128xf32, #tpu.memory_space<vmem>>, vector<128x16xf32>
    tpu.vector_store %arg7[%c0_69, %c80_70], %113 {strides = array<i32>} : memref<128x128xf32, #tpu.memory_space<vmem>>, vector<128x16xf32>,
    %c0_71 = arith.constant 0 : index
    %c96 = arith.constant 96 : index
    %115 = vector.load %arg6[%c0_71, %c96] : memref<128x384xf32, #tpu.memory_space<vmem>>, vector<128x16xf32>
    %cst_72 = arith.constant 2.500000e-01 : f32
    %116 = vector.broadcast %cst_72 : f32 to vector<128x16xf32>
    %117 = arith.mulf %115, %116 : vector<128x16xf32>
    %c0_73 = arith.constant 0 : index
    %c224 = arith.constant 224 : index
    %118 = vector.load %arg6[%c0_73, %c224] : memref<128x384xf32, #tpu.memory_space<vmem>>, vector<128x16xf32>
    %c0_74 = arith.constant 0 : index
    %c352 = arith.constant 352 : index
    %119 = vector.load %arg6[%c0_74, %c352] : memref<128x384xf32, #tpu.memory_space<vmem>>, vector<128x16xf32>
    %cst_75 = arith.constant dense<0.000000e+00> : vector<128x128xf32>
    %120 = tpu.matmul %117, %118, %cst_75 {dimension_numbers = #tpu.dot_dimension_numbers<[1], [1], [0], [0], [0, 0, 1, 0], [], []>} : vector<128x16xf32>, vector<128x16xf32>, vector<128x128xf32> -> vector<128x128xf32>
    %cst_76 = arith.constant dense<0xFF800000> : vector<128xf32>
    %121 = vector.multi_reduction <maximumf>, %120, %cst_76 [1] : vector<128x128xf32> to vector<128xf32>
    %122 = vector.shape_cast %121 : vector<128xf32> to vector<128x1xf32>
    %123 = vector.broadcast %122 : vector<128x1xf32> to vector<128x128xf32>
    %124 = arith.subf %120, %123 : vector<128x128xf32>
    %125 = math.exp %124 : vector<128x128xf32>
    %cst_77 = arith.constant dense<0.000000e+00> : vector<128xf32>
    %126 = vector.multi_reduction <add>, %125, %cst_77 [1] : vector<128x128xf32> to vector<128xf32>
    %127 = vector.shape_cast %126 : vector<128xf32> to vector<128x1xf32>
    %128 = tpu.reciprocal %127 : vector<128x1xf32> -> vector<128x1xf32>
    %129 = vector.broadcast %128 : vector<128x1xf32> to vector<128x128xf32>
    %130 = arith.mulf %125, %129 : vector<128x128xf32>
    %cst_78 = arith.constant dense<0.000000e+00> : vector<128x16xf32>
    %131 = tpu.matmul %130, %119, %cst_78 {dimension_numbers = #tpu.dot_dimension_numbers<[1], [0], [0], [1], [0, 0, 1, 1], [], []>} : vector<128x128xf32>, vector<128x16xf32>, vector<128x16xf32> -> vector<128x16xf32>
    %c0_79 = arith.constant 0 : index
    %c96_80 = arith.constant 96 : index
    %132 = vector.load %arg7[%c0_79, %c96_80] : memref<128x128xf32, #tpu.memory_space<vmem>>, vector<128x16xf32>
    tpu.vector_store %arg7[%c0_79, %c96_80], %131 {strides = array<i32>} : memref<128x128xf32, #tpu.memory_space<vmem>>, vector<128x16xf32>,
    %c0_81 = arith.constant 0 : index
    %c112 = arith.constant 112 : index
    %133 = vector.load %arg6[%c0_81, %c112] : memref<128x384xf32, #tpu.memory_space<vmem>>, vector<128x16xf32>
    %cst_82 = arith.constant 2.500000e-01 : f32
    %134 = vector.broadcast %cst_82 : f32 to vector<128x16xf32>
    %135 = arith.mulf %133, %134 : vector<128x16xf32>
    %c0_83 = arith.constant 0 : index
    %c240 = arith.constant 240 : index
    %136 = vector.load %arg6[%c0_83, %c240] : memref<128x384xf32, #tpu.memory_space<vmem>>, vector<128x16xf32>
    %c0_84 = arith.constant 0 : index
    %c368 = arith.constant 368 : index
    %137 = vector.load %arg6[%c0_84, %c368] : memref<128x384xf32, #tpu.memory_space<vmem>>, vector<128x16xf32>
    %cst_85 = arith.constant dense<0.000000e+00> : vector<128x128xf32>
    %138 = tpu.matmul %135, %136, %cst_85 {dimension_numbers = #tpu.dot_dimension_numbers<[1], [1], [0], [0], [0, 0, 1, 0], [], []>} : vector<128x16xf32>, vector<128x16xf32>, vector<128x128xf32> -> vector<128x128xf32>
    %cst_86 = arith.constant dense<0xFF800000> : vector<128xf32>
    %139 = vector.multi_reduction <maximumf>, %138, %cst_86 [1] : vector<128x128xf32> to vector<128xf32>
    %140 = vector.shape_cast %139 : vector<128xf32> to vector<128x1xf32>
    %141 = vector.broadcast %140 : vector<128x1xf32> to vector<128x128xf32>
    %142 = arith.subf %138, %141 : vector<128x128xf32>
    %143 = math.exp %142 : vector<128x128xf32>
    %cst_87 = arith.constant dense<0.000000e+00> : vector<128xf32>
    %144 = vector.multi_reduction <add>, %143, %cst_87 [1] : vector<128x128xf32> to vector<128xf32>
    %145 = vector.shape_cast %144 : vector<128xf32> to vector<128x1xf32>
    %146 = tpu.reciprocal %145 : vector<128x1xf32> -> vector<128x1xf32>
    %147 = vector.broadcast %146 : vector<128x1xf32> to vector<128x128xf32>
    %148 = arith.mulf %143, %147 : vector<128x128xf32>
    %cst_88 = arith.constant dense<0.000000e+00> : vector<128x16xf32>
    %149 = tpu.matmul %148, %137, %cst_88 {dimension_numbers = #tpu.dot_dimension_numbers<[1], [0], [0], [1], [0, 0, 1, 1], [], []>} : vector<128x128xf32>, vector<128x16xf32>, vector<128x16xf32> -> vector<128x16xf32>
    %c0_89 = arith.constant 0 : index
    %c112_90 = arith.constant 112 : index
    %150 = vector.load %arg7[%c0_89, %c112_90] : memref<128x128xf32, #tpu.memory_space<vmem>>, vector<128x16xf32>
    tpu.vector_store %arg7[%c0_89, %c112_90], %149 {strides = array<i32>} : memref<128x128xf32, #tpu.memory_space<vmem>>, vector<128x16xf32>,
    %c0_91 = arith.constant 0 : index
    %c0_92 = arith.constant 0 : index
    %151 = vector.load %arg7[%c0_91, %c0_92] : memref<128x128xf32, #tpu.memory_space<vmem>>, vector<128x128xf32>
    %cst_93 = arith.constant dense<0.000000e+00> : vector<128x128xf32>
    %152 = tpu.matmul %151, %3, %cst_93 {dimension_numbers = #tpu.dot_dimension_numbers<[1], [0], [0], [1], [0, 0, 1, 1], [], []>} : vector<128x128xf32>, vector<128x128xf32>, vector<128x128xf32> -> vector<128x128xf32>
    %153 = vector.broadcast %4 : vector<1x128xf32> to vector<128x128xf32>
    %154 = arith.addf %152, %153 : vector<128x128xf32>
    %c0_94 = arith.constant 0 : index
    %c0_95 = arith.constant 0 : index
    %c0_96 = arith.constant 0 : index
    %155 = vector.load %arg5[%c0_94, %c0_95, %c0_96] : memref<1x128x128xf32, #tpu.memory_space<vmem>>, vector<1x128x128xf32>
    %156 = vector.shape_cast %155 : vector<1x128x128xf32> to vector<128x128xf32>
    %157 = vector.shape_cast %154 : vector<128x128xf32> to vector<1x128x128xf32>
    tpu.vector_store %arg5[%c0_94, %c0_95, %c0_96], %157 {strides = array<i32>} : memref<1x128x128xf32, #tpu.memory_space<vmem>>, vector<1x128x128xf32>,
    return
  }
  func.func @transform_0(%arg0: i32) -> (i32, i32, i32) {
    %c0_i32 = arith.constant 0 : i32
    %c0_i32_0 = arith.constant 0 : i32
    %c0_i32_1 = arith.constant 0 : i32
    return %arg0, %c0_i32, %c0_i32_0 : i32, i32, i32
  }
  func.func @transform_1(%arg0: i32) -> (i32, i32) {
    %c0_i32 = arith.constant 0 : i32
    %c0_i32_0 = arith.constant 0 : i32
    %c0_i32_1 = arith.constant 0 : i32
    return %c0_i32, %c0_i32_0 : i32, i32
  }
  func.func @transform_2(%arg0: i32) -> (i32, i32) {
    %c0_i32 = arith.constant 0 : i32
    %c0_i32_0 = arith.constant 0 : i32
    %c0_i32_1 = arith.constant 0 : i32
    return %c0_i32, %c0_i32_0 : i32, i32
  }
  func.func @transform_3(%arg0: i32) -> (i32, i32) {
    %c0_i32 = arith.constant 0 : i32
    %c0_i32_0 = arith.constant 0 : i32
    %c0_i32_1 = arith.constant 0 : i32
    return %c0_i32, %c0_i32_0 : i32, i32
  }
  func.func @transform_4(%arg0: i32) -> (i32, i32, i32) {
    %c0_i32 = arith.constant 0 : i32
    %c0_i32_0 = arith.constant 0 : i32
    %c0_i32_1 = arith.constant 0 : i32
    return %arg0, %c0_i32, %c0_i32_0 : i32, i32, i32
  }
}

</mosaic_0001>

<bundles_post_ra>
// kernel: tpu_custom_call.1
= control target key start
LH: loop header
LB: loop body
LE: loop exit
PB: predicated region body
PF: predicated region fallthrough
CT: control target
= control target key end

     0   :  { %9 = vsyncpa [#allocation5], 0  ;;  %s13925_s0 = inlined_call_operand.hbm [shape: f32[2,128,128], index: 0, kind: input, shape index: {}]   ;;  %s13926_s1 = inlined_call_operand.hbm [shape: f32[128,384], index: 1, kind: input, shape index: {}]   ;;  %s13927_s2 = inlined_call_operand.hbm [shape: f32[128,128], index: 2, kind: input, shape index: {}]   ;;  %s13928_s3 = inlined_call_operand.vmem [shape: f32[1,128], index: 3, kind: input, shape index: {}]   ;;  %s13929_s4 = inlined_call_operand.hbm [shape: f32[2,128,128], index: 4, kind: output, shape index: {}]  }
   0x1   :  { %11 = vsyncpa [#allocation5 + $0x1], 0 }
   0x2   :  { %12 = vsyncpa [#allocation8], 0 }
   0x3   :  { %13 = vsyncpa [#allocation6], 0 }
   0x4   :  { %15 = vsyncpa [#allocation6 + $0x1], 0  ;;  %s11168_s15 = smov 0   ;;  %s11170_s16 = smov 0  }
   0x5   :  { %s11172_s17 = smov 0   ;;  %s11174_s18 = smov 0  }
   0x6 LB: > { %s11189_s19 = sadd.s32 4294967295, %s11123_s18   ;;  %s7201_s20 = sadd.s32 4294967294, %s11123_s18   ;;  %s11123_s18 = sphi %s11174_s18, %s14216_s18   ;;  %s11119_s17 = sphi %s11172_s17, %s14215_s17   ;;  %s11115_s16 = sphi %s11170_s16, %s14214_s16   ;;  %s11111_s15 = sphi %s11168_s15, %s14213_s15  }
   0x7   : > { %p41_p0 = scmp.ne.s32.totalorder %s11115_s16, %s11111_s15  ;;  %p13930_p1 = scmp.eq.s32.totalorder %s11189_s19, 0 }
   0x8   : > { %p134_p3 = scmp.eq.s32.totalorder %s7201_s20, 1  ;;  %p7202_p5 = scmp.ge.s32.totalorder %s11123_s18, 1 }
   0x9   : > { %p11198_p4 = por %p13930_p1, %p41_p0  ;;  %p141_p7 = scmp.lt.s32.totalorder %s11123_s18, 3 }
   0xa   : > { %p11203_p6 = por %p134_p3, %p41_p0  ;;  %s11125_s24 = smov [#allocation7]  }
   0xb   : > { %s13968_s21 = scalar_select %p11198_p4, 1, 0 }
   0xc   : > { %s13969_s22 = scalar_select %p11203_p6, 1, 0 }
   0xd   : > { %p11208_p8 = pnand %p7202_p5, %p141_p7  ;;  %s153_s25 = sshll.u32 %s11125_s24, 4  ;;  %s11212_s25 = int_to_ptr.vmem [resolvable:$true] %s153_s25 }
   0xe   : > { %s11126_s27 = smov [#allocation9]   ;;  %s10967_s5 = scalar_lea.hbm %s13926_s1, 6144 }
   0xf   : > { %p9826_p9 = pneg %p11208_p8  ;;  %s166_s28 = sshll.u32 %s11126_s27, 4  ;;  %s11223_s28 = int_to_ptr.vmem [resolvable:$true] %s166_s28 }
  0x10   : > { %p10968_p12 = scmp.ne.s32.totalorder %s13926_s1, %s10967_s5  ;;  %p10974_p5 = scmp.lt.u32.totalorder %s10967_s5, %s13926_s1 }
  0x11   : > { %p11219_p11 = pnand %p9826_p9, %p13930_p1 }
  0x13   : > { %p10969_p13 = pneg %p11219_p11 }
  0x15   : > { %p10970_p0 = pnand %p10969_p13, %p10968_p12 }
  0x17   : > { %p10971_p3 = pneg %p10970_p0 }
  0x19   : > { %p10976_p7 = pnand %p10974_p5, %p10971_p3 }
  0x1b   : > { %10979 = shalt.err (!%p10976_p7)
}
  0x1c   : > { %s10980_s10 = scalar_lea.vmem %s11212_s25, 6144  ;;  %p10988_p2 = scmp.lt.s32.totalorder %s11212_s25, %s11212_s25 }
  0x1d   : > { %p10981_p9 = scmp.ne.s32.totalorder %s11212_s25, %s10980_s10  ;;  %p10989_p12 = scmp.lt.s32.totalorder %s10980_s10, %s10980_s10 }
  0x1f   : > { %p10983_p10 = pnand %p10981_p9, %p10969_p13  ;;  %p10990_p0 = por %p10989_p12, %p10988_p2 }
  0x21   : > { %p10984_p1 = pneg %p10983_p10 }
  0x23   : > { %p10991_p6 = pnand %p10990_p0, %p10984_p1 }
  0x25   : > { %10994 = shalt.err (!%p10991_p6)
}
  0x26   : > { %s11127_s11 = smov 384   ;;  %s11128_s12 = smov 24  }
  0x27   : > { %9829 = dma.hbm_to_vmem [thread:$0]  (!%p11219_p11), %s13926_s1, 6144, %s11212_s25, [#allocation8], %s11127_s11, %s11127_s11, %s11128_s12  }
  0x28   : > { %s10995_s27 = scalar_lea.hbm %s13927_s2, 2048 }
  0x29   : > { %p10996_p2 = scmp.ne.s32.totalorder %s13927_s2, %s10995_s27  ;;  %p11002_p10 = scmp.lt.u32.totalorder %s10995_s27, %s13927_s2 }
  0x2b   : > { %p10998_p1 = pnand %p10996_p2, %p10969_p13 }
  0x2d   : > { %p10999_p6 = pneg %p10998_p1 }
  0x2f   : > { %p11004_p3 = pnand %p11002_p10, %p10999_p6 }
  0x31   : > { %11007 = shalt.err (!%p11004_p3)
}
  0x32   : > { %s11008_s25 = scalar_lea.vmem %s11223_s28, 2048  ;;  %p11016_p12 = scmp.lt.s32.totalorder %s11223_s28, %s11223_s28 }
  0x33   : > { %p11009_p5 = scmp.ne.s32.totalorder %s11223_s28, %s11008_s25  ;;  %p11017_p0 = scmp.lt.s32.totalorder %s11008_s25, %s11008_s25 }
  0x35   : > { %p11011_p7 = pnand %p11009_p5, %p10969_p13  ;;  %p11018_p2 = por %p11017_p0, %p11016_p12 }
  0x37   : > { %p11012_p9 = pneg %p11011_p7 }
  0x39   : > { %p11019_p1 = pnand %p11018_p2, %p11012_p9 }
  0x3b   : > { %11022 = shalt.err (!%p11019_p1)
}
  0x3c   : > { %s11129_s7 = smov 128   ;;  %s11130_s8 = smov 8  }
  0x3d   : > { %9832 = dma.hbm_to_vmem [thread:$0]  (!%p11219_p11), %s13927_s2, 2048, %s11223_s28, [#allocation8], %s11129_s7, %s11129_s7, %s11130_s8  }
  0x3e   : > { %s11281_s11 = sadd.s32 1, %s11123_s18   ;;  %s28_s13 = sadd.s32 1, %s11119_s17 }
  0x3f   : > { %s25_s12 = ssub.s32 %s11123_s18, %s11281_s11  ;;  %p35_p6 = scmp.ne.s32.totalorder %s11119_s17, %s11115_s16 }
  0x40   : > { %p26_p13 = scmp.eq.s32.totalorder %s25_s12, 0  ;;  %p36_p10 = scmp.eq.s32.totalorder %s11123_s18, 0 }
  0x41   : > { %p13972_p5 = scmp.eq.s32.totalorder %s11189_s19, 1  ;;  %p9843_p9 = scmp.lt.s32.totalorder %s11123_s18, 2 }
  0x42   : > { %s11290_s14 = scalar_select %p26_p13, %s11119_s17, %s28_s13  }
  0x43   : > { %p37_p3 = por %p36_p10, %p35_p6  ;;  %p11294_p7 = por %p13972_p5, %p35_p6 }
  0x44   : > { %s183_s20 = sand.u32 1, %s11119_s17   ;;  %s7476_s28 = sshll.u32 %s11123_s18, 11 }
  0x45   : > { %s13973_s26 = scalar_select %p11294_p7, 1, 0 }
  0x46   : > { %s7206_s24 = sshll.u32 %s183_s20, 7  ;;  %s11304_s30 = scalar_lea.hbm %s13925_s0, %s7476_s28 }
  0x47   : > { %s187_s5 = scalar_lea.vmem [#allocation4], %s7206_s24  ;;  %p11308_p11 = pnand %p9843_p9, %p37_p3 }
  0x48   : > { %s194_s6 = sshll.u32 %s187_s5, 4  ;;  %s11312_s9 = scalar_lea.sflag [#allocation5], %s183_s20  ;;  %s11306_s6 = int_to_ptr.vmem [resolvable:$true] %s194_s6 }
  0x49   : > { %s11023_s10 = scalar_lea.hbm %s11304_s30, 2048  ;;  %p11025_p0 = pneg %p11308_p11 }
  0x4a   : > { %p11024_p12 = scmp.ne.s32.totalorder %s11304_s30, %s11023_s10  ;;  %s11028_s24 = scalar_lea.hbm %s13925_s0, 4096 }
  0x4b   : > { %p11029_p13 = scmp.lt.u32.totalorder %s11304_s30, %s13925_s0  ;;  %p11030_p6 = scmp.lt.u32.totalorder %s11028_s24, %s11023_s10 }
  0x4c   : > { %p11026_p2 = pnand %p11025_p0, %p11024_p12  ;;  %p11032_p3 = scmp.lt.u32.totalorder %s11023_s10, %s11304_s30 }
  0x4d   : > { %p11031_p10 = por %p11030_p6, %p11029_p13 }
  0x4e   : > { %p11027_p1 = pneg %p11026_p2 }
  0x4f   : > { %p11033_p5 = por %p11032_p3, %p11031_p10 }
  0x51   : > { %p11034_p9 = pnand %p11033_p5, %p11027_p1 }
  0x53   : > { %11037 = shalt.err (!%p11034_p9)
}
  0x54   : > { %s11038_s20 = scalar_lea.vmem %s11306_s6, 2048  ;;  %s11131_s29 = smov [#allocation4]  }
  0x55   : > { %p11039_p12 = scmp.ne.s32.totalorder %s11306_s6, %s11038_s20  ;;  %s11043_s5 = sshll.u32 %s11131_s29, 4  ;;  %s11044_s5 = int_to_ptr.vmem [resolvable:$false] %s11043_s5 }
  0x56   : > { %s11045_s12 = scalar_lea.vmem %s11044_s5, 4096  ;;  %p11046_p4 = scmp.lt.s32.totalorder %s11306_s6, %s11044_s5 }
  0x57   : > { %p11041_p2 = pnand %p11039_p12, %p11025_p0  ;;  %p11047_p13 = scmp.lt.s32.totalorder %s11045_s12, %s11038_s20 }
  0x59   : > { %p11042_p7 = pneg %p11041_p2  ;;  %p11048_p6 = por %p11047_p13, %p11046_p4 }
  0x5b   : > { %p11049_p10 = pnand %p11048_p6, %p11042_p7 }
  0x5d   : > { %11052 = shalt.err (!%p11049_p10)
}
  0x5e   : > { %9836 = dma.hbm_to_vmem [thread:$0]  (!%p11308_p11), %s11304_s30, 2048, %s11306_s6, %s11312_s9, %s11129_s7, %s11129_s7, %s11130_s8  }
  0x5f   : > { %206 = sbr.rel (%p11208_p8) target bundleno = 5887 (0x16ff), region = 36 }
  0x66   : > { %s11346_s10 = sand.u32 1, %s11115_s16   ;;  %p13975_p4 = scmp.ne.s32.totalorder %s13968_s21, 0 }
  0x67   : > { %s7210_s13 = sshll.u32 %s11346_s10, 7  ;;  %s209_s24 = scalar_lea.sflag [#allocation5], %s11346_s10 }
  0x68   : > { %s11352_s25 = scalar_lea.vmem [#allocation4], %s7210_s13 }
  0x69   : > { %11098 = dma.done.wait (%p13975_p4), %s209_s24, 2048  }
  0x6a   : > { %11100 = vsyncadd (%p13975_p4), %s209_s24, 4294965248  ;;  %p13976_p7 = scmp.eq.s32.totalorder %s11189_s19, 0 }
  0x6c   : > { %11102 = dma.done.wait (%p13976_p7), [#allocation8], 8192   ;;  %p13977_p8 = pmov %p13976_p7 }
  0x6d   : > { %v11132_v0 = vmov 0.0   ;;  %v262_v1 = vld [vmem:[#allocation7 + $0x8] sm:$0xff]  ;;  %v265_v2 = vld [vmem:[#allocation7 + $0x20] sm:$0xff]  ;;  %v264_v5 = vld [vmem:[#allocation7 + $0x18] sm:$0xff]  ;;  %vm744_vm0 = vcmask 130048   ;;  %s11133_s21 = smov 112  }
  0x6e   : > { %11104 = vsyncadd (%p13977_p8), [#allocation8], 4294959104  ;;  %390 = vmatprep.mubr.f32.mxu0 %v11132_v0  ;;  %v261_v3 = vld [vmem:[#allocation7] sm:$0xff]  ;;  %v9062_v4 = vpack.c.bf16 %v265_v2, %v262_v1  ;;  %v268_v6 = vld [vmem:[#allocation7 + $0x38] sm:$0xff]  ;;  %s11134_s23 = smov 96   ;;  %s11135_s7 = smov 80  }
  0x6f   : > { %v271_v7 = vld [vmem:[#allocation7 + $0x50] sm:$0xff]  ;;  %v9064_v8 = vpack.c.bf16 %v264_v5, %v261_v3  ;;  %v270_v11 = vld [vmem:[#allocation7 + $0x48] sm:$0xff]  ;;  %v277_v13 = vld [vmem:[#allocation7 + $0x80] sm:$0xff]  ;;  %s11136_s8 = smov 64   ;;  %s11137_s30 = smov 48   ;;  %vm2077_vm2 = vcmask 261248  }
  0x70   : > { %v9066_v9 = vpack.c.bf16 %v271_v7, %v268_v6  ;;  %v267_v10 = vld [vmem:[#allocation7 + $0x30] sm:$0xff]  ;;  %v274_v12 = vld [vmem:[#allocation7 + $0x68] sm:$0xff]  ;;  %9063 = vmatprep.subr.bf16.mxu0 %v9062_v4  ;;  %v273_v16 = vld [vmem:[#allocation7 + $0x60] sm:$0xff]  ;;  %s11138_s6 = smov 32   ;;  %s11139_s9 = smov 16   ;;  %vm2880_vm3 = vcmask 392448  }
  0x71   : > { %9065 = vmatpush1.bf16.msra.mxu0 %v9064_v8  ;;  %v9068_v14 = vpack.c.bf16 %v270_v11, %v267_v10  ;;  %v9070_v15 = vpack.c.bf16 %v277_v13, %v274_v12  ;;  %v276_v17 = vld [vmem:[#allocation7 + $0x78] sm:$0xff]  ;;  %v283_v19 = vld [vmem:[#allocation7 + $0xb0] sm:$0xff]  ;;  %v282_v23 = vld [vmem:[#allocation7 + $0xa8] sm:$0xff]  ;;  %vm3683_vm4 = vcmask 523648   ;;  %vm4486_vm5 = vcmask 654848   ;;  %s13856_s20 = scalar_lea.vmem [#allocation10], %s7210_s13 }
  0x72   : > { %9067 = vmatprep.subr.bf16.mxu0 %v9066_v9  ;;  %v280_v18 = vld [vmem:[#allocation7 + $0x98] sm:$0xff]  ;;  %v9072_v20 = vpack.c.bf16 %v276_v17, %v273_v16  ;;  %v279_v22 = vld [vmem:[#allocation7 + $0x90] sm:$0xff]  ;;  %v286_v24 = vld [vmem:[#allocation7 + $0xc8] sm:$0xff]  ;;  %vm5289_vm6 = vcmask 786048   ;;  %vm6092_vm7 = vcmask 917248   ;;  %vm6895_vm8 = vcmask 1048448  }
  0x73   : > { %v9074_v21 = vpack.c.bf16 %v283_v19, %v280_v18  ;;  %v289_v25 = vld [vmem:[#allocation7 + $0xe0] sm:$0xff]  ;;  %v9076_v27 = vpack.c.bf16 %v282_v23, %v279_v22  ;;  %v288_v30 = vld [vmem:[#allocation7 + $0xd8] sm:$0xff]  ;;  %v295_v32 = vld [vmem:[#allocation7 + $0x110] sm:$0xff]  ;;  %s7477_s29 = sshll.u32 %s11189_s19, 11  ;;  %s7109_s5 = sshll.u32 %s13856_s20, 4  ;;  %s13879_s5 = int_to_ptr.vmem [resolvable:$true] %s7109_s5 }
  0x74   : > { %v11364_v26 = vld [vmem:[%s11352_s25] sm:$0xff]  ;;  %v9078_v28 = vpack.c.bf16 %v289_v25, %v286_v24  ;;  %v292_v31 = vld [vmem:[#allocation7 + $0xf8] sm:$0xff]  ;;  %v291_v33 = vld [vmem:[#allocation7 + $0xf0] sm:$0xff]  ;;  %s13877_s24 = scalar_lea.hbm %s13929_s4, %s7477_s29  ;;  %p14210_p0 = scmp.ne.s32.totalorder %s13973_s26, 0 }
  0x75   : > { %9069 = vmatpush1.bf16.msra.mxu0 %v9068_v14  ;;  %8086 = vmatprep.mubr.f32.mxu1 %v11364_v26  ;;  %v285_v29 = vld [vmem:[#allocation7 + $0xc0] sm:$0xff]  ;;  %v263_v35 = vld [vmem:[#allocation7 + $0x10] sm:$0xff]  ;;  %v266_v36 = vld [vmem:[#allocation7 + $0x28] sm:$0xff]  ;;  %v9082_v38 = vpack.c.bf16 %v295_v32, %v292_v31  ;;  %v13978_v31 = vmov 0  ;;  %s11140_s19 = smov [#allocation10]  }
  0x76   : > { %9071 = vmatprep.subr.bf16.mxu0 %v9070_v15  ;;  %v9080_v34 = vpack.c.bf16 %v288_v30, %v285_v29  ;;  %v269_v37 = vld [vmem:[#allocation7 + $0x40] sm:$0xff]  ;;  %v294_v39 = vld [vmem:[#allocation7 + $0x108] sm:$0xff]  ;;  %v9094_v41 = vpack.c.bf16 %v266_v36, %v263_v35  ;;  %v272_v42 = vld [vmem:[#allocation7 + $0x58] sm:$0xff] }
  0x77   : > { %v298_v40 = vld [vmem:[#allocation7 + $0x128] sm:$0xff]  ;;  %v301_v43 = vld [vmem:[#allocation7 + $0x140] sm:$0xff]  ;;  %v9098_v44 = vpack.c.bf16 %v272_v42, %v269_v37  ;;  %v275_v45 = vld [vmem:[#allocation7 + $0x70] sm:$0xff]  ;;  %v9084_v47 = vpack.c.bf16 %v294_v39, %v291_v33 }
  0x78   : > { %v278_v46 = vld [vmem:[#allocation7 + $0x88] sm:$0xff]  ;;  %9095 = vmatprep.subr.bf16.mxu1 %v9094_v41  ;;  %v9086_v48 = vpack.c.bf16 %v301_v43, %v298_v40  ;;  %v297_v49 = vld [vmem:[#allocation7 + $0x120] sm:$0xff]  ;;  %v300_v50 = vld [vmem:[#allocation7 + $0x138] sm:$0xff] }
  0x79   : > { %9073 = vmatpush1.bf16.msra.mxu0 %v9072_v20  ;;  %9097 = vmatpush3.bf16.msra.mxu1 %v9094_v41  ;;  %v304_v51 = vld [vmem:[#allocation7 + $0x158] sm:$0xff]  ;;  %v9102_v52 = vpack.c.bf16 %v278_v46, %v275_v45  ;;  %v307_v53 = vld [vmem:[#allocation7 + $0x170] sm:$0xff]  ;;  %v281_v54 = vld [vmem:[#allocation7 + $0xa0] sm:$0xff]  ;;  %v9088_v56 = vpack.c.bf16 %v300_v50, %v297_v49 }
  0x7a   : > { %9075 = vmatprep.subr.bf16.mxu0 %v9074_v21  ;;  %9099 = vmatprep.subr.bf16.mxu1 %v9098_v44  ;;  %v284_v55 = vld [vmem:[#allocation7 + $0xb8] sm:$0xff]  ;;  %v9090_v57 = vpack.c.bf16 %v307_v53, %v304_v51  ;;  %v303_v58 = vld [vmem:[#allocation7 + $0x150] sm:$0xff]  ;;  %v306_v59 = vld [vmem:[#allocation7 + $0x168] sm:$0xff] }
  0x7b   : > { %v9106_v60 = vpack.c.bf16 %v284_v55, %v281_v54  ;;  %v287_v61 = vld [vmem:[#allocation7 + $0xd0] sm:$0xff]  ;;  %v290_v62 = vld [vmem:[#allocation7 + $0xe8] sm:$0xff]  ;;  %v9092_v63 = vpack.c.bf16 %v306_v59, %v303_v58  ;;  %v293_v2 = vld [vmem:[#allocation7 + $0x100] sm:$0xff] }
  0x7c   : > { %v9110_v1 = vpack.c.bf16 %v290_v62, %v287_v61  ;;  %v296_v3 = vld [vmem:[#allocation7 + $0x118] sm:$0xff]  ;;  %v299_v5 = vld [vmem:[#allocation7 + $0x130] sm:$0xff]  ;;  %v302_v6 = vld [vmem:[#allocation7 + $0x148] sm:$0xff] }
  0x7d   : > { %9077 = vmatpush1.bf16.msra.mxu0 %v9076_v27  ;;  %9101 = vmatpush3.bf16.msra.mxu1 %v9098_v44  ;;  %v9114_v4 = vpack.c.bf16 %v296_v3, %v293_v2  ;;  %v246_v7 = vld [vmem:[%s11352_s25 + $0x8] sm:$0xff]  ;;  %v9118_v8 = vpack.c.bf16 %v302_v6, %v299_v5  ;;  %v305_v9 = vld [vmem:[#allocation7 + $0x160] sm:$0xff]  ;;  %v308_v10 = vld [vmem:[#allocation7 + $0x178] sm:$0xff] }
  0x7e   : > { %9079 = vmatprep.subr.bf16.mxu0 %v9078_v28  ;;  %9103 = vmatprep.subr.bf16.mxu1 %v9102_v52  ;;  %v247_v11 = vld [vmem:[%s11352_s25 + $0x10] sm:$0xff]  ;;  %v9122_v12 = vpack.c.bf16 %v308_v10, %v305_v9  ;;  %v248_v13 = vld [vmem:[%s11352_s25 + $0x18] sm:$0xff]  ;;  %v249_v14 = vld [vmem:[%s11352_s25 + $0x20] sm:$0xff] }
  0x7f   : > { %v250_v15 = vld [vmem:[%s11352_s25 + $0x28] sm:$0xff]  ;;  %v251_v16 = vld [vmem:[%s11352_s25 + $0x30] sm:$0xff]  ;;  %v252_v17 = vld [vmem:[%s11352_s25 + $0x38] sm:$0xff] }
  0x80   : > { %v253_v18 = vld [vmem:[%s11352_s25 + $0x40] sm:$0xff]  ;;  %v254_v19 = vld [vmem:[%s11352_s25 + $0x48] sm:$0xff]  ;;  %v255_v20 = vld [vmem:[%s11352_s25 + $0x50] sm:$0xff] }
  0x81   : > { %9081 = vmatpush1.bf16.msra.mxu0 %v9080_v34  ;;  %9105 = vmatpush3.bf16.msra.mxu1 %v9102_v52  ;;  %v256_v21 = vld [vmem:[%s11352_s25 + $0x58] sm:$0xff]  ;;  %v257_v22 = vld [vmem:[%s11352_s25 + $0x60] sm:$0xff]  ;;  %v258_v23 = vld [vmem:[%s11352_s25 + $0x68] sm:$0xff] }
  0x82   : > { %9083 = vmatprep.subr.bf16.mxu0 %v9082_v38  ;;  %9107 = vmatprep.subr.bf16.mxu1 %v9106_v60  ;;  %v259_v24 = vld [vmem:[%s11352_s25 + $0x70] sm:$0xff]  ;;  %v260_v25 = vld [vmem:[%s11352_s25 + $0x78] sm:$0xff]  ;;  %vm11406_vm1 = vmpackc.low %vm744_vm0, %vm744_vm0  ;;  %s7096_s25 = scalar_lea.sflag [#allocation6], %s11346_s10 }
  0x83   : > { %v13979_v31 = vsel %vm11406_vm1, 4294967295, %v13978_v31 }
  0x84   : > { %13980 = vst [vmem:[#allocation14_spill] sm:$0xff] %v13979_v31 }
  0x85   : > { %9085 = vmatpush1.bf16.msra.mxu0 %v9084_v47  ;;  %9109 = vmatpush3.bf16.msra.mxu1 %v9106_v60 }
  0x86   : > { %9087 = vmatprep.subr.bf16.mxu0 %v9086_v48  ;;  %9111 = vmatprep.subr.bf16.mxu1 %v9110_v1 }
  0x89   : > { %9089 = vmatpush1.bf16.msra.mxu0 %v9088_v56  ;;  %9113 = vmatpush3.bf16.msra.mxu1 %v9110_v1 }
  0x8a   : > { %9091 = vmatprep.subr.bf16.mxu0 %v9090_v57  ;;  %9115 = vmatprep.subr.bf16.mxu1 %v9114_v4 }
  0x8d   : > { %9093 = vmatpush1.bf16.msra.mxu0 %v9092_v63  ;;  %9117 = vmatpush3.bf16.msra.mxu1 %v9114_v4 }
  0x8e   : > { %9119 = vmatprep.subr.bf16.mxu1 %v9118_v8 }
  0x90   : > { %391 = vmatmul.mubr.f32.vlgmr.msra.gmra.mrb[0].mxu0 %v11364_v26 }
  0x91   : > { %396 = vmatprep.mubr.f32.mxu0 %v11132_v0  ;;  %9121 = vmatpush3.bf16.msra.mxu1 %v9118_v8 }
  0x92   : > { %9123 = vmatprep.subr.bf16.mxu1 %v9122_v12 }
  0x94   : > { %397 = vmatmul.mubr.f32.gmra.mrb[2].mxu0 %v246_v7 }
  0x95   : > { %402 = vmatprep.mubr.f32.mxu0 %v11132_v0  ;;  %9125 = vmatpush3.bf16.msra.mxu1 %v9122_v12 }
  0x98   : > { %403 = vmatmul.mubr.f32.gmra.mrb[4].mxu0 %v247_v11  ;;  %8087 = vmatmul.mubr.f32.vlgmr.msra.gmra.mrb[0].mxu1 %v246_v7 }
  0x99   : > { %408 = vmatprep.mubr.f32.mxu0 %v11132_v0  ;;  %8089 = vmatprep.mubr.f32.mxu1 %v247_v11 }
  0x9c   : > { %409 = vmatmul.mubr.f32.gmra.mrb[6].mxu0 %v248_v13  ;;  %8090 = vmatmul.mubr.f32.gmra.mrb[2].mxu1 %v248_v13 }
  0x9d   : > { %414 = vmatprep.mubr.f32.mxu0 %v11132_v0  ;;  %8092 = vmatprep.mubr.f32.mxu1 %v249_v14 }
  0xa0   : > { %415 = vmatmul.mubr.f32.gmra.mrb[8].mxu0 %v249_v14  ;;  %8093 = vmatmul.mubr.f32.gmra.mrb[4].mxu1 %v250_v15 }
  0xa1   : > { %420 = vmatprep.mubr.f32.mxu0 %v11132_v0  ;;  %8095 = vmatprep.mubr.f32.mxu1 %v251_v16 }
  0xa4   : > { %421 = vmatmul.mubr.f32.gmra.mrb[10].mxu0 %v250_v15  ;;  %8096 = vmatmul.mubr.f32.gmra.mrb[6].mxu1 %v252_v17 }
  0xa5   : > { %426 = vmatprep.mubr.f32.mxu0 %v11132_v0  ;;  %8098 = vmatprep.mubr.f32.mxu1 %v253_v18 }
  0xa8   : > { %427 = vmatmul.mubr.f32.gmra.mrb[12].mxu0 %v251_v16  ;;  %8099 = vmatmul.mubr.f32.gmra.mrb[8].mxu1 %v254_v19 }
  0xa9   : > { %432 = vmatprep.mubr.f32.mxu0 %v11132_v0  ;;  %8101 = vmatprep.mubr.f32.mxu1 %v255_v20 }
  0xac   : > { %433 = vmatmul.mubr.f32.gmra.mrb[14].mxu0 %v252_v17  ;;  %8102 = vmatmul.mubr.f32.gmra.mrb[10].mxu1 %v256_v21 }
  0xad   : > { %438 = vmatprep.mubr.f32.mxu0 %v11132_v0  ;;  %8104 = vmatprep.mubr.f32.mxu1 %v257_v22 }
  0xb0   : > { %439 = vmatmul.mubr.f32.gmra.mrb[16].mxu0 %v253_v18  ;;  %8105 = vmatmul.mubr.f32.gmra.mrb[12].mxu1 %v258_v23 }
  0xb1   : > { %444 = vmatprep.mubr.f32.mxu0 %v11132_v0  ;;  %8107 = vmatprep.mubr.f32.mxu1 %v259_v24 }
  0xb4   : > { %445 = vmatmul.mubr.f32.gmra.mrb[18].mxu0 %v254_v19  ;;  %8108 = vmatmul.mubr.f32.gmra.mrb[14].mxu1 %v260_v25 }
  0xb5   : > { %450 = vmatprep.mubr.f32.mxu0 %v11132_v0 }
  0xb8   : > { %451 = vmatmul.mubr.f32.gmra.mrb[20].mxu0 %v255_v20 }
  0xb9   : > { %456 = vmatprep.mubr.f32.mxu0 %v11132_v0 }
  0xbc   : > { %457 = vmatmul.mubr.f32.gmra.mrb[22].mxu0 %v256_v21 }
  0xbd   : > { %462 = vmatprep.mubr.f32.mxu0 %v11132_v0 }
  0xc0   : > { %463 = vmatmul.mubr.f32.gmra.mrb[24].mxu0 %v257_v22 }
  0xc1   : > { %468 = vmatprep.mubr.f32.mxu0 %v11132_v0 }
  0xc4   : > { %469 = vmatmul.mubr.f32.gmra.mrb[26].mxu0 %v258_v23 }
  0xc5   : > { %474 = vmatprep.mubr.f32.mxu0 %v11132_v0 }
  0xc8   : > { %475 = vmatmul.mubr.f32.gmra.mrb[28].mxu0 %v259_v24 }
  0xc9   : > { %480 = vmatprep.mubr.f32.mxu0 %v11132_v0 }
  0xcc   : > { %481 = vmatmul.mubr.f32.gmra.mrb[30].mxu0 %v260_v25 }
 0x163   : > { %v392_v26 = vpop.f32.mrb[0].mxu0 }
 0x164   : > { %v11398_v27 = vmul.f32 0.25, %v392_v26  ;;  %v394_v28 = vpop.f32.mrb[1].mxu0 }
 0x166   : > { %8142 = vmatprep.mubr.msk.f32.mxu0 %vm744_vm0, %v11398_v27 }
 0x167   : > { %v11402_v29 = vpop.f32.mrb[2].mxu0 }
 0x168   : > { %v400_v30 = vpop.f32.mrb[3].mxu0 }
 0x169   : > { %v11410_v32 = vpack.i.bf16 %v400_v30, %v394_v28  ;;  %v9126_v0 = vpack.c.bf16 %v400_v30, %v394_v28 }
 0x16b   : > { %9896 = vrot.lane.b32.xlu0 %v11410_v32, %s11133_s21  ;;  %v11414_v33 = vpop.f32.mrb[4].mxu0  ;;  %9128 = vmatprep.subr.msk.bf16.mxu0 %vm11406_vm1, %v9126_v0  ;;  %v11430_v40 = vpop.f32.mrb[0].mxu1 }
 0x16c   : > { %v406_v34 = vpop.f32.mrb[5].mxu0  ;;  %9131 = vmatpush3.bf16.xpose.msk.msra.mxu0 %vm11406_vm1, %v9126_v0  ;;  %v11434_v42 = vpop.f32.mrb[1].mxu1 }
 0x16d   : > { %v9174_v43 = vpack.c.bf16 %v11430_v40, %v11434_v42 }
 0x16f   : > { %v11420_v35 = vpop.f32.mrb[6].mxu0  ;;  %v11440_v45 = vpop.f32.mrb[2].mxu1  ;;  %9175 = vmatprep.subr.bf16.mxu1 %v9174_v43 }
 0x170   : > { %v412_v36 = vpop.f32.mrb[7].mxu0  ;;  %v11442_v47 = vpop.f32.mrb[3].mxu1  ;;  %9177 = vmatpush3.bf16.msra.mxu1 %v9174_v43 }
 0x171   : > { %v11422_v37 = vpack.i.bf16 %v412_v36, %v406_v34  ;;  %v9132_v38 = vpack.c.bf16 %v412_v36, %v406_v34  ;;  %v9178_v50 = vpack.c.bf16 %v11440_v45, %v11442_v47 }
 0x173   : > { %13981 = vst [vmem:[#allocation15_spill] sm:$0xff] %v11422_v37  ;;  %9901 = vrot.lane.b32.xlu1 %v11422_v37, %s11133_s21  ;;  %v11426_v39 = vpop.f32.mrb[8].mxu0  ;;  %9134 = vmatprep.subr.msk.bf16.mxu0 %vm11406_vm1, %v9132_v38  ;;  %v11454_v52 = vpop.f32.mrb[4].mxu1 }
 0x174   : > { %v418_v41 = vpop.f32.mrb[9].mxu0  ;;  %9137 = vmatpush3.bf16.xpose.msk.msra.mxu0 %vm11406_vm1, %v9132_v38  ;;  %9179 = vmatprep.subr.bf16.mxu1 %v9178_v50  ;;  %v11458_v54 = vpop.f32.mrb[5].mxu1 }
 0x175   : > { %9181 = vmatpush3.bf16.msra.mxu1 %v9178_v50  ;;  %v9182_v55 = vpack.c.bf16 %v11454_v52, %v11458_v54  ;;  %v11534_v50 = vmul.f32 0.25, %v11414_v33 }
 0x177   : > { %v11438_v44 = vpop.f32.mrb[10].mxu0  ;;  %v11464_v57 = vpop.f32.mrb[6].mxu1  ;;  %9183 = vmatprep.subr.bf16.mxu1 %v9182_v55 }
 0x178   : > { %v424_v46 = vpop.f32.mrb[11].mxu0  ;;  %v11466_v59 = vpop.f32.mrb[7].mxu1 }
 0x179   : > { %v11444_v48 = vpack.i.bf16 %v424_v46, %v418_v41  ;;  %v9138_v49 = vpack.c.bf16 %v424_v46, %v418_v41  ;;  %9185 = vmatpush3.bf16.msra.mxu1 %v9182_v55  ;;  %v9186_v62 = vpack.c.bf16 %v11464_v57, %v11466_v59  ;;  %v11544_v55 = vmul.f32 0.25, %v11426_v39 }
 0x17b   : > { %9906 = vrot.lane.b32.xlu0 %v11444_v48, %s11133_s21  ;;  %v11450_v51 = vpop.f32.mrb[12].mxu0  ;;  %9140 = vmatprep.subr.msk.bf16.mxu0 %vm11406_vm1, %v9138_v49  ;;  %v11478_v1 = vpop.f32.mrb[8].mxu1 }
 0x17c   : > { %v430_v53 = vpop.f32.mrb[13].mxu0  ;;  %9143 = vmatpush3.bf16.xpose.msk.msra.mxu0 %vm11406_vm1, %v9138_v49  ;;  %9187 = vmatprep.subr.bf16.mxu1 %v9186_v62  ;;  %v11482_v3 = vpop.f32.mrb[9].mxu1  ;;  %v11531_v49 = vmul.f32 0.25, %v11402_v29  ;;  %v11551_v29 = vmul.f32 0.25, %v11438_v44  ;;  %v11554_v33 = vmul.f32 0.25, %v11450_v51 }
 0x17d   : > { %9189 = vmatpush3.bf16.msra.mxu1 %v9186_v62  ;;  %v9190_v4 = vpack.c.bf16 %v11478_v1, %v11482_v3 }
 0x17f   : > { %v11462_v56 = vpop.f32.mrb[14].mxu0  ;;  %v11488_v6 = vpop.f32.mrb[10].mxu1  ;;  %9191 = vmatprep.subr.bf16.mxu1 %v9190_v4 }
 0x180   : > { %v436_v58 = vpop.f32.mrb[15].mxu0  ;;  %v11490_v8 = vpop.f32.mrb[11].mxu1 }
 0x181   : > { %v11468_v60 = vpack.i.bf16 %v436_v58, %v430_v53  ;;  %v9144_v61 = vpack.c.bf16 %v436_v58, %v430_v53  ;;  %9193 = vmatpush3.bf16.msra.mxu1 %v9190_v4  ;;  %v9194_v10 = vpack.c.bf16 %v11488_v6, %v11490_v8  ;;  %v11541_v53 = vmul.f32 0.25, %v11420_v35 }
 0x182   : > { %v11561_v35 = vmul.f32 0.25, %v11462_v56 }
 0x183   : > { %13982 = vst [vmem:[#allocation16_spill] sm:$0xff] %v11468_v60  ;;  %9911 = vrot.lane.b32.xlu1 %v11468_v60, %s11133_s21  ;;  %v11474_v63 = vpop.f32.mrb[16].mxu0  ;;  %9146 = vmatprep.subr.msk.bf16.mxu0 %vm11406_vm1, %v9144_v61  ;;  %v11498_v13 = vpop.f32.mrb[12].mxu1 }
 0x184   : > { %v442_v2 = vpop.f32.mrb[17].mxu0  ;;  %9149 = vmatpush3.bf16.xpose.msk.msra.mxu0 %vm11406_vm1, %v9144_v61  ;;  %9195 = vmatprep.subr.bf16.mxu1 %v9194_v10  ;;  %v11502_v15 = vpop.f32.mrb[13].mxu1  ;;  %v11564_v39 = vmul.f32 0.25, %v11474_v63 }
 0x185   : > { %9197 = vmatpush3.bf16.msra.mxu1 %v9194_v10  ;;  %v9198_v16 = vpack.c.bf16 %v11498_v13, %v11502_v15 }
 0x187   : > { %v11486_v5 = vpop.f32.mrb[18].mxu0  ;;  %v11506_v18 = vpop.f32.mrb[14].mxu1  ;;  %9199 = vmatprep.subr.bf16.mxu1 %v9198_v16 }
 0x188   : > { %v448_v7 = vpop.f32.mrb[19].mxu0  ;;  %v11508_v20 = vpop.f32.mrb[15].mxu1  ;;  %v11571_v44 = vmul.f32 0.25, %v11486_v5 }
 0x189   : > { %v9150_v9 = vpack.c.bf16 %v448_v7, %v442_v2  ;;  %v11494_v11 = vpack.i.bf16 %v448_v7, %v442_v2  ;;  %9201 = vmatpush3.bf16.msra.mxu1 %v9198_v16  ;;  %v9202_v22 = vpack.c.bf16 %v11506_v18, %v11508_v20 }
 0x18b   : > { %13983 = vst [vmem:[#allocation17_spill] sm:$0xff] %v11494_v11  ;;  %v452_v12 = vpop.f32.mrb[20].mxu0  ;;  %9152 = vmatprep.subr.msk.bf16.mxu0 %vm11406_vm1, %v9150_v9  ;;  %9203 = vmatprep.subr.bf16.mxu1 %v9202_v22 }
 0x18c   : > { %v454_v14 = vpop.f32.mrb[21].mxu0  ;;  %9155 = vmatpush3.bf16.xpose.msk.msra.mxu0 %vm11406_vm1, %v9150_v9  ;;  %v11573_v51 = vmul.f32 0.25, %v452_v12 }
 0x18d   : > { %9205 = vmatpush3.bf16.msra.mxu1 %v9202_v22 }
 0x18f   : > { %v458_v17 = vpop.f32.mrb[22].mxu0 }
 0x190   : > { %v460_v19 = vpop.f32.mrb[23].mxu0  ;;  %v11579_v56 = vmul.f32 0.25, %v458_v17 }
 0x191   : > { %v9156_v21 = vpack.c.bf16 %v460_v19, %v454_v14  ;;  %v11512_v23 = vpack.i.bf16 %v460_v19, %v454_v14 }
 0x193   : > { %13984 = vst [vmem:[#allocation18_spill] sm:$0xff] %v11512_v23  ;;  %v464_v24 = vpop.f32.mrb[24].mxu0  ;;  %9158 = vmatprep.subr.msk.bf16.mxu0 %vm11406_vm1, %v9156_v21 }
 0x194   : > { %v466_v25 = vpop.f32.mrb[25].mxu0  ;;  %9161 = vmatpush3.bf16.xpose.msk.msra.mxu0 %vm11406_vm1, %v9156_v21  ;;  %v11581_v58 = vmul.f32 0.25, %v464_v24 }
 0x197   : > { %v470_v26 = vpop.f32.mrb[26].mxu0 }
 0x198   : > { %v472_v28 = vpop.f32.mrb[27].mxu0  ;;  %v11587_v61 = vmul.f32 0.25, %v470_v26 }
 0x199   : > { %v9162_v30 = vpack.c.bf16 %v472_v28, %v466_v25  ;;  %v11518_v0 = vpack.i.bf16 %v472_v28, %v466_v25 }
 0x19b   : > { %13985 = vst [vmem:[#allocation19_spill] sm:$0xff] %v11518_v0  ;;  %v476_v34 = vpop.f32.mrb[28].mxu0  ;;  %9164 = vmatprep.subr.msk.bf16.mxu0 %vm11406_vm1, %v9162_v30 }
 0x19c   : > { %v478_v36 = vpop.f32.mrb[29].mxu0  ;;  %9167 = vmatpush3.bf16.xpose.msk.msra.mxu0 %vm11406_vm1, %v9162_v30  ;;  %v11589_v62 = vmul.f32 0.25, %v476_v34 }
 0x19f   : > { %v482_v38 = vpop.f32.mrb[30].mxu0 }
 0x1a0   : > { %v484_v41 = vpop.f32.mrb[31].mxu0  ;;  %v11595_v63 = vmul.f32 0.25, %v482_v38 }
 0x1a1   : > { %v9168_v43 = vpack.c.bf16 %v484_v41, %v478_v36  ;;  %v11524_v46 = vpack.i.bf16 %v484_v41, %v478_v36 }
 0x1a3   : > { %9170 = vmatprep.subr.msk.bf16.mxu0 %vm11406_vm1, %v9168_v43 }
 0x1a4   : > { %9173 = vmatpush3.bf16.xpose.msk.msra.mxu0 %vm11406_vm1, %v9168_v43 }
 0x1ab   : > { %8143 = vmatmul.mubr.msk.f32.vlgmr.msra.gmra.mrb[32].mxu0 %vm744_vm0, %v11531_v49 }
 0x1ac   : > { %8145 = vmatprep.mubr.msk.f32.mxu0 %vm744_vm0, %v11534_v50 }
 0x1af   : > { %8146 = vmatmul.mubr.msk.f32.gmra.mrb[34].mxu0 %vm744_vm0, %v11541_v53 }
 0x1b0   : > { %8148 = vmatprep.mubr.msk.f32.mxu0 %vm744_vm0, %v11544_v55 }
 0x1b3   : > { %8149 = vmatmul.mubr.msk.f32.gmra.mrb[36].mxu0 %vm744_vm0, %v11551_v29 }
 0x1b4   : > { %8151 = vmatprep.mubr.msk.f32.mxu0 %vm744_vm0, %v11554_v33 }
 0x1b7   : > { %8152 = vmatmul.mubr.msk.f32.gmra.mrb[38].mxu0 %vm744_vm0, %v11561_v35 }
 0x1b8   : > { %8154 = vmatprep.mubr.msk.f32.mxu0 %vm744_vm0, %v11564_v39 }
 0x1bb   : > { %8155 = vmatmul.mubr.msk.f32.gmra.mrb[40].mxu0 %vm744_vm0, %v11571_v44 }
 0x1bc   : > { %8157 = vmatprep.mubr.msk.f32.mxu0 %vm744_vm0, %v11573_v51 }
 0x1bf   : > { %8158 = vmatmul.mubr.msk.f32.gmra.mrb[42].mxu0 %vm744_vm0, %v11579_v56 }
 0x1c0   : > { %8160 = vmatprep.mubr.msk.f32.mxu0 %vm744_vm0, %v11581_v58 }
 0x1c3   : > { %8161 = vmatmul.mubr.msk.f32.gmra.mrb[44].mxu0 %vm744_vm0, %v11587_v61 }
 0x1c4   : > { %8163 = vmatprep.mubr.msk.f32.mxu0 %vm744_vm0, %v11589_v62 }
 0x1c7   : > { %8164 = vmatmul.mubr.msk.f32.gmra.mrb[46].mxu0 %vm744_vm0, %v11595_v63 }
 0x1dd   : > { %v9897_v2 = vpop.permute.xlu0 %9896 }
 0x1de   : > { %v9899_v4 = vunpack.i.h.bf16 %v9897_v2  ;;  %v9898_v5 = vunpack.i.l.bf16 %v9897_v2 }
 0x1e0   : > { %v11599_v7 = vpack.c.bf16 %v9899_v4, %v9898_v5 }
 0x1e2   : > { %13986 = vst [vmem:[#allocation20_spill] sm:$0xff] %v11599_v7  ;;  %9208 = vmatprep.subr.msk.bf16.mxu1 %vm11406_vm1, %v11599_v7  ;;  %v11652_v7 = vpack.i.bf16 %v11430_v40, %v11434_v42  ;;  %v11671_v40 = vpack.i.bf16 %v11454_v52, %v11458_v54  ;;  %v11675_v42 = vpack.i.bf16 %v11478_v1, %v11482_v3 }
 0x1e3   : > { %v11689_v52 = vpack.i.bf16 %v11506_v18, %v11508_v20 }
 0x1ed   : > { %v11645_v38 = vpop.permute.xlu0 %9906 }
 0x27e   : > { %v8144_v9 = vpop.f32.mrb[32].mxu0 }
 0x27f   : > { %988 = vmax.xlane.f32.xlu0 %v8144_v9  ;;  %v907_v10 = vpop.f32.mrb[33].mxu0 }
 0x282   : > { %v11604_v12 = vpop.f32.mrb[34].mxu0 }
 0x283   : > { %986 = vmax.xlane.f32.xlu0 %v907_v10  ;;  %992 = vmax.xlane.f32.xlu1 %v11604_v12  ;;  %v917_v14 = vpop.f32.mrb[35].mxu0 }
 0x286   : > { %v11607_v16 = vpop.f32.mrb[36].mxu0 }
 0x287   : > { %990 = vmax.xlane.f32.xlu1 %v917_v14  ;;  %v11609_v17 = vpop.f32.mrb[37].mxu0 }
 0x288   : > { %994 = vmax.xlane.f32.xlu0 %v11609_v17 }
 0x28a   : > { %v11612_v19 = vpop.f32.mrb[38].mxu0 }
 0x28b   : > { %996 = vmax.xlane.f32.xlu1 %v11607_v16  ;;  %v11615_v21 = vpop.f32.mrb[39].mxu0 }
 0x28c   : > { %998 = vmax.xlane.f32.xlu0 %v11615_v21 }
 0x28e   : > { %v11618_v22 = vpop.f32.mrb[40].mxu0 }
 0x28f   : > { %1000 = vmax.xlane.f32.xlu1 %v11612_v19  ;;  %v11621_v24 = vpop.f32.mrb[41].mxu0 }
 0x290   : > { %1002 = vmax.xlane.f32.xlu0 %v11621_v24 }
 0x292   : > { %v11624_v25 = vpop.f32.mrb[42].mxu0 }
 0x293   : > { %1004 = vmax.xlane.f32.xlu1 %v11618_v22  ;;  %v11627_v26 = vpop.f32.mrb[43].mxu0 }
 0x294   : > { %1006 = vmax.xlane.f32.xlu0 %v11627_v26 }
 0x296   : > { %v11630_v28 = vpop.f32.mrb[44].mxu0 }
 0x297   : > { %1008 = vmax.xlane.f32.xlu1 %v11624_v25  ;;  %v11633_v30 = vpop.f32.mrb[45].mxu0 }
 0x298   : > { %1010 = vmax.xlane.f32.xlu0 %v11633_v30 }
 0x29a   : > { %v11636_v34 = vpop.f32.mrb[46].mxu0 }
 0x29b   : > { %1012 = vmax.xlane.f32.xlu1 %v11630_v28  ;;  %v11639_v36 = vpop.f32.mrb[47].mxu0 }
 0x29c   : > { %1014 = vmax.xlane.f32.xlu0 %v11639_v36 }
 0x29f   : > { %1016 = vmax.xlane.f32.xlu1 %v11636_v34 }
 0x2b2   : > { %9916 = vrot.lane.b32.xlu0 %v11494_v11, %s11133_s21  ;;  %v11656_v11 = vpop.permute.xlu1 %9901 }
 0x30c   : > { %v989_v41 = vpop.xlane.xlu0 %988 }
 0x30d   : > { %v1019_v43 = vsub.f32 %v8144_v9, %v989_v41  ;;  %v11660_v9 = vpack.i.bf16 %v11440_v45, %v11442_v47  ;;  %v11679_v45 = vpack.i.bf16 %v11488_v6, %v11490_v8 }
 0x30f   : > { %v1036_v2 = vmul.f32 1.442695, %v1019_v43 }
 0x310   : > { %v987_v4 = vpop.xlane.xlu0 %986 }
 0x311   : > { %10455 = vpow2.f32 %v1036_v2  ;;  %v1018_v5 = vsub.f32 %v907_v10, %v987_v4  ;;  %v11667_v10 = vpop.permute.xlu1 %9911 }
 0x312   : > { %13987 = vst [vmem:[#allocation21_spill] sm:$0xff] %v11667_v10 }
 0x313   : > { %v1034_v60 = vmul.f32 1.442695, %v1018_v5 }
 0x315   : > { %10457 = vpow2.f32 %v1034_v60  ;;  %v11665_v60 = vpack.i.bf16 %v11464_v57, %v11466_v59  ;;  %v993_v41 = vpop.xlane.xlu1 %992  ;;  %v11685_v57 = vpack.i.bf16 %v11498_v13, %v11502_v15  ;;  %v995_v59 = vpop.xlane.xlu0 %994 }
 0x316   : > { %v1021_v43 = vsub.f32 %v11604_v12, %v993_v41  ;;  %v1022_v18 = vsub.f32 %v11609_v17, %v995_v59 }
 0x318   : > { %v1040_v15 = vmul.f32 1.442695, %v1021_v43 }
 0x319   : > { %v991_v47 = vpop.xlane.xlu1 %990  ;;  %v999_v3 = vpop.xlane.xlu0 %998 }
 0x31a   : > { %v1020_v6 = vsub.f32 %v917_v14, %v991_v47  ;;  %v1024_v14 = vsub.f32 %v11615_v21, %v999_v3 }
 0x31b   : > { %v11647_v31 = vpop.eup %10455 }
 0x31c   : > { %1068 = vadd.xlane.f32.xlu1 %v11647_v31  ;;  %v1038_v2 = vmul.f32 1.442695, %v1020_v6 }
 0x31d   : > { %v997_v54 = vpop.xlane.xlu1 %996  ;;  %v1003_v13 = vpop.xlane.xlu0 %1002 }
 0x31e   : > { %v1023_v4 = vsub.f32 %v11607_v16, %v997_v54  ;;  %10459 = vpow2.f32 %v1038_v2  ;;  %v1046_v16 = vmul.f32 1.442695, %v1024_v14  ;;  %v1026_v6 = vsub.f32 %v11621_v24, %v1003_v13 }
 0x31f   : > { %v11654_v37 = vpop.eup %10457  ;;  %10461 = vpow2.f32 %v1040_v15 }
 0x320   : > { %1066 = vadd.xlane.f32.xlu0 %v11654_v37  ;;  %v1044_v20 = vmul.f32 1.442695, %v1023_v4  ;;  %v1050_v3 = vmul.f32 1.442695, %v1026_v6 }
 0x321   : > { %v1001_v1 = vpop.xlane.xlu1 %1000  ;;  %v1007_v10 = vpop.xlane.xlu0 %1006 }
 0x322   : > { %v1025_v5 = vsub.f32 %v11612_v19, %v1001_v1  ;;  %10463 = vpow2.f32 %v1044_v20  ;;  %v1028_v12 = vsub.f32 %v11627_v26, %v1007_v10 }
 0x324   : > { %v1048_v47 = vmul.f32 1.442695, %v1025_v5  ;;  %v1054_v17 = vmul.f32 1.442695, %v1028_v12 }
 0x325   : > { %v1005_v8 = vpop.xlane.xlu1 %1004  ;;  %v1011_v1 = vpop.xlane.xlu0 %1010 }
 0x326   : > { %v1027_v54 = vsub.f32 %v11618_v22, %v1005_v8  ;;  %v1030_v26 = vsub.f32 %v11633_v30, %v1011_v1 }
 0x328   : > { %v11701_v19 = vpop.eup %10459  ;;  %v1052_v21 = vmul.f32 1.442695, %v1027_v54  ;;  %v1058_v24 = vmul.f32 1.442695, %v1030_v26  ;;  %v9903_v26 = vunpack.i.l.bf16 %v11656_v11 }
 0x329   : > { %v11706_v10 = vpop.eup %10461  ;;  %v1015_v15 = vpop.xlane.xlu0 %1014 }
 0x32c   : > { %v11708_v22 = vpop.eup %10463 }
 0x32d   : > { %9921 = vrot.lane.b32.xlu1 %v11512_v23, %s11133_s21  ;;  %v1009_v23 = vpop.xlane.xlu1 %1008 }
 0x331   : > { %v1013_v41 = vpop.xlane.xlu1 %1012 }
 0x332   : > { %v1031_v59 = vsub.f32 %v11630_v28, %v1013_v41  ;;  %v1029_v28 = vsub.f32 %v11624_v25, %v1009_v23  ;;  %v1032_v25 = vsub.f32 %v11639_v36, %v1015_v15 }
 0x334   : > { %v1056_v30 = vmul.f32 1.442695, %v1029_v28 }
 0x335   : > { %v1017_v43 = vpop.xlane.xlu1 %1016 }
 0x336   : > { %9926 = vrot.lane.b32.xlu0 %v11518_v0, %s11133_s21  ;;  %v1042_v0 = vmul.f32 1.442695, %v1022_v18  ;;  %v1033_v4 = vsub.f32 %v11636_v34, %v1017_v43  ;;  %v1062_v34 = vmul.f32 1.442695, %v1032_v25 }
 0x338   : > { %10465 = vpow2.f32 %v1042_v0  ;;  %v1060_v0 = vmul.f32 1.442695, %v1031_v59  ;;  %v1064_v18 = vmul.f32 1.442695, %v1033_v4  ;;  %v13988_v59 = vld [vmem:[#allocation15_spill] sm:$0xff]  ;;  %v9908_v4 = vunpack.i.l.bf16 %v11645_v38 }
 0x339   : > { %10467 = vpow2.f32 %v1048_v47 }
 0x33a   : > { %10469 = vpow2.f32 %v1046_v16  ;;  %v9917_v16 = vpop.permute.xlu0 %9916 }
 0x33b   : > { %10471 = vpow2.f32 %v1054_v17 }
 0x33c   : > { %10473 = vpow2.f32 %v1052_v21  ;;  %v9904_v21 = vunpack.i.h.bf16 %v11656_v11 }
 0x33d   : > { %10475 = vpow2.f32 %v1060_v0 }
 0x33e   : > { %10477 = vpow2.f32 %v1050_v3  ;;  %v9212_v28 = vpack.c.bf16 %v9904_v21, %v9903_v26 }
 0x33f   : > { %10479 = vpow2.f32 %v1058_v24  ;;  %v13989_v24 = vld [vmem:[#allocation20_spill] sm:$0xff] }
 0x340   : > { %10481 = vpow2.f32 %v1056_v30  ;;  %v9909_v30 = vunpack.i.h.bf16 %v11645_v38  ;;  %v9918_v38 = vunpack.i.l.bf16 %v9917_v16 }
 0x341   : > { %10483 = vpow2.f32 %v1064_v18  ;;  %v9919_v18 = vunpack.i.h.bf16 %v9917_v16 }
 0x342   : > { %v11713_v8 = vpop.eup %10465  ;;  %10485 = vpow2.f32 %v1062_v34  ;;  %v9218_v15 = vpack.c.bf16 %v9909_v30, %v9908_v4 }
 0x343   : > { %v11715_v2 = vpop.eup %10467  ;;  %v9230_v34 = vpack.c.bf16 %v9919_v18, %v9918_v38 }
 0x344   : > { %v11720_v13 = vpop.eup %10469 }
 0x345   : > { %v11722_v23 = vpop.eup %10471 }
 0x346   : > { %v11727_v20 = vpop.eup %10473 }
 0x347   : > { %v11729_v5 = vpop.eup %10475 }
 0x348   : > { %v11733_v14 = vpop.eup %10477 }
 0x349   : > { %v11735_v47 = vpop.eup %10479 }
 0x34a   : > { %v11739_v36 = vpop.eup %10481 }
 0x34b   : > { %v11742_v12 = vpop.eup %10483 }
 0x34c   : > { %v11745_v41 = vpop.eup %10485 }
 0x351   : > { %1070 = vadd.xlane.f32.xlu1 %v11701_v19 }
 0x355   : > { %1076 = vadd.xlane.f32.xlu1 %v11708_v22  ;;  %1072 = vadd.xlane.f32.xlu0 %v11706_v10 }
 0x359   : > { %1080 = vadd.xlane.f32.xlu1 %v11715_v2  ;;  %1074 = vadd.xlane.f32.xlu0 %v11713_v8 }
 0x35d   : > { %1078 = vadd.xlane.f32.xlu1 %v11720_v13  ;;  %1086 = vadd.xlane.f32.xlu0 %v11722_v23 }
 0x361   : > { %1084 = vadd.xlane.f32.xlu1 %v11727_v20  ;;  %1092 = vadd.xlane.f32.xlu0 %v11729_v5 }
 0x365   : > { %1082 = vadd.xlane.f32.xlu1 %v11733_v14  ;;  %1090 = vadd.xlane.f32.xlu0 %v11735_v47 }
 0x369   : > { %1088 = vadd.xlane.f32.xlu1 %v11739_v36 }
 0x36d   : > { %1096 = vadd.xlane.f32.xlu1 %v11742_v12 }
 0x371   : > { %1094 = vadd.xlane.f32.xlu1 %v11745_v41 }
 0x37b   : > { %9931 = vrot.lane.b32.xlu0 %v11524_v46, %s11133_s21 }
 0x37f   : > { %1371 = vrot.lane.b32.xlu0 %v11398_v27, %s11133_s21 }
 0x382   : > { %1373 = vrot.lane.b32.xlu1 %v11531_v49, %s11133_s21 }
 0x383   : > { %1375 = vrot.lane.b32.xlu0 %v11534_v50, %s11133_s21 }
 0x386   : > { %1377 = vrot.lane.b32.xlu1 %v11541_v53, %s11133_s21 }
 0x387   : > { %1379 = vrot.lane.b32.xlu0 %v11544_v55, %s11133_s21 }
 0x38a   : > { %1381 = vrot.lane.b32.xlu1 %v11551_v29, %s11133_s21 }
 0x38b   : > { %1383 = vrot.lane.b32.xlu0 %v11554_v33, %s11133_s21 }
 0x38e   : > { %1385 = vrot.lane.b32.xlu1 %v11561_v35, %s11133_s21 }
 0x38f   : > { %1387 = vrot.lane.b32.xlu0 %v11564_v39, %s11133_s21 }
 0x392   : > { %1389 = vrot.lane.b32.xlu1 %v11571_v44, %s11133_s21 }
 0x393   : > { %1391 = vrot.lane.b32.xlu0 %v11573_v51, %s11133_s21 }
 0x396   : > { %1393 = vrot.lane.b32.xlu1 %v11579_v56, %s11133_s21 }
 0x397   : > { %1395 = vrot.lane.b32.xlu0 %v11581_v58, %s11133_s21 }
 0x39a   : > { %1397 = vrot.lane.b32.xlu1 %v11587_v61, %s11133_s21 }
 0x39b   : > { %1399 = vrot.lane.b32.xlu0 %v11589_v62, %s11133_s21 }
 0x39e   : > { %1401 = vrot.lane.b32.xlu1 %v11595_v63, %s11133_s21 }
 0x39f   : > { %9936 = vrot.lane.b32.xlu0 %v11652_v7, %s11133_s21 }
 0x3a2   : > { %9941 = vrot.lane.b32.xlu1 %v11660_v9, %s11133_s21 }
 0x3a3   : > { %9951 = vrot.lane.b32.xlu0 %v11665_v60, %s11133_s21 }
 0x3a6   : > { %9946 = vrot.lane.b32.xlu1 %v11671_v40, %s11133_s21 }
 0x3a7   : > { %9956 = vrot.lane.b32.xlu0 %v11675_v42, %s11133_s21 }
 0x3a9   : > { %v1069_v54 = vpop.xlane.xlu1 %1068 }
 0x3aa   : > { %9961 = vrot.lane.b32.xlu1 %v11679_v45, %s11133_s21  ;;  %10487 = vrcp.f32 %v1069_v54 }
 0x3ab   : > { %9976 = vrot.lane.b32.xlu0 %v11410_v32, %s11134_s23 }
 0x3ad   : > { %v1067_v17 = vpop.xlane.xlu0 %1066  ;;  %v9922_v54 = vpop.permute.xlu1 %9921 }
 0x3ae   : > { %10489 = vrcp.f32 %v1067_v17  ;;  %9966 = vrot.lane.b32.xlu1 %v11685_v57, %s11133_s21  ;;  %v9924_v17 = vunpack.i.h.bf16 %v9922_v54 }
 0x3af   : > { %9986 = vrot.lane.b32.xlu0 %v11444_v48, %s11134_s23 }
 0x3b1   : > { %v9927_v21 = vpop.permute.xlu0 %9926 }
 0x3b2   : > { %9971 = vrot.lane.b32.xlu1 %v11689_v52, %s11133_s21  ;;  %v9929_v16 = vunpack.i.h.bf16 %v9927_v21 }
 0x3b4   : > { %v10488_v1 = vpop.eup %10487 }
 0x3b5   : > { %v1115_v3 = vmul.f32 %v10488_v1, %v11647_v31  ;;  %v13991_v31 = vld [vmem:[#allocation21_spill] sm:$0xff]  ;;  %v9923_v1 = vunpack.i.l.bf16 %v9922_v54 }
 0x3b6   : > { %9981 = vrot.lane.b32.xlu1 %v13988_v59, %s11134_s23  ;;  %v9913_v11 = vunpack.i.l.bf16 %v13991_v31 }
 0x3b8   : > { %v10490_v6 = vpop.eup %10489 }
 0x3b9   : > { %v1114_v0 = vmul.f32 %v10490_v6, %v11654_v37  ;;  %v9914_v37 = vunpack.i.h.bf16 %v13991_v31  ;;  %v9236_v6 = vpack.c.bf16 %v9924_v17, %v9923_v1 }
 0x3bb   : > { %8198 = vmatprep.mubr.f32.mxu1 %v1114_v0  ;;  %v9224_v25 = vpack.c.bf16 %v9914_v37, %v9913_v11  ;;  %v9928_v0 = vunpack.i.l.bf16 %v9927_v21 }
 0x3bc   : > { %8199 = vmatmul.mubr.f32.vlgmr.msra.gmra.mrb[16].mxu1 %v1115_v3 }
 0x3bd   : > { %9211 = vmatpush3.bf16.xpose.msk.msra.mxu1 %vm11406_vm1, %v13989_v24  ;;  %v9242_v24 = vpack.c.bf16 %v9929_v16, %v9928_v0 }
 0x3be   : > { %9214 = vmatprep.subr.msk.bf16.mxu1 %vm11406_vm1, %v9212_v28 }
 0x3c5   : > { %9217 = vmatpush3.bf16.xpose.msk.msra.mxu1 %vm11406_vm1, %v9212_v28 }
 0x3c6   : > { %9220 = vmatprep.subr.msk.bf16.mxu1 %vm11406_vm1, %v9218_v15 }
 0x3cd   : > { %9223 = vmatpush3.bf16.xpose.msk.msra.mxu1 %vm11406_vm1, %v9218_v15 }
 0x3ce   : > { %9226 = vmatprep.subr.msk.bf16.mxu1 %vm11406_vm1, %v9224_v25 }
 0x3d5   : > { %9229 = vmatpush3.bf16.xpose.msk.msra.mxu1 %vm11406_vm1, %v9224_v25 }
 0x3d6   : > { %9232 = vmatprep.subr.msk.bf16.mxu1 %vm11406_vm1, %v9230_v34 }
 0x3dd   : > { %9235 = vmatpush3.bf16.xpose.msk.msra.mxu1 %vm11406_vm1, %v9230_v34 }
 0x3de   : > { %9238 = vmatprep.subr.msk.bf16.mxu1 %vm11406_vm1, %v9236_v6  ;;  %v1071_v26 = vpop.xlane.xlu1 %1070 }
 0x3df   : > { %10491 = vrcp.f32 %v1071_v26 }
 0x3e2   : > { %v1077_v3 = vpop.xlane.xlu1 %1076  ;;  %v1073_v28 = vpop.xlane.xlu0 %1072 }
 0x3e3   : > { %10493 = vrcp.f32 %v1073_v28 }
 0x3e4   : > { %10495 = vrcp.f32 %v1077_v3 }
 0x3e5   : > { %9241 = vmatpush3.bf16.xpose.msk.msra.mxu1 %vm11406_vm1, %v9236_v6 }
 0x3e6   : > { %9244 = vmatprep.subr.msk.bf16.mxu1 %vm11406_vm1, %v9242_v24  ;;  %v1081_v30 = vpop.xlane.xlu1 %1080  ;;  %v1075_v4 = vpop.xlane.xlu0 %1074 }
 0x3e7   : > { %10497 = vrcp.f32 %v1075_v4 }
 0x3e8   : > { %10499 = vrcp.f32 %v1081_v30 }
 0x3e9   : > { %v10492_v15 = vpop.eup %10491 }
 0x3ea   : > { %v1079_v31 = vpop.xlane.xlu1 %1078  ;;  %v1087_v37 = vpop.xlane.xlu0 %1086  ;;  %v1116_v11 = vmul.f32 %v10492_v15, %v11701_v19 }
 0x3eb   : > { %10501 = vrcp.f32 %v1079_v31 }
 0x3ec   : > { %8201 = vmatprep.mubr.f32.mxu1 %v1116_v11  ;;  %10503 = vrcp.f32 %v1087_v37 }
 0x3ed   : > { %9247 = vmatpush3.bf16.xpose.msk.msra.mxu1 %vm11406_vm1, %v9242_v24  ;;  %v10494_v25 = vpop.eup %10493 }
 0x3ee   : > { %v1085_v18 = vpop.xlane.xlu1 %1084  ;;  %v1093_v38 = vpop.xlane.xlu0 %1092  ;;  %v1117_v34 = vmul.f32 %v10494_v25, %v11706_v10 }
 0x3ef   : > { %v10496_v54 = vpop.eup %10495  ;;  %10505 = vrcp.f32 %v1085_v18 }
 0x3f0   : > { %8202 = vmatmul.mubr.f32.gmra.mrb[18].mxu1 %v1117_v34  ;;  %v1119_v26 = vmul.f32 %v10496_v54, %v11708_v22 }
 0x3f1   : > { %v10498_v17 = vpop.eup %10497 }
 0x3f2   : > { %v1083_v1 = vpop.xlane.xlu1 %1082  ;;  %v1091_v6 = vpop.xlane.xlu0 %1090  ;;  %v1118_v19 = vmul.f32 %v10498_v17, %v11713_v8 }
 0x3f3   : > { %10507 = vrcp.f32 %v1083_v1  ;;  %v10500_v21 = vpop.eup %10499 }
 0x3f4   : > { %8204 = vmatprep.mubr.f32.mxu1 %v1118_v19  ;;  %10509 = vrcp.f32 %v1091_v6  ;;  %v1121_v30 = vmul.f32 %v10500_v21, %v11715_v2 }
 0x3f5   : > { %v10502_v16 = vpop.eup %10501  ;;  %8205 = vmatmul.mubr.f32.gmra.mrb[20].mxu1 %v1119_v26 }
 0x3f6   : > { %v1089_v0 = vpop.xlane.xlu1 %1088  ;;  %v9932_v3 = vpop.permute.xlu0 %9931  ;;  %v1120_v10 = vmul.f32 %v10502_v16, %v11720_v13 }
 0x3f7   : > { %10511 = vrcp.f32 %v1089_v0  ;;  %v9934_v28 = vunpack.i.h.bf16 %v9932_v3  ;;  %v9933_v24 = vunpack.i.l.bf16 %v9932_v3  ;;  %v10504_v22 = vpop.eup %10503 }
 0x3f8   : > { %8207 = vmatprep.mubr.f32.mxu1 %v1120_v10  ;;  %10513 = vrcp.f32 %v1093_v38  ;;  %v1124_v38 = vmul.f32 %v10504_v22, %v11722_v23 }
 0x3f9   : > { %v9248_v4 = vpack.c.bf16 %v9934_v28, %v9933_v24  ;;  %8208 = vmatmul.mubr.f32.gmra.mrb[22].mxu1 %v1121_v30  ;;  %v10506_v31 = vpop.eup %10505 }
 0x3fa   : > { %v1097_v8 = vpop.xlane.xlu1 %1096  ;;  %v1372_v15 = vpop.permute.xlu0 %1371  ;;  %v1123_v2 = vmul.f32 %v10506_v31, %v11727_v20 }
 0x3fb   : > { %9250 = vmatprep.subr.msk.bf16.mxu1 %vm11406_vm1, %v9248_v4  ;;  %10515 = vrcp.f32 %v1097_v8 }
 0x3fc   : > { %9253 = vmatpush3.bf16.xpose.msk.msra.mxu1 %vm11406_vm1, %v9248_v4 }
 0x3fd   : > { %v10508_v13 = vpop.eup %10507 }
 0x3fe   : > { %v1095_v37 = vpop.xlane.xlu1 %1094  ;;  %v1376_v11 = vpop.permute.xlu0 %1375  ;;  %v1122_v25 = vmul.f32 %v10508_v13, %v11733_v14 }
 0x3ff   : > { %10517 = vrcp.f32 %v1095_v37  ;;  %v10510_v18 = vpop.eup %10509 }
 0x400   : > { %8210 = vmatprep.mubr.f32.mxu1 %v1122_v25  ;;  %v1126_v19 = vmul.f32 %v10510_v18, %v11735_v47 }
 0x401   : > { %v10512_v34 = vpop.eup %10511  ;;  %8211 = vmatmul.mubr.f32.gmra.mrb[24].mxu1 %v1123_v2 }
 0x402   : > { %v1374_v54 = vpop.permute.xlu1 %1373  ;;  %8213 = vmatprep.mubr.f32.mxu1 %v1124_v38  ;;  %v1380_v17 = vpop.permute.xlu0 %1379  ;;  %v1125_v1 = vmul.f32 %v10512_v34, %v11739_v36 }
 0x403   : > { %v10514_v6 = vpop.eup %10513 }
 0x404   : > { %v1127_v20 = vmul.f32 %v10514_v6, %v11729_v5 }
 0x405   : > { %8214 = vmatmul.mubr.f32.gmra.mrb[26].mxu1 %v1125_v1  ;;  %v10516_v26 = vpop.eup %10515 }
 0x406   : > { %v1378_v21 = vpop.permute.xlu1 %1377  ;;  %8216 = vmatprep.mubr.f32.mxu1 %v1126_v19  ;;  %v1384_v14 = vpop.permute.xlu0 %1383  ;;  %v1129_v10 = vmul.f32 %v10516_v26, %v11742_v12 }
 0x409   : > { %v10518_v16 = vpop.eup %10517  ;;  %8217 = vmatmul.mubr.f32.gmra.mrb[28].mxu1 %v1127_v20 }
 0x40a   : > { %v1382_v23 = vpop.permute.xlu1 %1381  ;;  %v1388_v0 = vpop.permute.xlu0 %1387  ;;  %v1128_v3 = vmul.f32 %v10518_v16, %v11745_v41 }
 0x40c   : > { %8219 = vmatprep.mubr.f32.mxu1 %v1128_v3 }
 0x40d   : > { %8220 = vmatmul.mubr.f32.gmra.mrb[30].mxu1 %v1129_v10 }
 0x40e   : > { %v1386_v36 = vpop.permute.xlu1 %1385  ;;  %8254 = vmatprep.mubr.msk.f32.mxu1 %vm744_vm0, %v1372_v15  ;;  %v1392_v47 = vpop.permute.xlu0 %1391 }
 0x411   : > { %8255 = vmatmul.mubr.msk.f32.vlgmr.msra.gmra.mrb[32].mxu1 %vm744_vm0, %v1374_v54 }
 0x412   : > { %v1390_v28 = vpop.permute.xlu1 %1389  ;;  %v1396_v24 = vpop.permute.xlu0 %1395  ;;  %8257 = vmatprep.mubr.msk.f32.mxu1 %vm744_vm0, %v1376_v11 }
 0x415   : > { %8258 = vmatmul.mubr.msk.f32.gmra.mrb[34].mxu1 %vm744_vm0, %v1378_v21 }
 0x416   : > { %v1394_v5 = vpop.permute.xlu1 %1393  ;;  %v1400_v30 = vpop.permute.xlu0 %1399  ;;  %8260 = vmatprep.mubr.msk.f32.mxu1 %vm744_vm0, %v1380_v17 }
 0x419   : > { %8261 = vmatmul.mubr.msk.f32.gmra.mrb[36].mxu1 %vm744_vm0, %v1382_v23 }
 0x41a   : > { %v1398_v12 = vpop.permute.xlu1 %1397  ;;  %v9937_v41 = vpop.permute.xlu0 %9936  ;;  %8263 = vmatprep.mubr.msk.f32.mxu1 %vm744_vm0, %v1384_v14 }
 0x41b   : > { %v9939_v4 = vunpack.i.h.bf16 %v9937_v41  ;;  %v9938_v8 = vunpack.i.l.bf16 %v9937_v41 }
 0x41d   : > { %8264 = vmatmul.mubr.msk.f32.gmra.mrb[38].mxu1 %vm744_vm0, %v1386_v36  ;;  %v9254_v15 = vpack.c.bf16 %v9939_v4, %v9938_v8 }
 0x41e   : > { %v1402_v22 = vpop.permute.xlu1 %1401  ;;  %8266 = vmatprep.mubr.msk.f32.mxu1 %vm744_vm0, %v1388_v0  ;;  %v9952_v31 = vpop.permute.xlu0 %9951 }
 0x41f   : > { %9255 = vmatprep.subr.bf16.mxu0 %v9254_v15  ;;  %v9954_v25 = vunpack.i.h.bf16 %v9952_v31  ;;  %v9953_v2 = vunpack.i.l.bf16 %v9952_v31 }
 0x420   : > { %9257 = vmatpush3.bf16.msra.mxu0 %v9254_v15 }
 0x421   : > { %8267 = vmatmul.mubr.msk.f32.gmra.mrb[40].mxu1 %vm744_vm0, %v1390_v28  ;;  %v9266_v21 = vpack.c.bf16 %v9954_v25, %v9953_v2 }
 0x422   : > { %v9942_v13 = vpop.permute.xlu1 %9941  ;;  %8269 = vmatprep.mubr.msk.f32.mxu1 %vm744_vm0, %v1392_v47  ;;  %v9957_v17 = vpop.permute.xlu0 %9956 }
 0x423   : > { %v9944_v37 = vunpack.i.h.bf16 %v9942_v13  ;;  %v9943_v11 = vunpack.i.l.bf16 %v9942_v13  ;;  %v9959_v1 = vunpack.i.h.bf16 %v9957_v17  ;;  %v9958_v6 = vunpack.i.l.bf16 %v9957_v17 }
 0x425   : > { %8270 = vmatmul.mubr.msk.f32.gmra.mrb[42].mxu1 %vm744_vm0, %v1394_v5  ;;  %v9258_v18 = vpack.c.bf16 %v9944_v37, %v9943_v11  ;;  %v9270_v16 = vpack.c.bf16 %v9959_v1, %v9958_v6 }
 0x426   : > { %v9947_v38 = vpop.permute.xlu1 %9946  ;;  %8272 = vmatprep.mubr.msk.f32.mxu1 %vm744_vm0, %v1396_v24  ;;  %v9977_v5 = vpop.permute.xlu0 %9976 }
 0x427   : > { %v9949_v34 = vunpack.i.h.bf16 %v9947_v38  ;;  %v9948_v54 = vunpack.i.l.bf16 %v9947_v38  ;;  %9259 = vmatprep.subr.bf16.mxu0 %v9258_v18  ;;  %v9978_v41 = vunpack.i.l.bf16 %v9977_v5 }
 0x428   : > { %9261 = vmatpush3.bf16.msra.mxu0 %v9258_v18 }
 0x429   : > { %8273 = vmatmul.mubr.msk.f32.gmra.mrb[44].mxu1 %vm744_vm0, %v1398_v12  ;;  %v9262_v19 = vpack.c.bf16 %v9949_v34, %v9948_v54  ;;  %v9979_v12 = vunpack.i.h.bf16 %v9977_v5 }
 0x42a   : > { %v9962_v14 = vpop.permute.xlu1 %9961  ;;  %8275 = vmatprep.mubr.msk.f32.mxu1 %vm744_vm0, %v1400_v30 }
 0x42b   : > { %9263 = vmatprep.subr.bf16.mxu0 %v9262_v19  ;;  %v9964_v20 = vunpack.i.h.bf16 %v9962_v14  ;;  %v9963_v26 = vunpack.i.l.bf16 %v9962_v14  ;;  %v11873_v4 = vpack.c.bf16 %v9979_v12, %v9978_v41  ;;  %v13994_v41 = vld [vmem:[#allocation17_spill] sm:$0xff] }
 0x42c   : > { %9265 = vmatpush3.bf16.msra.mxu0 %v9262_v19 }
 0x42d   : > { %8276 = vmatmul.mubr.msk.f32.gmra.mrb[46].mxu1 %vm744_vm0, %v1402_v22  ;;  %9267 = vmatprep.subr.bf16.mxu0 %v9266_v21  ;;  %v9274_v10 = vpack.c.bf16 %v9964_v20, %v9963_v26  ;;  %13992 = vst [vmem:[#allocation15_spill] sm:$0xff] %v11873_v4 }
 0x42e   : > { %v9967_v23 = vpop.permute.xlu1 %9966 }
 0x42f   : > { %v9969_v0 = vunpack.i.h.bf16 %v9967_v23  ;;  %v9968_v3 = vunpack.i.l.bf16 %v9967_v23 }
 0x430   : > { %9269 = vmatpush3.bf16.msra.mxu0 %v9266_v21 }
 0x431   : > { %9271 = vmatprep.subr.bf16.mxu0 %v9270_v16  ;;  %v9278_v24 = vpack.c.bf16 %v9969_v0, %v9968_v3 }
 0x432   : > { %v9972_v36 = vpop.permute.xlu1 %9971 }
 0x433   : > { %v9974_v47 = vunpack.i.h.bf16 %v9972_v36  ;;  %v9973_v28 = vunpack.i.l.bf16 %v9972_v36  ;;  %v13993_v36 = vld [vmem:[#allocation16_spill] sm:$0xff] }
 0x434   : > { %9273 = vmatpush3.bf16.msra.mxu0 %v9270_v16 }
 0x435   : > { %9275 = vmatprep.subr.bf16.mxu0 %v9274_v10  ;;  %v9282_v30 = vpack.c.bf16 %v9974_v47, %v9973_v28 }
 0x438   : > { %9277 = vmatpush3.bf16.msra.mxu0 %v9274_v10 }
 0x439   : > { %9279 = vmatprep.subr.bf16.mxu0 %v9278_v24 }
 0x43c   : > { %9281 = vmatpush3.bf16.msra.mxu0 %v9278_v24 }
 0x43d   : > { %9283 = vmatprep.subr.bf16.mxu0 %v9282_v30 }
 0x440   : > { %9285 = vmatpush3.bf16.msra.mxu0 %v9282_v30 }
 0x441   : > { %9288 = vmatprep.subr.msk.bf16.mxu0 %vm11406_vm1, %v11873_v4 }
 0x48f   : > { %v8200_v8 = vpop.f32.mrb[16].mxu1 }
 0x490   : > { %1276 = vst.msk [vmem:[#allocation3 + $0x8] sm:$0xff] %vm744_vm0, %v8200_v8  ;;  %v1196_v15 = vpop.f32.mrb[17].mxu1  ;;  %v11925_v8 = vpop.permute.xlu1 %9981 }
 0x491   : > { %1275 = vst.msk [vmem:[#allocation3] sm:$0xff] %vm744_vm0, %v1196_v15  ;;  %v11927_v15 = vpop.permute.xlu0 %9986 }
 0x492   : > { %13995 = vst [vmem:[#allocation20_spill] sm:$0xff] %v11927_v15 }
 0x4c3   : > { %v8203_v22 = vpop.f32.mrb[18].mxu1 }
 0x4c4   : > { %1278 = vst.msk [vmem:[#allocation3 + $0x18] sm:$0xff] %vm744_vm0, %v8203_v22  ;;  %v1206_v31 = vpop.f32.mrb[19].mxu1 }
 0x4c5   : > { %1277 = vst.msk [vmem:[#allocation3 + $0x10] sm:$0xff] %vm744_vm0, %v1206_v31 }
 0x4c8   : > { %v8206_v13 = vpop.f32.mrb[20].mxu1 }
 0x4c9   : > { %1280 = vst.msk [vmem:[#allocation3 + $0x28] sm:$0xff] %vm744_vm0, %v8206_v13  ;;  %v1216_v37 = vpop.f32.mrb[21].mxu1 }
 0x4ca   : > { %1279 = vst.msk [vmem:[#allocation3 + $0x20] sm:$0xff] %vm744_vm0, %v1216_v37 }
 0x4cc   : > { %v8209_v11 = vpop.f32.mrb[22].mxu1 }
 0x4cd   : > { %1282 = vst.msk [vmem:[#allocation3 + $0x38] sm:$0xff] %vm744_vm0, %v8209_v11  ;;  %v1226_v25 = vpop.f32.mrb[23].mxu1 }
 0x4ce   : > { %1281 = vst.msk [vmem:[#allocation3 + $0x30] sm:$0xff] %vm744_vm0, %v1226_v25 }
 0x4d4   : > { %v8212_v2 = vpop.f32.mrb[24].mxu1 }
 0x4d5   : > { %1284 = vst.msk [vmem:[#allocation3 + $0x48] sm:$0xff] %vm744_vm0, %v8212_v2  ;;  %v1236_v18 = vpop.f32.mrb[25].mxu1 }
 0x4d6   : > { %1283 = vst.msk [vmem:[#allocation3 + $0x40] sm:$0xff] %vm744_vm0, %v1236_v18 }
 0x4d8   : > { %v8215_v38 = vpop.f32.mrb[26].mxu1 }
 0x4d9   : > { %1286 = vst.msk [vmem:[#allocation3 + $0x58] sm:$0xff] %vm744_vm0, %v8215_v38  ;;  %v1246_v34 = vpop.f32.mrb[27].mxu1 }
 0x4da   : > { %1285 = vst.msk [vmem:[#allocation3 + $0x50] sm:$0xff] %vm744_vm0, %v1246_v34  ;;  %v13996_v34 = vld [vmem:[#allocation18_spill] sm:$0xff] }
 0x4dc   : > { %v8218_v54 = vpop.f32.mrb[28].mxu1 }
 0x4dd   : > { %1288 = vst.msk [vmem:[#allocation3 + $0x68] sm:$0xff] %vm744_vm0, %v8218_v54  ;;  %v1256_v17 = vpop.f32.mrb[29].mxu1 }
 0x4de   : > { %1287 = vst.msk [vmem:[#allocation3 + $0x60] sm:$0xff] %vm744_vm0, %v1256_v17  ;;  %v13997_v17 = vld [vmem:[#allocation19_spill] sm:$0xff] }
 0x4e0   : > { %v8221_v1 = vpop.f32.mrb[30].mxu1 }
 0x4e1   : > { %1290 = vst.msk [vmem:[#allocation3 + $0x78] sm:$0xff] %vm744_vm0, %v8221_v1  ;;  %v1266_v6 = vpop.f32.mrb[31].mxu1 }
 0x4e2   : > { %1289 = vst.msk [vmem:[#allocation3 + $0x70] sm:$0xff] %vm744_vm0, %v1266_v6 }
 0x4e4   : > { %v8256_v19 = vpop.f32.mrb[32].mxu1 }
 0x4e5   : > { %1662 = vmax.xlane.f32.xlu1 %v8256_v19  ;;  %v1581_v21 = vpop.f32.mrb[33].mxu1 }
 0x4e6   : > { %1660 = vmax.xlane.f32.xlu0 %v1581_v21 }
 0x4e8   : > { %v8259_v14 = vpop.f32.mrb[34].mxu1 }
 0x4e9   : > { %v1591_v20 = vpop.f32.mrb[35].mxu1 }
 0x4ea   : > { %1666 = vmax.xlane.f32.xlu0 %v8259_v14 }
 0x4ec   : > { %v8262_v26 = vpop.f32.mrb[36].mxu1 }
 0x4ed   : > { %v11894_v16 = vpop.f32.mrb[37].mxu1 }
 0x4ee   : > { %1664 = vmax.xlane.f32.xlu0 %v1591_v20 }
 0x4f0   : > { %v8265_v23 = vpop.f32.mrb[38].mxu1 }
 0x4f1   : > { %v11896_v0 = vpop.f32.mrb[39].mxu1 }
 0x4f2   : > { %1668 = vmax.xlane.f32.xlu0 %v11894_v16 }
 0x4f4   : > { %v11899_v3 = vpop.f32.mrb[40].mxu1 }
 0x4f5   : > { %v11901_v10 = vpop.f32.mrb[41].mxu1 }
 0x4f6   : > { %9991 = vrot.lane.b32.xlu1 %v13993_v36, %s11134_s23  ;;  %1672 = vmax.xlane.f32.xlu0 %v11896_v0 }
 0x4f8   : > { %v11906_v47 = vpop.f32.mrb[42].mxu1 }
 0x4f9   : > { %v1631_v28 = vpop.f32.mrb[43].mxu1 }
 0x4fa   : > { %1676 = vmax.xlane.f32.xlu0 %v11901_v10 }
 0x4fc   : > { %v11909_v24 = vpop.f32.mrb[44].mxu1 }
 0x4fd   : > { %v11911_v5 = vpop.f32.mrb[45].mxu1 }
 0x4fe   : > { %1680 = vmax.xlane.f32.xlu0 %v1631_v28 }
 0x500   : > { %v11913_v30 = vpop.f32.mrb[46].mxu1 }
 0x501   : > { %v11915_v12 = vpop.f32.mrb[47].mxu1 }
 0x502   : > { %1684 = vmax.xlane.f32.xlu0 %v11911_v5 }
 0x506   : > { %1688 = vmax.xlane.f32.xlu0 %v11915_v12 }
 0x51a   : > { %1670 = vmax.xlane.f32.xlu1 %v8262_v26 }
 0x51c   : > { %9996 = vrot.lane.b32.xlu0 %v13994_v41, %s11134_s23 }
 0x51e   : > { %1674 = vmax.xlane.f32.xlu1 %v8265_v23 }
 0x522   : > { %1678 = vmax.xlane.f32.xlu1 %v11899_v3 }
 0x526   : > { %1682 = vmax.xlane.f32.xlu1 %v11906_v47 }
 0x52a   : > { %1686 = vmax.xlane.f32.xlu1 %v11909_v24 }
 0x52e   : > { %1690 = vmax.xlane.f32.xlu1 %v11913_v30 }
 0x572   : > { %v1663_v22 = vpop.xlane.xlu1 %1662 }
 0x573   : > { %v1693_v31 = vsub.f32 %v8256_v19, %v1663_v22  ;;  %v1661_v13 = vpop.xlane.xlu0 %1660 }
 0x574   : > { %v1692_v37 = vsub.f32 %v1581_v21, %v1661_v13 }
 0x575   : > { %v1710_v11 = vmul.f32 1.442695, %v1693_v31 }
 0x576   : > { %v1708_v25 = vmul.f32 1.442695, %v1692_v37  ;;  %v11939_v19 = vpop.permute.xlu1 %9991 }
 0x577   : > { %10519 = vpow2.f32 %v1710_v11  ;;  %v1667_v38 = vpop.xlane.xlu0 %1666  ;;  %13998 = vst [vmem:[#allocation21_spill] sm:$0xff] %v11939_v19 }
 0x578   : > { %10521 = vpow2.f32 %v1708_v25  ;;  %v1695_v22 = vsub.f32 %v8259_v14, %v1667_v38 }
 0x57a   : > { %v1714_v25 = vmul.f32 1.442695, %v1695_v22 }
 0x57b   : > { %v1665_v54 = vpop.xlane.xlu0 %1664 }
 0x57c   : > { %v1694_v21 = vsub.f32 %v1591_v20, %v1665_v54 }
 0x57e   : > { %v1712_v37 = vmul.f32 1.442695, %v1694_v21 }
 0x57f   : > { %v1669_v1 = vpop.xlane.xlu0 %1668 }
 0x580   : > { %10523 = vpow2.f32 %v1712_v37 }
 0x581   : > { %v11929_v2 = vpop.eup %10519  ;;  %10525 = vpow2.f32 %v1714_v25 }
 0x582   : > { %v11931_v18 = vpop.eup %10521  ;;  %1742 = vadd.xlane.f32.xlu0 %v11929_v2 }
 0x583   : > { %1740 = vadd.xlane.f32.xlu1 %v11931_v18  ;;  %v1673_v6 = vpop.xlane.xlu0 %1672 }
 0x587   : > { %v1677_v31 = vpop.xlane.xlu0 %1676 }
 0x58b   : > { %v1681_v43 = vpop.xlane.xlu0 %1680 }
 0x58c   : > { %v1702_v14 = vsub.f32 %v1631_v28, %v1681_v43 }
 0x58e   : > { %v1728_v21 = vmul.f32 1.442695, %v1702_v14 }
 0x594   : > { %10001 = vrot.lane.b32.xlu1 %v13996_v34, %s11134_s23  ;;  %v1696_v34 = vsub.f32 %v11894_v16, %v1669_v1  ;;  %v1700_v16 = vsub.f32 %v11901_v10, %v1677_v31  ;;  %v11945_v1 = vpop.eup %10523 }
 0x596   : > { %v1716_v20 = vmul.f32 1.442695, %v1696_v34  ;;  %v1724_v28 = vmul.f32 1.442695, %v1700_v16 }
 0x598   : > { %10006 = vrot.lane.b32.xlu0 %v13997_v17, %s11134_s23  ;;  %v1698_v17 = vsub.f32 %v11896_v0, %v1673_v6  ;;  %v11947_v0 = vpop.eup %10525 }
 0x59a   : > { %v1720_v38 = vmul.f32 1.442695, %v1698_v17 }
 0x5a7   : > { %v1671_v13 = vpop.xlane.xlu1 %1670 }
 0x5a8   : > { %v1697_v11 = vsub.f32 %v8262_v26, %v1671_v13 }
 0x5aa   : > { %v1718_v41 = vmul.f32 1.442695, %v1697_v11 }
 0x5ab   : > { %v1675_v36 = vpop.xlane.xlu1 %1674 }
 0x5ac   : > { %v1699_v15 = vsub.f32 %v8265_v23, %v1675_v36  ;;  %10527 = vpow2.f32 %v1718_v41  ;;  %v1685_v23 = vpop.xlane.xlu0 %1684 }
 0x5ad   : > { %v1704_v43 = vsub.f32 %v11911_v5, %v1685_v23 }
 0x5ae   : > { %v1722_v4 = vmul.f32 1.442695, %v1699_v15 }
 0x5af   : > { %v1679_v19 = vpop.xlane.xlu1 %1678  ;;  %v1732_v6 = vmul.f32 1.442695, %v1704_v43  ;;  %v9983_v43 = vunpack.i.l.bf16 %v11925_v8 }
 0x5b0   : > { %10529 = vpow2.f32 %v1722_v4  ;;  %v1701_v26 = vsub.f32 %v11899_v3, %v1679_v19  ;;  %v1689_v22 = vpop.xlane.xlu0 %1688 }
 0x5b1   : > { %10531 = vpow2.f32 %v1716_v20 }
 0x5b2   : > { %10533 = vpow2.f32 %v1720_v38  ;;  %v1726_v36 = vmul.f32 1.442695, %v1701_v26 }
 0x5b3   : > { %v1683_v54 = vpop.xlane.xlu1 %1682  ;;  %10535 = vpow2.f32 %v1728_v21 }
 0x5b4   : > { %10537 = vpow2.f32 %v1726_v36  ;;  %v1703_v10 = vsub.f32 %v11906_v47, %v1683_v54  ;;  %v1706_v47 = vsub.f32 %v11915_v12, %v1689_v22  ;;  %v9997_v54 = vpop.permute.xlu0 %9996 }
 0x5b6   : > { %v11953_v3 = vpop.eup %10527 }
 0x5b7   : > { %v1687_v41 = vpop.xlane.xlu1 %1686  ;;  %1744 = vadd.xlane.f32.xlu0 %v11945_v1 }
 0x5b8   : > { %v1705_v4 = vsub.f32 %v11909_v24, %v1687_v41  ;;  %1746 = vadd.xlane.f32.xlu1 %v11947_v0  ;;  %v1730_v24 = vmul.f32 1.442695, %v1703_v10  ;;  %v9984_v41 = vunpack.i.h.bf16 %v11925_v8  ;;  %v14002_v8 = vld [vmem:[#allocation21_spill] sm:$0xff] }
 0x5ba   : > { %v11956_v15 = vpop.eup %10529  ;;  %v1734_v34 = vmul.f32 1.442695, %v1705_v4  ;;  %v9292_v10 = vpack.c.bf16 %v9984_v41, %v9983_v43 }
 0x5bb   : > { %v1691_v17 = vpop.xlane.xlu1 %1690  ;;  %1750 = vadd.xlane.f32.xlu0 %v11953_v3  ;;  %v11961_v19 = vpop.eup %10531 }
 0x5bc   : > { %10539 = vpow2.f32 %v1734_v34  ;;  %1754 = vadd.xlane.f32.xlu1 %v11956_v15  ;;  %v1707_v5 = vsub.f32 %v11913_v30, %v1691_v17  ;;  %v11963_v31 = vpop.eup %10533  ;;  %v1736_v30 = vmul.f32 1.442695, %v1706_v47  ;;  %v13999_v34 = vld [vmem:[#allocation15_spill] sm:$0xff] }
 0x5bd   : > { %10541 = vpow2.f32 %v1724_v28  ;;  %v11968_v37 = vpop.eup %10535 }
 0x5be   : > { %10543 = vpow2.f32 %v1732_v6  ;;  %v1738_v13 = vmul.f32 1.442695, %v1707_v5  ;;  %v11970_v11 = vpop.eup %10537  ;;  %v14001_v6 = vld [vmem:[#allocation20_spill] sm:$0xff] }
 0x5bf   : > { %1748 = vadd.xlane.f32.xlu0 %v11961_v19  ;;  %10545 = vpow2.f32 %v1730_v24  ;;  %v9989_v24 = vunpack.i.h.bf16 %v14001_v6  ;;  %v9988_v5 = vunpack.i.l.bf16 %v14001_v6 }
 0x5c0   : > { %1752 = vadd.xlane.f32.xlu1 %v11963_v31  ;;  %10547 = vpow2.f32 %v1738_v13  ;;  %v9999_v13 = vunpack.i.h.bf16 %v9997_v54 }
 0x5c1   : > { %10549 = vpow2.f32 %v1736_v30  ;;  %v9298_v22 = vpack.c.bf16 %v9989_v24, %v9988_v5  ;;  %v9998_v30 = vunpack.i.l.bf16 %v9997_v54 }
 0x5c3   : > { %1760 = vadd.xlane.f32.xlu0 %v11968_v37 }
 0x5c4   : > { %1758 = vadd.xlane.f32.xlu1 %v11970_v11 }
 0x5c6   : > { %v11974_v25 = vpop.eup %10539 }
 0x5c7   : > { %v11976_v20 = vpop.eup %10541  ;;  %1766 = vadd.xlane.f32.xlu0 %v11974_v25 }
 0x5c8   : > { %1756 = vadd.xlane.f32.xlu1 %v11976_v20  ;;  %v11980_v12 = vpop.eup %10543 }
 0x5c9   : > { %v11982_v14 = vpop.eup %10545 }
 0x5ca   : > { %v11986_v38 = vpop.eup %10547 }
 0x5cb   : > { %1764 = vadd.xlane.f32.xlu0 %v11980_v12  ;;  %v11989_v26 = vpop.eup %10549 }
 0x5cc   : > { %1762 = vadd.xlane.f32.xlu1 %v11982_v14 }
 0x5d0   : > { %1770 = vadd.xlane.f32.xlu1 %v11986_v38 }
 0x5d4   : > { %1768 = vadd.xlane.f32.xlu1 %v11989_v26 }
 0x5e1   : > { %10011 = vrot.lane.b32.xlu0 %v11524_v46, %s11134_s23 }
 0x5e5   : > { %2174 = vrot.lane.b32.xlu0 %v11398_v27, %s11134_s23  ;;  %2176 = vrot.lane.b32.xlu1 %v11531_v49, %s11134_s23 }
 0x5e9   : > { %2178 = vrot.lane.b32.xlu0 %v11534_v50, %s11134_s23  ;;  %2180 = vrot.lane.b32.xlu1 %v11541_v53, %s11134_s23 }
 0x5ed   : > { %2182 = vrot.lane.b32.xlu0 %v11544_v55, %s11134_s23  ;;  %2184 = vrot.lane.b32.xlu1 %v11551_v29, %s11134_s23 }
 0x5f1   : > { %2186 = vrot.lane.b32.xlu0 %v11554_v33, %s11134_s23  ;;  %2188 = vrot.lane.b32.xlu1 %v11561_v35, %s11134_s23 }
 0x5f5   : > { %2190 = vrot.lane.b32.xlu0 %v11564_v39, %s11134_s23  ;;  %2192 = vrot.lane.b32.xlu1 %v11571_v44, %s11134_s23 }
 0x5f9   : > { %2194 = vrot.lane.b32.xlu0 %v11573_v51, %s11134_s23  ;;  %2196 = vrot.lane.b32.xlu1 %v11579_v56, %s11134_s23 }
 0x5fd   : > { %2198 = vrot.lane.b32.xlu0 %v11581_v58, %s11134_s23  ;;  %2200 = vrot.lane.b32.xlu1 %v11587_v61, %s11134_s23 }
 0x601   : > { %2202 = vrot.lane.b32.xlu0 %v11589_v62, %s11134_s23  ;;  %2204 = vrot.lane.b32.xlu1 %v11595_v63, %s11134_s23 }
 0x605   : > { %10016 = vrot.lane.b32.xlu0 %v11652_v7, %s11134_s23  ;;  %10021 = vrot.lane.b32.xlu1 %v11660_v9, %s11134_s23 }
 0x609   : > { %10031 = vrot.lane.b32.xlu0 %v11665_v60, %s11134_s23  ;;  %10026 = vrot.lane.b32.xlu1 %v11671_v40, %s11134_s23 }
 0x60d   : > { %10036 = vrot.lane.b32.xlu0 %v11675_v42, %s11134_s23  ;;  %10041 = vrot.lane.b32.xlu1 %v11679_v45, %s11134_s23 }
 0x60f   : > { %v1743_v21 = vpop.xlane.xlu0 %1742 }
 0x610   : > { %10551 = vrcp.f32 %v1743_v21  ;;  %v1741_v16 = vpop.xlane.xlu1 %1740  ;;  %v9310_v21 = vpack.c.bf16 %v9999_v13, %v9998_v30 }
 0x611   : > { %10553 = vrcp.f32 %v1741_v16  ;;  %10056 = vrot.lane.b32.xlu0 %v11410_v32, %s11135_s7  ;;  %10046 = vrot.lane.b32.xlu1 %v11685_v57, %s11134_s23 }
 0x613   : > { %v10007_v43 = vpop.permute.xlu0 %10006 }
 0x614   : > { %v10002_v16 = vpop.permute.xlu1 %10001  ;;  %v10008_v54 = vunpack.i.l.bf16 %v10007_v43 }
 0x615   : > { %10066 = vrot.lane.b32.xlu0 %v11444_v48, %s11135_s7  ;;  %10051 = vrot.lane.b32.xlu1 %v11689_v52, %s11134_s23 }
 0x619   : > { %10061 = vrot.lane.b32.xlu1 %v13988_v59, %s11135_s7 }
 0x61a   : > { %v10552_v23 = vpop.eup %10551 }
 0x61b   : > { %v10554_v36 = vpop.eup %10553  ;;  %v1789_v28 = vmul.f32 %v10552_v23, %v11929_v2  ;;  %v9994_v2 = vunpack.i.h.bf16 %v14002_v8  ;;  %v10004_v23 = vunpack.i.h.bf16 %v10002_v16 }
 0x61c   : > { %v1788_v4 = vmul.f32 %v10554_v36, %v11931_v18  ;;  %v9993_v18 = vunpack.i.l.bf16 %v14002_v8  ;;  %v10003_v36 = vunpack.i.l.bf16 %v10002_v16 }
 0x61e   : > { %8310 = vmatprep.mubr.f32.mxu0 %v1788_v4  ;;  %v9304_v47 = vpack.c.bf16 %v9994_v2, %v9993_v18  ;;  %v9316_v41 = vpack.c.bf16 %v10004_v23, %v10003_v36  ;;  %v10009_v4 = vunpack.i.h.bf16 %v10007_v43 }
 0x61f   : > { %8311 = vmatmul.mubr.f32.vlgmr.msra.gmra.mrb[48].mxu0 %v1789_v28 }
 0x620   : > { %9291 = vmatpush3.bf16.xpose.msk.msra.mxu0 %vm11406_vm1, %v13999_v34  ;;  %v9322_v34 = vpack.c.bf16 %v10009_v4, %v10008_v54 }
 0x621   : > { %9294 = vmatprep.subr.msk.bf16.mxu0 %vm11406_vm1, %v9292_v10 }
 0x628   : > { %9297 = vmatpush3.bf16.xpose.msk.msra.mxu0 %vm11406_vm1, %v9292_v10 }
 0x629   : > { %9300 = vmatprep.subr.msk.bf16.mxu0 %vm11406_vm1, %v9298_v22 }
 0x630   : > { %9303 = vmatpush3.bf16.xpose.msk.msra.mxu0 %vm11406_vm1, %v9298_v22 }
 0x631   : > { %9306 = vmatprep.subr.msk.bf16.mxu0 %vm11406_vm1, %v9304_v47 }
 0x638   : > { %9309 = vmatpush3.bf16.xpose.msk.msra.mxu0 %vm11406_vm1, %v9304_v47 }
 0x639   : > { %9312 = vmatprep.subr.msk.bf16.mxu0 %vm11406_vm1, %v9310_v21 }
 0x640   : > { %9315 = vmatpush3.bf16.xpose.msk.msra.mxu0 %vm11406_vm1, %v9310_v21 }
 0x641   : > { %9318 = vmatprep.subr.msk.bf16.mxu0 %vm11406_vm1, %v9316_v41 }
 0x644   : > { %v1745_v28 = vpop.xlane.xlu0 %1744 }
 0x645   : > { %10555 = vrcp.f32 %v1745_v28  ;;  %v1747_v10 = vpop.xlane.xlu1 %1746 }
 0x646   : > { %10557 = vrcp.f32 %v1747_v10 }
 0x648   : > { %9321 = vmatpush3.bf16.xpose.msk.msra.mxu0 %vm11406_vm1, %v9316_v41  ;;  %v1751_v6 = vpop.xlane.xlu0 %1750 }
 0x649   : > { %9324 = vmatprep.subr.msk.bf16.mxu0 %vm11406_vm1, %v9322_v34  ;;  %v1755_v24 = vpop.xlane.xlu1 %1754  ;;  %10559 = vrcp.f32 %v1751_v6 }
 0x64c   : > { %v1749_v5 = vpop.xlane.xlu0 %1748 }
 0x64d   : > { %10561 = vrcp.f32 %v1749_v5  ;;  %v1753_v22 = vpop.xlane.xlu1 %1752 }
 0x64e   : > { %10563 = vrcp.f32 %v1753_v22 }
 0x64f   : > { %v10556_v8 = vpop.eup %10555  ;;  %10565 = vrcp.f32 %v1755_v24 }
 0x650   : > { %v10558_v2 = vpop.eup %10557  ;;  %9327 = vmatpush3.bf16.xpose.msk.msra.mxu0 %vm11406_vm1, %v9322_v34  ;;  %v1761_v18 = vpop.xlane.xlu0 %1760  ;;  %v1790_v47 = vmul.f32 %v10556_v8, %v11945_v1 }
 0x651   : > { %v1759_v13 = vpop.xlane.xlu1 %1758  ;;  %v1791_v30 = vmul.f32 %v10558_v2, %v11947_v0  ;;  %10567 = vrcp.f32 %v1761_v18 }
 0x652   : > { %8313 = vmatprep.mubr.f32.mxu0 %v1790_v47  ;;  %10569 = vrcp.f32 %v1759_v13 }
 0x653   : > { %8314 = vmatmul.mubr.f32.gmra.mrb[50].mxu0 %v1791_v30  ;;  %v10560_v23 = vpop.eup %10559 }
 0x654   : > { %v1767_v21 = vpop.xlane.xlu0 %1766  ;;  %v1793_v1 = vmul.f32 %v10560_v23, %v11953_v3 }
 0x655   : > { %v1757_v16 = vpop.xlane.xlu1 %1756 }
 0x656   : > { %10571 = vrcp.f32 %v1757_v16 }
 0x657   : > { %v10562_v36 = vpop.eup %10561 }
 0x658   : > { %v10564_v41 = vpop.eup %10563  ;;  %v1765_v43 = vpop.xlane.xlu0 %1764  ;;  %v1792_v4 = vmul.f32 %v10562_v36, %v11961_v19 }
 0x659   : > { %10573 = vrcp.f32 %v1765_v43  ;;  %v1763_v54 = vpop.xlane.xlu1 %1762  ;;  %v1794_v28 = vmul.f32 %v10564_v41, %v11963_v31  ;;  %v10566_v0 = vpop.eup %10565 }
 0x65a   : > { %10575 = vrcp.f32 %v1763_v54  ;;  %8316 = vmatprep.mubr.f32.mxu0 %v1792_v4  ;;  %v1795_v5 = vmul.f32 %v10566_v0, %v11956_v15 }
 0x65b   : > { %8317 = vmatmul.mubr.f32.gmra.mrb[52].mxu0 %v1793_v1  ;;  %10577 = vrcp.f32 %v1767_v21  ;;  %v10568_v22 = vpop.eup %10567 }
 0x65c   : > { %8319 = vmatprep.mubr.f32.mxu0 %v1794_v28  ;;  %v10012_v10 = vpop.permute.xlu0 %10011  ;;  %v10570_v19 = vpop.eup %10569  ;;  %v1798_v13 = vmul.f32 %v10568_v22, %v11968_v37 }
 0x65d   : > { %v10014_v34 = vunpack.i.h.bf16 %v10012_v10  ;;  %v10013_v6 = vunpack.i.l.bf16 %v10012_v10  ;;  %v1771_v24 = vpop.xlane.xlu1 %1770  ;;  %v1797_v47 = vmul.f32 %v10570_v19, %v11970_v11 }
 0x65e   : > { %10579 = vrcp.f32 %v1771_v24 }
 0x65f   : > { %v9328_v8 = vpack.c.bf16 %v10014_v34, %v10013_v6  ;;  %8320 = vmatmul.mubr.f32.gmra.mrb[54].mxu0 %v1795_v5 }
 0x660   : > { %v10572_v2 = vpop.eup %10571  ;;  %v2175_v3 = vpop.permute.xlu0 %2174 }
 0x661   : > { %v1769_v31 = vpop.xlane.xlu1 %1768  ;;  %9330 = vmatprep.subr.msk.bf16.mxu0 %vm11406_vm1, %v9328_v8  ;;  %v1796_v18 = vmul.f32 %v10572_v2, %v11976_v20 }
 0x662   : > { %10581 = vrcp.f32 %v1769_v31  ;;  %9333 = vmatpush3.bf16.xpose.msk.msra.mxu0 %vm11406_vm1, %v9328_v8 }
 0x663   : > { %v10574_v15 = vpop.eup %10573  ;;  %8322 = vmatprep.mubr.f32.mxu0 %v1796_v18 }
 0x664   : > { %v10576_v30 = vpop.eup %10575  ;;  %8323 = vmatmul.mubr.f32.gmra.mrb[56].mxu0 %v1797_v47  ;;  %v2179_v21 = vpop.permute.xlu0 %2178  ;;  %v1800_v20 = vmul.f32 %v10574_v15, %v11980_v12 }
 0x665   : > { %v2177_v16 = vpop.permute.xlu1 %2176  ;;  %8325 = vmatprep.mubr.f32.mxu0 %v1798_v13  ;;  %v1799_v23 = vmul.f32 %v10576_v30, %v11982_v14  ;;  %v10578_v36 = vpop.eup %10577 }
 0x666   : > { %v1801_v11 = vmul.f32 %v10578_v36, %v11974_v25 }
 0x668   : > { %8326 = vmatmul.mubr.f32.gmra.mrb[58].mxu0 %v1799_v23  ;;  %v2183_v41 = vpop.permute.xlu0 %2182  ;;  %v10580_v4 = vpop.eup %10579 }
 0x669   : > { %v2181_v43 = vpop.permute.xlu1 %2180  ;;  %8328 = vmatprep.mubr.f32.mxu0 %v1800_v20  ;;  %v1803_v0 = vmul.f32 %v10580_v4, %v11986_v38 }
 0x66c   : > { %v10582_v54 = vpop.eup %10581  ;;  %8329 = vmatmul.mubr.f32.gmra.mrb[60].mxu0 %v1801_v11  ;;  %v2187_v37 = vpop.permute.xlu0 %2186 }
 0x66d   : > { %v2185_v1 = vpop.permute.xlu1 %2184  ;;  %v1802_v28 = vmul.f32 %v10582_v54, %v11989_v26 }
 0x66f   : > { %8331 = vmatprep.mubr.f32.mxu0 %v1802_v28 }
 0x670   : > { %8332 = vmatmul.mubr.f32.gmra.mrb[62].mxu0 %v1803_v0  ;;  %v2191_v14 = vpop.permute.xlu0 %2190 }
 0x671   : > { %v2189_v10 = vpop.permute.xlu1 %2188  ;;  %8366 = vmatprep.mubr.msk.f32.mxu0 %vm744_vm0, %v2175_v3 }
 0x674   : > { %v2195_v12 = vpop.permute.xlu0 %2194  ;;  %8367 = vmatmul.mubr.msk.f32.vlgmr.msra.gmra.mrb[64].mxu0 %vm744_vm0, %v2177_v16 }
 0x675   : > { %v2193_v34 = vpop.permute.xlu1 %2192  ;;  %8369 = vmatprep.mubr.msk.f32.mxu0 %vm744_vm0, %v2179_v21 }
 0x678   : > { %v2199_v25 = vpop.permute.xlu0 %2198  ;;  %8370 = vmatmul.mubr.msk.f32.gmra.mrb[66].mxu0 %vm744_vm0, %v2181_v43 }
 0x679   : > { %v2197_v6 = vpop.permute.xlu1 %2196  ;;  %8372 = vmatprep.mubr.msk.f32.mxu0 %vm744_vm0, %v2183_v41 }
 0x67c   : > { %v2203_v26 = vpop.permute.xlu0 %2202  ;;  %8373 = vmatmul.mubr.msk.f32.gmra.mrb[68].mxu0 %vm744_vm0, %v2185_v1 }
 0x67d   : > { %v2201_v38 = vpop.permute.xlu1 %2200  ;;  %8375 = vmatprep.mubr.msk.f32.mxu0 %vm744_vm0, %v2187_v37 }
 0x680   : > { %v10017_v24 = vpop.permute.xlu0 %10016  ;;  %8376 = vmatmul.mubr.msk.f32.gmra.mrb[70].mxu0 %vm744_vm0, %v2189_v10 }
 0x681   : > { %v10019_v5 = vunpack.i.h.bf16 %v10017_v24  ;;  %v10018_v22 = vunpack.i.l.bf16 %v10017_v24  ;;  %v2205_v19 = vpop.permute.xlu1 %2204  ;;  %8378 = vmatprep.mubr.msk.f32.mxu0 %vm744_vm0, %v2191_v14 }
 0x683   : > { %v9334_v8 = vpack.c.bf16 %v10019_v5, %v10018_v22 }
 0x684   : > { %8379 = vmatmul.mubr.msk.f32.gmra.mrb[72].mxu0 %vm744_vm0, %v2193_v34  ;;  %v10032_v2 = vpop.permute.xlu0 %10031 }
 0x685   : > { %v10022_v3 = vpop.permute.xlu1 %10021  ;;  %8381 = vmatprep.mubr.msk.f32.mxu0 %vm744_vm0, %v2195_v12  ;;  %9335 = vmatprep.subr.bf16.mxu1 %v9334_v8  ;;  %v10034_v13 = vunpack.i.h.bf16 %v10032_v2  ;;  %v10033_v30 = vunpack.i.l.bf16 %v10032_v2 }
 0x686   : > { %v10024_v31 = vunpack.i.h.bf16 %v10022_v3  ;;  %v10023_v18 = vunpack.i.l.bf16 %v10022_v3  ;;  %9337 = vmatpush3.bf16.msra.mxu1 %v9334_v8 }
 0x687   : > { %v9346_v11 = vpack.c.bf16 %v10034_v13, %v10033_v30 }
 0x688   : > { %8382 = vmatmul.mubr.msk.f32.gmra.mrb[74].mxu0 %vm744_vm0, %v2197_v6  ;;  %v9338_v47 = vpack.c.bf16 %v10024_v31, %v10023_v18  ;;  %v10037_v23 = vpop.permute.xlu0 %10036 }
 0x689   : > { %v10027_v15 = vpop.permute.xlu1 %10026  ;;  %8384 = vmatprep.mubr.msk.f32.mxu0 %vm744_vm0, %v2199_v25  ;;  %v10039_v41 = vunpack.i.h.bf16 %v10037_v23  ;;  %v10038_v43 = vunpack.i.l.bf16 %v10037_v23 }
 0x68a   : > { %v10029_v21 = vunpack.i.h.bf16 %v10027_v15  ;;  %v10028_v16 = vunpack.i.l.bf16 %v10027_v15  ;;  %9339 = vmatprep.subr.bf16.mxu1 %v9338_v47 }
 0x68b   : > { %9341 = vmatpush3.bf16.msra.mxu1 %v9338_v47  ;;  %v9350_v1 = vpack.c.bf16 %v10039_v41, %v10038_v43 }
 0x68c   : > { %8385 = vmatmul.mubr.msk.f32.gmra.mrb[76].mxu0 %vm744_vm0, %v2201_v38  ;;  %v9342_v36 = vpack.c.bf16 %v10029_v21, %v10028_v16  ;;  %v10057_v6 = vpop.permute.xlu0 %10056 }
 0x68d   : > { %v10042_v20 = vpop.permute.xlu1 %10041  ;;  %8387 = vmatprep.mubr.msk.f32.mxu0 %vm744_vm0, %v2203_v26  ;;  %v10059_v26 = vunpack.i.h.bf16 %v10057_v6  ;;  %v10058_v38 = vunpack.i.l.bf16 %v10057_v6 }
 0x68e   : > { %9343 = vmatprep.subr.bf16.mxu1 %v9342_v36  ;;  %v10044_v54 = vunpack.i.h.bf16 %v10042_v20  ;;  %v10043_v37 = vunpack.i.l.bf16 %v10042_v20 }
 0x68f   : > { %9345 = vmatpush3.bf16.msra.mxu1 %v9342_v36  ;;  %v12117_v5 = vpack.c.bf16 %v10059_v26, %v10058_v38 }
 0x690   : > { %8388 = vmatmul.mubr.msk.f32.gmra.mrb[78].mxu0 %vm744_vm0, %v2205_v19  ;;  %9347 = vmatprep.subr.bf16.mxu1 %v9346_v11  ;;  %v9354_v14 = vpack.c.bf16 %v10044_v54, %v10043_v37 }
 0x691   : > { %v10047_v4 = vpop.permute.xlu1 %10046  ;;  %14003 = vst [vmem:[#allocation15_spill] sm:$0xff] %v12117_v5 }
 0x692   : > { %v10049_v28 = vunpack.i.h.bf16 %v10047_v4  ;;  %v10048_v0 = vunpack.i.l.bf16 %v10047_v4 }
 0x693   : > { %9349 = vmatpush3.bf16.msra.mxu1 %v9346_v11 }
 0x694   : > { %9351 = vmatprep.subr.bf16.mxu1 %v9350_v1  ;;  %v9358_v25 = vpack.c.bf16 %v10049_v28, %v10048_v0 }
 0x695   : > { %v10052_v10 = vpop.permute.xlu1 %10051 }
 0x696   : > { %v10054_v12 = vunpack.i.h.bf16 %v10052_v10  ;;  %v10053_v34 = vunpack.i.l.bf16 %v10052_v10  ;;  %v14020_v10 = vld [vmem:[#allocation16_spill] sm:$0xff] }
 0x697   : > { %9353 = vmatpush3.bf16.msra.mxu1 %v9350_v1 }
 0x698   : > { %9355 = vmatprep.subr.bf16.mxu1 %v9354_v14  ;;  %v9362_v24 = vpack.c.bf16 %v10054_v12, %v10053_v34 }
 0x69b   : > { %9357 = vmatpush3.bf16.msra.mxu1 %v9354_v14 }
 0x69c   : > { %9359 = vmatprep.subr.bf16.mxu1 %v9358_v25 }
 0x69f   : > { %9361 = vmatpush3.bf16.msra.mxu1 %v9358_v25 }
 0x6a0   : > { %9363 = vmatprep.subr.bf16.mxu1 %v9362_v24 }
 0x6a3   : > { %9365 = vmatpush3.bf16.msra.mxu1 %v9362_v24  ;;  %v14021_v24 = vld [vmem:[#allocation17_spill] sm:$0xff] }
 0x6a4   : > { %9368 = vmatprep.subr.msk.bf16.mxu1 %vm11406_vm1, %v12117_v5 }
 0x6f2   : > { %v12122_v22 = vpop.f32.mrb[48].mxu0 }
 0x6f3   : > { %14004 = vst [vmem:[#allocation20_spill] sm:$0xff] %v12122_v22  ;;  %v12124_v19 = vpop.f32.mrb[49].mxu0 }
 0x6f4   : > { %14005 = vst [vmem:[#allocation21_spill] sm:$0xff] %v12124_v19 }
 0x726   : > { %v12126_v8 = vpop.f32.mrb[50].mxu0 }
 0x727   : > { %14006 = vst [vmem:[#allocation22_spill] sm:$0xff] %v12126_v8  ;;  %v12128_v2 = vpop.f32.mrb[51].mxu0 }
 0x728   : > { %14007 = vst [vmem:[#allocation23_spill] sm:$0xff] %v12128_v2  ;;  %v14023_v2 = vld [vmem:[#allocation18_spill] sm:$0xff] }
 0x72e   : > { %v12130_v3 = vpop.f32.mrb[52].mxu0 }
 0x72f   : > { %14008 = vst [vmem:[#allocation24_spill] sm:$0xff] %v12130_v3  ;;  %v12132_v31 = vpop.f32.mrb[53].mxu0 }
 0x730   : > { %14009 = vst [vmem:[#allocation25_spill] sm:$0xff] %v12132_v31 }
 0x732   : > { %v12134_v18 = vpop.f32.mrb[54].mxu0 }
 0x733   : > { %14010 = vst [vmem:[#allocation26_spill] sm:$0xff] %v12134_v18  ;;  %v12136_v47 = vpop.f32.mrb[55].mxu0  ;;  %v12187_v18 = vpop.permute.xlu0 %10066 }
 0x734   : > { %14011 = vst [vmem:[#allocation27_spill] sm:$0xff] %v12136_v47  ;;  %14022 = vst [vmem:[#allocation36_spill] sm:$0xff] %v12187_v18 }
 0x737   : > { %v12138_v15 = vpop.f32.mrb[56].mxu0 }
 0x738   : > { %14012 = vst [vmem:[#allocation28_spill] sm:$0xff] %v12138_v15  ;;  %v12140_v13 = vpop.f32.mrb[57].mxu0 }
 0x739   : > { %14013 = vst [vmem:[#allocation29_spill] sm:$0xff] %v12140_v13 }
 0x73b   : > { %v12142_v30 = vpop.f32.mrb[58].mxu0 }
 0x73c   : > { %14014 = vst [vmem:[#allocation30_spill] sm:$0xff] %v12142_v30  ;;  %v12144_v21 = vpop.f32.mrb[59].mxu0 }
 0x73d   : > { %14015 = vst [vmem:[#allocation31_spill] sm:$0xff] %v12144_v21 }
 0x73f   : > { %v12146_v16 = vpop.f32.mrb[60].mxu0 }
 0x740   : > { %14016 = vst [vmem:[#allocation32_spill] sm:$0xff] %v12146_v16  ;;  %v12148_v23 = vpop.f32.mrb[61].mxu0 }
 0x741   : > { %14017 = vst [vmem:[#allocation33_spill] sm:$0xff] %v12148_v23 }
 0x743   : > { %v12150_v36 = vpop.f32.mrb[62].mxu0 }
 0x744   : > { %14018 = vst [vmem:[#allocation34_spill] sm:$0xff] %v12150_v36  ;;  %v12152_v20 = vpop.f32.mrb[63].mxu0  ;;  %v12185_v36 = vpop.permute.xlu1 %10061 }
 0x745   : > { %14019 = vst [vmem:[#allocation35_spill] sm:$0xff] %v12152_v20 }
 0x747   : > { %v8368_v41 = vpop.f32.mrb[64].mxu0 }
 0x748   : > { %2465 = vmax.xlane.f32.xlu1 %v8368_v41  ;;  %v2384_v43 = vpop.f32.mrb[65].mxu0 }
 0x749   : > { %2463 = vmax.xlane.f32.xlu0 %v2384_v43 }
 0x74b   : > { %v8371_v11 = vpop.f32.mrb[66].mxu0 }
 0x74c   : > { %v2394_v4 = vpop.f32.mrb[67].mxu0 }
 0x74d   : > { %2469 = vmax.xlane.f32.xlu0 %v8371_v11 }
 0x74f   : > { %v8374_v54 = vpop.f32.mrb[68].mxu0 }
 0x750   : > { %v12154_v37 = vpop.f32.mrb[69].mxu0 }
 0x751   : > { %2467 = vmax.xlane.f32.xlu0 %v2394_v4 }
 0x753   : > { %v8377_v1 = vpop.f32.mrb[70].mxu0 }
 0x754   : > { %v12156_v28 = vpop.f32.mrb[71].mxu0 }
 0x755   : > { %2471 = vmax.xlane.f32.xlu0 %v12154_v37 }
 0x757   : > { %v12159_v0 = vpop.f32.mrb[72].mxu0 }
 0x758   : > { %v12161_v14 = vpop.f32.mrb[73].mxu0 }
 0x759   : > { %10071 = vrot.lane.b32.xlu1 %v14020_v10, %s11135_s7  ;;  %2475 = vmax.xlane.f32.xlu0 %v12156_v28 }
 0x75b   : > { %v12166_v12 = vpop.f32.mrb[74].mxu0 }
 0x75c   : > { %v2434_v34 = vpop.f32.mrb[75].mxu0 }
 0x75d   : > { %2479 = vmax.xlane.f32.xlu0 %v12161_v14 }
 0x75f   : > { %v12169_v25 = vpop.f32.mrb[76].mxu0 }
 0x760   : > { %v12171_v6 = vpop.f32.mrb[77].mxu0 }
 0x761   : > { %2483 = vmax.xlane.f32.xlu0 %v2434_v34 }
 0x763   : > { %v12173_v26 = vpop.f32.mrb[78].mxu0 }
 0x764   : > { %v12175_v38 = vpop.f32.mrb[79].mxu0 }
 0x765   : > { %2487 = vmax.xlane.f32.xlu0 %v12171_v6 }
 0x769   : > { %2491 = vmax.xlane.f32.xlu0 %v12175_v38 }
 0x77d   : > { %2473 = vmax.xlane.f32.xlu1 %v8374_v54 }
 0x77f   : > { %10076 = vrot.lane.b32.xlu0 %v14021_v24, %s11135_s7 }
 0x781   : > { %2477 = vmax.xlane.f32.xlu1 %v8377_v1 }
 0x785   : > { %2481 = vmax.xlane.f32.xlu1 %v12159_v0 }
 0x789   : > { %2485 = vmax.xlane.f32.xlu1 %v12166_v12 }
 0x78d   : > { %2489 = vmax.xlane.f32.xlu1 %v12169_v25 }
 0x791   : > { %2493 = vmax.xlane.f32.xlu1 %v12173_v26 }
 0x7d5   : > { %v2466_v20 = vpop.xlane.xlu1 %2465 }
 0x7d6   : > { %v2496_v47 = vsub.f32 %v8368_v41, %v2466_v20  ;;  %v2464_v16 = vpop.xlane.xlu0 %2463  ;;  %v14024_v20 = vld [vmem:[#allocation19_spill] sm:$0xff] }
 0x7d7   : > { %v2495_v3 = vsub.f32 %v2384_v43, %v2464_v16 }
 0x7d8   : > { %v2513_v23 = vmul.f32 1.442695, %v2496_v47 }
 0x7d9   : > { %v2511_v31 = vmul.f32 1.442695, %v2495_v3  ;;  %v12199_v16 = vpop.permute.xlu1 %10071 }
 0x7da   : > { %10583 = vpow2.f32 %v2513_v23  ;;  %v2470_v21 = vpop.xlane.xlu0 %2469  ;;  %14025 = vst [vmem:[#allocation37_spill] sm:$0xff] %v12199_v16 }
 0x7db   : > { %10585 = vpow2.f32 %v2511_v31  ;;  %v2498_v23 = vsub.f32 %v8371_v11, %v2470_v21 }
 0x7dd   : > { %v2517_v19 = vmul.f32 1.442695, %v2498_v23 }
 0x7de   : > { %v2468_v22 = vpop.xlane.xlu0 %2467 }
 0x7df   : > { %v2497_v31 = vsub.f32 %v2394_v4, %v2468_v22 }
 0x7e1   : > { %v2515_v15 = vmul.f32 1.442695, %v2497_v31 }
 0x7e2   : > { %v2472_v47 = vpop.xlane.xlu0 %2471 }
 0x7e3   : > { %10587 = vpow2.f32 %v2515_v15 }
 0x7e4   : > { %v12189_v30 = vpop.eup %10583  ;;  %10589 = vpow2.f32 %v2517_v19 }
 0x7e5   : > { %v12191_v8 = vpop.eup %10585  ;;  %2545 = vadd.xlane.f32.xlu0 %v12189_v30 }
 0x7e6   : > { %2543 = vadd.xlane.f32.xlu1 %v12191_v8  ;;  %v2476_v3 = vpop.xlane.xlu0 %2475 }
 0x7ea   : > { %v2480_v41 = vpop.xlane.xlu0 %2479 }
 0x7eb   : > { %v2503_v15 = vsub.f32 %v12161_v14, %v2480_v41 }
 0x7ee   : > { %v2484_v17 = vpop.xlane.xlu0 %2483 }
 0x7ef   : > { %v2505_v21 = vsub.f32 %v2434_v34, %v2484_v17 }
 0x7f7   : > { %10081 = vrot.lane.b32.xlu1 %v14023_v2, %s11135_s7  ;;  %v2499_v2 = vsub.f32 %v12154_v37, %v2472_v47  ;;  %v2488_v37 = vpop.xlane.xlu0 %2487 }
 0x7f8   : > { %v2507_v17 = vsub.f32 %v12171_v6, %v2488_v37 }
 0x7f9   : > { %v2519_v22 = vmul.f32 1.442695, %v2499_v2 }
 0x7fb   : > { %10086 = vrot.lane.b32.xlu0 %v14024_v20, %s11135_s7  ;;  %v2501_v20 = vsub.f32 %v12156_v28, %v2476_v3  ;;  %v2492_v3 = vpop.xlane.xlu0 %2491 }
 0x7fd   : > { %v2523_v11 = vmul.f32 1.442695, %v2501_v20  ;;  %v2535_v20 = vmul.f32 1.442695, %v2507_v17  ;;  %v10063_v17 = vunpack.i.l.bf16 %v12185_v36 }
 0x80a   : > { %v2474_v43 = vpop.xlane.xlu1 %2473 }
 0x80b   : > { %v2500_v13 = vsub.f32 %v8374_v54, %v2474_v43 }
 0x80d   : > { %v2521_v24 = vmul.f32 1.442695, %v2500_v13  ;;  %v2531_v13 = vmul.f32 1.442695, %v2505_v21 }
 0x80e   : > { %v2478_v10 = vpop.xlane.xlu1 %2477 }
 0x80f   : > { %v2502_v18 = vsub.f32 %v8377_v1, %v2478_v10  ;;  %10591 = vpow2.f32 %v2521_v24  ;;  %v12205_v1 = vpop.eup %10587 }
 0x810   : > { %v12207_v28 = vpop.eup %10589 }
 0x811   : > { %v2525_v5 = vmul.f32 1.442695, %v2502_v18 }
 0x812   : > { %v2482_v16 = vpop.xlane.xlu1 %2481 }
 0x813   : > { %10593 = vpow2.f32 %v2525_v5  ;;  %v2504_v4 = vsub.f32 %v12159_v0, %v2482_v16  ;;  %v2527_v0 = vmul.f32 1.442695, %v2503_v15 }
 0x814   : > { %10595 = vpow2.f32 %v2519_v22 }
 0x815   : > { %10597 = vpow2.f32 %v2523_v11  ;;  %v2529_v19 = vmul.f32 1.442695, %v2504_v4 }
 0x816   : > { %v2486_v54 = vpop.xlane.xlu1 %2485  ;;  %10599 = vpow2.f32 %v2531_v13 }
 0x817   : > { %10601 = vpow2.f32 %v2529_v19  ;;  %v2506_v14 = vsub.f32 %v12166_v12, %v2486_v54  ;;  %v2509_v12 = vsub.f32 %v12175_v38, %v2492_v3  ;;  %v10077_v54 = vpop.permute.xlu0 %10076 }
 0x819   : > { %v12213_v2 = vpop.eup %10591 }
 0x81a   : > { %v2490_v18 = vpop.xlane.xlu1 %2489  ;;  %2547 = vadd.xlane.f32.xlu0 %v12205_v1 }
 0x81b   : > { %v2508_v5 = vsub.f32 %v12169_v25, %v2490_v18  ;;  %2549 = vadd.xlane.f32.xlu1 %v12207_v28  ;;  %v2533_v25 = vmul.f32 1.442695, %v2506_v14  ;;  %v10064_v18 = vunpack.i.h.bf16 %v12185_v36 }
 0x81d   : > { %v12216_v10 = vpop.eup %10593  ;;  %v2537_v34 = vmul.f32 1.442695, %v2508_v5  ;;  %v9372_v14 = vpack.c.bf16 %v10064_v18, %v10063_v17 }
 0x81e   : > { %v2494_v24 = vpop.xlane.xlu1 %2493  ;;  %2553 = vadd.xlane.f32.xlu0 %v12213_v2  ;;  %v12221_v47 = vpop.eup %10595 }
 0x81f   : > { %10603 = vpow2.f32 %v2537_v34  ;;  %2557 = vadd.xlane.f32.xlu1 %v12216_v10  ;;  %v2510_v6 = vsub.f32 %v12173_v26, %v2494_v24  ;;  %v12223_v16 = vpop.eup %10597  ;;  %v2539_v26 = vmul.f32 1.442695, %v2509_v12  ;;  %v14026_v34 = vld [vmem:[#allocation15_spill] sm:$0xff] }
 0x820   : > { %10605 = vpow2.f32 %v2527_v0  ;;  %v12228_v23 = vpop.eup %10599 }
 0x821   : > { %10607 = vpow2.f32 %v2535_v20  ;;  %v2541_v31 = vmul.f32 1.442695, %v2510_v6  ;;  %v12230_v41 = vpop.eup %10601  ;;  %v14028_v20 = vld [vmem:[#allocation36_spill] sm:$0xff] }
 0x822   : > { %2551 = vadd.xlane.f32.xlu0 %v12221_v47  ;;  %10609 = vpow2.f32 %v2533_v25  ;;  %v10069_v25 = vunpack.i.h.bf16 %v14028_v20  ;;  %v10068_v6 = vunpack.i.l.bf16 %v14028_v20 }
 0x823   : > { %2555 = vadd.xlane.f32.xlu1 %v12223_v16  ;;  %10611 = vpow2.f32 %v2541_v31  ;;  %v10079_v31 = vunpack.i.h.bf16 %v10077_v54 }
 0x824   : > { %10613 = vpow2.f32 %v2539_v26  ;;  %v9378_v3 = vpack.c.bf16 %v10069_v25, %v10068_v6  ;;  %v10078_v26 = vunpack.i.l.bf16 %v10077_v54 }
 0x826   : > { %2563 = vadd.xlane.f32.xlu0 %v12228_v23 }
 0x827   : > { %2561 = vadd.xlane.f32.xlu1 %v12230_v41 }
 0x829   : > { %v12234_v43 = vpop.eup %10603 }
 0x82a   : > { %v12236_v22 = vpop.eup %10605  ;;  %2569 = vadd.xlane.f32.xlu0 %v12234_v43 }
 0x82b   : > { %2559 = vadd.xlane.f32.xlu1 %v12236_v22  ;;  %v12240_v38 = vpop.eup %10607 }
 0x82c   : > { %v12242_v21 = vpop.eup %10609 }
 0x82d   : > { %v12246_v11 = vpop.eup %10611 }
 0x82e   : > { %2567 = vadd.xlane.f32.xlu0 %v12240_v38  ;;  %v12249_v4 = vpop.eup %10613 }
 0x82f   : > { %2565 = vadd.xlane.f32.xlu1 %v12242_v21 }
 0x833   : > { %2573 = vadd.xlane.f32.xlu1 %v12246_v11 }
 0x837   : > { %2571 = vadd.xlane.f32.xlu1 %v12249_v4 }
 0x844   : > { %10091 = vrot.lane.b32.xlu0 %v11524_v46, %s11135_s7 }
 0x848   : > { %2977 = vrot.lane.b32.xlu0 %v11398_v27, %s11135_s7  ;;  %2979 = vrot.lane.b32.xlu1 %v11531_v49, %s11135_s7 }
 0x84c   : > { %2981 = vrot.lane.b32.xlu0 %v11534_v50, %s11135_s7  ;;  %2983 = vrot.lane.b32.xlu1 %v11541_v53, %s11135_s7 }
 0x850   : > { %2985 = vrot.lane.b32.xlu0 %v11544_v55, %s11135_s7  ;;  %2987 = vrot.lane.b32.xlu1 %v11551_v29, %s11135_s7 }
 0x854   : > { %2989 = vrot.lane.b32.xlu0 %v11554_v33, %s11135_s7  ;;  %2991 = vrot.lane.b32.xlu1 %v11561_v35, %s11135_s7 }
 0x858   : > { %2993 = vrot.lane.b32.xlu0 %v11564_v39, %s11135_s7  ;;  %2995 = vrot.lane.b32.xlu1 %v11571_v44, %s11135_s7 }
 0x85c   : > { %2997 = vrot.lane.b32.xlu0 %v11573_v51, %s11135_s7  ;;  %2999 = vrot.lane.b32.xlu1 %v11579_v56, %s11135_s7 }
 0x860   : > { %3001 = vrot.lane.b32.xlu0 %v11581_v58, %s11135_s7  ;;  %3003 = vrot.lane.b32.xlu1 %v11587_v61, %s11135_s7 }
 0x864   : > { %3005 = vrot.lane.b32.xlu0 %v11589_v62, %s11135_s7  ;;  %3007 = vrot.lane.b32.xlu1 %v11595_v63, %s11135_s7 }
 0x868   : > { %10096 = vrot.lane.b32.xlu0 %v11652_v7, %s11135_s7  ;;  %10101 = vrot.lane.b32.xlu1 %v11660_v9, %s11135_s7 }
 0x86c   : > { %10111 = vrot.lane.b32.xlu0 %v11665_v60, %s11135_s7  ;;  %10106 = vrot.lane.b32.xlu1 %v11671_v40, %s11135_s7 }
 0x870   : > { %10116 = vrot.lane.b32.xlu0 %v11675_v42, %s11135_s7  ;;  %10121 = vrot.lane.b32.xlu1 %v11679_v45, %s11135_s7 }
 0x872   : > { %v2546_v13 = vpop.xlane.xlu0 %2545 }
 0x873   : > { %10615 = vrcp.f32 %v2546_v13  ;;  %v2544_v15 = vpop.xlane.xlu1 %2543  ;;  %v9390_v13 = vpack.c.bf16 %v10079_v31, %v10078_v26 }
 0x874   : > { %10617 = vrcp.f32 %v2544_v15  ;;  %10136 = vrot.lane.b32.xlu0 %v11410_v32, %s11136_s8  ;;  %10126 = vrot.lane.b32.xlu1 %v11685_v57, %s11135_s7 }
 0x876   : > { %v10087_v17 = vpop.permute.xlu0 %10086 }
 0x877   : > { %v10082_v15 = vpop.permute.xlu1 %10081  ;;  %v10088_v54 = vunpack.i.l.bf16 %v10087_v17 }
 0x878   : > { %10146 = vrot.lane.b32.xlu0 %v11444_v48, %s11136_s8  ;;  %10131 = vrot.lane.b32.xlu1 %v11689_v52, %s11135_s7 }
 0x87c   : > { %10141 = vrot.lane.b32.xlu1 %v13988_v59, %s11136_s8 }
 0x87d   : > { %v10616_v37 = vpop.eup %10615 }
 0x87e   : > { %v10618_v19 = vpop.eup %10617  ;;  %v2592_v0 = vmul.f32 %v10616_v37, %v12189_v30  ;;  %v10084_v37 = vunpack.i.h.bf16 %v10082_v15 }
 0x87f   : > { %v2591_v5 = vmul.f32 %v10618_v19, %v12191_v8  ;;  %v14029_v8 = vld [vmem:[#allocation37_spill] sm:$0xff]  ;;  %v10083_v19 = vunpack.i.l.bf16 %v10082_v15 }
 0x880   : > { %v10074_v30 = vunpack.i.h.bf16 %v14029_v8  ;;  %v10073_v36 = vunpack.i.l.bf16 %v14029_v8 }
 0x881   : > { %8422 = vmatprep.mubr.f32.mxu1 %v2591_v5  ;;  %v9396_v18 = vpack.c.bf16 %v10084_v37, %v10083_v19  ;;  %v10089_v5 = vunpack.i.h.bf16 %v10087_v17 }
 0x882   : > { %8423 = vmatmul.mubr.f32.vlgmr.msra.gmra.mrb[48].mxu1 %v2592_v0  ;;  %v9384_v12 = vpack.c.bf16 %v10074_v30, %v10073_v36 }
 0x883   : > { %9371 = vmatpush3.bf16.xpose.msk.msra.mxu1 %vm11406_vm1, %v14026_v34  ;;  %v9402_v34 = vpack.c.bf16 %v10089_v5, %v10088_v54 }
 0x884   : > { %9374 = vmatprep.subr.msk.bf16.mxu1 %vm11406_vm1, %v9372_v14 }
 0x88b   : > { %9377 = vmatpush3.bf16.xpose.msk.msra.mxu1 %vm11406_vm1, %v9372_v14 }
 0x88c   : > { %9380 = vmatprep.subr.msk.bf16.mxu1 %vm11406_vm1, %v9378_v3 }
 0x893   : > { %9383 = vmatpush3.bf16.xpose.msk.msra.mxu1 %vm11406_vm1, %v9378_v3 }
 0x894   : > { %9386 = vmatprep.subr.msk.bf16.mxu1 %vm11406_vm1, %v9384_v12 }
 0x89b   : > { %9389 = vmatpush3.bf16.xpose.msk.msra.mxu1 %vm11406_vm1, %v9384_v12 }
 0x89c   : > { %9392 = vmatprep.subr.msk.bf16.mxu1 %vm11406_vm1, %v9390_v13 }
 0x8a3   : > { %9395 = vmatpush3.bf16.xpose.msk.msra.mxu1 %vm11406_vm1, %v9390_v13 }
 0x8a4   : > { %9398 = vmatprep.subr.msk.bf16.mxu1 %vm11406_vm1, %v9396_v18 }
 0x8a7   : > { %v2548_v0 = vpop.xlane.xlu0 %2547 }
 0x8a8   : > { %10619 = vrcp.f32 %v2548_v0  ;;  %v2550_v14 = vpop.xlane.xlu1 %2549 }
 0x8a9   : > { %10621 = vrcp.f32 %v2550_v14 }
 0x8ab   : > { %9401 = vmatpush3.bf16.xpose.msk.msra.mxu1 %vm11406_vm1, %v9396_v18  ;;  %v2554_v20 = vpop.xlane.xlu0 %2553 }
 0x8ac   : > { %9404 = vmatprep.subr.msk.bf16.mxu1 %vm11406_vm1, %v9402_v34  ;;  %v2558_v25 = vpop.xlane.xlu1 %2557  ;;  %10623 = vrcp.f32 %v2554_v20 }
 0x8af   : > { %v2552_v6 = vpop.xlane.xlu0 %2551 }
 0x8b0   : > { %10625 = vrcp.f32 %v2552_v6  ;;  %v2556_v3 = vpop.xlane.xlu1 %2555 }
 0x8b1   : > { %10627 = vrcp.f32 %v2556_v3 }
 0x8b2   : > { %v10620_v8 = vpop.eup %10619  ;;  %10629 = vrcp.f32 %v2558_v25 }
 0x8b3   : > { %v10622_v30 = vpop.eup %10621  ;;  %9407 = vmatpush3.bf16.xpose.msk.msra.mxu1 %vm11406_vm1, %v9402_v34  ;;  %v2564_v36 = vpop.xlane.xlu0 %2563  ;;  %v2593_v12 = vmul.f32 %v10620_v8, %v12205_v1 }
 0x8b4   : > { %v2562_v31 = vpop.xlane.xlu1 %2561  ;;  %v2594_v26 = vmul.f32 %v10622_v30, %v12207_v28  ;;  %10631 = vrcp.f32 %v2564_v36 }
 0x8b5   : > { %8425 = vmatprep.mubr.f32.mxu1 %v2593_v12  ;;  %10633 = vrcp.f32 %v2562_v31 }
 0x8b6   : > { %8426 = vmatmul.mubr.f32.gmra.mrb[50].mxu1 %v2594_v26  ;;  %v10624_v37 = vpop.eup %10623 }
 0x8b7   : > { %v2570_v13 = vpop.xlane.xlu0 %2569  ;;  %v2596_v1 = vmul.f32 %v10624_v37, %v12213_v2 }
 0x8b8   : > { %v2560_v15 = vpop.xlane.xlu1 %2559 }
 0x8b9   : > { %10635 = vrcp.f32 %v2560_v15 }
 0x8ba   : > { %v10626_v19 = vpop.eup %10625 }
 0x8bb   : > { %v10628_v18 = vpop.eup %10627  ;;  %v2568_v17 = vpop.xlane.xlu0 %2567  ;;  %v2595_v5 = vmul.f32 %v10626_v19, %v12221_v47 }
 0x8bc   : > { %10637 = vrcp.f32 %v2568_v17  ;;  %v2566_v54 = vpop.xlane.xlu1 %2565  ;;  %v2597_v0 = vmul.f32 %v10628_v18, %v12223_v16  ;;  %v10630_v28 = vpop.eup %10629 }
 0x8bd   : > { %10639 = vrcp.f32 %v2566_v54  ;;  %8428 = vmatprep.mubr.f32.mxu1 %v2595_v5  ;;  %v2598_v6 = vmul.f32 %v10630_v28, %v12216_v10 }
 0x8be   : > { %8429 = vmatmul.mubr.f32.gmra.mrb[52].mxu1 %v2596_v1  ;;  %10641 = vrcp.f32 %v2570_v13  ;;  %v10632_v3 = vpop.eup %10631 }
 0x8bf   : > { %8431 = vmatprep.mubr.f32.mxu1 %v2597_v0  ;;  %v10092_v14 = vpop.permute.xlu0 %10091  ;;  %v10634_v47 = vpop.eup %10633  ;;  %v2601_v31 = vmul.f32 %v10632_v3, %v12228_v23 }
 0x8c0   : > { %v10094_v34 = vunpack.i.h.bf16 %v10092_v14  ;;  %v10093_v20 = vunpack.i.l.bf16 %v10092_v14  ;;  %v2574_v25 = vpop.xlane.xlu1 %2573  ;;  %v2600_v12 = vmul.f32 %v10634_v47, %v12230_v41 }
 0x8c1   : > { %10643 = vrcp.f32 %v2574_v25 }
 0x8c2   : > { %v9408_v8 = vpack.c.bf16 %v10094_v34, %v10093_v20  ;;  %8432 = vmatmul.mubr.f32.gmra.mrb[54].mxu1 %v2598_v6 }
 0x8c3   : > { %v10636_v30 = vpop.eup %10635  ;;  %v2978_v2 = vpop.permute.xlu0 %2977 }
 0x8c4   : > { %v2572_v16 = vpop.xlane.xlu1 %2571  ;;  %9410 = vmatprep.subr.msk.bf16.mxu1 %vm11406_vm1, %v9408_v8  ;;  %v2599_v36 = vmul.f32 %v10636_v30, %v12236_v22 }
 0x8c5   : > { %10645 = vrcp.f32 %v2572_v16  ;;  %9413 = vmatpush3.bf16.xpose.msk.msra.mxu1 %vm11406_vm1, %v9408_v8 }
 0x8c6   : > { %v10638_v10 = vpop.eup %10637  ;;  %8434 = vmatprep.mubr.f32.mxu1 %v2599_v36 }
 0x8c7   : > { %v10640_v26 = vpop.eup %10639  ;;  %8435 = vmatmul.mubr.f32.gmra.mrb[56].mxu1 %v2600_v12  ;;  %v2982_v13 = vpop.permute.xlu0 %2981  ;;  %v2603_v22 = vmul.f32 %v10638_v10, %v12240_v38 }
 0x8c8   : > { %v2980_v15 = vpop.permute.xlu1 %2979  ;;  %8437 = vmatprep.mubr.f32.mxu1 %v2601_v31  ;;  %v2602_v37 = vmul.f32 %v10640_v26, %v12242_v21  ;;  %v10642_v19 = vpop.eup %10641 }
 0x8c9   : > { %v2604_v41 = vmul.f32 %v10642_v19, %v12234_v43 }
 0x8cb   : > { %8438 = vmatmul.mubr.f32.gmra.mrb[58].mxu1 %v2602_v37  ;;  %v2986_v18 = vpop.permute.xlu0 %2985  ;;  %v10644_v5 = vpop.eup %10643 }
 0x8cc   : > { %v2984_v17 = vpop.permute.xlu1 %2983  ;;  %8440 = vmatprep.mubr.f32.mxu1 %v2603_v22  ;;  %v2606_v28 = vmul.f32 %v10644_v5, %v12246_v11 }
 0x8cf   : > { %v10646_v54 = vpop.eup %10645  ;;  %8441 = vmatmul.mubr.f32.gmra.mrb[60].mxu1 %v2604_v41  ;;  %v2990_v23 = vpop.permute.xlu0 %2989 }
 0x8d0   : > { %v2988_v1 = vpop.permute.xlu1 %2987  ;;  %v2605_v0 = vmul.f32 %v10646_v54, %v12249_v4 }
 0x8d2   : > { %8443 = vmatprep.mubr.f32.mxu1 %v2605_v0 }
 0x8d3   : > { %8444 = vmatmul.mubr.f32.gmra.mrb[62].mxu1 %v2606_v28  ;;  %v2994_v21 = vpop.permute.xlu0 %2993 }
 0x8d4   : > { %v2992_v14 = vpop.permute.xlu1 %2991  ;;  %8478 = vmatprep.mubr.msk.f32.mxu1 %vm744_vm0, %v2978_v2 }
 0x8d7   : > { %v2998_v38 = vpop.permute.xlu0 %2997  ;;  %8479 = vmatmul.mubr.msk.f32.vlgmr.msra.gmra.mrb[64].mxu1 %vm744_vm0, %v2980_v15 }
 0x8d8   : > { %v2996_v34 = vpop.permute.xlu1 %2995  ;;  %8481 = vmatprep.mubr.msk.f32.mxu1 %vm744_vm0, %v2982_v13 }
 0x8db   : > { %v3002_v43 = vpop.permute.xlu0 %3001  ;;  %8482 = vmatmul.mubr.msk.f32.gmra.mrb[66].mxu1 %vm744_vm0, %v2984_v17 }
 0x8dc   : > { %v3000_v20 = vpop.permute.xlu1 %2999  ;;  %8484 = vmatprep.mubr.msk.f32.mxu1 %vm744_vm0, %v2986_v18 }
 0x8df   : > { %v3006_v4 = vpop.permute.xlu0 %3005  ;;  %8485 = vmatmul.mubr.msk.f32.gmra.mrb[68].mxu1 %vm744_vm0, %v2988_v1 }
 0x8e0   : > { %v3004_v11 = vpop.permute.xlu1 %3003  ;;  %8487 = vmatprep.mubr.msk.f32.mxu1 %vm744_vm0, %v2990_v23 }
 0x8e3   : > { %v10097_v25 = vpop.permute.xlu0 %10096  ;;  %8488 = vmatmul.mubr.msk.f32.gmra.mrb[70].mxu1 %vm744_vm0, %v2992_v14 }
 0x8e4   : > { %v10099_v6 = vunpack.i.h.bf16 %v10097_v25  ;;  %v10098_v3 = vunpack.i.l.bf16 %v10097_v25  ;;  %v3008_v47 = vpop.permute.xlu1 %3007  ;;  %8490 = vmatprep.mubr.msk.f32.mxu1 %vm744_vm0, %v2994_v21 }
 0x8e6   : > { %v9414_v8 = vpack.c.bf16 %v10099_v6, %v10098_v3 }
 0x8e7   : > { %8491 = vmatmul.mubr.msk.f32.gmra.mrb[72].mxu1 %vm744_vm0, %v2996_v34  ;;  %v10112_v30 = vpop.permute.xlu0 %10111 }
 0x8e8   : > { %v10102_v2 = vpop.permute.xlu1 %10101  ;;  %8493 = vmatprep.mubr.msk.f32.mxu1 %vm744_vm0, %v2998_v38  ;;  %9415 = vmatprep.subr.bf16.mxu0 %v9414_v8  ;;  %v10114_v31 = vunpack.i.h.bf16 %v10112_v30  ;;  %v10113_v26 = vunpack.i.l.bf16 %v10112_v30 }
 0x8e9   : > { %v10104_v16 = vunpack.i.h.bf16 %v10102_v2  ;;  %v10103_v36 = vunpack.i.l.bf16 %v10102_v2  ;;  %9417 = vmatpush3.bf16.msra.mxu0 %v9414_v8 }
 0x8ea   : > { %v9426_v41 = vpack.c.bf16 %v10114_v31, %v10113_v26 }
 0x8eb   : > { %8494 = vmatmul.mubr.msk.f32.gmra.mrb[74].mxu1 %vm744_vm0, %v3000_v20  ;;  %v9418_v12 = vpack.c.bf16 %v10104_v16, %v10103_v36  ;;  %v10117_v37 = vpop.permute.xlu0 %10116 }
 0x8ec   : > { %v10107_v10 = vpop.permute.xlu1 %10106  ;;  %8496 = vmatprep.mubr.msk.f32.mxu1 %vm744_vm0, %v3002_v43  ;;  %v10119_v18 = vunpack.i.h.bf16 %v10117_v37  ;;  %v10118_v17 = vunpack.i.l.bf16 %v10117_v37 }
 0x8ed   : > { %v10109_v13 = vunpack.i.h.bf16 %v10107_v10  ;;  %v10108_v15 = vunpack.i.l.bf16 %v10107_v10  ;;  %9419 = vmatprep.subr.bf16.mxu0 %v9418_v12 }
 0x8ee   : > { %9421 = vmatpush3.bf16.msra.mxu0 %v9418_v12  ;;  %v9430_v1 = vpack.c.bf16 %v10119_v18, %v10118_v17 }
 0x8ef   : > { %8497 = vmatmul.mubr.msk.f32.gmra.mrb[76].mxu1 %vm744_vm0, %v3004_v11  ;;  %v9422_v19 = vpack.c.bf16 %v10109_v13, %v10108_v15  ;;  %v10137_v20 = vpop.permute.xlu0 %10136 }
 0x8f0   : > { %v10122_v22 = vpop.permute.xlu1 %10121  ;;  %8499 = vmatprep.mubr.msk.f32.mxu1 %vm744_vm0, %v3006_v4  ;;  %v10139_v4 = vunpack.i.h.bf16 %v10137_v20  ;;  %v10138_v11 = vunpack.i.l.bf16 %v10137_v20 }
 0x8f1   : > { %9423 = vmatprep.subr.bf16.mxu0 %v9422_v19  ;;  %v10124_v54 = vunpack.i.h.bf16 %v10122_v22  ;;  %v10123_v23 = vunpack.i.l.bf16 %v10122_v22 }
 0x8f2   : > { %9425 = vmatpush3.bf16.msra.mxu0 %v9422_v19  ;;  %v12377_v6 = vpack.c.bf16 %v10139_v4, %v10138_v11 }
 0x8f3   : > { %8500 = vmatmul.mubr.msk.f32.gmra.mrb[78].mxu1 %vm744_vm0, %v3008_v47  ;;  %9427 = vmatprep.subr.bf16.mxu0 %v9426_v41  ;;  %v9434_v21 = vpack.c.bf16 %v10124_v54, %v10123_v23 }
 0x8f4   : > { %v10127_v5 = vpop.permute.xlu1 %10126  ;;  %14030 = vst [vmem:[#allocation15_spill] sm:$0xff] %v12377_v6 }
 0x8f5   : > { %v10129_v0 = vunpack.i.h.bf16 %v10127_v5  ;;  %v10128_v28 = vunpack.i.l.bf16 %v10127_v5 }
 0x8f6   : > { %9429 = vmatpush3.bf16.msra.mxu0 %v9426_v41 }
 0x8f7   : > { %9431 = vmatprep.subr.bf16.mxu0 %v9430_v1  ;;  %v9438_v43 = vpack.c.bf16 %v10129_v0, %v10128_v28 }
 0x8f8   : > { %v10132_v14 = vpop.permute.xlu1 %10131 }
 0x8f9   : > { %v10134_v38 = vunpack.i.h.bf16 %v10132_v14  ;;  %v10133_v34 = vunpack.i.l.bf16 %v10132_v14  ;;  %v14047_v14 = vld [vmem:[#allocation16_spill] sm:$0xff] }
 0x8fa   : > { %9433 = vmatpush3.bf16.msra.mxu0 %v9430_v1 }
 0x8fb   : > { %9435 = vmatprep.subr.bf16.mxu0 %v9434_v21  ;;  %v9442_v25 = vpack.c.bf16 %v10134_v38, %v10133_v34 }
 0x8fe   : > { %9437 = vmatpush3.bf16.msra.mxu0 %v9434_v21 }
 0x8ff   : > { %9439 = vmatprep.subr.bf16.mxu0 %v9438_v43 }
 0x902   : > { %9441 = vmatpush3.bf16.msra.mxu0 %v9438_v43 }
 0x903   : > { %9443 = vmatprep.subr.bf16.mxu0 %v9442_v25 }
 0x906   : > { %9445 = vmatpush3.bf16.msra.mxu0 %v9442_v25  ;;  %v14048_v25 = vld [vmem:[#allocation17_spill] sm:$0xff] }
 0x907   : > { %9448 = vmatprep.subr.msk.bf16.mxu0 %vm11406_vm1, %v12377_v6 }
 0x955   : > { %v12382_v3 = vpop.f32.mrb[48].mxu1 }
 0x956   : > { %14031 = vst [vmem:[#allocation36_spill] sm:$0xff] %v12382_v3  ;;  %v12384_v47 = vpop.f32.mrb[49].mxu1 }
 0x957   : > { %14032 = vst [vmem:[#allocation37_spill] sm:$0xff] %v12384_v47 }
 0x989   : > { %v12386_v8 = vpop.f32.mrb[50].mxu1 }
 0x98a   : > { %14033 = vst [vmem:[#allocation38_spill] sm:$0xff] %v12386_v8  ;;  %v12388_v30 = vpop.f32.mrb[51].mxu1 }
 0x98b   : > { %14034 = vst [vmem:[#allocation39_spill] sm:$0xff] %v12388_v30  ;;  %v14050_v30 = vld [vmem:[#allocation18_spill] sm:$0xff] }
 0x991   : > { %v12390_v2 = vpop.f32.mrb[52].mxu1 }
 0x992   : > { %14035 = vst [vmem:[#allocation40_spill] sm:$0xff] %v12390_v2  ;;  %v12392_v16 = vpop.f32.mrb[53].mxu1 }
 0x993   : > { %14036 = vst [vmem:[#allocation41_spill] sm:$0xff] %v12392_v16 }
 0x995   : > { %v12394_v36 = vpop.f32.mrb[54].mxu1 }
 0x996   : > { %14037 = vst [vmem:[#allocation42_spill] sm:$0xff] %v12394_v36  ;;  %v12396_v12 = vpop.f32.mrb[55].mxu1  ;;  %v12447_v36 = vpop.permute.xlu0 %10146 }
 0x997   : > { %14038 = vst [vmem:[#allocation43_spill] sm:$0xff] %v12396_v12  ;;  %14049 = vst [vmem:[#allocation52_spill] sm:$0xff] %v12447_v36 }
 0x99a   : > { %v12398_v10 = vpop.f32.mrb[56].mxu1 }
 0x99b   : > { %14039 = vst [vmem:[#allocation44_spill] sm:$0xff] %v12398_v10  ;;  %v12400_v31 = vpop.f32.mrb[57].mxu1 }
 0x99c   : > { %14040 = vst [vmem:[#allocation45_spill] sm:$0xff] %v12400_v31 }
 0x99e   : > { %v12402_v26 = vpop.f32.mrb[58].mxu1 }
 0x99f   : > { %14041 = vst [vmem:[#allocation46_spill] sm:$0xff] %v12402_v26  ;;  %v12404_v13 = vpop.f32.mrb[59].mxu1 }
 0x9a0   : > { %14042 = vst [vmem:[#allocation47_spill] sm:$0xff] %v12404_v13 }
 0x9a2   : > { %v12406_v15 = vpop.f32.mrb[60].mxu1 }
 0x9a3   : > { %14043 = vst [vmem:[#allocation48_spill] sm:$0xff] %v12406_v15  ;;  %v12408_v37 = vpop.f32.mrb[61].mxu1 }
 0x9a4   : > { %14044 = vst [vmem:[#allocation49_spill] sm:$0xff] %v12408_v37 }
 0x9a6   : > { %v12410_v19 = vpop.f32.mrb[62].mxu1 }
 0x9a7   : > { %14045 = vst [vmem:[#allocation50_spill] sm:$0xff] %v12410_v19  ;;  %v12412_v22 = vpop.f32.mrb[63].mxu1  ;;  %v12445_v19 = vpop.permute.xlu1 %10141 }
 0x9a8   : > { %14046 = vst [vmem:[#allocation51_spill] sm:$0xff] %v12412_v22 }
 0x9aa   : > { %v8480_v18 = vpop.f32.mrb[64].mxu1 }
 0x9ab   : > { %3268 = vmax.xlane.f32.xlu1 %v8480_v18  ;;  %v3187_v17 = vpop.f32.mrb[65].mxu1 }
 0x9ac   : > { %3266 = vmax.xlane.f32.xlu0 %v3187_v17 }
 0x9ae   : > { %v8483_v41 = vpop.f32.mrb[66].mxu1 }
 0x9af   : > { %v3197_v5 = vpop.f32.mrb[67].mxu1 }
 0x9b0   : > { %3272 = vmax.xlane.f32.xlu0 %v8483_v41 }
 0x9b2   : > { %v8486_v54 = vpop.f32.mrb[68].mxu1 }
 0x9b3   : > { %v12414_v23 = vpop.f32.mrb[69].mxu1 }
 0x9b4   : > { %3270 = vmax.xlane.f32.xlu0 %v3197_v5 }
 0x9b6   : > { %v8489_v1 = vpop.f32.mrb[70].mxu1 }
 0x9b7   : > { %v12416_v0 = vpop.f32.mrb[71].mxu1 }
 0x9b8   : > { %3274 = vmax.xlane.f32.xlu0 %v12414_v23 }
 0x9ba   : > { %v12419_v28 = vpop.f32.mrb[72].mxu1 }
 0x9bb   : > { %v12421_v21 = vpop.f32.mrb[73].mxu1 }
 0x9bc   : > { %10151 = vrot.lane.b32.xlu1 %v14047_v14, %s11136_s8  ;;  %3278 = vmax.xlane.f32.xlu0 %v12416_v0 }
 0x9be   : > { %v12426_v38 = vpop.f32.mrb[74].mxu1 }
 0x9bf   : > { %v3237_v34 = vpop.f32.mrb[75].mxu1 }
 0x9c0   : > { %3282 = vmax.xlane.f32.xlu0 %v12421_v21 }
 0x9c2   : > { %v12429_v43 = vpop.f32.mrb[76].mxu1 }
 0x9c3   : > { %v12431_v20 = vpop.f32.mrb[77].mxu1 }
 0x9c4   : > { %3286 = vmax.xlane.f32.xlu0 %v3237_v34 }
 0x9c6   : > { %v12433_v4 = vpop.f32.mrb[78].mxu1 }
 0x9c7   : > { %v12435_v11 = vpop.f32.mrb[79].mxu1 }
 0x9c8   : > { %3290 = vmax.xlane.f32.xlu0 %v12431_v20 }
 0x9cc   : > { %3294 = vmax.xlane.f32.xlu0 %v12435_v11 }
 0x9e0   : > { %3276 = vmax.xlane.f32.xlu1 %v8486_v54 }
 0x9e2   : > { %10156 = vrot.lane.b32.xlu0 %v14048_v25, %s11136_s8 }
 0x9e4   : > { %3280 = vmax.xlane.f32.xlu1 %v8489_v1 }
 0x9e8   : > { %3284 = vmax.xlane.f32.xlu1 %v12419_v28 }
 0x9ec   : > { %3288 = vmax.xlane.f32.xlu1 %v12426_v38 }
 0x9f0   : > { %3292 = vmax.xlane.f32.xlu1 %v12429_v43 }
 0x9f4   : > { %3296 = vmax.xlane.f32.xlu1 %v12433_v4 }
 0xa38   : > { %v3269_v22 = vpop.xlane.xlu1 %3268 }
 0xa39   : > { %v3299_v12 = vsub.f32 %v8480_v18, %v3269_v22  ;;  %v3267_v15 = vpop.xlane.xlu0 %3266  ;;  %v14051_v22 = vld [vmem:[#allocation19_spill] sm:$0xff] }
 0xa3a   : > { %v3298_v2 = vsub.f32 %v3187_v17, %v3267_v15 }
 0xa3b   : > { %v3316_v37 = vmul.f32 1.442695, %v3299_v12 }
 0xa3c   : > { %v3314_v16 = vmul.f32 1.442695, %v3298_v2  ;;  %v12459_v15 = vpop.permute.xlu1 %10151 }
 0xa3d   : > { %10647 = vpow2.f32 %v3316_v37  ;;  %v3273_v13 = vpop.xlane.xlu0 %3272  ;;  %14052 = vst [vmem:[#allocation53_spill] sm:$0xff] %v12459_v15 }
 0xa3e   : > { %10649 = vpow2.f32 %v3314_v16  ;;  %v3301_v37 = vsub.f32 %v8483_v41, %v3273_v13 }
 0xa40   : > { %v3320_v47 = vmul.f32 1.442695, %v3301_v37 }
 0xa41   : > { %v3271_v10 = vpop.xlane.xlu0 %3270 }
 0xa42   : > { %v3300_v16 = vsub.f32 %v3197_v5, %v3271_v10 }
 0xa44   : > { %v3318_v3 = vmul.f32 1.442695, %v3300_v16 }
 0xa45   : > { %v3275_v12 = vpop.xlane.xlu0 %3274 }
 0xa46   : > { %10651 = vpow2.f32 %v3318_v3 }
 0xa47   : > { %v12449_v26 = vpop.eup %10647  ;;  %10653 = vpow2.f32 %v3320_v47 }
 0xa48   : > { %v12451_v8 = vpop.eup %10649  ;;  %3348 = vadd.xlane.f32.xlu0 %v12449_v26 }
 0xa49   : > { %3346 = vadd.xlane.f32.xlu1 %v12451_v8  ;;  %v3279_v2 = vpop.xlane.xlu0 %3278 }
 0xa4d   : > { %v3283_v18 = vpop.xlane.xlu0 %3282 }
 0xa4e   : > { %v3306_v3 = vsub.f32 %v12421_v21, %v3283_v18 }
 0xa51   : > { %v3287_v24 = vpop.xlane.xlu0 %3286 }
 0xa52   : > { %v3308_v13 = vsub.f32 %v3237_v34, %v3287_v24 }
 0xa5a   : > { %10161 = vrot.lane.b32.xlu1 %v14050_v30, %s11136_s8  ;;  %v3302_v30 = vsub.f32 %v12414_v23, %v3275_v12  ;;  %v3291_v23 = vpop.xlane.xlu0 %3290 }
 0xa5b   : > { %v3310_v24 = vsub.f32 %v12431_v20, %v3291_v23 }
 0xa5c   : > { %v3322_v10 = vmul.f32 1.442695, %v3302_v30 }
 0xa5e   : > { %10166 = vrot.lane.b32.xlu0 %v14051_v22, %s11136_s8  ;;  %v3304_v22 = vsub.f32 %v12416_v0, %v3279_v2  ;;  %v3295_v2 = vpop.xlane.xlu0 %3294 }
 0xa60   : > { %v3326_v41 = vmul.f32 1.442695, %v3304_v22  ;;  %v3338_v22 = vmul.f32 1.442695, %v3310_v24  ;;  %v10143_v24 = vunpack.i.l.bf16 %v12445_v19 }
 0xa6d   : > { %v3277_v17 = vpop.xlane.xlu1 %3276 }
 0xa6e   : > { %v3303_v31 = vsub.f32 %v8486_v54, %v3277_v17 }
 0xa70   : > { %v3324_v25 = vmul.f32 1.442695, %v3303_v31  ;;  %v3334_v31 = vmul.f32 1.442695, %v3308_v13 }
 0xa71   : > { %v3281_v14 = vpop.xlane.xlu1 %3280 }
 0xa72   : > { %v3305_v36 = vsub.f32 %v8489_v1, %v3281_v14  ;;  %10655 = vpow2.f32 %v3324_v25  ;;  %v12465_v1 = vpop.eup %10651 }
 0xa73   : > { %v12467_v0 = vpop.eup %10653 }
 0xa74   : > { %v3328_v6 = vmul.f32 1.442695, %v3305_v36 }
 0xa75   : > { %v3285_v15 = vpop.xlane.xlu1 %3284 }
 0xa76   : > { %10657 = vpow2.f32 %v3328_v6  ;;  %v3307_v5 = vsub.f32 %v12419_v28, %v3285_v15  ;;  %v3330_v28 = vmul.f32 1.442695, %v3306_v3 }
 0xa77   : > { %10659 = vpow2.f32 %v3322_v10 }
 0xa78   : > { %10661 = vpow2.f32 %v3326_v41  ;;  %v3332_v47 = vmul.f32 1.442695, %v3307_v5 }
 0xa79   : > { %v3289_v54 = vpop.xlane.xlu1 %3288  ;;  %10663 = vpow2.f32 %v3334_v31 }
 0xa7a   : > { %10665 = vpow2.f32 %v3332_v47  ;;  %v3309_v21 = vsub.f32 %v12426_v38, %v3289_v54  ;;  %v3312_v38 = vsub.f32 %v12435_v11, %v3295_v2  ;;  %v10157_v54 = vpop.permute.xlu0 %10156 }
 0xa7c   : > { %v12473_v30 = vpop.eup %10655 }
 0xa7d   : > { %v3293_v36 = vpop.xlane.xlu1 %3292  ;;  %3350 = vadd.xlane.f32.xlu0 %v12465_v1 }
 0xa7e   : > { %v3311_v6 = vsub.f32 %v12429_v43, %v3293_v36  ;;  %3352 = vadd.xlane.f32.xlu1 %v12467_v0  ;;  %v3336_v43 = vmul.f32 1.442695, %v3309_v21  ;;  %v10144_v36 = vunpack.i.h.bf16 %v12445_v19 }
 0xa80   : > { %v12476_v14 = vpop.eup %10657  ;;  %v3340_v34 = vmul.f32 1.442695, %v3311_v6  ;;  %v9452_v21 = vpack.c.bf16 %v10144_v36, %v10143_v24 }
 0xa81   : > { %v3297_v25 = vpop.xlane.xlu1 %3296  ;;  %3356 = vadd.xlane.f32.xlu0 %v12473_v30  ;;  %v12481_v12 = vpop.eup %10659 }
 0xa82   : > { %10667 = vpow2.f32 %v3340_v34  ;;  %3360 = vadd.xlane.f32.xlu1 %v12476_v14  ;;  %v3313_v20 = vsub.f32 %v12433_v4, %v3297_v25  ;;  %v12483_v15 = vpop.eup %10661  ;;  %v3342_v4 = vmul.f32 1.442695, %v3312_v38  ;;  %v14053_v34 = vld [vmem:[#allocation15_spill] sm:$0xff] }
 0xa83   : > { %10669 = vpow2.f32 %v3330_v28  ;;  %v12488_v37 = vpop.eup %10663 }
 0xa84   : > { %10671 = vpow2.f32 %v3338_v22  ;;  %v3344_v16 = vmul.f32 1.442695, %v3313_v20  ;;  %v12490_v18 = vpop.eup %10665  ;;  %v14055_v22 = vld [vmem:[#allocation52_spill] sm:$0xff] }
 0xa85   : > { %3354 = vadd.xlane.f32.xlu0 %v12481_v12  ;;  %10673 = vpow2.f32 %v3336_v43  ;;  %v10149_v43 = vunpack.i.h.bf16 %v14055_v22  ;;  %v10148_v20 = vunpack.i.l.bf16 %v14055_v22 }
 0xa86   : > { %3358 = vadd.xlane.f32.xlu1 %v12483_v15  ;;  %10675 = vpow2.f32 %v3344_v16  ;;  %v10159_v16 = vunpack.i.h.bf16 %v10157_v54 }
 0xa87   : > { %10677 = vpow2.f32 %v3342_v4  ;;  %v9458_v2 = vpack.c.bf16 %v10149_v43, %v10148_v20  ;;  %v10158_v4 = vunpack.i.l.bf16 %v10157_v54 }
 0xa89   : > { %3366 = vadd.xlane.f32.xlu0 %v12488_v37 }
 0xa8a   : > { %3364 = vadd.xlane.f32.xlu1 %v12490_v18 }
 0xa8c   : > { %v12494_v17 = vpop.eup %10667 }
 0xa8d   : > { %v12496_v10 = vpop.eup %10669  ;;  %3372 = vadd.xlane.f32.xlu0 %v12494_v17 }
 0xa8e   : > { %3362 = vadd.xlane.f32.xlu1 %v12496_v10  ;;  %v12500_v11 = vpop.eup %10671 }
 0xa8f   : > { %v12502_v13 = vpop.eup %10673 }
 0xa90   : > { %v12506_v41 = vpop.eup %10675 }
 0xa91   : > { %3370 = vadd.xlane.f32.xlu0 %v12500_v11  ;;  %v12509_v5 = vpop.eup %10677 }
 0xa92   : > { %3368 = vadd.xlane.f32.xlu1 %v12502_v13 }
 0xa96   : > { %3376 = vadd.xlane.f32.xlu1 %v12506_v41 }
 0xa9a   : > { %3374 = vadd.xlane.f32.xlu1 %v12509_v5 }
 0xaa7   : > { %10171 = vrot.lane.b32.xlu0 %v11524_v46, %s11136_s8 }
 0xaab   : > { %3780 = vrot.lane.b32.xlu0 %v11398_v27, %s11136_s8  ;;  %3782 = vrot.lane.b32.xlu1 %v11531_v49, %s11136_s8 }
 0xaaf   : > { %3784 = vrot.lane.b32.xlu0 %v11534_v50, %s11136_s8  ;;  %3786 = vrot.lane.b32.xlu1 %v11541_v53, %s11136_s8 }
 0xab3   : > { %3788 = vrot.lane.b32.xlu0 %v11544_v55, %s11136_s8  ;;  %3790 = vrot.lane.b32.xlu1 %v11551_v29, %s11136_s8 }
 0xab7   : > { %3792 = vrot.lane.b32.xlu0 %v11554_v33, %s11136_s8  ;;  %3794 = vrot.lane.b32.xlu1 %v11561_v35, %s11136_s8 }
 0xabb   : > { %3796 = vrot.lane.b32.xlu0 %v11564_v39, %s11136_s8  ;;  %3798 = vrot.lane.b32.xlu1 %v11571_v44, %s11136_s8 }
 0xabf   : > { %3800 = vrot.lane.b32.xlu0 %v11573_v51, %s11136_s8  ;;  %3802 = vrot.lane.b32.xlu1 %v11579_v56, %s11136_s8 }
 0xac3   : > { %3804 = vrot.lane.b32.xlu0 %v11581_v58, %s11136_s8  ;;  %3806 = vrot.lane.b32.xlu1 %v11587_v61, %s11136_s8 }
 0xac7   : > { %3808 = vrot.lane.b32.xlu0 %v11589_v62, %s11136_s8  ;;  %3810 = vrot.lane.b32.xlu1 %v11595_v63, %s11136_s8 }
 0xacb   : > { %10176 = vrot.lane.b32.xlu0 %v11652_v7, %s11136_s8  ;;  %10181 = vrot.lane.b32.xlu1 %v11660_v9, %s11136_s8 }
 0xacf   : > { %10191 = vrot.lane.b32.xlu0 %v11665_v60, %s11136_s8  ;;  %10186 = vrot.lane.b32.xlu1 %v11671_v40, %s11136_s8 }
 0xad3   : > { %10196 = vrot.lane.b32.xlu0 %v11675_v42, %s11136_s8  ;;  %10201 = vrot.lane.b32.xlu1 %v11679_v45, %s11136_s8 }
 0xad5   : > { %v3349_v31 = vpop.xlane.xlu0 %3348 }
 0xad6   : > { %10679 = vrcp.f32 %v3349_v31  ;;  %v3347_v3 = vpop.xlane.xlu1 %3346  ;;  %v9470_v31 = vpack.c.bf16 %v10159_v16, %v10158_v4 }
 0xad7   : > { %10681 = vrcp.f32 %v3347_v3  ;;  %10216 = vrot.lane.b32.xlu0 %v11410_v32, %s11137_s30  ;;  %10206 = vrot.lane.b32.xlu1 %v11685_v57, %s11136_s8 }
 0xad9   : > { %v10167_v24 = vpop.permute.xlu0 %10166 }
 0xada   : > { %v10162_v3 = vpop.permute.xlu1 %10161  ;;  %v10168_v54 = vunpack.i.l.bf16 %v10167_v24 }
 0xadb   : > { %10226 = vrot.lane.b32.xlu0 %v11444_v48, %s11137_s30  ;;  %10211 = vrot.lane.b32.xlu1 %v11689_v52, %s11136_s8 }
 0xadf   : > { %10221 = vrot.lane.b32.xlu1 %v13988_v59, %s11137_s30 }
 0xae0   : > { %v10680_v23 = vpop.eup %10679 }
 0xae1   : > { %v10682_v47 = vpop.eup %10681  ;;  %v3395_v28 = vmul.f32 %v10680_v23, %v12449_v26  ;;  %v10164_v23 = vunpack.i.h.bf16 %v10162_v3 }
 0xae2   : > { %v3394_v6 = vmul.f32 %v10682_v47, %v12451_v8  ;;  %v14056_v8 = vld [vmem:[#allocation53_spill] sm:$0xff]  ;;  %v10163_v47 = vunpack.i.l.bf16 %v10162_v3 }
 0xae3   : > { %v10154_v26 = vunpack.i.h.bf16 %v14056_v8  ;;  %v10153_v19 = vunpack.i.l.bf16 %v14056_v8 }
 0xae4   : > { %8534 = vmatprep.mubr.f32.mxu0 %v3394_v6  ;;  %v9476_v36 = vpack.c.bf16 %v10164_v23, %v10163_v47  ;;  %v10169_v6 = vunpack.i.h.bf16 %v10167_v24 }
 0xae5   : > { %8535 = vmatmul.mubr.f32.vlgmr.msra.gmra.mrb[80].mxu0 %v3395_v28  ;;  %v9464_v38 = vpack.c.bf16 %v10154_v26, %v10153_v19 }
 0xae6   : > { %9451 = vmatpush3.bf16.xpose.msk.msra.mxu0 %vm11406_vm1, %v14053_v34  ;;  %v9482_v34 = vpack.c.bf16 %v10169_v6, %v10168_v54 }
 0xae7   : > { %9454 = vmatprep.subr.msk.bf16.mxu0 %vm11406_vm1, %v9452_v21 }
 0xaee   : > { %9457 = vmatpush3.bf16.xpose.msk.msra.mxu0 %vm11406_vm1, %v9452_v21 }
 0xaef   : > { %9460 = vmatprep.subr.msk.bf16.mxu0 %vm11406_vm1, %v9458_v2 }
 0xaf6   : > { %9463 = vmatpush3.bf16.xpose.msk.msra.mxu0 %vm11406_vm1, %v9458_v2 }
 0xaf7   : > { %9466 = vmatprep.subr.msk.bf16.mxu0 %vm11406_vm1, %v9464_v38 }
 0xafe   : > { %9469 = vmatpush3.bf16.xpose.msk.msra.mxu0 %vm11406_vm1, %v9464_v38 }
 0xaff   : > { %9472 = vmatprep.subr.msk.bf16.mxu0 %vm11406_vm1, %v9470_v31 }
 0xb06   : > { %9475 = vmatpush3.bf16.xpose.msk.msra.mxu0 %vm11406_vm1, %v9470_v31 }
 0xb07   : > { %9478 = vmatprep.subr.msk.bf16.mxu0 %vm11406_vm1, %v9476_v36 }
 0xb0a   : > { %v3351_v28 = vpop.xlane.xlu0 %3350 }
 0xb0b   : > { %10683 = vrcp.f32 %v3351_v28  ;;  %v3353_v21 = vpop.xlane.xlu1 %3352 }
 0xb0c   : > { %10685 = vrcp.f32 %v3353_v21 }
 0xb0e   : > { %9481 = vmatpush3.bf16.xpose.msk.msra.mxu0 %vm11406_vm1, %v9476_v36  ;;  %v3357_v22 = vpop.xlane.xlu0 %3356 }
 0xb0f   : > { %9484 = vmatprep.subr.msk.bf16.mxu0 %vm11406_vm1, %v9482_v34  ;;  %v3361_v43 = vpop.xlane.xlu1 %3360  ;;  %10687 = vrcp.f32 %v3357_v22 }
 0xb12   : > { %v3355_v20 = vpop.xlane.xlu0 %3354 }
 0xb13   : > { %10689 = vrcp.f32 %v3355_v20  ;;  %v3359_v2 = vpop.xlane.xlu1 %3358 }
 0xb14   : > { %10691 = vrcp.f32 %v3359_v2 }
 0xb15   : > { %v10684_v8 = vpop.eup %10683  ;;  %10693 = vrcp.f32 %v3361_v43 }
 0xb16   : > { %v10686_v26 = vpop.eup %10685  ;;  %9487 = vmatpush3.bf16.xpose.msk.msra.mxu0 %vm11406_vm1, %v9482_v34  ;;  %v3367_v19 = vpop.xlane.xlu0 %3366  ;;  %v3396_v38 = vmul.f32 %v10684_v8, %v12465_v1 }
 0xb17   : > { %v3365_v16 = vpop.xlane.xlu1 %3364  ;;  %v3397_v4 = vmul.f32 %v10686_v26, %v12467_v0  ;;  %10695 = vrcp.f32 %v3367_v19 }
 0xb18   : > { %8537 = vmatprep.mubr.f32.mxu0 %v3396_v38  ;;  %10697 = vrcp.f32 %v3365_v16 }
 0xb19   : > { %8538 = vmatmul.mubr.f32.gmra.mrb[82].mxu0 %v3397_v4  ;;  %v10688_v23 = vpop.eup %10687 }
 0xb1a   : > { %v3373_v31 = vpop.xlane.xlu0 %3372  ;;  %v3399_v1 = vmul.f32 %v10688_v23, %v12473_v30 }
 0xb1b   : > { %v3363_v3 = vpop.xlane.xlu1 %3362 }
 0xb1c   : > { %10699 = vrcp.f32 %v3363_v3 }
 0xb1d   : > { %v10690_v47 = vpop.eup %10689 }
 0xb1e   : > { %v10692_v36 = vpop.eup %10691  ;;  %v3371_v24 = vpop.xlane.xlu0 %3370  ;;  %v3398_v6 = vmul.f32 %v10690_v47, %v12481_v12 }
 0xb1f   : > { %10701 = vrcp.f32 %v3371_v24  ;;  %v3369_v54 = vpop.xlane.xlu1 %3368  ;;  %v3400_v28 = vmul.f32 %v10692_v36, %v12483_v15  ;;  %v10694_v0 = vpop.eup %10693 }
 0xb20   : > { %10703 = vrcp.f32 %v3369_v54  ;;  %8540 = vmatprep.mubr.f32.mxu0 %v3398_v6  ;;  %v3401_v20 = vmul.f32 %v10694_v0, %v12476_v14 }
 0xb21   : > { %8541 = vmatmul.mubr.f32.gmra.mrb[84].mxu0 %v3399_v1  ;;  %10705 = vrcp.f32 %v3373_v31  ;;  %v10696_v2 = vpop.eup %10695 }
 0xb22   : > { %8543 = vmatprep.mubr.f32.mxu0 %v3400_v28  ;;  %v10172_v21 = vpop.permute.xlu0 %10171  ;;  %v10698_v12 = vpop.eup %10697  ;;  %v3404_v16 = vmul.f32 %v10696_v2, %v12488_v37 }
 0xb23   : > { %v10174_v34 = vunpack.i.h.bf16 %v10172_v21  ;;  %v10173_v22 = vunpack.i.l.bf16 %v10172_v21  ;;  %v3377_v43 = vpop.xlane.xlu1 %3376  ;;  %v3403_v38 = vmul.f32 %v10698_v12, %v12490_v18 }
 0xb24   : > { %10707 = vrcp.f32 %v3377_v43 }
 0xb25   : > { %v9488_v8 = vpack.c.bf16 %v10174_v34, %v10173_v22  ;;  %8544 = vmatmul.mubr.f32.gmra.mrb[86].mxu0 %v3401_v20 }
 0xb26   : > { %v10700_v26 = vpop.eup %10699  ;;  %v3781_v30 = vpop.permute.xlu0 %3780 }
 0xb27   : > { %v3375_v15 = vpop.xlane.xlu1 %3374  ;;  %9490 = vmatprep.subr.msk.bf16.mxu0 %vm11406_vm1, %v9488_v8  ;;  %v3402_v19 = vmul.f32 %v10700_v26, %v12496_v10 }
 0xb28   : > { %10709 = vrcp.f32 %v3375_v15  ;;  %9493 = vmatpush3.bf16.xpose.msk.msra.mxu0 %vm11406_vm1, %v9488_v8 }
 0xb29   : > { %v10702_v14 = vpop.eup %10701  ;;  %8546 = vmatprep.mubr.f32.mxu0 %v3402_v19 }
 0xb2a   : > { %v10704_v4 = vpop.eup %10703  ;;  %8547 = vmatmul.mubr.f32.gmra.mrb[88].mxu0 %v3403_v38  ;;  %v3785_v31 = vpop.permute.xlu0 %3784  ;;  %v3406_v10 = vmul.f32 %v10702_v14, %v12500_v11 }
 0xb2b   : > { %v3783_v3 = vpop.permute.xlu1 %3782  ;;  %8549 = vmatprep.mubr.f32.mxu0 %v3404_v16  ;;  %v3405_v23 = vmul.f32 %v10704_v4, %v12502_v13  ;;  %v10706_v47 = vpop.eup %10705 }
 0xb2c   : > { %v3407_v18 = vmul.f32 %v10706_v47, %v12494_v17 }
 0xb2e   : > { %8550 = vmatmul.mubr.f32.gmra.mrb[90].mxu0 %v3405_v23  ;;  %v3789_v36 = vpop.permute.xlu0 %3788  ;;  %v10708_v6 = vpop.eup %10707 }
 0xb2f   : > { %v3787_v24 = vpop.permute.xlu1 %3786  ;;  %8552 = vmatprep.mubr.f32.mxu0 %v3406_v10  ;;  %v3409_v0 = vmul.f32 %v10708_v6, %v12506_v41 }
 0xb32   : > { %v10710_v54 = vpop.eup %10709  ;;  %8553 = vmatmul.mubr.f32.gmra.mrb[92].mxu0 %v3407_v18  ;;  %v3793_v37 = vpop.permute.xlu0 %3792 }
 0xb33   : > { %v3791_v1 = vpop.permute.xlu1 %3790  ;;  %v3408_v28 = vmul.f32 %v10710_v54, %v12509_v5 }
 0xb35   : > { %8555 = vmatprep.mubr.f32.mxu0 %v3408_v28 }
 0xb36   : > { %8556 = vmatmul.mubr.f32.gmra.mrb[94].mxu0 %v3409_v0  ;;  %v3797_v13 = vpop.permute.xlu0 %3796 }
 0xb37   : > { %v3795_v21 = vpop.permute.xlu1 %3794  ;;  %8590 = vmatprep.mubr.msk.f32.mxu0 %vm744_vm0, %v3781_v30 }
 0xb3a   : > { %v3801_v11 = vpop.permute.xlu0 %3800  ;;  %8591 = vmatmul.mubr.msk.f32.vlgmr.msra.gmra.mrb[96].mxu0 %vm744_vm0, %v3783_v3 }
 0xb3b   : > { %v3799_v34 = vpop.permute.xlu1 %3798  ;;  %8593 = vmatprep.mubr.msk.f32.mxu0 %vm744_vm0, %v3785_v31 }
 0xb3e   : > { %v3805_v17 = vpop.permute.xlu0 %3804  ;;  %8594 = vmatmul.mubr.msk.f32.gmra.mrb[98].mxu0 %vm744_vm0, %v3787_v24 }
 0xb3f   : > { %v3803_v22 = vpop.permute.xlu1 %3802  ;;  %8596 = vmatprep.mubr.msk.f32.mxu0 %vm744_vm0, %v3789_v36 }
 0xb42   : > { %v3809_v5 = vpop.permute.xlu0 %3808  ;;  %8597 = vmatmul.mubr.msk.f32.gmra.mrb[100].mxu0 %vm744_vm0, %v3791_v1 }
 0xb43   : > { %v3807_v41 = vpop.permute.xlu1 %3806  ;;  %8599 = vmatprep.mubr.msk.f32.mxu0 %vm744_vm0, %v3793_v37 }
 0xb46   : > { %v10177_v43 = vpop.permute.xlu0 %10176  ;;  %8600 = vmatmul.mubr.msk.f32.gmra.mrb[102].mxu0 %vm744_vm0, %v3795_v21 }
 0xb47   : > { %v10179_v20 = vunpack.i.h.bf16 %v10177_v43  ;;  %v10178_v2 = vunpack.i.l.bf16 %v10177_v43  ;;  %v3811_v12 = vpop.permute.xlu1 %3810  ;;  %8602 = vmatprep.mubr.msk.f32.mxu0 %vm744_vm0, %v3797_v13 }
 0xb49   : > { %v9494_v8 = vpack.c.bf16 %v10179_v20, %v10178_v2 }
 0xb4a   : > { %8603 = vmatmul.mubr.msk.f32.gmra.mrb[104].mxu0 %vm744_vm0, %v3799_v34  ;;  %v10192_v26 = vpop.permute.xlu0 %10191 }
 0xb4b   : > { %v10182_v30 = vpop.permute.xlu1 %10181  ;;  %8605 = vmatprep.mubr.msk.f32.mxu0 %vm744_vm0, %v3801_v11  ;;  %9495 = vmatprep.subr.bf16.mxu1 %v9494_v8  ;;  %v10194_v16 = vunpack.i.h.bf16 %v10192_v26  ;;  %v10193_v4 = vunpack.i.l.bf16 %v10192_v26 }
 0xb4c   : > { %v10184_v15 = vunpack.i.h.bf16 %v10182_v30  ;;  %v10183_v19 = vunpack.i.l.bf16 %v10182_v30  ;;  %9497 = vmatpush3.bf16.msra.mxu1 %v9494_v8 }
 0xb4d   : > { %v9506_v18 = vpack.c.bf16 %v10194_v16, %v10193_v4 }
 0xb4e   : > { %8606 = vmatmul.mubr.msk.f32.gmra.mrb[106].mxu0 %vm744_vm0, %v3803_v22  ;;  %v9498_v38 = vpack.c.bf16 %v10184_v15, %v10183_v19  ;;  %v10197_v23 = vpop.permute.xlu0 %10196 }
 0xb4f   : > { %v10187_v14 = vpop.permute.xlu1 %10186  ;;  %8608 = vmatprep.mubr.msk.f32.mxu0 %vm744_vm0, %v3805_v17  ;;  %v10199_v36 = vunpack.i.h.bf16 %v10197_v23  ;;  %v10198_v24 = vunpack.i.l.bf16 %v10197_v23 }
 0xb50   : > { %v10189_v31 = vunpack.i.h.bf16 %v10187_v14  ;;  %v10188_v3 = vunpack.i.l.bf16 %v10187_v14  ;;  %9499 = vmatprep.subr.bf16.mxu1 %v9498_v38 }
 0xb51   : > { %9501 = vmatpush3.bf16.msra.mxu1 %v9498_v38  ;;  %v9510_v1 = vpack.c.bf16 %v10199_v36, %v10198_v24 }
 0xb52   : > { %8609 = vmatmul.mubr.msk.f32.gmra.mrb[108].mxu0 %vm744_vm0, %v3807_v41  ;;  %v9502_v47 = vpack.c.bf16 %v10189_v31, %v10188_v3  ;;  %v10217_v22 = vpop.permute.xlu0 %10216 }
 0xb53   : > { %v10202_v10 = vpop.permute.xlu1 %10201  ;;  %8611 = vmatprep.mubr.msk.f32.mxu0 %vm744_vm0, %v3809_v5  ;;  %v10219_v5 = vunpack.i.h.bf16 %v10217_v22  ;;  %v10218_v41 = vunpack.i.l.bf16 %v10217_v22 }
 0xb54   : > { %9503 = vmatprep.subr.bf16.mxu1 %v9502_v47  ;;  %v10204_v54 = vunpack.i.h.bf16 %v10202_v10  ;;  %v10203_v37 = vunpack.i.l.bf16 %v10202_v10 }
 0xb55   : > { %9505 = vmatpush3.bf16.msra.mxu1 %v9502_v47  ;;  %v12637_v20 = vpack.c.bf16 %v10219_v5, %v10218_v41 }
 0xb56   : > { %8612 = vmatmul.mubr.msk.f32.gmra.mrb[110].mxu0 %vm744_vm0, %v3811_v12  ;;  %9507 = vmatprep.subr.bf16.mxu1 %v9506_v18  ;;  %v9514_v13 = vpack.c.bf16 %v10204_v54, %v10203_v37 }
 0xb57   : > { %v10207_v6 = vpop.permute.xlu1 %10206  ;;  %14057 = vst [vmem:[#allocation15_spill] sm:$0xff] %v12637_v20 }
 0xb58   : > { %v10209_v28 = vunpack.i.h.bf16 %v10207_v6  ;;  %v10208_v0 = vunpack.i.l.bf16 %v10207_v6 }
 0xb59   : > { %9509 = vmatpush3.bf16.msra.mxu1 %v9506_v18 }
 0xb5a   : > { %9511 = vmatprep.subr.bf16.mxu1 %v9510_v1  ;;  %v9518_v17 = vpack.c.bf16 %v10209_v28, %v10208_v0 }
 0xb5b   : > { %v10212_v21 = vpop.permute.xlu1 %10211 }
 0xb5c   : > { %v10214_v11 = vunpack.i.h.bf16 %v10212_v21  ;;  %v10213_v34 = vunpack.i.l.bf16 %v10212_v21  ;;  %v14074_v21 = vld [vmem:[#allocation16_spill] sm:$0xff] }
 0xb5d   : > { %9513 = vmatpush3.bf16.msra.mxu1 %v9510_v1 }
 0xb5e   : > { %9515 = vmatprep.subr.bf16.mxu1 %v9514_v13  ;;  %v9522_v43 = vpack.c.bf16 %v10214_v11, %v10213_v34 }
 0xb61   : > { %9517 = vmatpush3.bf16.msra.mxu1 %v9514_v13 }
 0xb62   : > { %9519 = vmatprep.subr.bf16.mxu1 %v9518_v17 }
 0xb65   : > { %9521 = vmatpush3.bf16.msra.mxu1 %v9518_v17 }
 0xb66   : > { %9523 = vmatprep.subr.bf16.mxu1 %v9522_v43 }
 0xb69   : > { %9525 = vmatpush3.bf16.msra.mxu1 %v9522_v43  ;;  %v14075_v43 = vld [vmem:[#allocation17_spill] sm:$0xff] }
 0xb6a   : > { %9528 = vmatprep.subr.msk.bf16.mxu1 %vm11406_vm1, %v12637_v20 }
 0xbb8   : > { %v12642_v2 = vpop.f32.mrb[80].mxu0 }
 0xbb9   : > { %14058 = vst [vmem:[#allocation52_spill] sm:$0xff] %v12642_v2  ;;  %v12644_v12 = vpop.f32.mrb[81].mxu0 }
 0xbba   : > { %14059 = vst [vmem:[#allocation53_spill] sm:$0xff] %v12644_v12 }
 0xbec   : > { %v12646_v8 = vpop.f32.mrb[82].mxu0 }
 0xbed   : > { %14060 = vst [vmem:[#allocation54_spill] sm:$0xff] %v12646_v8  ;;  %v12648_v26 = vpop.f32.mrb[83].mxu0 }
 0xbee   : > { %14061 = vst [vmem:[#allocation55_spill] sm:$0xff] %v12648_v26  ;;  %v14077_v26 = vld [vmem:[#allocation18_spill] sm:$0xff] }
 0xbf4   : > { %v12650_v30 = vpop.f32.mrb[84].mxu0 }
 0xbf5   : > { %14062 = vst [vmem:[#allocation56_spill] sm:$0xff] %v12650_v30  ;;  %v12652_v15 = vpop.f32.mrb[85].mxu0 }
 0xbf6   : > { %14063 = vst [vmem:[#allocation57_spill] sm:$0xff] %v12652_v15 }
 0xbf8   : > { %v12654_v19 = vpop.f32.mrb[86].mxu0 }
 0xbf9   : > { %14064 = vst [vmem:[#allocation58_spill] sm:$0xff] %v12654_v19  ;;  %v12656_v38 = vpop.f32.mrb[87].mxu0 }
 0xbfa   : > { %14065 = vst [vmem:[#allocation59_spill] sm:$0xff] %v12656_v38 }
 0xbfd   : > { %v12658_v14 = vpop.f32.mrb[88].mxu0 }
 0xbfe   : > { %14066 = vst [vmem:[#allocation60_spill] sm:$0xff] %v12658_v14  ;;  %v12660_v16 = vpop.f32.mrb[89].mxu0 }
 0xbff   : > { %14067 = vst [vmem:[#allocation61_spill] sm:$0xff] %v12660_v16 }
 0xc01   : > { %v12662_v4 = vpop.f32.mrb[90].mxu0 }
 0xc02   : > { %14068 = vst [vmem:[#allocation62_spill] sm:$0xff] %v12662_v4  ;;  %v12664_v31 = vpop.f32.mrb[91].mxu0 }
 0xc03   : > { %14069 = vst [vmem:[#allocation63_spill] sm:$0xff] %v12664_v31 }
 0xc05   : > { %v12666_v3 = vpop.f32.mrb[92].mxu0 }
 0xc06   : > { %14070 = vst [vmem:[#allocation64_spill] sm:$0xff] %v12666_v3  ;;  %v12668_v23 = vpop.f32.mrb[93].mxu0 }
 0xc07   : > { %14071 = vst [vmem:[#allocation65_spill] sm:$0xff] %v12668_v23 }
 0xc09   : > { %v12670_v47 = vpop.f32.mrb[94].mxu0 }
 0xc0a   : > { %14072 = vst [vmem:[#allocation66_spill] sm:$0xff] %v12670_v47  ;;  %v12672_v10 = vpop.f32.mrb[95].mxu0  ;;  %v12705_v47 = vpop.permute.xlu1 %10221 }
 0xc0b   : > { %14073 = vst [vmem:[#allocation67_spill] sm:$0xff] %v12672_v10  ;;  %v12707_v10 = vpop.permute.xlu0 %10226 }
 0xc0c   : > { %14076 = vst [vmem:[#allocation68_spill] sm:$0xff] %v12707_v10 }
 0xc0d   : > { %v8592_v36 = vpop.f32.mrb[96].mxu0 }
 0xc0e   : > { %4071 = vmax.xlane.f32.xlu1 %v8592_v36  ;;  %v3990_v24 = vpop.f32.mrb[97].mxu0 }
 0xc0f   : > { %4069 = vmax.xlane.f32.xlu0 %v3990_v24 }
 0xc11   : > { %v8595_v18 = vpop.f32.mrb[98].mxu0 }
 0xc12   : > { %v4000_v6 = vpop.f32.mrb[99].mxu0 }
 0xc13   : > { %4075 = vmax.xlane.f32.xlu0 %v8595_v18 }
 0xc15   : > { %v8598_v54 = vpop.f32.mrb[100].mxu0 }
 0xc16   : > { %v12674_v37 = vpop.f32.mrb[101].mxu0 }
 0xc17   : > { %4073 = vmax.xlane.f32.xlu0 %v4000_v6 }
 0xc19   : > { %v8601_v1 = vpop.f32.mrb[102].mxu0 }
 0xc1a   : > { %v12676_v28 = vpop.f32.mrb[103].mxu0 }
 0xc1b   : > { %4077 = vmax.xlane.f32.xlu0 %v12674_v37 }
 0xc1d   : > { %v12679_v0 = vpop.f32.mrb[104].mxu0 }
 0xc1e   : > { %v12681_v13 = vpop.f32.mrb[105].mxu0 }
 0xc1f   : > { %10231 = vrot.lane.b32.xlu1 %v14074_v21, %s11137_s30  ;;  %4081 = vmax.xlane.f32.xlu0 %v12676_v28 }
 0xc21   : > { %v12686_v11 = vpop.f32.mrb[106].mxu0 }
 0xc22   : > { %v4040_v34 = vpop.f32.mrb[107].mxu0 }
 0xc23   : > { %4085 = vmax.xlane.f32.xlu0 %v12681_v13 }
 0xc25   : > { %v12689_v17 = vpop.f32.mrb[108].mxu0 }
 0xc26   : > { %v12691_v22 = vpop.f32.mrb[109].mxu0 }
 0xc27   : > { %4089 = vmax.xlane.f32.xlu0 %v4040_v34 }
 0xc29   : > { %v12693_v5 = vpop.f32.mrb[110].mxu0 }
 0xc2a   : > { %v12695_v41 = vpop.f32.mrb[111].mxu0 }
 0xc2b   : > { %4093 = vmax.xlane.f32.xlu0 %v12691_v22 }
 0xc2f   : > { %4097 = vmax.xlane.f32.xlu0 %v12695_v41 }
 0xc43   : > { %4079 = vmax.xlane.f32.xlu1 %v8598_v54 }
 0xc45   : > { %10236 = vrot.lane.b32.xlu0 %v14075_v43, %s11137_s30 }
 0xc47   : > { %4083 = vmax.xlane.f32.xlu1 %v8601_v1 }
 0xc4b   : > { %4087 = vmax.xlane.f32.xlu1 %v12679_v0 }
 0xc4f   : > { %4091 = vmax.xlane.f32.xlu1 %v12686_v11 }
 0xc53   : > { %4095 = vmax.xlane.f32.xlu1 %v12689_v17 }
 0xc57   : > { %4099 = vmax.xlane.f32.xlu1 %v12693_v5 }
 0xc9b   : > { %v4072_v19 = vpop.xlane.xlu1 %4071 }
 0xc9c   : > { %v4102_v38 = vsub.f32 %v8592_v36, %v4072_v19  ;;  %v4070_v3 = vpop.xlane.xlu0 %4069  ;;  %v14078_v19 = vld [vmem:[#allocation19_spill] sm:$0xff] }
 0xc9d   : > { %v4101_v23 = vsub.f32 %v3990_v24, %v4070_v3 }
 0xc9e   : > { %v4119_v30 = vmul.f32 1.442695, %v4102_v38 }
 0xc9f   : > { %v4117_v15 = vmul.f32 1.442695, %v4101_v23 }
 0xca0   : > { %10711 = vpow2.f32 %v4119_v30  ;;  %v4076_v8 = vpop.xlane.xlu0 %4075  ;;  %v12719_v30 = vpop.permute.xlu1 %10231 }
 0xca1   : > { %10713 = vpow2.f32 %v4117_v15  ;;  %14079 = vst [vmem:[#allocation69_spill] sm:$0xff] %v12719_v30  ;;  %v4104_v23 = vsub.f32 %v8595_v18, %v4076_v8 }
 0xca3   : > { %v4123_v12 = vmul.f32 1.442695, %v4104_v23 }
 0xca4   : > { %v4074_v14 = vpop.xlane.xlu0 %4073 }
 0xca5   : > { %v4103_v15 = vsub.f32 %v4000_v6, %v4074_v14 }
 0xca7   : > { %v4121_v16 = vmul.f32 1.442695, %v4103_v15 }
 0xca8   : > { %v4078_v38 = vpop.xlane.xlu0 %4077 }
 0xca9   : > { %10715 = vpow2.f32 %v4121_v16 }
 0xcaa   : > { %v12709_v4 = vpop.eup %10711  ;;  %10717 = vpow2.f32 %v4123_v12 }
 0xcab   : > { %v12711_v31 = vpop.eup %10713  ;;  %4151 = vadd.xlane.f32.xlu0 %v12709_v4 }
 0xcac   : > { %4149 = vadd.xlane.f32.xlu1 %v12711_v31  ;;  %v4082_v3 = vpop.xlane.xlu0 %4081 }
 0xcb0   : > { %v4086_v36 = vpop.xlane.xlu0 %4085 }
 0xcb1   : > { %v4109_v16 = vsub.f32 %v12681_v13, %v4086_v36 }
 0xcb4   : > { %v4090_v25 = vpop.xlane.xlu0 %4089 }
 0xcb5   : > { %v4111_v8 = vsub.f32 %v4040_v34, %v4090_v25 }
 0xcbd   : > { %10241 = vrot.lane.b32.xlu1 %v14077_v26, %s11137_s30  ;;  %v4105_v26 = vsub.f32 %v12674_v37, %v4078_v38  ;;  %v4094_v37 = vpop.xlane.xlu0 %4093 }
 0xcbe   : > { %v4113_v25 = vsub.f32 %v12691_v22, %v4094_v37 }
 0xcbf   : > { %v4125_v14 = vmul.f32 1.442695, %v4105_v26 }
 0xcc1   : > { %10246 = vrot.lane.b32.xlu0 %v14078_v19, %s11137_s30  ;;  %v4107_v19 = vsub.f32 %v12676_v28, %v4082_v3  ;;  %v4098_v3 = vpop.xlane.xlu0 %4097 }
 0xcc3   : > { %v4129_v18 = vmul.f32 1.442695, %v4107_v19  ;;  %v4141_v19 = vmul.f32 1.442695, %v4113_v25  ;;  %v10223_v25 = vunpack.i.l.bf16 %v12705_v47 }
 0xcd0   : > { %v4080_v24 = vpop.xlane.xlu1 %4079 }
 0xcd1   : > { %v4106_v2 = vsub.f32 %v8598_v54, %v4080_v24 }
 0xcd3   : > { %v4127_v43 = vmul.f32 1.442695, %v4106_v2  ;;  %v4137_v2 = vmul.f32 1.442695, %v4111_v8 }
 0xcd4   : > { %v4084_v21 = vpop.xlane.xlu1 %4083 }
 0xcd5   : > { %v4108_v10 = vsub.f32 %v8601_v1, %v4084_v21  ;;  %10719 = vpow2.f32 %v4127_v43  ;;  %v12725_v1 = vpop.eup %10715 }
 0xcd6   : > { %v12727_v28 = vpop.eup %10717 }
 0xcd7   : > { %v4131_v20 = vmul.f32 1.442695, %v4108_v10 }
 0xcd8   : > { %v4088_v30 = vpop.xlane.xlu1 %4087 }
 0xcd9   : > { %10721 = vpow2.f32 %v4131_v20  ;;  %v4110_v6 = vsub.f32 %v12679_v0, %v4088_v30  ;;  %v4133_v0 = vmul.f32 1.442695, %v4109_v16 }
 0xcda   : > { %10723 = vpow2.f32 %v4125_v14 }
 0xcdb   : > { %10725 = vpow2.f32 %v4129_v18  ;;  %v4135_v12 = vmul.f32 1.442695, %v4110_v6 }
 0xcdc   : > { %v4092_v54 = vpop.xlane.xlu1 %4091  ;;  %10727 = vpow2.f32 %v4137_v2 }
 0xcdd   : > { %10729 = vpow2.f32 %v4135_v12  ;;  %v4112_v13 = vsub.f32 %v12686_v11, %v4092_v54  ;;  %v4115_v11 = vsub.f32 %v12695_v41, %v4098_v3  ;;  %v10237_v54 = vpop.permute.xlu0 %10236 }
 0xcdf   : > { %v12733_v26 = vpop.eup %10719 }
 0xce0   : > { %v4096_v10 = vpop.xlane.xlu1 %4095  ;;  %4153 = vadd.xlane.f32.xlu0 %v12725_v1 }
 0xce1   : > { %v4114_v20 = vsub.f32 %v12689_v17, %v4096_v10  ;;  %4155 = vadd.xlane.f32.xlu1 %v12727_v28  ;;  %v4139_v17 = vmul.f32 1.442695, %v4112_v13  ;;  %v10224_v10 = vunpack.i.h.bf16 %v12705_v47 }
 0xce3   : > { %v12736_v21 = vpop.eup %10721  ;;  %v4143_v34 = vmul.f32 1.442695, %v4114_v20  ;;  %v9532_v13 = vpack.c.bf16 %v10224_v10, %v10223_v25 }
 0xce4   : > { %v4100_v43 = vpop.xlane.xlu1 %4099  ;;  %4159 = vadd.xlane.f32.xlu0 %v12733_v26  ;;  %v12741_v38 = vpop.eup %10723 }
 0xce5   : > { %10731 = vpow2.f32 %v4143_v34  ;;  %4163 = vadd.xlane.f32.xlu1 %v12736_v21  ;;  %v4116_v22 = vsub.f32 %v12693_v5, %v4100_v43  ;;  %v12743_v30 = vpop.eup %10725  ;;  %v4145_v5 = vmul.f32 1.442695, %v4115_v11  ;;  %v14080_v34 = vld [vmem:[#allocation15_spill] sm:$0xff] }
 0xce6   : > { %10733 = vpow2.f32 %v4133_v0  ;;  %v12748_v23 = vpop.eup %10727 }
 0xce7   : > { %10735 = vpow2.f32 %v4141_v19  ;;  %v4147_v15 = vmul.f32 1.442695, %v4116_v22  ;;  %v12750_v36 = vpop.eup %10729  ;;  %v14082_v19 = vld [vmem:[#allocation68_spill] sm:$0xff] }
 0xce8   : > { %4157 = vadd.xlane.f32.xlu0 %v12741_v38  ;;  %10737 = vpow2.f32 %v4139_v17  ;;  %v10229_v17 = vunpack.i.h.bf16 %v14082_v19  ;;  %v10228_v22 = vunpack.i.l.bf16 %v14082_v19 }
 0xce9   : > { %4161 = vadd.xlane.f32.xlu1 %v12743_v30  ;;  %10739 = vpow2.f32 %v4147_v15  ;;  %v10239_v15 = vunpack.i.h.bf16 %v10237_v54 }
 0xcea   : > { %10741 = vpow2.f32 %v4145_v5  ;;  %v9538_v3 = vpack.c.bf16 %v10229_v17, %v10228_v22  ;;  %v10238_v5 = vunpack.i.l.bf16 %v10237_v54 }
 0xcec   : > { %4169 = vadd.xlane.f32.xlu0 %v12748_v23 }
 0xced   : > { %4167 = vadd.xlane.f32.xlu1 %v12750_v36 }
 0xcef   : > { %v12754_v24 = vpop.eup %10731 }
 0xcf0   : > { %v12756_v14 = vpop.eup %10733  ;;  %4175 = vadd.xlane.f32.xlu0 %v12754_v24 }
 0xcf1   : > { %4165 = vadd.xlane.f32.xlu1 %v12756_v14  ;;  %v12760_v41 = vpop.eup %10735 }
 0xcf2   : > { %v12762_v8 = vpop.eup %10737 }
 0xcf3   : > { %v12766_v18 = vpop.eup %10739 }
 0xcf4   : > { %4173 = vadd.xlane.f32.xlu0 %v12760_v41  ;;  %v12769_v6 = vpop.eup %10741 }
 0xcf5   : > { %4171 = vadd.xlane.f32.xlu1 %v12762_v8 }
 0xcf9   : > { %4179 = vadd.xlane.f32.xlu1 %v12766_v18 }
 0xcfd   : > { %4177 = vadd.xlane.f32.xlu1 %v12769_v6 }
 0xd0a   : > { %10251 = vrot.lane.b32.xlu0 %v11524_v46, %s11137_s30 }
 0xd0e   : > { %4583 = vrot.lane.b32.xlu0 %v11398_v27, %s11137_s30  ;;  %4585 = vrot.lane.b32.xlu1 %v11531_v49, %s11137_s30 }
 0xd12   : > { %4587 = vrot.lane.b32.xlu0 %v11534_v50, %s11137_s30  ;;  %4589 = vrot.lane.b32.xlu1 %v11541_v53, %s11137_s30 }
 0xd16   : > { %4591 = vrot.lane.b32.xlu0 %v11544_v55, %s11137_s30  ;;  %4593 = vrot.lane.b32.xlu1 %v11551_v29, %s11137_s30 }
 0xd1a   : > { %4595 = vrot.lane.b32.xlu0 %v11554_v33, %s11137_s30  ;;  %4597 = vrot.lane.b32.xlu1 %v11561_v35, %s11137_s30 }
 0xd1e   : > { %4599 = vrot.lane.b32.xlu0 %v11564_v39, %s11137_s30  ;;  %4601 = vrot.lane.b32.xlu1 %v11571_v44, %s11137_s30 }
 0xd22   : > { %4603 = vrot.lane.b32.xlu0 %v11573_v51, %s11137_s30  ;;  %4605 = vrot.lane.b32.xlu1 %v11579_v56, %s11137_s30 }
 0xd26   : > { %4607 = vrot.lane.b32.xlu0 %v11581_v58, %s11137_s30  ;;  %4609 = vrot.lane.b32.xlu1 %v11587_v61, %s11137_s30 }
 0xd2a   : > { %4611 = vrot.lane.b32.xlu0 %v11589_v62, %s11137_s30  ;;  %4613 = vrot.lane.b32.xlu1 %v11595_v63, %s11137_s30 }
 0xd2e   : > { %10256 = vrot.lane.b32.xlu0 %v11652_v7, %s11137_s30  ;;  %10261 = vrot.lane.b32.xlu1 %v11660_v9, %s11137_s30 }
 0xd32   : > { %10271 = vrot.lane.b32.xlu0 %v11665_v60, %s11137_s30  ;;  %10266 = vrot.lane.b32.xlu1 %v11671_v40, %s11137_s30 }
 0xd36   : > { %10276 = vrot.lane.b32.xlu0 %v11675_v42, %s11137_s30  ;;  %10281 = vrot.lane.b32.xlu1 %v11679_v45, %s11137_s30 }
 0xd38   : > { %v4152_v2 = vpop.xlane.xlu0 %4151 }
 0xd39   : > { %10743 = vrcp.f32 %v4152_v2  ;;  %v4150_v16 = vpop.xlane.xlu1 %4149  ;;  %v9550_v2 = vpack.c.bf16 %v10239_v15, %v10238_v5 }
 0xd3a   : > { %10745 = vrcp.f32 %v4150_v16  ;;  %10296 = vrot.lane.b32.xlu0 %v11410_v32, %s11138_s6  ;;  %10286 = vrot.lane.b32.xlu1 %v11685_v57, %s11137_s30 }
 0xd3c   : > { %v10247_v25 = vpop.permute.xlu0 %10246 }
 0xd3d   : > { %v10242_v16 = vpop.permute.xlu1 %10241  ;;  %v10248_v54 = vunpack.i.l.bf16 %v10247_v25 }
 0xd3e   : > { %10306 = vrot.lane.b32.xlu0 %v11444_v48, %s11138_s6  ;;  %10291 = vrot.lane.b32.xlu1 %v11689_v52, %s11137_s30 }
 0xd42   : > { %10301 = vrot.lane.b32.xlu1 %v13988_v59, %s11138_s6 }
 0xd43   : > { %v10744_v37 = vpop.eup %10743 }
 0xd44   : > { %v10746_v12 = vpop.eup %10745  ;;  %v4198_v0 = vmul.f32 %v10744_v37, %v12709_v4  ;;  %v14083_v4 = vld [vmem:[#allocation69_spill] sm:$0xff]  ;;  %v10244_v37 = vunpack.i.h.bf16 %v10242_v16 }
 0xd45   : > { %v4197_v20 = vmul.f32 %v10746_v12, %v12711_v31  ;;  %v10234_v31 = vunpack.i.h.bf16 %v14083_v4  ;;  %v10233_v47 = vunpack.i.l.bf16 %v14083_v4  ;;  %v10243_v12 = vunpack.i.l.bf16 %v10242_v16 }
 0xd47   : > { %8646 = vmatprep.mubr.f32.mxu1 %v4197_v20  ;;  %v9544_v11 = vpack.c.bf16 %v10234_v31, %v10233_v47  ;;  %v9556_v10 = vpack.c.bf16 %v10244_v37, %v10243_v12  ;;  %v10249_v20 = vunpack.i.h.bf16 %v10247_v25 }
 0xd48   : > { %8647 = vmatmul.mubr.f32.vlgmr.msra.gmra.mrb[80].mxu1 %v4198_v0 }
 0xd49   : > { %9531 = vmatpush3.bf16.xpose.msk.msra.mxu1 %vm11406_vm1, %v14080_v34  ;;  %v9562_v34 = vpack.c.bf16 %v10249_v20, %v10248_v54 }
 0xd4a   : > { %9534 = vmatprep.subr.msk.bf16.mxu1 %vm11406_vm1, %v9532_v13 }
 0xd51   : > { %9537 = vmatpush3.bf16.xpose.msk.msra.mxu1 %vm11406_vm1, %v9532_v13 }
 0xd52   : > { %9540 = vmatprep.subr.msk.bf16.mxu1 %vm11406_vm1, %v9538_v3 }
 0xd59   : > { %9543 = vmatpush3.bf16.xpose.msk.msra.mxu1 %vm11406_vm1, %v9538_v3 }
 0xd5a   : > { %9546 = vmatprep.subr.msk.bf16.mxu1 %vm11406_vm1, %v9544_v11 }
 0xd61   : > { %9549 = vmatpush3.bf16.xpose.msk.msra.mxu1 %vm11406_vm1, %v9544_v11 }
 0xd62   : > { %9552 = vmatprep.subr.msk.bf16.mxu1 %vm11406_vm1, %v9550_v2 }
 0xd69   : > { %9555 = vmatpush3.bf16.xpose.msk.msra.mxu1 %vm11406_vm1, %v9550_v2 }
 0xd6a   : > { %9558 = vmatprep.subr.msk.bf16.mxu1 %vm11406_vm1, %v9556_v10 }
 0xd6d   : > { %v4154_v0 = vpop.xlane.xlu0 %4153 }
 0xd6e   : > { %10747 = vrcp.f32 %v4154_v0  ;;  %v4156_v13 = vpop.xlane.xlu1 %4155 }
 0xd6f   : > { %10749 = vrcp.f32 %v4156_v13 }
 0xd71   : > { %9561 = vmatpush3.bf16.xpose.msk.msra.mxu1 %vm11406_vm1, %v9556_v10  ;;  %v4160_v19 = vpop.xlane.xlu0 %4159 }
 0xd72   : > { %9564 = vmatprep.subr.msk.bf16.mxu1 %vm11406_vm1, %v9562_v34  ;;  %v4164_v17 = vpop.xlane.xlu1 %4163  ;;  %10751 = vrcp.f32 %v4160_v19 }
 0xd75   : > { %v4158_v22 = vpop.xlane.xlu0 %4157 }
 0xd76   : > { %10753 = vrcp.f32 %v4158_v22  ;;  %v4162_v3 = vpop.xlane.xlu1 %4161 }
 0xd77   : > { %10755 = vrcp.f32 %v4162_v3 }
 0xd78   : > { %v10748_v4 = vpop.eup %10747  ;;  %10757 = vrcp.f32 %v4164_v17 }
 0xd79   : > { %v10750_v31 = vpop.eup %10749  ;;  %9567 = vmatpush3.bf16.xpose.msk.msra.mxu1 %vm11406_vm1, %v9562_v34  ;;  %v4170_v47 = vpop.xlane.xlu0 %4169  ;;  %v4199_v11 = vmul.f32 %v10748_v4, %v12725_v1 }
 0xd7a   : > { %v4168_v15 = vpop.xlane.xlu1 %4167  ;;  %v4200_v5 = vmul.f32 %v10750_v31, %v12727_v28  ;;  %10759 = vrcp.f32 %v4170_v47 }
 0xd7b   : > { %8649 = vmatprep.mubr.f32.mxu1 %v4199_v11  ;;  %10761 = vrcp.f32 %v4168_v15 }
 0xd7c   : > { %8650 = vmatmul.mubr.f32.gmra.mrb[82].mxu1 %v4200_v5  ;;  %v10752_v37 = vpop.eup %10751 }
 0xd7d   : > { %v4176_v2 = vpop.xlane.xlu0 %4175  ;;  %v4202_v1 = vmul.f32 %v10752_v37, %v12733_v26 }
 0xd7e   : > { %v4166_v16 = vpop.xlane.xlu1 %4165 }
 0xd7f   : > { %10763 = vrcp.f32 %v4166_v16 }
 0xd80   : > { %v10754_v12 = vpop.eup %10753 }
 0xd81   : > { %v10756_v10 = vpop.eup %10755  ;;  %v4174_v25 = vpop.xlane.xlu0 %4173  ;;  %v4201_v20 = vmul.f32 %v10754_v12, %v12741_v38 }
 0xd82   : > { %10765 = vrcp.f32 %v4174_v25  ;;  %v4172_v54 = vpop.xlane.xlu1 %4171  ;;  %v4203_v0 = vmul.f32 %v10756_v10, %v12743_v30  ;;  %v10758_v28 = vpop.eup %10757 }
 0xd83   : > { %10767 = vrcp.f32 %v4172_v54  ;;  %8652 = vmatprep.mubr.f32.mxu1 %v4201_v20  ;;  %v4204_v22 = vmul.f32 %v10758_v28, %v12736_v21 }
 0xd84   : > { %8653 = vmatmul.mubr.f32.gmra.mrb[84].mxu1 %v4202_v1  ;;  %10769 = vrcp.f32 %v4176_v2  ;;  %v10760_v3 = vpop.eup %10759 }
 0xd85   : > { %8655 = vmatprep.mubr.f32.mxu1 %v4203_v0  ;;  %v10252_v13 = vpop.permute.xlu0 %10251  ;;  %v10762_v38 = vpop.eup %10761  ;;  %v4207_v15 = vmul.f32 %v10760_v3, %v12748_v23 }
 0xd86   : > { %v10254_v34 = vunpack.i.h.bf16 %v10252_v13  ;;  %v10253_v19 = vunpack.i.l.bf16 %v10252_v13  ;;  %v4180_v17 = vpop.xlane.xlu1 %4179  ;;  %v4206_v11 = vmul.f32 %v10762_v38, %v12750_v36 }
 0xd87   : > { %10771 = vrcp.f32 %v4180_v17 }
 0xd88   : > { %v9568_v4 = vpack.c.bf16 %v10254_v34, %v10253_v19  ;;  %8656 = vmatmul.mubr.f32.gmra.mrb[86].mxu1 %v4204_v22 }
 0xd89   : > { %v10764_v31 = vpop.eup %10763  ;;  %v4584_v26 = vpop.permute.xlu0 %4583 }
 0xd8a   : > { %v4178_v30 = vpop.xlane.xlu1 %4177  ;;  %9570 = vmatprep.subr.msk.bf16.mxu1 %vm11406_vm1, %v9568_v4  ;;  %v4205_v47 = vmul.f32 %v10764_v31, %v12756_v14 }
 0xd8b   : > { %10773 = vrcp.f32 %v4178_v30  ;;  %9573 = vmatpush3.bf16.xpose.msk.msra.mxu1 %vm11406_vm1, %v9568_v4 }
 0xd8c   : > { %v10766_v21 = vpop.eup %10765  ;;  %8658 = vmatprep.mubr.f32.mxu1 %v4205_v47 }
 0xd8d   : > { %v10768_v5 = vpop.eup %10767  ;;  %8659 = vmatmul.mubr.f32.gmra.mrb[88].mxu1 %v4206_v11  ;;  %v4588_v2 = vpop.permute.xlu0 %4587  ;;  %v4209_v14 = vmul.f32 %v10766_v21, %v12760_v41 }
 0xd8e   : > { %v4586_v16 = vpop.permute.xlu1 %4585  ;;  %8661 = vmatprep.mubr.f32.mxu1 %v4207_v15  ;;  %v4208_v37 = vmul.f32 %v10768_v5, %v12762_v8  ;;  %v10770_v12 = vpop.eup %10769 }
 0xd8f   : > { %v4210_v36 = vmul.f32 %v10770_v12, %v12754_v24 }
 0xd91   : > { %8662 = vmatmul.mubr.f32.gmra.mrb[90].mxu1 %v4208_v37  ;;  %v4592_v10 = vpop.permute.xlu0 %4591  ;;  %v10772_v20 = vpop.eup %10771 }
 0xd92   : > { %v4590_v25 = vpop.permute.xlu1 %4589  ;;  %8664 = vmatprep.mubr.f32.mxu1 %v4209_v14  ;;  %v4212_v28 = vmul.f32 %v10772_v20, %v12766_v18 }
 0xd95   : > { %v10774_v54 = vpop.eup %10773  ;;  %8665 = vmatmul.mubr.f32.gmra.mrb[92].mxu1 %v4210_v36  ;;  %v4596_v23 = vpop.permute.xlu0 %4595 }
 0xd96   : > { %v4594_v1 = vpop.permute.xlu1 %4593  ;;  %v4211_v0 = vmul.f32 %v10774_v54, %v12769_v6 }
 0xd98   : > { %8667 = vmatprep.mubr.f32.mxu1 %v4211_v0 }
 0xd99   : > { %8668 = vmatmul.mubr.f32.gmra.mrb[94].mxu1 %v4212_v28  ;;  %v4600_v8 = vpop.permute.xlu0 %4599 }
 0xd9a   : > { %v4598_v13 = vpop.permute.xlu1 %4597  ;;  %8702 = vmatprep.mubr.msk.f32.mxu1 %vm744_vm0, %v4584_v26 }
 0xd9d   : > { %v4604_v41 = vpop.permute.xlu0 %4603  ;;  %8703 = vmatmul.mubr.msk.f32.vlgmr.msra.gmra.mrb[96].mxu1 %vm744_vm0, %v4586_v16 }
 0xd9e   : > { %v4602_v34 = vpop.permute.xlu1 %4601  ;;  %8705 = vmatprep.mubr.msk.f32.mxu1 %vm744_vm0, %v4588_v2 }
 0xda1   : > { %v4608_v24 = vpop.permute.xlu0 %4607  ;;  %8706 = vmatmul.mubr.msk.f32.gmra.mrb[98].mxu1 %vm744_vm0, %v4590_v25 }
 0xda2   : > { %v4606_v19 = vpop.permute.xlu1 %4605  ;;  %8708 = vmatprep.mubr.msk.f32.mxu1 %vm744_vm0, %v4592_v10 }
 0xda5   : > { %v4612_v6 = vpop.permute.xlu0 %4611  ;;  %8709 = vmatmul.mubr.msk.f32.gmra.mrb[100].mxu1 %vm744_vm0, %v4594_v1 }
 0xda6   : > { %v4610_v18 = vpop.permute.xlu1 %4609  ;;  %8711 = vmatprep.mubr.msk.f32.mxu1 %vm744_vm0, %v4596_v23 }
 0xda9   : > { %v10257_v17 = vpop.permute.xlu0 %10256  ;;  %8712 = vmatmul.mubr.msk.f32.gmra.mrb[102].mxu1 %vm744_vm0, %v4598_v13 }
 0xdaa   : > { %v10259_v22 = vunpack.i.h.bf16 %v10257_v17  ;;  %v10258_v3 = vunpack.i.l.bf16 %v10257_v17  ;;  %v4614_v38 = vpop.permute.xlu1 %4613  ;;  %8714 = vmatprep.mubr.msk.f32.mxu1 %vm744_vm0, %v4600_v8 }
 0xdac   : > { %v9574_v4 = vpack.c.bf16 %v10259_v22, %v10258_v3 }
 0xdad   : > { %8715 = vmatmul.mubr.msk.f32.gmra.mrb[104].mxu1 %vm744_vm0, %v4602_v34  ;;  %v10272_v31 = vpop.permute.xlu0 %10271 }
 0xdae   : > { %v10262_v26 = vpop.permute.xlu1 %10261  ;;  %8717 = vmatprep.mubr.msk.f32.mxu1 %vm744_vm0, %v4604_v41  ;;  %9575 = vmatprep.subr.bf16.mxu0 %v9574_v4  ;;  %v10274_v15 = vunpack.i.h.bf16 %v10272_v31  ;;  %v10273_v5 = vunpack.i.l.bf16 %v10272_v31 }
 0xdaf   : > { %v10264_v30 = vunpack.i.h.bf16 %v10262_v26  ;;  %v10263_v47 = vunpack.i.l.bf16 %v10262_v26  ;;  %9577 = vmatpush3.bf16.msra.mxu0 %v9574_v4 }
 0xdb0   : > { %v9586_v36 = vpack.c.bf16 %v10274_v15, %v10273_v5 }
 0xdb1   : > { %8718 = vmatmul.mubr.msk.f32.gmra.mrb[106].mxu1 %vm744_vm0, %v4606_v19  ;;  %v9578_v11 = vpack.c.bf16 %v10264_v30, %v10263_v47  ;;  %v10277_v37 = vpop.permute.xlu0 %10276 }
 0xdb2   : > { %v10267_v21 = vpop.permute.xlu1 %10266  ;;  %8720 = vmatprep.mubr.msk.f32.mxu1 %vm744_vm0, %v4608_v24  ;;  %v10279_v10 = vunpack.i.h.bf16 %v10277_v37  ;;  %v10278_v25 = vunpack.i.l.bf16 %v10277_v37 }
 0xdb3   : > { %v10269_v2 = vunpack.i.h.bf16 %v10267_v21  ;;  %v10268_v16 = vunpack.i.l.bf16 %v10267_v21  ;;  %9579 = vmatprep.subr.bf16.mxu0 %v9578_v11 }
 0xdb4   : > { %9581 = vmatpush3.bf16.msra.mxu0 %v9578_v11  ;;  %v9590_v1 = vpack.c.bf16 %v10279_v10, %v10278_v25 }
 0xdb5   : > { %8721 = vmatmul.mubr.msk.f32.gmra.mrb[108].mxu1 %vm744_vm0, %v4610_v18  ;;  %v9582_v12 = vpack.c.bf16 %v10269_v2, %v10268_v16  ;;  %v10297_v19 = vpop.permute.xlu0 %10296 }
 0xdb6   : > { %v10282_v14 = vpop.permute.xlu1 %10281  ;;  %8723 = vmatprep.mubr.msk.f32.mxu1 %vm744_vm0, %v4612_v6  ;;  %v10299_v6 = vunpack.i.h.bf16 %v10297_v19  ;;  %v10298_v18 = vunpack.i.l.bf16 %v10297_v19 }
 0xdb7   : > { %9583 = vmatprep.subr.bf16.mxu0 %v9582_v12  ;;  %v10284_v54 = vunpack.i.h.bf16 %v10282_v14  ;;  %v10283_v23 = vunpack.i.l.bf16 %v10282_v14 }
 0xdb8   : > { %9585 = vmatpush3.bf16.msra.mxu0 %v9582_v12  ;;  %v12897_v22 = vpack.c.bf16 %v10299_v6, %v10298_v18 }
 0xdb9   : > { %8724 = vmatmul.mubr.msk.f32.gmra.mrb[110].mxu1 %vm744_vm0, %v4614_v38  ;;  %9587 = vmatprep.subr.bf16.mxu0 %v9586_v36  ;;  %v9594_v8 = vpack.c.bf16 %v10284_v54, %v10283_v23 }
 0xdba   : > { %v10287_v20 = vpop.permute.xlu1 %10286  ;;  %14084 = vst [vmem:[#allocation15_spill] sm:$0xff] %v12897_v22 }
 0xdbb   : > { %v10289_v0 = vunpack.i.h.bf16 %v10287_v20  ;;  %v10288_v28 = vunpack.i.l.bf16 %v10287_v20 }
 0xdbc   : > { %9589 = vmatpush3.bf16.msra.mxu0 %v9586_v36 }
 0xdbd   : > { %9591 = vmatprep.subr.bf16.mxu0 %v9590_v1  ;;  %v9598_v24 = vpack.c.bf16 %v10289_v0, %v10288_v28 }
 0xdbe   : > { %v10292_v13 = vpop.permute.xlu1 %10291 }
 0xdbf   : > { %v10294_v41 = vunpack.i.h.bf16 %v10292_v13  ;;  %v10293_v34 = vunpack.i.l.bf16 %v10292_v13  ;;  %v14101_v13 = vld [vmem:[#allocation16_spill] sm:$0xff] }
 0xdc0   : > { %9593 = vmatpush3.bf16.msra.mxu0 %v9590_v1 }
 0xdc1   : > { %9595 = vmatprep.subr.bf16.mxu0 %v9594_v8  ;;  %v9602_v17 = vpack.c.bf16 %v10294_v41, %v10293_v34 }
 0xdc4   : > { %9597 = vmatpush3.bf16.msra.mxu0 %v9594_v8 }
 0xdc5   : > { %9599 = vmatprep.subr.bf16.mxu0 %v9598_v24 }
 0xdc8   : > { %9601 = vmatpush3.bf16.msra.mxu0 %v9598_v24 }
 0xdc9   : > { %9603 = vmatprep.subr.bf16.mxu0 %v9602_v17 }
 0xdcc   : > { %9605 = vmatpush3.bf16.msra.mxu0 %v9602_v17  ;;  %v14102_v17 = vld [vmem:[#allocation17_spill] sm:$0xff] }
 0xdcd   : > { %9608 = vmatprep.subr.msk.bf16.mxu0 %vm11406_vm1, %v12897_v22 }
 0xe1b   : > { %v12902_v3 = vpop.f32.mrb[80].mxu1 }
 0xe1c   : > { %14085 = vst [vmem:[#allocation68_spill] sm:$0xff] %v12902_v3  ;;  %v12904_v38 = vpop.f32.mrb[81].mxu1 }
 0xe1d   : > { %14086 = vst [vmem:[#allocation69_spill] sm:$0xff] %v12904_v38 }
 0xe4f   : > { %v12906_v4 = vpop.f32.mrb[82].mxu1 }
 0xe50   : > { %14087 = vst [vmem:[#allocation70_spill] sm:$0xff] %v12906_v4  ;;  %v12908_v31 = vpop.f32.mrb[83].mxu1 }
 0xe51   : > { %14088 = vst [vmem:[#allocation71_spill] sm:$0xff] %v12908_v31  ;;  %v14105_v31 = vld [vmem:[#allocation18_spill] sm:$0xff] }
 0xe57   : > { %v12910_v26 = vpop.f32.mrb[84].mxu1 }
 0xe58   : > { %14089 = vst [vmem:[#allocation72_spill] sm:$0xff] %v12910_v26  ;;  %v12912_v30 = vpop.f32.mrb[85].mxu1 }
 0xe59   : > { %14090 = vst [vmem:[#allocation73_spill] sm:$0xff] %v12912_v30 }
 0xe5b   : > { %v12914_v47 = vpop.f32.mrb[86].mxu1 }
 0xe5c   : > { %14091 = vst [vmem:[#allocation74_spill] sm:$0xff] %v12914_v47  ;;  %v12916_v11 = vpop.f32.mrb[87].mxu1 }
 0xe5d   : > { %14092 = vst [vmem:[#allocation75_spill] sm:$0xff] %v12916_v11 }
 0xe60   : > { %v12918_v21 = vpop.f32.mrb[88].mxu1 }
 0xe61   : > { %14093 = vst [vmem:[#allocation76_spill] sm:$0xff] %v12918_v21  ;;  %v12920_v15 = vpop.f32.mrb[89].mxu1 }
 0xe62   : > { %14094 = vst [vmem:[#allocation77_spill] sm:$0xff] %v12920_v15 }
 0xe64   : > { %v12922_v5 = vpop.f32.mrb[90].mxu1 }
 0xe65   : > { %14095 = vst [vmem:[#allocation78_spill] sm:$0xff] %v12922_v5  ;;  %v12924_v2 = vpop.f32.mrb[91].mxu1 }
 0xe66   : > { %14096 = vst [vmem:[#allocation79_spill] sm:$0xff] %v12924_v2 }
 0xe68   : > { %v12926_v16 = vpop.f32.mrb[92].mxu1 }
 0xe69   : > { %14097 = vst [vmem:[#allocation80_spill] sm:$0xff] %v12926_v16  ;;  %v12928_v37 = vpop.f32.mrb[93].mxu1 }
 0xe6a   : > { %14098 = vst [vmem:[#allocation81_spill] sm:$0xff] %v12928_v37 }
 0xe6c   : > { %v12930_v12 = vpop.f32.mrb[94].mxu1 }
 0xe6d   : > { %14099 = vst [vmem:[#allocation82_spill] sm:$0xff] %v12930_v12  ;;  %v12932_v14 = vpop.f32.mrb[95].mxu1  ;;  %v12965_v12 = vpop.permute.xlu1 %10301 }
 0xe6e   : > { %14100 = vst [vmem:[#allocation83_spill] sm:$0xff] %v12932_v14  ;;  %v12967_v14 = vpop.permute.xlu0 %10306 }
 0xe6f   : > { %14103 = vst [vmem:[#allocation16_spill] sm:$0xff] %v12967_v14 }
 0xe70   : > { %v8704_v10 = vpop.f32.mrb[96].mxu1 }
 0xe71   : > { %4874 = vmax.xlane.f32.xlu1 %v8704_v10  ;;  %v4793_v25 = vpop.f32.mrb[97].mxu1 }
 0xe72   : > { %4872 = vmax.xlane.f32.xlu0 %v4793_v25 }
 0xe74   : > { %v8707_v36 = vpop.f32.mrb[98].mxu1 }
 0xe75   : > { %v4803_v20 = vpop.f32.mrb[99].mxu1 }
 0xe76   : > { %4878 = vmax.xlane.f32.xlu0 %v8707_v36 }
 0xe78   : > { %v8710_v54 = vpop.f32.mrb[100].mxu1 }
 0xe79   : > { %v12934_v23 = vpop.f32.mrb[101].mxu1 }
 0xe7a   : > { %4876 = vmax.xlane.f32.xlu0 %v4803_v20 }
 0xe7c   : > { %v8713_v1 = vpop.f32.mrb[102].mxu1 }
 0xe7d   : > { %v12936_v0 = vpop.f32.mrb[103].mxu1 }
 0xe7e   : > { %4880 = vmax.xlane.f32.xlu0 %v12934_v23 }
 0xe80   : > { %v12939_v28 = vpop.f32.mrb[104].mxu1 }
 0xe81   : > { %v12941_v8 = vpop.f32.mrb[105].mxu1 }
 0xe82   : > { %10311 = vrot.lane.b32.xlu1 %v14101_v13, %s11138_s6  ;;  %4884 = vmax.xlane.f32.xlu0 %v12936_v0 }
 0xe84   : > { %v12946_v41 = vpop.f32.mrb[106].mxu1 }
 0xe85   : > { %v4843_v34 = vpop.f32.mrb[107].mxu1 }
 0xe86   : > { %4888 = vmax.xlane.f32.xlu0 %v12941_v8 }
 0xe88   : > { %v12949_v24 = vpop.f32.mrb[108].mxu1 }
 0xe89   : > { %v12951_v19 = vpop.f32.mrb[109].mxu1 }
 0xe8a   : > { %4892 = vmax.xlane.f32.xlu0 %v4843_v34 }
 0xe8c   : > { %v12953_v6 = vpop.f32.mrb[110].mxu1 }
 0xe8d   : > { %v12955_v18 = vpop.f32.mrb[111].mxu1 }
 0xe8e   : > { %4896 = vmax.xlane.f32.xlu0 %v12951_v19 }
 0xe92   : > { %4900 = vmax.xlane.f32.xlu0 %v12955_v18 }
 0xea6   : > { %4882 = vmax.xlane.f32.xlu1 %v8710_v54 }
 0xea8   : > { %10316 = vrot.lane.b32.xlu0 %v14102_v17, %s11138_s6 }
 0xeaa   : > { %4886 = vmax.xlane.f32.xlu1 %v8713_v1 }
 0xeae   : > { %4890 = vmax.xlane.f32.xlu1 %v12939_v28 }
 0xeb2   : > { %4894 = vmax.xlane.f32.xlu1 %v12946_v41 }
 0xeb6   : > { %4898 = vmax.xlane.f32.xlu1 %v12949_v24 }
 0xeba   : > { %4902 = vmax.xlane.f32.xlu1 %v12953_v6 }
 0xefe   : > { %v4875_v47 = vpop.xlane.xlu1 %4874 }
 0xeff   : > { %v4905_v11 = vsub.f32 %v8704_v10, %v4875_v47  ;;  %v4873_v16 = vpop.xlane.xlu0 %4872  ;;  %v14106_v47 = vld [vmem:[#allocation19_spill] sm:$0xff] }
 0xf00   : > { %v4904_v37 = vsub.f32 %v4793_v25, %v4873_v16 }
 0xf01   : > { %v4922_v26 = vmul.f32 1.442695, %v4905_v11 }
 0xf02   : > { %v4920_v30 = vmul.f32 1.442695, %v4904_v37 }
 0xf03   : > { %10775 = vpow2.f32 %v4922_v26  ;;  %v4879_v4 = vpop.xlane.xlu0 %4878  ;;  %v12979_v26 = vpop.permute.xlu1 %10311 }
 0xf04   : > { %10777 = vpow2.f32 %v4920_v30  ;;  %14107 = vst [vmem:[#allocation85_spill] sm:$0xff] %v12979_v26  ;;  %v4907_v37 = vsub.f32 %v8707_v36, %v4879_v4 }
 0xf06   : > { %v4926_v38 = vmul.f32 1.442695, %v4907_v37 }
 0xf07   : > { %v4877_v21 = vpop.xlane.xlu0 %4876 }
 0xf08   : > { %v4906_v30 = vsub.f32 %v4803_v20, %v4877_v21 }
 0xf0a   : > { %v4924_v15 = vmul.f32 1.442695, %v4906_v30 }
 0xf0b   : > { %v4881_v11 = vpop.xlane.xlu0 %4880 }
 0xf0c   : > { %10779 = vpow2.f32 %v4924_v15 }
 0xf0d   : > { %v12969_v5 = vpop.eup %10775  ;;  %10781 = vpow2.f32 %v4926_v38 }
 0xf0e   : > { %14104 = vst [vmem:[#allocation84_spill] sm:$0xff] %v12969_v5  ;;  %v12971_v2 = vpop.eup %10777  ;;  %4954 = vadd.xlane.f32.xlu0 %v12969_v5 }
 0xf0f   : > { %4952 = vadd.xlane.f32.xlu1 %v12971_v2  ;;  %v4885_v16 = vpop.xlane.xlu0 %4884 }
 0xf13   : > { %v4889_v10 = vpop.xlane.xlu0 %4888 }
 0xf14   : > { %v4912_v15 = vsub.f32 %v12941_v8, %v4889_v10 }
 0xf17   : > { %v4893_v22 = vpop.xlane.xlu0 %4892 }
 0xf18   : > { %v4914_v4 = vsub.f32 %v4843_v34, %v4893_v22 }
 0xf20   : > { %10321 = vrot.lane.b32.xlu1 %v14105_v31, %s11138_s6  ;;  %v4908_v31 = vsub.f32 %v12934_v23, %v4881_v11  ;;  %v12985_v23 = vpop.eup %10779 }
 0xf22   : > { %v4928_v21 = vmul.f32 1.442695, %v4908_v31 }
 0xf24   : > { %10326 = vrot.lane.b32.xlu0 %v14106_v47, %s11138_s6  ;;  %v4910_v47 = vsub.f32 %v12936_v0, %v4885_v16  ;;  %v4936_v0 = vmul.f32 1.442695, %v4912_v15 }
 0xf26   : > { %v4932_v36 = vmul.f32 1.442695, %v4910_v47 }
 0xf33   : > { %v4883_v25 = vpop.xlane.xlu1 %4882 }
 0xf34   : > { %v4909_v3 = vsub.f32 %v8710_v54, %v4883_v25 }
 0xf36   : > { %v4930_v17 = vmul.f32 1.442695, %v4909_v3  ;;  %v4940_v3 = vmul.f32 1.442695, %v4914_v4 }
 0xf37   : > { %v4887_v14 = vpop.xlane.xlu1 %4886 }
 0xf38   : > { %v4911_v43 = vsub.f32 %v8713_v1, %v4887_v14  ;;  %10783 = vpow2.f32 %v4930_v17  ;;  %v4897_v14 = vpop.xlane.xlu0 %4896  ;;  %v12987_v1 = vpop.eup %10781 }
 0xf39   : > { %v4916_v22 = vsub.f32 %v12951_v19, %v4897_v14 }
 0xf3a   : > { %v4934_v5 = vmul.f32 1.442695, %v4911_v43 }
 0xf3b   : > { %v4891_v26 = vpop.xlane.xlu1 %4890  ;;  %v4944_v47 = vmul.f32 1.442695, %v4916_v22  ;;  %v10303_v22 = vunpack.i.l.bf16 %v12965_v12 }
 0xf3c   : > { %10785 = vpow2.f32 %v4934_v5  ;;  %v4913_v20 = vsub.f32 %v12939_v28, %v4891_v26  ;;  %v4901_v16 = vpop.xlane.xlu0 %4900 }
 0xf3d   : > { %10787 = vpow2.f32 %v4928_v21 }
 0xf3e   : > { %10789 = vpow2.f32 %v4932_v36  ;;  %v4938_v38 = vmul.f32 1.442695, %v4913_v20 }
 0xf3f   : > { %v4895_v54 = vpop.xlane.xlu1 %4894  ;;  %10791 = vpow2.f32 %v4940_v3 }
 0xf40   : > { %10793 = vpow2.f32 %v4938_v38  ;;  %v4915_v28 = vsub.f32 %v12946_v41, %v4895_v54  ;;  %v4918_v41 = vsub.f32 %v12955_v18, %v4901_v16  ;;  %v10317_v54 = vpop.permute.xlu0 %10316 }
 0xf41   : > { %v10319_v16 = vunpack.i.h.bf16 %v10317_v54 }
 0xf42   : > { %v12993_v5 = vpop.eup %10783 }
 0xf43   : > { %v4899_v43 = vpop.xlane.xlu1 %4898  ;;  %4956 = vadd.xlane.f32.xlu0 %v12985_v23 }
 0xf44   : > { %v4917_v31 = vsub.f32 %v12949_v24, %v4899_v43  ;;  %4958 = vadd.xlane.f32.xlu1 %v12987_v1  ;;  %v4942_v24 = vmul.f32 1.442695, %v4915_v28  ;;  %v10304_v43 = vunpack.i.h.bf16 %v12965_v12  ;;  %v14109_v28 = vld [vmem:[#allocation15_spill] sm:$0xff] }
 0xf46   : > { %v12996_v8 = vpop.eup %10785  ;;  %v4946_v34 = vmul.f32 1.442695, %v4917_v31  ;;  %v14108_v31 = vld [vmem:[#allocation84_spill] sm:$0xff] }
 0xf47   : > { %v4903_v17 = vpop.xlane.xlu1 %4902  ;;  %4962 = vadd.xlane.f32.xlu0 %v12993_v5  ;;  %v13001_v11 = vpop.eup %10787 }
 0xf48   : > { %10795 = vpow2.f32 %v4946_v34  ;;  %4966 = vadd.xlane.f32.xlu1 %v12996_v8  ;;  %v4919_v19 = vsub.f32 %v12953_v6, %v4903_v17  ;;  %v13003_v26 = vpop.eup %10789  ;;  %v4948_v6 = vmul.f32 1.442695, %v4918_v41  ;;  %v10318_v41 = vunpack.i.l.bf16 %v10317_v54 }
 0xf49   : > { %10797 = vpow2.f32 %v4936_v0  ;;  %v13008_v37 = vpop.eup %10791 }
 0xf4a   : > { %10799 = vpow2.f32 %v4944_v47  ;;  %v4950_v30 = vmul.f32 1.442695, %v4919_v19  ;;  %v13010_v10 = vpop.eup %10793 }
 0xf4b   : > { %4960 = vadd.xlane.f32.xlu0 %v13001_v11  ;;  %10801 = vpow2.f32 %v4942_v24 }
 0xf4c   : > { %4964 = vadd.xlane.f32.xlu1 %v13003_v26  ;;  %10803 = vpow2.f32 %v4950_v30  ;;  %v9630_v30 = vpack.c.bf16 %v10319_v16, %v10318_v41 }
 0xf4d   : > { %10805 = vpow2.f32 %v4948_v6 }
 0xf4f   : > { %4972 = vadd.xlane.f32.xlu0 %v13008_v37 }
 0xf50   : > { %4970 = vadd.xlane.f32.xlu1 %v13010_v10 }
 0xf52   : > { %v13014_v25 = vpop.eup %10795 }
 0xf53   : > { %v13016_v21 = vpop.eup %10797  ;;  %4978 = vadd.xlane.f32.xlu0 %v13014_v25 }
 0xf54   : > { %4968 = vadd.xlane.f32.xlu1 %v13016_v21  ;;  %v13020_v18 = vpop.eup %10799 }
 0xf55   : > { %v13022_v4 = vpop.eup %10801 }
 0xf56   : > { %v13026_v36 = vpop.eup %10803 }
 0xf57   : > { %4976 = vadd.xlane.f32.xlu0 %v13020_v18  ;;  %v13029_v20 = vpop.eup %10805 }
 0xf58   : > { %4974 = vadd.xlane.f32.xlu1 %v13022_v4 }
 0xf5c   : > { %4982 = vadd.xlane.f32.xlu1 %v13026_v36 }
 0xf60   : > { %4980 = vadd.xlane.f32.xlu1 %v13029_v20 }
 0xf6d   : > { %10331 = vrot.lane.b32.xlu0 %v11524_v46, %s11138_s6 }
 0xf71   : > { %5386 = vrot.lane.b32.xlu0 %v11398_v27, %s11138_s6  ;;  %5388 = vrot.lane.b32.xlu1 %v11531_v49, %s11138_s6 }
 0xf75   : > { %5390 = vrot.lane.b32.xlu0 %v11534_v50, %s11138_s6  ;;  %5392 = vrot.lane.b32.xlu1 %v11541_v53, %s11138_s6 }
 0xf79   : > { %5394 = vrot.lane.b32.xlu0 %v11544_v55, %s11138_s6  ;;  %5396 = vrot.lane.b32.xlu1 %v11551_v29, %s11138_s6 }
 0xf7d   : > { %5398 = vrot.lane.b32.xlu0 %v11554_v33, %s11138_s6  ;;  %5400 = vrot.lane.b32.xlu1 %v11561_v35, %s11138_s6 }
 0xf81   : > { %5402 = vrot.lane.b32.xlu0 %v11564_v39, %s11138_s6  ;;  %5404 = vrot.lane.b32.xlu1 %v11571_v44, %s11138_s6 }
 0xf85   : > { %5406 = vrot.lane.b32.xlu0 %v11573_v51, %s11138_s6  ;;  %5408 = vrot.lane.b32.xlu1 %v11579_v56, %s11138_s6 }
 0xf89   : > { %5410 = vrot.lane.b32.xlu0 %v11581_v58, %s11138_s6  ;;  %5412 = vrot.lane.b32.xlu1 %v11587_v61, %s11138_s6 }
 0xf8d   : > { %5414 = vrot.lane.b32.xlu0 %v11589_v62, %s11138_s6  ;;  %5416 = vrot.lane.b32.xlu1 %v11595_v63, %s11138_s6 }
 0xf91   : > { %10336 = vrot.lane.b32.xlu0 %v11652_v7, %s11138_s6  ;;  %10341 = vrot.lane.b32.xlu1 %v11660_v9, %s11138_s6 }
 0xf95   : > { %10351 = vrot.lane.b32.xlu0 %v11665_v60, %s11138_s6  ;;  %10346 = vrot.lane.b32.xlu1 %v11671_v40, %s11138_s6 }
 0xf99   : > { %10356 = vrot.lane.b32.xlu0 %v11675_v42, %s11138_s6  ;;  %10361 = vrot.lane.b32.xlu1 %v11679_v45, %s11138_s6 }
 0xf9b   : > { %v4955_v3 = vpop.xlane.xlu0 %4954 }
 0xf9c   : > { %10807 = vrcp.f32 %v4955_v3  ;;  %v4953_v15 = vpop.xlane.xlu1 %4952 }
 0xf9d   : > { %10809 = vrcp.f32 %v4953_v15  ;;  %10376 = vrot.lane.b32.xlu0 %v11410_v32, %s11139_s9  ;;  %10366 = vrot.lane.b32.xlu1 %v11685_v57, %s11138_s6 }
 0xfa0   : > { %v10322_v6 = vpop.permute.xlu1 %10321 }
 0xfa1   : > { %10386 = vrot.lane.b32.xlu0 %v11444_v48, %s11139_s9  ;;  %10371 = vrot.lane.b32.xlu1 %v11689_v52, %s11138_s6  ;;  %v9612_v48 = vpack.c.bf16 %v10304_v43, %v10303_v22  ;;  %v10324_v3 = vunpack.i.h.bf16 %v10322_v6  ;;  %v10323_v15 = vunpack.i.l.bf16 %v10322_v6 }
 0xfa5   : > { %10381 = vrot.lane.b32.xlu1 %v13988_v59, %s11139_s9  ;;  %v14111_v59 = vld [vmem:[#allocation16_spill] sm:$0xff] }
 0xfa6   : > { %v10808_v14 = vpop.eup %10807  ;;  %v10309_v17 = vunpack.i.h.bf16 %v14111_v59  ;;  %v10308_v12 = vunpack.i.l.bf16 %v14111_v59 }
 0xfa7   : > { %v10810_v38 = vpop.eup %10809  ;;  %v5001_v0 = vmul.f32 %v10808_v14, %v14108_v31  ;;  %v9636_v14 = vpack.c.bf16 %v10324_v3, %v10323_v15 }
 0xfa8   : > { %v5000_v32 = vmul.f32 %v10810_v38, %v12971_v2  ;;  %v9618_v2 = vpack.c.bf16 %v10309_v17, %v10308_v12  ;;  %v10327_v38 = vpop.permute.xlu0 %10326 }
 0xfa9   : > { %10391 = vrot.lane.b32.xlu1 %v14101_v13, %s11139_s9  ;;  %v14112_v13 = vld [vmem:[#allocation85_spill] sm:$0xff]  ;;  %v10329_v43 = vunpack.i.h.bf16 %v10327_v38  ;;  %v10328_v54 = vunpack.i.l.bf16 %v10327_v38 }
 0xfaa   : > { %8758 = vmatprep.mubr.f32.mxu0 %v5000_v32  ;;  %v10314_v47 = vunpack.i.h.bf16 %v14112_v13  ;;  %v10313_v24 = vunpack.i.l.bf16 %v14112_v13 }
 0xfab   : > { %8759 = vmatmul.mubr.f32.vlgmr.msra.gmra.mrb[112].mxu0 %v5001_v0  ;;  %v9642_v31 = vpack.c.bf16 %v10329_v43, %v10328_v54 }
 0xfac   : > { %9611 = vmatpush3.bf16.xpose.msk.msra.mxu0 %vm11406_vm1, %v14109_v28  ;;  %v9624_v19 = vpack.c.bf16 %v10314_v47, %v10313_v24 }
 0xfad   : > { %9614 = vmatprep.subr.msk.bf16.mxu0 %vm11406_vm1, %v9612_v48 }
 0xfb4   : > { %9617 = vmatpush3.bf16.xpose.msk.msra.mxu0 %vm11406_vm1, %v9612_v48 }
 0xfb5   : > { %9620 = vmatprep.subr.msk.bf16.mxu0 %vm11406_vm1, %v9618_v2 }
 0xfbc   : > { %9623 = vmatpush3.bf16.xpose.msk.msra.mxu0 %vm11406_vm1, %v9618_v2 }
 0xfbd   : > { %9626 = vmatprep.subr.msk.bf16.mxu0 %vm11406_vm1, %v9624_v19 }
 0xfc4   : > { %9629 = vmatpush3.bf16.xpose.msk.msra.mxu0 %vm11406_vm1, %v9624_v19 }
 0xfc5   : > { %9632 = vmatprep.subr.msk.bf16.mxu0 %vm11406_vm1, %v9630_v30 }
 0xfcc   : > { %9635 = vmatpush3.bf16.xpose.msk.msra.mxu0 %vm11406_vm1, %v9630_v30 }
 0xfcd   : > { %9638 = vmatprep.subr.msk.bf16.mxu0 %vm11406_vm1, %v9636_v14 }
 0xfd0   : > { %v4957_v22 = vpop.xlane.xlu0 %4956 }
 0xfd1   : > { %10811 = vrcp.f32 %v4957_v22  ;;  %v4959_v32 = vpop.xlane.xlu1 %4958 }
 0xfd2   : > { %10813 = vrcp.f32 %v4959_v32 }
 0xfd4   : > { %9641 = vmatpush3.bf16.xpose.msk.msra.mxu0 %vm11406_vm1, %v9636_v14  ;;  %v4963_v0 = vpop.xlane.xlu0 %4962 }
 0xfd5   : > { %9644 = vmatprep.subr.msk.bf16.mxu0 %vm11406_vm1, %v9642_v31  ;;  %v4967_v48 = vpop.xlane.xlu1 %4966  ;;  %10815 = vrcp.f32 %v4963_v0 }
 0xfd8   : > { %v4961_v28 = vpop.xlane.xlu0 %4960 }
 0xfd9   : > { %10817 = vrcp.f32 %v4961_v28  ;;  %v4965_v59 = vpop.xlane.xlu1 %4964 }
 0xfda   : > { %10819 = vrcp.f32 %v4965_v59 }
 0xfdb   : > { %v10812_v17 = vpop.eup %10811  ;;  %10821 = vrcp.f32 %v4967_v48 }
 0xfdc   : > { %v10814_v12 = vpop.eup %10813  ;;  %9647 = vmatpush3.bf16.xpose.msk.msra.mxu0 %vm11406_vm1, %v9642_v31  ;;  %v4973_v2 = vpop.xlane.xlu0 %4972  ;;  %v5002_v13 = vmul.f32 %v10812_v17, %v12985_v23 }
 0xfdd   : > { %v4971_v47 = vpop.xlane.xlu1 %4970  ;;  %v5003_v24 = vmul.f32 %v10814_v12, %v12987_v1  ;;  %10823 = vrcp.f32 %v4973_v2 }
 0xfde   : > { %8761 = vmatprep.mubr.f32.mxu0 %v5002_v13  ;;  %10825 = vrcp.f32 %v4971_v47 }
 0xfdf   : > { %8762 = vmatmul.mubr.f32.gmra.mrb[114].mxu0 %v5003_v24  ;;  %v10816_v41 = vpop.eup %10815 }
 0xfe0   : > { %v4979_v19 = vpop.xlane.xlu0 %4978  ;;  %v5005_v23 = vmul.f32 %v10816_v41, %v12993_v5 }
 0xfe1   : > { %v4969_v16 = vpop.xlane.xlu1 %4968 }
 0xfe2   : > { %10827 = vrcp.f32 %v4969_v16 }
 0xfe3   : > { %v10818_v30 = vpop.eup %10817 }
 0xfe4   : > { %v10820_v6 = vpop.eup %10819  ;;  %v4977_v3 = vpop.xlane.xlu0 %4976  ;;  %v5004_v15 = vmul.f32 %v10818_v30, %v13001_v11 }
 0xfe5   : > { %10829 = vrcp.f32 %v4977_v3  ;;  %v4975_v14 = vpop.xlane.xlu1 %4974  ;;  %v5006_v38 = vmul.f32 %v10820_v6, %v13003_v26  ;;  %v10822_v1 = vpop.eup %10821 }
 0xfe6   : > { %10831 = vrcp.f32 %v4975_v14  ;;  %8764 = vmatprep.mubr.f32.mxu0 %v5004_v15  ;;  %v5007_v31 = vmul.f32 %v10822_v1, %v12996_v8 }
 0xfe7   : > { %8765 = vmatmul.mubr.f32.gmra.mrb[116].mxu0 %v5005_v23  ;;  %10833 = vrcp.f32 %v4979_v19  ;;  %v10824_v0 = vpop.eup %10823 }
 0xfe8   : > { %8767 = vmatprep.mubr.f32.mxu0 %v5006_v38  ;;  %v10332_v43 = vpop.permute.xlu0 %10331  ;;  %v10826_v11 = vpop.eup %10825  ;;  %v5010_v12 = vmul.f32 %v10824_v0, %v13008_v37 }
 0xfe9   : > { %v10334_v54 = vunpack.i.h.bf16 %v10332_v43  ;;  %v10333_v22 = vunpack.i.l.bf16 %v10332_v43  ;;  %v4983_v32 = vpop.xlane.xlu1 %4982  ;;  %v5009_v17 = vmul.f32 %v10826_v11, %v13010_v10 }
 0xfea   : > { %10835 = vrcp.f32 %v4983_v32 }
 0xfeb   : > { %v9648_v48 = vpack.c.bf16 %v10334_v54, %v10333_v22  ;;  %8768 = vmatmul.mubr.f32.gmra.mrb[118].mxu0 %v5007_v31 }
 0xfec   : > { %v10828_v28 = vpop.eup %10827  ;;  %v5387_v5 = vpop.permute.xlu0 %5386 }
 0xfed   : > { %v4981_v26 = vpop.xlane.xlu1 %4980  ;;  %9650 = vmatprep.subr.msk.bf16.mxu0 %vm11406_vm1, %v9648_v48  ;;  %v5008_v59 = vmul.f32 %v10828_v28, %v13016_v21 }
 0xfee   : > { %10837 = vrcp.f32 %v4981_v26  ;;  %9653 = vmatpush3.bf16.xpose.msk.msra.mxu0 %vm11406_vm1, %v9648_v48 }
 0xfef   : > { %v10830_v8 = vpop.eup %10829  ;;  %8770 = vmatprep.mubr.f32.mxu0 %v5008_v59 }
 0xff0   : > { %v10832_v2 = vpop.eup %10831  ;;  %8771 = vmatmul.mubr.f32.gmra.mrb[120].mxu0 %v5009_v17  ;;  %v5391_v13 = vpop.permute.xlu0 %5390  ;;  %v5012_v21 = vmul.f32 %v10830_v8, %v13020_v18 }
 0xff1   : > { %v5389_v47 = vpop.permute.xlu1 %5388  ;;  %8773 = vmatprep.mubr.f32.mxu0 %v5010_v12  ;;  %v5011_v24 = vmul.f32 %v10832_v2, %v13022_v4  ;;  %v10834_v19 = vpop.eup %10833 }
 0xff2   : > { %v5013_v10 = vmul.f32 %v10834_v19, %v13014_v25 }
 0xff4   : > { %8774 = vmatmul.mubr.f32.gmra.mrb[122].mxu0 %v5011_v24  ;;  %v5395_v16 = vpop.permute.xlu0 %5394  ;;  %v10836_v30 = vpop.eup %10835 }
 0xff5   : > { %v5393_v41 = vpop.permute.xlu1 %5392  ;;  %8776 = vmatprep.mubr.f32.mxu0 %v5012_v21  ;;  %v5015_v14 = vmul.f32 %v10836_v30, %v13026_v36 }
 0xff8   : > { %v10838_v6 = vpop.eup %10837  ;;  %8777 = vmatmul.mubr.f32.gmra.mrb[124].mxu0 %v5013_v10  ;;  %v5399_v37 = vpop.permute.xlu0 %5398 }
 0xff9   : > { %v5397_v3 = vpop.permute.xlu1 %5396  ;;  %v5014_v15 = vmul.f32 %v10838_v6, %v13029_v20 }
 0xffb   : > { %8779 = vmatprep.mubr.f32.mxu0 %v5014_v15 }
 0xffc   : > { %8780 = vmatmul.mubr.f32.gmra.mrb[126].mxu0 %v5015_v14  ;;  %v5403_v4 = vpop.permute.xlu0 %5402 }
 0xffd   : > { %v5401_v23 = vpop.permute.xlu1 %5400  ;;  %8814 = vmatprep.mubr.msk.f32.mxu0 %vm744_vm0, %v5387_v5 }
0x1000   : > { %v5407_v18 = vpop.permute.xlu0 %5406  ;;  %8815 = vmatmul.mubr.msk.f32.vlgmr.msra.gmra.mrb[128].mxu0 %vm744_vm0, %v5389_v47 }
0x1001   : > { %v5405_v38 = vpop.permute.xlu1 %5404  ;;  %8817 = vmatprep.mubr.msk.f32.mxu0 %vm744_vm0, %v5391_v13 }
0x1004   : > { %v5411_v25 = vpop.permute.xlu0 %5410  ;;  %8818 = vmatmul.mubr.msk.f32.gmra.mrb[130].mxu0 %vm744_vm0, %v5393_v41 }
0x1005   : > { %v5409_v1 = vpop.permute.xlu1 %5408  ;;  %8820 = vmatprep.mubr.msk.f32.mxu0 %vm744_vm0, %v5395_v16 }
0x1008   : > { %v5415_v20 = vpop.permute.xlu0 %5414  ;;  %8821 = vmatmul.mubr.msk.f32.gmra.mrb[132].mxu0 %vm744_vm0, %v5397_v3 }
0x1009   : > { %v5413_v36 = vpop.permute.xlu1 %5412  ;;  %8823 = vmatprep.mubr.msk.f32.mxu0 %vm744_vm0, %v5399_v37 }
0x100c   : > { %v10337_v43 = vpop.permute.xlu0 %10336  ;;  %8824 = vmatmul.mubr.msk.f32.gmra.mrb[134].mxu0 %vm744_vm0, %v5401_v23 }
0x100d   : > { %v10339_v54 = vunpack.i.h.bf16 %v10337_v43  ;;  %v10338_v22 = vunpack.i.l.bf16 %v10337_v43  ;;  %v5417_v32 = vpop.permute.xlu1 %5416  ;;  %8826 = vmatprep.mubr.msk.f32.mxu0 %vm744_vm0, %v5403_v4 }
0x100f   : > { %v9654_v31 = vpack.c.bf16 %v10339_v54, %v10338_v22 }
0x1010   : > { %8827 = vmatmul.mubr.msk.f32.gmra.mrb[136].mxu0 %vm744_vm0, %v5405_v38  ;;  %v10352_v0 = vpop.permute.xlu0 %10351 }
0x1011   : > { %v10342_v11 = vpop.permute.xlu1 %10341  ;;  %8829 = vmatprep.mubr.msk.f32.mxu0 %vm744_vm0, %v5407_v18  ;;  %9655 = vmatprep.subr.bf16.mxu1 %v9654_v31  ;;  %v10354_v59 = vunpack.i.h.bf16 %v10352_v0  ;;  %v10353_v17 = vunpack.i.l.bf16 %v10352_v0 }
0x1012   : > { %v10344_v48 = vunpack.i.h.bf16 %v10342_v11  ;;  %v10343_v28 = vunpack.i.l.bf16 %v10342_v11  ;;  %9657 = vmatpush3.bf16.msra.mxu1 %v9654_v31 }
0x1013   : > { %v9666_v21 = vpack.c.bf16 %v10354_v59, %v10353_v17 }
0x1014   : > { %8830 = vmatmul.mubr.msk.f32.gmra.mrb[138].mxu0 %vm744_vm0, %v5409_v1  ;;  %v9658_v5 = vpack.c.bf16 %v10344_v48, %v10343_v28  ;;  %v10357_v2 = vpop.permute.xlu0 %10356 }
0x1015   : > { %v10347_v26 = vpop.permute.xlu1 %10346  ;;  %8832 = vmatprep.mubr.msk.f32.mxu0 %vm744_vm0, %v5411_v25  ;;  %v10359_v24 = vunpack.i.h.bf16 %v10357_v2  ;;  %v10358_v19 = vunpack.i.l.bf16 %v10357_v2 }
0x1016   : > { %v10349_v8 = vunpack.i.h.bf16 %v10347_v26  ;;  %v10348_v12 = vunpack.i.l.bf16 %v10347_v26  ;;  %9659 = vmatprep.subr.bf16.mxu1 %v9658_v5 }
0x1017   : > { %9661 = vmatpush3.bf16.msra.mxu1 %v9658_v5  ;;  %v9670_v30 = vpack.c.bf16 %v10359_v24, %v10358_v19 }
0x1018   : > { %8833 = vmatmul.mubr.msk.f32.gmra.mrb[140].mxu0 %vm744_vm0, %v5413_v36  ;;  %v9662_v13 = vpack.c.bf16 %v10349_v8, %v10348_v12  ;;  %v10377_v18 = vpop.permute.xlu0 %10376 }
0x1019   : > { %v10362_v47 = vpop.permute.xlu1 %10361  ;;  %8835 = vmatprep.mubr.msk.f32.mxu0 %vm744_vm0, %v5415_v20  ;;  %v10379_v38 = vunpack.i.h.bf16 %v10377_v18  ;;  %v10378_v25 = vunpack.i.l.bf16 %v10377_v18  ;;  %v14129_v18 = vld [vmem:[#allocation17_spill] sm:$0xff] }
0x101a   : > { %9663 = vmatprep.subr.bf16.mxu1 %v9662_v13  ;;  %v10364_v41 = vunpack.i.h.bf16 %v10362_v47  ;;  %v10363_v10 = vunpack.i.l.bf16 %v10362_v47 }
0x101b   : > { %9665 = vmatpush3.bf16.msra.mxu1 %v9662_v13  ;;  %v13159_v20 = vpack.c.bf16 %v10379_v38, %v10378_v25 }
0x101c   : > { %8836 = vmatmul.mubr.msk.f32.gmra.mrb[142].mxu0 %vm744_vm0, %v5417_v32  ;;  %9667 = vmatprep.subr.bf16.mxu1 %v9666_v21  ;;  %v9674_v3 = vpack.c.bf16 %v10364_v41, %v10363_v10 }
0x101d   : > { %v10367_v16 = vpop.permute.xlu1 %10366 }
0x101e   : > { %v10369_v6 = vunpack.i.h.bf16 %v10367_v16  ;;  %v10368_v37 = vunpack.i.l.bf16 %v10367_v16 }
0x101f   : > { %9669 = vmatpush3.bf16.msra.mxu1 %v9666_v21 }
0x1020   : > { %9671 = vmatprep.subr.bf16.mxu1 %v9670_v30  ;;  %v9678_v23 = vpack.c.bf16 %v10369_v6, %v10368_v37 }
0x1021   : > { %v10372_v15 = vpop.permute.xlu1 %10371 }
0x1022   : > { %v10374_v14 = vunpack.i.h.bf16 %v10372_v15  ;;  %v10373_v4 = vunpack.i.l.bf16 %v10372_v15 }
0x1023   : > { %9673 = vmatpush3.bf16.msra.mxu1 %v9670_v30 }
0x1024   : > { %9675 = vmatprep.subr.bf16.mxu1 %v9674_v3  ;;  %v9682_v1 = vpack.c.bf16 %v10374_v14, %v10373_v4 }
0x1025   : > { %v13224_v38 = vpop.permute.xlu1 %10381 }
0x1027   : > { %9677 = vmatpush3.bf16.msra.mxu1 %v9674_v3 }
0x1028   : > { %9679 = vmatprep.subr.bf16.mxu1 %v9678_v23 }
0x1029   : > { %v13226_v25 = vpop.permute.xlu1 %10391 }
0x102b   : > { %9681 = vmatpush3.bf16.msra.mxu1 %v9678_v23  ;;  %v14128_v23 = vld [vmem:[#allocation18_spill] sm:$0xff] }
0x102c   : > { %9683 = vmatprep.subr.bf16.mxu1 %v9682_v1 }
0x102f   : > { %9685 = vmatpush3.bf16.msra.mxu1 %v9682_v1  ;;  %v13228_v1 = vpop.permute.xlu0 %10386 }
0x1030   : > { %9688 = vmatprep.subr.msk.bf16.mxu1 %vm11406_vm1, %v13159_v20 }
0x107e   : > { %v13164_v36 = vpop.f32.mrb[112].mxu0 }
0x107f   : > { %14113 = vst [vmem:[#allocation84_spill] sm:$0xff] %v13164_v36  ;;  %v13166_v43 = vpop.f32.mrb[113].mxu0 }
0x10b2   : > { %v13168_v54 = vpop.f32.mrb[114].mxu0 }
0x10b3   : > { %14114 = vst [vmem:[#allocation15_spill] sm:$0xff] %v13168_v54  ;;  %v13170_v22 = vpop.f32.mrb[115].mxu0 }
0x10b4   : > { %14115 = vst [vmem:[#allocation14_spill] sm:$0xff] %v13170_v22 }
0x10ba   : > { %v13172_v32 = vpop.f32.mrb[116].mxu0 }
0x10bb   : > { %14116 = vst [vmem:[#allocation16_spill] sm:$0xff] %v13172_v32  ;;  %v13174_v31 = vpop.f32.mrb[117].mxu0 }
0x10bc   : > { %14117 = vst [vmem:[#allocation85_spill] sm:$0xff] %v13174_v31 }
0x10be   : > { %v13176_v0 = vpop.f32.mrb[118].mxu0 }
0x10bf   : > { %14118 = vst [vmem:[#allocation86_spill] sm:$0xff] %v13176_v0  ;;  %v13178_v11 = vpop.f32.mrb[119].mxu0 }
0x10c0   : > { %14119 = vst [vmem:[#allocation87_spill] sm:$0xff] %v13178_v11 }
0x10c3   : > { %v13180_v48 = vpop.f32.mrb[120].mxu0 }
0x10c4   : > { %14120 = vst [vmem:[#allocation88_spill] sm:$0xff] %v13180_v48  ;;  %v13182_v28 = vpop.f32.mrb[121].mxu0 }
0x10c5   : > { %14121 = vst [vmem:[#allocation89_spill] sm:$0xff] %v13182_v28 }
0x10c7   : > { %v13184_v5 = vpop.f32.mrb[122].mxu0 }
0x10c8   : > { %14122 = vst [vmem:[#allocation90_spill] sm:$0xff] %v13184_v5  ;;  %v13186_v26 = vpop.f32.mrb[123].mxu0 }
0x10c9   : > { %14123 = vst [vmem:[#allocation91_spill] sm:$0xff] %v13186_v26 }
0x10cb   : > { %v13188_v59 = vpop.f32.mrb[124].mxu0 }
0x10cc   : > { %14124 = vst [vmem:[#allocation92_spill] sm:$0xff] %v13188_v59  ;;  %v13190_v17 = vpop.f32.mrb[125].mxu0 }
0x10cd   : > { %14125 = vst [vmem:[#allocation93_spill] sm:$0xff] %v13190_v17 }
0x10cf   : > { %v13192_v8 = vpop.f32.mrb[126].mxu0 }
0x10d0   : > { %14126 = vst [vmem:[#allocation94_spill] sm:$0xff] %v13192_v8  ;;  %v13194_v12 = vpop.f32.mrb[127].mxu0 }
0x10d1   : > { %14127 = vst [vmem:[#allocation95_spill] sm:$0xff] %v13194_v12 }
0x10d3   : > { %v8816_v2 = vpop.f32.mrb[128].mxu0 }
0x10d4   : > { %5677 = vmax.xlane.f32.xlu1 %v8816_v2  ;;  %v5596_v13 = vpop.f32.mrb[129].mxu0 }
0x10d5   : > { %5675 = vmax.xlane.f32.xlu0 %v5596_v13 }
0x10d7   : > { %v8819_v47 = vpop.f32.mrb[130].mxu0 }
0x10d8   : > { %v13196_v24 = vpop.f32.mrb[131].mxu0 }
0x10d9   : > { %5681 = vmax.xlane.f32.xlu0 %v8819_v47 }
0x10db   : > { %v13198_v19 = vpop.f32.mrb[132].mxu0 }
0x10dc   : > { %5685 = vmax.xlane.f32.xlu1 %v13198_v19  ;;  %v13201_v21 = vpop.f32.mrb[133].mxu0 }
0x10dd   : > { %5679 = vmax.xlane.f32.xlu0 %v13196_v24 }
0x10df   : > { %v8825_v16 = vpop.f32.mrb[134].mxu0 }
0x10e0   : > { %5689 = vmax.xlane.f32.xlu1 %v8825_v16  ;;  %v5626_v41 = vpop.f32.mrb[135].mxu0 }
0x10e1   : > { %5683 = vmax.xlane.f32.xlu0 %v13201_v21 }
0x10e3   : > { %v8828_v10 = vpop.f32.mrb[136].mxu0 }
0x10e4   : > { %5693 = vmax.xlane.f32.xlu1 %v8828_v10  ;;  %v5636_v30 = vpop.f32.mrb[137].mxu0 }
0x10e5   : > { %5687 = vmax.xlane.f32.xlu0 %v5626_v41 }
0x10e7   : > { %v8831_v6 = vpop.f32.mrb[138].mxu0 }
0x10e8   : > { %5697 = vmax.xlane.f32.xlu1 %v8831_v6  ;;  %v13205_v37 = vpop.f32.mrb[139].mxu0 }
0x10e9   : > { %5691 = vmax.xlane.f32.xlu0 %v5636_v30 }
0x10eb   : > { %v13207_v3 = vpop.f32.mrb[140].mxu0 }
0x10ec   : > { %5701 = vmax.xlane.f32.xlu1 %v13207_v3  ;;  %v13210_v15 = vpop.f32.mrb[141].mxu0 }
0x10ed   : > { %5695 = vmax.xlane.f32.xlu0 %v13205_v37 }
0x10ef   : > { %v13213_v14 = vpop.f32.mrb[142].mxu0 }
0x10f0   : > { %5705 = vmax.xlane.f32.xlu1 %v13213_v14  ;;  %v13216_v4 = vpop.f32.mrb[143].mxu0 }
0x10f1   : > { %5699 = vmax.xlane.f32.xlu0 %v13210_v15 }
0x10f5   : > { %5703 = vmax.xlane.f32.xlu0 %v13216_v4 }
0x1101   : > { %10401 = vrot.lane.b32.xlu1 %v14128_v23, %s11139_s9 }
0x110b   : > { %10396 = vrot.lane.b32.xlu0 %v14129_v18, %s11139_s9 }
0x1161   : > { %v5678_v8 = vpop.xlane.xlu1 %5677 }
0x1162   : > { %v5708_v12 = vsub.f32 %v8816_v2, %v5678_v8  ;;  %v5676_v0 = vpop.xlane.xlu0 %5675 }
0x1163   : > { %v5707_v11 = vsub.f32 %v5596_v13, %v5676_v0 }
0x1164   : > { %v5725_v59 = vmul.f32 1.442695, %v5708_v12 }
0x1165   : > { %v5723_v32 = vmul.f32 1.442695, %v5707_v11 }
0x1166   : > { %10839 = vpow2.f32 %v5725_v59  ;;  %v5682_v17 = vpop.xlane.xlu0 %5681 }
0x1167   : > { %10841 = vpow2.f32 %v5723_v32  ;;  %v5710_v31 = vsub.f32 %v8819_v47, %v5682_v17 }
0x1169   : > { %v5729_v23 = vmul.f32 1.442695, %v5710_v31  ;;  %v5686_v5 = vpop.xlane.xlu1 %5685 }
0x116a   : > { %v5680_v54 = vpop.xlane.xlu0 %5679 }
0x116b   : > { %10843 = vpow2.f32 %v5729_v23 }
0x116d   : > { %v5690_v18 = vpop.xlane.xlu1 %5689 }
0x116e   : > { %v5714_v26 = vsub.f32 %v8825_v16, %v5690_v18  ;;  %v5684_v22 = vpop.xlane.xlu0 %5683  ;;  %v5709_v18 = vsub.f32 %v13196_v24, %v5680_v54 }
0x1170   : > { %v13230_v48 = vpop.eup %10839  ;;  %v5737_v36 = vmul.f32 1.442695, %v5714_v26 }
0x1171   : > { %v13232_v28 = vpop.eup %10841  ;;  %v5694_v8 = vpop.xlane.xlu1 %5693  ;;  %5757 = vadd.xlane.f32.xlu0 %v13230_v48 }
0x1172   : > { %10845 = vpow2.f32 %v5737_v36  ;;  %v5688_v0 = vpop.xlane.xlu0 %5687  ;;  %5755 = vadd.xlane.f32.xlu1 %v13232_v28  ;;  %v5716_v32 = vsub.f32 %v8828_v10, %v5694_v8  ;;  %v5712_v8 = vsub.f32 %v13198_v19, %v5686_v5 }
0x1173   : > { %v5713_v31 = vsub.f32 %v5626_v41, %v5688_v0  ;;  %v5727_v0 = vmul.f32 1.442695, %v5709_v18 }
0x1174   : > { %v5741_v12 = vmul.f32 1.442695, %v5716_v32  ;;  %v5733_v32 = vmul.f32 1.442695, %v5712_v8 }
0x1175   : > { %v13236_v11 = vpop.eup %10843  ;;  %v5735_v59 = vmul.f32 1.442695, %v5713_v31  ;;  %v5698_v2 = vpop.xlane.xlu1 %5697  ;;  %v5711_v31 = vsub.f32 %v13201_v21, %v5684_v22 }
0x1176   : > { %v5692_v17 = vpop.xlane.xlu0 %5691  ;;  %5761 = vadd.xlane.f32.xlu1 %v13236_v11  ;;  %v5718_v13 = vsub.f32 %v8831_v6, %v5698_v2 }
0x1177   : > { %10847 = vpow2.f32 %v5735_v59  ;;  %v5715_v26 = vsub.f32 %v5636_v30, %v5692_v17  ;;  %v14130_v30 = vld [vmem:[#allocation19_spill] sm:$0xff]  ;;  %v5731_v17 = vmul.f32 1.442695, %v5711_v31 }
0x1178   : > { %10849 = vpow2.f32 %v5741_v12  ;;  %v5745_v36 = vmul.f32 1.442695, %v5718_v13 }
0x1179   : > { %v5739_v47 = vmul.f32 1.442695, %v5715_v26  ;;  %v5702_v26 = vpop.xlane.xlu1 %5701 }
0x117a   : > { %v5696_v59 = vpop.xlane.xlu0 %5695  ;;  %v5720_v2 = vsub.f32 %v13207_v3, %v5702_v26 }
0x117b   : > { %10851 = vpow2.f32 %v5739_v47  ;;  %v5717_v12 = vsub.f32 %v13205_v37, %v5696_v59 }
0x117c   : > { %v13239_v16 = vpop.eup %10845  ;;  %10853 = vpow2.f32 %v5745_v36  ;;  %v5749_v19 = vmul.f32 1.442695, %v5720_v2 }
0x117d   : > { %5769 = vadd.xlane.f32.xlu1 %v13239_v16  ;;  %10855 = vpow2.f32 %v5727_v0  ;;  %v5743_v54 = vmul.f32 1.442695, %v5717_v12  ;;  %v5706_v13 = vpop.xlane.xlu1 %5705 }
0x117e   : > { %10857 = vpow2.f32 %v5733_v32  ;;  %v5700_v24 = vpop.xlane.xlu0 %5699  ;;  %v5722_v3 = vsub.f32 %v13213_v14, %v5706_v13 }
0x117f   : > { %10859 = vpow2.f32 %v5731_v17  ;;  %v5719_v22 = vsub.f32 %v13210_v15, %v5700_v24 }
0x1180   : > { %10861 = vpow2.f32 %v5743_v54  ;;  %v5753_v15 = vmul.f32 1.442695, %v5722_v3 }
0x1181   : > { %v13242_v41 = vpop.eup %10847  ;;  %10863 = vpow2.f32 %v5749_v19 }
0x1182   : > { %5767 = vadd.xlane.f32.xlu1 %v13242_v41  ;;  %v13245_v10 = vpop.eup %10849  ;;  %v5704_v36 = vpop.xlane.xlu0 %5703 }
0x1185   : > { %v13250_v6 = vpop.eup %10851 }
0x1186   : > { %5773 = vadd.xlane.f32.xlu1 %v13245_v10  ;;  %v13253_v23 = vpop.eup %10853 }
0x1187   : > { %10406 = vrot.lane.b32.xlu0 %v14130_v30, %s11139_s9  ;;  %v13263_v5 = vpop.eup %10855  ;;  %v5721_v30 = vsub.f32 %v13216_v4, %v5704_v36 }
0x1188   : > { %v13267_v21 = vpop.eup %10857 }
0x1189   : > { %v13270_v37 = vpop.eup %10859  ;;  %v5751_v8 = vmul.f32 1.442695, %v5721_v30 }
0x118a   : > { %5771 = vadd.xlane.f32.xlu1 %v13250_v6  ;;  %v13274_v47 = vpop.eup %10861 }
0x118b   : > { %v13278_v18 = vpop.eup %10863 }
0x118e   : > { %5777 = vadd.xlane.f32.xlu1 %v13253_v23 }
0x119f   : > { %6191 = vrot.lane.b32.xlu1 %v11531_v49, %s11139_s9  ;;  %v5747_v49 = vmul.f32 1.442695, %v5719_v22 }
0x11a1   : > { %10865 = vpow2.f32 %v5747_v49 }
0x11a2   : > { %10867 = vpow2.f32 %v5753_v15 }
0x11a3   : > { %10869 = vpow2.f32 %v5751_v8 }
0x11a6   : > { %5759 = vadd.xlane.f32.xlu0 %v13263_v5 }
0x11aa   : > { %5765 = vadd.xlane.f32.xlu0 %v13267_v21 }
0x11ab   : > { %v13281_v0 = vpop.eup %10865 }
0x11ac   : > { %v13284_v14 = vpop.eup %10867 }
0x11ad   : > { %v13287_v32 = vpop.eup %10869 }
0x11ae   : > { %5763 = vadd.xlane.f32.xlu0 %v13270_v37 }
0x11b2   : > { %5775 = vadd.xlane.f32.xlu0 %v13274_v47 }
0x11b6   : > { %5781 = vadd.xlane.f32.xlu0 %v13278_v18 }
0x11ba   : > { %5779 = vadd.xlane.f32.xlu0 %v13281_v0 }
0x11c3   : > { %5785 = vadd.xlane.f32.xlu1 %v13284_v14 }
0x11c7   : > { %5783 = vadd.xlane.f32.xlu1 %v13287_v32 }
0x11d0   : > { %10411 = vrot.lane.b32.xlu0 %v11524_v46, %s11139_s9  ;;  %v10402_v46 = vpop.permute.xlu1 %10401 }
0x11d4   : > { %6189 = vrot.lane.b32.xlu0 %v11398_v27, %s11139_s9  ;;  %v10397_v27 = vpop.permute.xlu0 %10396 }
0x11d8   : > { %6193 = vrot.lane.b32.xlu0 %v11534_v50, %s11139_s9  ;;  %6195 = vrot.lane.b32.xlu1 %v11541_v53, %s11139_s9 }
0x11dc   : > { %6197 = vrot.lane.b32.xlu0 %v11544_v55, %s11139_s9  ;;  %6199 = vrot.lane.b32.xlu1 %v11551_v29, %s11139_s9 }
0x11e0   : > { %6201 = vrot.lane.b32.xlu0 %v11554_v33, %s11139_s9  ;;  %6203 = vrot.lane.b32.xlu1 %v11561_v35, %s11139_s9  ;;  %v10384_v33 = vunpack.i.h.bf16 %v13224_v38  ;;  %v10383_v35 = vunpack.i.l.bf16 %v13224_v38 }
0x11e4   : > { %6205 = vrot.lane.b32.xlu0 %v11564_v39, %s11139_s9  ;;  %6207 = vrot.lane.b32.xlu1 %v11571_v44, %s11139_s9 }
0x11e8   : > { %6209 = vrot.lane.b32.xlu0 %v11573_v51, %s11139_s9  ;;  %6211 = vrot.lane.b32.xlu1 %v11579_v56, %s11139_s9  ;;  %v9692_v51 = vpack.c.bf16 %v10384_v33, %v10383_v35  ;;  %v10389_v56 = vunpack.i.h.bf16 %v13228_v1 }
0x11ec   : > { %6213 = vrot.lane.b32.xlu0 %v11581_v58, %s11139_s9  ;;  %6215 = vrot.lane.b32.xlu1 %v11587_v61, %s11139_s9  ;;  %v10388_v58 = vunpack.i.l.bf16 %v13228_v1 }
0x11ee   : > { %v9698_v61 = vpack.c.bf16 %v10389_v56, %v10388_v58 }
0x11f0   : > { %6217 = vrot.lane.b32.xlu0 %v11589_v62, %s11139_s9  ;;  %6219 = vrot.lane.b32.xlu1 %v11595_v63, %s11139_s9  ;;  %v10394_v62 = vunpack.i.h.bf16 %v13226_v25  ;;  %v10393_v63 = vunpack.i.l.bf16 %v13226_v25 }
0x11f4   : > { %10416 = vrot.lane.b32.xlu0 %v11652_v7, %s11139_s9  ;;  %10421 = vrot.lane.b32.xlu1 %v11660_v9, %s11139_s9  ;;  %v9704_v7 = vpack.c.bf16 %v10394_v62, %v10393_v63  ;;  %v10399_v9 = vunpack.i.h.bf16 %v10397_v27 }
0x11f8   : > { %10426 = vrot.lane.b32.xlu0 %v11671_v40, %s11139_s9  ;;  %10431 = vrot.lane.b32.xlu1 %v11665_v60, %s11139_s9  ;;  %v10398_v60 = vunpack.i.l.bf16 %v10397_v27 }
0x11fa   : > { %v9710_v40 = vpack.c.bf16 %v10399_v9, %v10398_v60 }
0x11fc   : > { %10436 = vrot.lane.b32.xlu0 %v11675_v42, %s11139_s9 }
0x11fe   : > { %v5758_v50 = vpop.xlane.xlu0 %5757 }
0x11ff   : > { %10871 = vrcp.f32 %v5758_v50  ;;  %v5756_v53 = vpop.xlane.xlu1 %5755 }
0x1200   : > { %10873 = vrcp.f32 %v5756_v53 }
0x1202   : > { %v10407_v38 = vpop.permute.xlu0 %10406 }
0x1203   : > { %v5762_v42 = vpop.xlane.xlu1 %5761  ;;  %v10409_v1 = vunpack.i.h.bf16 %v10407_v38  ;;  %v10408_v31 = vunpack.i.l.bf16 %v10407_v38 }
0x1204   : > { %10875 = vrcp.f32 %v5762_v42 }
0x1205   : > { %v9722_v17 = vpack.c.bf16 %v10409_v1, %v10408_v31 }
0x1209   : > { %v10872_v55 = vpop.eup %10871 }
0x120a   : > { %v10874_v29 = vpop.eup %10873  ;;  %v5804_v44 = vmul.f32 %v10872_v55, %v13230_v48  ;;  %v10403_v48 = vunpack.i.l.bf16 %v10402_v46 }
0x120b   : > { %v5803_v39 = vmul.f32 %v10874_v29, %v13232_v28  ;;  %v5770_v28 = vpop.xlane.xlu1 %5769 }
0x120d   : > { %8870 = vmatprep.mubr.f32.mxu1 %v5803_v39 }
0x120e   : > { %8871 = vmatmul.mubr.f32.vlgmr.msra.gmra.mrb[112].mxu1 %v5804_v44  ;;  %v10876_v54 = vpop.eup %10875 }
0x120f   : > { %9691 = vmatpush3.bf16.xpose.msk.msra.mxu1 %vm11406_vm1, %v13159_v20  ;;  %v10404_v20 = vunpack.i.h.bf16 %v10402_v46  ;;  %v5768_v25 = vpop.xlane.xlu1 %5767  ;;  %v5806_v13 = vmul.f32 %v10876_v54, %v13236_v11 }
0x1210   : > { %9694 = vmatprep.subr.msk.bf16.mxu1 %vm11406_vm1, %v9692_v51 }
0x1211   : > { %v9716_v4 = vpack.c.bf16 %v10404_v20, %v10403_v48 }
0x1213   : > { %v5774_v12 = vpop.xlane.xlu1 %5773 }
0x1217   : > { %9697 = vmatpush3.bf16.xpose.msk.msra.mxu1 %vm11406_vm1, %v9692_v51  ;;  %v5772_v24 = vpop.xlane.xlu1 %5771 }
0x1218   : > { %9700 = vmatprep.subr.msk.bf16.mxu1 %vm11406_vm1, %v9698_v61 }
0x121b   : > { %v5778_v15 = vpop.xlane.xlu1 %5777 }
0x121f   : > { %9703 = vmatpush3.bf16.xpose.msk.msra.mxu1 %vm11406_vm1, %v9698_v61  ;;  %v6192_v29 = vpop.permute.xlu1 %6191 }
0x1220   : > { %9706 = vmatprep.subr.msk.bf16.mxu1 %vm11406_vm1, %v9704_v7 }
0x1227   : > { %9709 = vmatpush3.bf16.xpose.msk.msra.mxu1 %vm11406_vm1, %v9704_v7 }
0x1228   : > { %9712 = vmatprep.subr.msk.bf16.mxu1 %vm11406_vm1, %v9710_v40 }
0x122f   : > { %9715 = vmatpush3.bf16.xpose.msk.msra.mxu1 %vm11406_vm1, %v9710_v40 }
0x1230   : > { %9718 = vmatprep.subr.msk.bf16.mxu1 %vm11406_vm1, %v9716_v4 }
0x1233   : > { %v5760_v59 = vpop.xlane.xlu0 %5759 }
0x1234   : > { %10877 = vrcp.f32 %v5760_v59 }
0x1235   : > { %10879 = vrcp.f32 %v5768_v25 }
0x1237   : > { %9721 = vmatpush3.bf16.xpose.msk.msra.mxu1 %vm11406_vm1, %v9716_v4  ;;  %v5766_v26 = vpop.xlane.xlu0 %5765 }
0x1238   : > { %9724 = vmatprep.subr.msk.bf16.mxu1 %vm11406_vm1, %v9722_v17  ;;  %10881 = vrcp.f32 %v5766_v26 }
0x123b   : > { %v5764_v2 = vpop.xlane.xlu0 %5763 }
0x123c   : > { %10883 = vrcp.f32 %v5764_v2 }
0x123d   : > { %10885 = vrcp.f32 %v5770_v28 }
0x123e   : > { %v10878_v19 = vpop.eup %10877  ;;  %10887 = vrcp.f32 %v5772_v24 }
0x123f   : > { %9727 = vmatpush3.bf16.xpose.msk.msra.mxu1 %vm11406_vm1, %v9722_v17  ;;  %v5776_v22 = vpop.xlane.xlu0 %5775  ;;  %v5805_v49 = vmul.f32 %v10878_v19, %v13263_v5  ;;  %10889 = vrcp.f32 %v5774_v12  ;;  %v10880_v36 = vpop.eup %10879 }
0x1240   : > { %10891 = vrcp.f32 %v5776_v22  ;;  %v5809_v11 = vmul.f32 %v10880_v36, %v13242_v41 }
0x1241   : > { %8873 = vmatprep.mubr.f32.mxu1 %v5805_v49  ;;  %10893 = vrcp.f32 %v5778_v15 }
0x1242   : > { %8874 = vmatmul.mubr.f32.gmra.mrb[114].mxu1 %v5806_v13  ;;  %v10882_v30 = vpop.eup %10881 }
0x1243   : > { %v5782_v3 = vpop.xlane.xlu0 %5781  ;;  %v5808_v50 = vmul.f32 %v10882_v30, %v13267_v21 }
0x1246   : > { %v10884_v8 = vpop.eup %10883 }
0x1247   : > { %v5780_v27 = vpop.xlane.xlu0 %5779  ;;  %v5807_v46 = vmul.f32 %v10884_v8, %v13270_v37  ;;  %v10886_v5 = vpop.eup %10885 }
0x1248   : > { %10895 = vrcp.f32 %v5780_v27  ;;  %v10888_v53 = vpop.eup %10887  ;;  %v5810_v39 = vmul.f32 %v10886_v5, %v13239_v16 }
0x1249   : > { %8876 = vmatprep.mubr.f32.mxu1 %v5807_v46  ;;  %10897 = vrcp.f32 %v5782_v3  ;;  %v10890_v44 = vpop.eup %10889  ;;  %v5811_v37 = vmul.f32 %v10888_v53, %v13250_v6 }
0x124a   : > { %8877 = vmatmul.mubr.f32.gmra.mrb[116].mxu1 %v5808_v50  ;;  %v10892_v51 = vpop.eup %10891  ;;  %v5812_v41 = vmul.f32 %v10890_v44, %v13245_v10 }
0x124b   : > { %8879 = vmatprep.mubr.f32.mxu1 %v5809_v11  ;;  %v10412_v55 = vpop.permute.xlu0 %10411  ;;  %v10894_v61 = vpop.eup %10893  ;;  %v5813_v16 = vmul.f32 %v10892_v51, %v13274_v47 }
0x124c   : > { %v10414_v33 = vunpack.i.h.bf16 %v10412_v55  ;;  %v10413_v35 = vunpack.i.l.bf16 %v10412_v55  ;;  %v5814_v7 = vmul.f32 %v10894_v61, %v13253_v23 }
0x124e   : > { %v9728_v56 = vpack.c.bf16 %v10414_v33, %v10413_v35  ;;  %8880 = vmatmul.mubr.f32.gmra.mrb[118].mxu1 %v5810_v39 }
0x124f   : > { %8882 = vmatprep.mubr.f32.mxu1 %v5811_v37  ;;  %v6190_v21 = vpop.permute.xlu0 %6189 }
0x1250   : > { %v5786_v58 = vpop.xlane.xlu1 %5785  ;;  %9730 = vmatprep.subr.msk.bf16.mxu1 %vm11406_vm1, %v9728_v56 }
0x1251   : > { %9733 = vmatpush3.bf16.xpose.msk.msra.mxu1 %vm11406_vm1, %v9728_v56  ;;  %10899 = vrcp.f32 %v5786_v58 }
0x1252   : > { %v10896_v62 = vpop.eup %10895  ;;  %8883 = vmatmul.mubr.f32.gmra.mrb[120].mxu1 %v5812_v41 }
0x1253   : > { %8885 = vmatprep.mubr.f32.mxu1 %v5813_v16  ;;  %v6194_v6 = vpop.permute.xlu0 %6193  ;;  %v10898_v9 = vpop.eup %10897  ;;  %v5815_v60 = vmul.f32 %v10896_v62, %v13281_v0 }
0x1254   : > { %v5784_v63 = vpop.xlane.xlu1 %5783  ;;  %v5816_v34 = vmul.f32 %v10898_v9, %v13278_v18 }
0x1255   : > { %10901 = vrcp.f32 %v5784_v63 }
0x1256   : > { %8886 = vmatmul.mubr.f32.gmra.mrb[122].mxu1 %v5814_v7 }
0x1257   : > { %8888 = vmatprep.mubr.f32.mxu1 %v5815_v60  ;;  %v6198_v10 = vpop.permute.xlu0 %6197 }
0x1258   : > { %v6196_v40 = vpop.permute.xlu1 %6195 }
0x125a   : > { %8889 = vmatmul.mubr.f32.gmra.mrb[124].mxu1 %v5816_v34 }
0x125b   : > { %v6202_v47 = vpop.permute.xlu0 %6201  ;;  %v10900_v20 = vpop.eup %10899 }
0x125c   : > { %v6200_v42 = vpop.permute.xlu1 %6199  ;;  %v5818_v23 = vmul.f32 %v10900_v20, %v13284_v14 }
0x125f   : > { %v10902_v48 = vpop.eup %10901  ;;  %v6206_v28 = vpop.permute.xlu0 %6205 }
0x1260   : > { %v6204_v4 = vpop.permute.xlu1 %6203  ;;  %v5817_v38 = vmul.f32 %v10902_v48, %v13287_v32 }
0x1262   : > { %8891 = vmatprep.mubr.f32.mxu1 %v5817_v38 }
0x1263   : > { %8892 = vmatmul.mubr.f32.gmra.mrb[126].mxu1 %v5818_v23  ;;  %v6210_v0 = vpop.permute.xlu0 %6209 }
0x1264   : > { %v6208_v25 = vpop.permute.xlu1 %6207  ;;  %8926 = vmatprep.mubr.msk.f32.mxu1 %vm744_vm0, %v6190_v21 }
0x1267   : > { %v6214_v1 = vpop.permute.xlu0 %6213  ;;  %8927 = vmatmul.mubr.msk.f32.vlgmr.msra.gmra.mrb[128].mxu1 %vm744_vm0, %v6192_v29 }
0x1268   : > { %v6212_v18 = vpop.permute.xlu1 %6211  ;;  %8929 = vmatprep.mubr.msk.f32.mxu1 %vm744_vm0, %v6194_v6 }
0x126b   : > { %v6218_v31 = vpop.permute.xlu0 %6217  ;;  %8930 = vmatmul.mubr.msk.f32.gmra.mrb[130].mxu1 %vm744_vm0, %v6196_v40 }
0x126c   : > { %v6216_v59 = vpop.permute.xlu1 %6215  ;;  %8932 = vmatprep.mubr.msk.f32.mxu1 %vm744_vm0, %v6198_v10 }
0x126f   : > { %v10417_v32 = vpop.permute.xlu0 %10416  ;;  %8933 = vmatmul.mubr.msk.f32.gmra.mrb[132].mxu1 %vm744_vm0, %v6200_v42 }
0x1270   : > { %v10419_v14 = vunpack.i.h.bf16 %v10417_v32  ;;  %v10418_v17 = vunpack.i.l.bf16 %v10417_v32  ;;  %v6220_v12 = vpop.permute.xlu1 %6219  ;;  %8935 = vmatprep.mubr.msk.f32.mxu1 %vm744_vm0, %v6202_v47 }
0x1272   : > { %v9734_v26 = vpack.c.bf16 %v10419_v14, %v10418_v17 }
0x1273   : > { %v10427_v2 = vpop.permute.xlu0 %10426  ;;  %8936 = vmatmul.mubr.msk.f32.gmra.mrb[134].mxu1 %vm744_vm0, %v6204_v4 }
0x1274   : > { %v10422_v54 = vpop.permute.xlu1 %10421  ;;  %8938 = vmatprep.mubr.msk.f32.mxu1 %vm744_vm0, %v6206_v28  ;;  %9735 = vmatprep.subr.bf16.mxu0 %v9734_v26  ;;  %v10429_v24 = vunpack.i.h.bf16 %v10427_v2  ;;  %v10428_v19 = vunpack.i.l.bf16 %v10427_v2 }
0x1275   : > { %v10424_v22 = vunpack.i.h.bf16 %v10422_v54  ;;  %v10423_v49 = vunpack.i.l.bf16 %v10422_v54  ;;  %9737 = vmatpush3.bf16.msra.mxu0 %v9734_v26 }
0x1276   : > { %v9742_v30 = vpack.c.bf16 %v10429_v24, %v10428_v19 }
0x1277   : > { %8939 = vmatmul.mubr.msk.f32.gmra.mrb[136].mxu1 %vm744_vm0, %v6208_v25  ;;  %v9738_v13 = vpack.c.bf16 %v10424_v22, %v10423_v49  ;;  %v10437_v8 = vpop.permute.xlu0 %10436 }
0x1278   : > { %v10432_v3 = vpop.permute.xlu1 %10431  ;;  %8941 = vmatprep.mubr.msk.f32.mxu1 %vm744_vm0, %v6210_v0  ;;  %v10439_v27 = vunpack.i.h.bf16 %v10437_v8  ;;  %v10438_v46 = vunpack.i.l.bf16 %v10437_v8 }
0x1279   : > { %v10434_v36 = vunpack.i.h.bf16 %v10432_v3  ;;  %v10433_v15 = vunpack.i.l.bf16 %v10432_v3  ;;  %9739 = vmatprep.subr.bf16.mxu0 %v9738_v13 }
0x127a   : > { %9741 = vmatpush3.bf16.msra.mxu0 %v9738_v13  ;;  %v9750_v5 = vpack.c.bf16 %v10439_v27, %v10438_v46 }
0x127b   : > { %8942 = vmatmul.mubr.msk.f32.gmra.mrb[138].mxu1 %vm744_vm0, %v6212_v18  ;;  %9743 = vmatprep.subr.bf16.mxu0 %v9742_v30  ;;  %v9746_v50 = vpack.c.bf16 %v10434_v36, %v10433_v15 }
0x127c   : > { %8944 = vmatprep.mubr.msk.f32.mxu1 %vm744_vm0, %v6214_v1 }
0x127e   : > { %9745 = vmatpush3.bf16.msra.mxu0 %v9742_v30 }
0x127f   : > { %8945 = vmatmul.mubr.msk.f32.gmra.mrb[140].mxu1 %vm744_vm0, %v6216_v59  ;;  %9747 = vmatprep.subr.bf16.mxu0 %v9746_v50 }
0x1280   : > { %8947 = vmatprep.mubr.msk.f32.mxu1 %vm744_vm0, %v6218_v31 }
0x1282   : > { %9749 = vmatpush3.bf16.msra.mxu0 %v9746_v50 }
0x1283   : > { %8948 = vmatmul.mubr.msk.f32.gmra.mrb[142].mxu1 %vm744_vm0, %v6220_v12  ;;  %9751 = vmatprep.subr.bf16.mxu0 %v9750_v5 }
0x1286   : > { %9753 = vmatpush3.bf16.msra.mxu0 %v9750_v5 }
0x12e1   : > { %v13401_v11 = vpop.f32.mrb[112].mxu1 }
0x12e2   : > { %v13403_v53 = vpop.f32.mrb[113].mxu1 }
0x1315   : > { %v13405_v55 = vpop.f32.mrb[114].mxu1 }
0x1316   : > { %v13407_v29 = vpop.f32.mrb[115].mxu1 }
0x131d   : > { %v13409_v33 = vpop.f32.mrb[116].mxu1 }
0x131e   : > { %v13411_v35 = vpop.f32.mrb[117].mxu1 }
0x1321   : > { %v13413_v39 = vpop.f32.mrb[118].mxu1 }
0x1322   : > { %v13415_v44 = vpop.f32.mrb[119].mxu1 }
0x1325   : > { %v13417_v37 = vpop.f32.mrb[120].mxu1 }
0x1326   : > { %v13419_v51 = vpop.f32.mrb[121].mxu1 }
0x1329   : > { %v13421_v56 = vpop.f32.mrb[122].mxu1 }
0x132a   : > { %v13423_v21 = vpop.f32.mrb[123].mxu1 }
0x132d   : > { %v13425_v58 = vpop.f32.mrb[124].mxu1 }
0x132e   : > { %v13427_v41 = vpop.f32.mrb[125].mxu1 }
0x1336   : > { %v13429_v61 = vpop.f32.mrb[126].mxu1 }
0x1337   : > { %v13431_v16 = vpop.f32.mrb[127].mxu1 }
0x133a   : > { %v8928_v62 = vpop.f32.mrb[128].mxu1 }
0x133b   : > { %6480 = vmax.xlane.f32.xlu1 %v8928_v62  ;;  %v6399_v6 = vpop.f32.mrb[129].mxu1 }
0x133c   : > { %6478 = vmax.xlane.f32.xlu0 %v6399_v6 }
0x133e   : > { %v8931_v63 = vpop.f32.mrb[130].mxu1 }
0x133f   : > { %v6409_v7 = vpop.f32.mrb[131].mxu1 }
0x1340   : > { %6484 = vmax.xlane.f32.xlu0 %v8931_v63 }
0x1342   : > { %v8934_v9 = vpop.f32.mrb[132].mxu1 }
0x1343   : > { %6488 = vmax.xlane.f32.xlu1 %v8934_v9  ;;  %v6419_v60 = vpop.f32.mrb[133].mxu1 }
0x1344   : > { %6482 = vmax.xlane.f32.xlu0 %v6409_v7 }
0x1346   : > { %v8937_v10 = vpop.f32.mrb[134].mxu1 }
0x1347   : > { %6492 = vmax.xlane.f32.xlu1 %v8937_v10  ;;  %v6429_v40 = vpop.f32.mrb[135].mxu1 }
0x1348   : > { %6486 = vmax.xlane.f32.xlu0 %v6419_v60 }
0x134a   : > { %v13433_v34 = vpop.f32.mrb[136].mxu1 }
0x134b   : > { %6496 = vmax.xlane.f32.xlu1 %v13433_v34  ;;  %v6439_v47 = vpop.f32.mrb[137].mxu1 }
0x134c   : > { %6490 = vmax.xlane.f32.xlu0 %v6429_v40 }
0x134e   : > { %v13436_v42 = vpop.f32.mrb[138].mxu1 }
0x134f   : > { %6500 = vmax.xlane.f32.xlu1 %v13436_v42  ;;  %v13439_v20 = vpop.f32.mrb[139].mxu1 }
0x1350   : > { %6494 = vmax.xlane.f32.xlu0 %v6439_v47 }
0x1352   : > { %v13441_v48 = vpop.f32.mrb[140].mxu1 }
0x1353   : > { %6504 = vmax.xlane.f32.xlu1 %v13441_v48  ;;  %v13444_v28 = vpop.f32.mrb[141].mxu1 }
0x1354   : > { %6498 = vmax.xlane.f32.xlu0 %v13439_v20 }
0x1356   : > { %v13447_v4 = vpop.f32.mrb[142].mxu1 }
0x1357   : > { %6508 = vmax.xlane.f32.xlu1 %v13447_v4  ;;  %v13450_v38 = vpop.f32.mrb[143].mxu1 }
0x1358   : > { %6502 = vmax.xlane.f32.xlu0 %v13444_v28 }
0x135c   : > { %6506 = vmax.xlane.f32.xlu0 %v13450_v38 }
0x1368   : > { %10441 = vrot.lane.b32.xlu1 %v11679_v45, %s11139_s9 }
0x1372   : > { %10446 = vrot.lane.b32.xlu0 %v11685_v57, %s11139_s9 }
0x13c8   : > { %v6481_v23 = vpop.xlane.xlu1 %6480 }
0x13c9   : > { %v6511_v0 = vsub.f32 %v8928_v62, %v6481_v23  ;;  %v6479_v25 = vpop.xlane.xlu0 %6478 }
0x13ca   : > { %v6510_v1 = vsub.f32 %v6399_v6, %v6479_v25 }
0x13cb   : > { %v6528_v18 = vmul.f32 1.442695, %v6511_v0 }
0x13cc   : > { %v6526_v31 = vmul.f32 1.442695, %v6510_v1 }
0x13cd   : > { %10903 = vpow2.f32 %v6528_v18  ;;  %v6485_v59 = vpop.xlane.xlu0 %6484 }
0x13ce   : > { %10905 = vpow2.f32 %v6526_v31  ;;  %v6513_v32 = vsub.f32 %v8931_v63, %v6485_v59 }
0x13d0   : > { %v6532_v14 = vmul.f32 1.442695, %v6513_v32  ;;  %v6489_v17 = vpop.xlane.xlu1 %6488 }
0x13d1   : > { %v6515_v12 = vsub.f32 %v8934_v9, %v6489_v17  ;;  %v6483_v26 = vpop.xlane.xlu0 %6482 }
0x13d2   : > { %10907 = vpow2.f32 %v6532_v14  ;;  %v6512_v2 = vsub.f32 %v6409_v7, %v6483_v26 }
0x13d3   : > { %v6536_v24 = vmul.f32 1.442695, %v6515_v12 }
0x13d4   : > { %v6530_v45 = vmul.f32 1.442695, %v6512_v2  ;;  %v6493_v54 = vpop.xlane.xlu1 %6492 }
0x13d5   : > { %v6487_v57 = vpop.xlane.xlu0 %6486  ;;  %v6517_v19 = vsub.f32 %v8937_v10, %v6493_v54 }
0x13d6   : > { %10909 = vpow2.f32 %v6530_v45  ;;  %v6514_v22 = vsub.f32 %v6419_v60, %v6487_v57 }
0x13d7   : > { %v13458_v49 = vpop.eup %10903  ;;  %10911 = vpow2.f32 %v6536_v24  ;;  %v6540_v30 = vmul.f32 1.442695, %v6517_v19 }
0x13d8   : > { %v13460_v13 = vpop.eup %10905  ;;  %v6534_v3 = vmul.f32 1.442695, %v6514_v22  ;;  %v6497_v36 = vpop.xlane.xlu1 %6496  ;;  %6560 = vadd.xlane.f32.xlu0 %v13458_v49 }
0x13d9   : > { %v6491_v15 = vpop.xlane.xlu0 %6490  ;;  %6558 = vadd.xlane.f32.xlu1 %v13460_v13  ;;  %v6519_v62 = vsub.f32 %v13433_v34, %v6497_v36 }
0x13da   : > { %10913 = vpow2.f32 %v6534_v3  ;;  %v6516_v8 = vsub.f32 %v6429_v40, %v6491_v15 }
0x13db   : > { %10915 = vpow2.f32 %v6540_v30  ;;  %v6544_v10 = vmul.f32 1.442695, %v6519_v62  ;;  %v14132_v62 = vld [vmem:[#allocation29_spill] sm:$0xff] }
0x13dc   : > { %v13464_v27 = vpop.eup %10907  ;;  %v6501_v46 = vpop.xlane.xlu1 %6500  ;;  %v6538_v50 = vmul.f32 1.442695, %v6516_v8 }
0x13dd   : > { %v6495_v5 = vpop.xlane.xlu0 %6494  ;;  %6564 = vadd.xlane.f32.xlu1 %v13464_v27  ;;  %v6521_v40 = vsub.f32 %v13436_v42, %v6501_v46 }
0x13de   : > { %v6518_v6 = vsub.f32 %v6439_v47, %v6495_v5  ;;  %10917 = vpow2.f32 %v6538_v50  ;;  %v14131_v5 = vld [vmem:[#allocation21_spill] sm:$0xff] }
0x13df   : > { %v6548_v1 = vmul.f32 1.442695, %v6521_v40  ;;  %v14139_v40 = vld [vmem:[#allocation52_spill] sm:$0xff] }
0x13e0   : > { %v13468_v63 = vpop.eup %10909  ;;  %v6542_v7 = vmul.f32 1.442695, %v6518_v6  ;;  %v6505_v9 = vpop.xlane.xlu1 %6504  ;;  %v14133_v6 = vld [vmem:[#allocation28_spill] sm:$0xff] }
0x13e1   : > { %v6499_v60 = vpop.xlane.xlu0 %6498  ;;  %6562 = vadd.xlane.f32.xlu1 %v13468_v63  ;;  %v13472_v23 = vpop.eup %10911  ;;  %v6523_v46 = vsub.f32 %v13441_v48, %v6505_v9  ;;  %v14136_v48 = vld [vmem:[#allocation36_spill] sm:$0xff] }
0x13e2   : > { %10919 = vpow2.f32 %v6542_v7  ;;  %v6520_v34 = vsub.f32 %v13439_v20, %v6499_v60  ;;  %v14134_v60 = vld [vmem:[#allocation37_spill] sm:$0xff]  ;;  %v14137_v9 = vld [vmem:[#allocation44_spill] sm:$0xff] }
0x13e3   : > { %10921 = vpow2.f32 %v6544_v10  ;;  %v6552_v50 = vmul.f32 1.442695, %v6523_v46  ;;  %v14138_v10 = vld [vmem:[#allocation53_spill] sm:$0xff] }
0x13e4   : > { %v13474_v0 = vpop.eup %10913  ;;  %v6509_v25 = vpop.xlane.xlu1 %6508  ;;  %v6546_v59 = vmul.f32 1.442695, %v6520_v34  ;;  %10923 = vpow2.f32 %v6548_v1  ;;  %v14141_v34 = vld [vmem:[#allocation69_spill] sm:$0xff]  ;;  %v14143_v1 = vld [vmem:[#allocation23_spill] sm:$0xff] }
0x13e5   : > { %v6503_v47 = vpop.xlane.xlu0 %6502  ;;  %6568 = vadd.xlane.f32.xlu1 %v13472_v23  ;;  %6566 = vadd.xlane.f32.xlu0 %v13474_v0  ;;  %v13479_v18 = vpop.eup %10915  ;;  %v6525_v22 = vsub.f32 %v13447_v4, %v6509_v25  ;;  %v14140_v25 = vld [vmem:[#allocation20_spill] sm:$0xff] }
0x13e6   : > { %v6522_v17 = vsub.f32 %v13444_v28, %v6503_v47  ;;  %10925 = vpow2.f32 %v6546_v59  ;;  %v14142_v47 = vld [vmem:[#allocation61_spill] sm:$0xff]  ;;  %v14145_v59 = vld [vmem:[#allocation68_spill] sm:$0xff] }
0x13e8   : > { %v10442_v31 = vpop.permute.xlu1 %10441  ;;  %v13483_v20 = vpop.eup %10917  ;;  %v6550_v45 = vmul.f32 1.442695, %v6522_v17  ;;  %v14149_v17 = vld [vmem:[#allocation76_spill] sm:$0xff] }
0x13e9   : > { %v10444_v42 = vunpack.i.h.bf16 %v10442_v31  ;;  %v10443_v32 = vunpack.i.l.bf16 %v10442_v31  ;;  %6572 = vadd.xlane.f32.xlu1 %v13479_v18  ;;  %v6507_v14 = vpop.xlane.xlu0 %6506  ;;  %v14144_v31 = vld [vmem:[#allocation60_spill] sm:$0xff] }
0x13ea   : > { %v6524_v54 = vsub.f32 %v13450_v38, %v6507_v14  ;;  %10927 = vpow2.f32 %v6550_v45  ;;  %v6556_v38 = vmul.f32 1.442695, %v6525_v22  ;;  %v14148_v14 = vld [vmem:[#allocation22_spill] sm:$0xff]  ;;  %v14152_v45 = vld [vmem:[#allocation84_spill] sm:$0xff] }
0x13eb   : > { %v9754_v12 = vpack.c.bf16 %v10444_v42, %v10443_v32  ;;  %v14146_v42 = vld [vmem:[#allocation77_spill] sm:$0xff]  ;;  %v14147_v32 = vld [vmem:[#allocation31_spill] sm:$0xff] }
0x13ec   : > { %v13485_v26 = vpop.eup %10919  ;;  %v6554_v3 = vmul.f32 1.442695, %v6524_v54  ;;  %v14154_v54 = vld [vmem:[#allocation47_spill] sm:$0xff] }
0x13ed   : > { %6570 = vadd.xlane.f32.xlu1 %v13483_v20  ;;  %9755 = vmatprep.subr.bf16.mxu0 %v9754_v12  ;;  %v10447_v2 = vpop.permute.xlu0 %10446  ;;  %v13490_v19 = vpop.eup %10921 }
0x13ee   : > { %6574 = vadd.xlane.f32.xlu0 %v13485_v26  ;;  %v10449_v24 = vunpack.i.h.bf16 %v10447_v2  ;;  %v10448_v57 = vunpack.i.l.bf16 %v10447_v2  ;;  %9757 = vmatpush3.bf16.msra.mxu0 %v9754_v12  ;;  %v13494_v36 = vpop.eup %10923  ;;  %10929 = vpow2.f32 %v6554_v3  ;;  %v14150_v12 = vld [vmem:[#allocation39_spill] sm:$0xff]  ;;  %v14151_v2 = vld [vmem:[#allocation89_spill] sm:$0xff]  ;;  %v14159_v3 = vld [vmem:[#allocation54_spill] sm:$0xff] }
0x13ef   : > { %10931 = vpow2.f32 %v6556_v38  ;;  %v14160_v38 = vld [vmem:[#allocation63_spill] sm:$0xff] }
0x13f0   : > { %v9758_v28 = vpack.c.bf16 %v10449_v24, %v10448_v57  ;;  %v13497_v15 = vpop.eup %10925  ;;  %10933 = vpow2.f32 %v6552_v50  ;;  %v14155_v24 = vld [vmem:[#allocation38_spill] sm:$0xff]  ;;  %v14156_v57 = vld [vmem:[#allocation88_spill] sm:$0xff]  ;;  %v14161_v50 = vld [vmem:[#allocation71_spill] sm:$0xff] }
0x13f1   : > { %6576 = vadd.xlane.f32.xlu1 %v13490_v19 }
0x13f2   : > { %9759 = vmatprep.subr.bf16.mxu0 %v9758_v28 }
0x13f3   : > { %9761 = vmatpush3.bf16.msra.mxu0 %v9758_v28  ;;  %v14157_v28 = vld [vmem:[#allocation55_spill] sm:$0xff] }
0x13f4   : > { %v13500_v30 = vpop.eup %10927 }
0x13f5   : > { %6580 = vadd.xlane.f32.xlu1 %v13494_v36 }
0x13f8   : > { %v13503_v4 = vpop.eup %10929 }
0x13f9   : > { %6578 = vadd.xlane.f32.xlu1 %v13497_v15  ;;  %v13506_v8 = vpop.eup %10931 }
0x13fa   : > { %v13518_v7 = vpop.eup %10933 }
0x13fd   : > { %6582 = vadd.xlane.f32.xlu1 %v13500_v30 }
0x1401   : > { %6586 = vadd.xlane.f32.xlu1 %v13503_v4 }
0x1404   : > { %10451 = vrot.lane.b32.xlu0 %v11689_v52, %s11139_s9  ;;  %v14135_v52 = vld [vmem:[#allocation45_spill] sm:$0xff] }
0x1405   : > { %6588 = vadd.xlane.f32.xlu1 %v13506_v8 }
0x1416   : > { %2029 = vrot.lane.b32.xlu1 %v14131_v5, %s11139_s9 }
0x141a   : > { %2045 = vrot.lane.b32.xlu1 %v14132_v62, %s11139_s9  ;;  %v14163_v62 = vld [vmem:[#allocation62_spill] sm:$0xff] }
0x141e   : > { %2047 = vrot.lane.b32.xlu1 %v14133_v6, %s11139_s9 }
0x1422   : > { %2832 = vrot.lane.b32.xlu1 %v14134_v60, %s11138_s6  ;;  %v14164_v60 = vld [vmem:[#allocation70_spill] sm:$0xff] }
0x1423   : > { %6584 = vadd.xlane.f32.xlu0 %v13518_v7 }
0x1426   : > { %2848 = vrot.lane.b32.xlu1 %v14135_v52, %s11138_s6 }
0x142a   : > { %2834 = vrot.lane.b32.xlu1 %v14136_v48, %s11138_s6 }
0x142e   : > { %2850 = vrot.lane.b32.xlu1 %v14137_v9, %s11138_s6  ;;  %v14165_v9 = vld [vmem:[#allocation79_spill] sm:$0xff] }
0x1432   : > { %3635 = vrot.lane.b32.xlu1 %v14138_v10, %s11137_s30  ;;  %v14166_v10 = vld [vmem:[#allocation14_spill] sm:$0xff] }
0x1436   : > { %3637 = vrot.lane.b32.xlu1 %v14139_v40, %s11137_s30 }
0x1439   : > { %2031 = vrot.lane.b32.xlu0 %v14140_v25, %s11139_s9  ;;  %v14167_v25 = vld [vmem:[#allocation33_spill] sm:$0xff] }
0x143a   : > { %4438 = vrot.lane.b32.xlu1 %v14141_v34, %s11136_s8 }
0x143d   : > { %3651 = vrot.lane.b32.xlu0 %v14142_v47, %s11137_s30  ;;  %v14168_v47 = vld [vmem:[#allocation24_spill] sm:$0xff] }
0x143e   : > { %2033 = vrot.lane.b32.xlu1 %v14143_v1, %s11139_s9  ;;  %v14169_v1 = vld [vmem:[#allocation78_spill] sm:$0xff] }
0x1441   : > { %3653 = vrot.lane.b32.xlu0 %v14144_v31, %s11137_s30 }
0x1442   : > { %4440 = vrot.lane.b32.xlu1 %v14145_v59, %s11136_s8  ;;  %v14170_v59 = vld [vmem:[#allocation41_spill] sm:$0xff] }
0x1445   : > { %4454 = vrot.lane.b32.xlu0 %v14146_v42, %s11136_s8 }
0x1446   : > { %5241 = vrot.lane.b32.xlu1 %v13166_v43, %s11135_s7  ;;  %v14153_v43 = vld [vmem:[#allocation30_spill] sm:$0xff] }
0x1449   : > { %2049 = vrot.lane.b32.xlu0 %v14147_v32, %s11139_s9 }
0x144a   : > { %2035 = vrot.lane.b32.xlu1 %v14148_v14, %s11139_s9 }
0x144d   : > { %4456 = vrot.lane.b32.xlu0 %v14149_v17, %s11136_s8  ;;  %v14171_v17 = vld [vmem:[#allocation91_spill] sm:$0xff] }
0x144e   : > { %2836 = vrot.lane.b32.xlu1 %v14150_v12, %s11138_s6 }
0x1451   : > { %5257 = vrot.lane.b32.xlu0 %v14151_v2, %s11135_s7  ;;  %v14172_v2 = vld [vmem:[#allocation15_spill] sm:$0xff] }
0x1452   : > { %5243 = vrot.lane.b32.xlu1 %v14152_v45, %s11135_s7 }
0x1455   : > { %2051 = vrot.lane.b32.xlu0 %v14153_v43, %s11139_s9 }
0x1456   : > { %6044 = vrot.lane.b32.xlu1 %v13403_v53, %s11134_s23  ;;  %v14158_v53 = vld [vmem:[#allocation46_spill] sm:$0xff] }
0x1459   : > { %2852 = vrot.lane.b32.xlu0 %v14154_v54, %s11138_s6 }
0x145a   : > { %2838 = vrot.lane.b32.xlu1 %v14155_v24, %s11138_s6  ;;  %v14173_v24 = vld [vmem:[#allocation32_spill] sm:$0xff] }
0x145d   : > { %5259 = vrot.lane.b32.xlu0 %v14156_v57, %s11135_s7 }
0x145e   : > { %3639 = vrot.lane.b32.xlu1 %v14157_v28, %s11137_s30 }
0x1461   : > { %6060 = vrot.lane.b32.xlu0 %v13419_v51, %s11134_s23 }
0x1462   : > { %6046 = vrot.lane.b32.xlu1 %v13401_v11, %s11134_s23  ;;  %v14162_v11 = vld [vmem:[#allocation25_spill] sm:$0xff] }
0x1465   : > { %2854 = vrot.lane.b32.xlu0 %v14158_v53, %s11138_s6  ;;  %v6561_v48 = vpop.xlane.xlu0 %6560 }
0x1466   : > { %v6559_v22 = vpop.xlane.xlu1 %6558  ;;  %3641 = vrot.lane.b32.xlu1 %v14159_v3, %s11137_s30 }
0x1467   : > { %10935 = vrcp.f32 %v6559_v22 }
0x1468   : > { %10937 = vrcp.f32 %v6561_v48 }
0x1469   : > { %3655 = vrot.lane.b32.xlu0 %v14160_v38, %s11137_s30  ;;  %v14174_v38 = vld [vmem:[#allocation49_spill] sm:$0xff] }
0x146a   : > { %v6565_v46 = vpop.xlane.xlu1 %6564  ;;  %4442 = vrot.lane.b32.xlu1 %v14161_v50, %s11136_s8  ;;  %v14175_v50 = vld [vmem:[#allocation40_spill] sm:$0xff] }
0x146d   : > { %6062 = vrot.lane.b32.xlu0 %v13417_v37, %s11134_s23 }
0x146e   : > { %v6563_v51 = vpop.xlane.xlu1 %6562  ;;  %2037 = vrot.lane.b32.xlu1 %v14162_v11, %s11139_s9 }
0x146f   : > { %10939 = vrcp.f32 %v6563_v51 }
0x1470   : > { %10941 = vrcp.f32 %v6565_v46 }
0x1471   : > { %v10936_v5 = vpop.eup %10935  ;;  %3657 = vrot.lane.b32.xlu0 %v14163_v62, %s11137_s30 }
0x1472   : > { %v6569_v6 = vpop.xlane.xlu1 %6568  ;;  %4444 = vrot.lane.b32.xlu1 %v14164_v60, %s11136_s8  ;;  %v6606_v52 = vmul.f32 %v10936_v5, %v13460_v13  ;;  %v6567_v40 = vpop.xlane.xlu0 %6566  ;;  %v14177_v5 = vld [vmem:[#allocation57_spill] sm:$0xff] }
0x1473   : > { %10943 = vrcp.f32 %v6567_v40  ;;  %v10938_v43 = vpop.eup %10937 }
0x1474   : > { %8982 = vmatprep.mubr.f32.mxu0 %v6606_v52  ;;  %10945 = vrcp.f32 %v6569_v6  ;;  %v6607_v28 = vmul.f32 %v10938_v43, %v13458_v49 }
0x1475   : > { %4458 = vrot.lane.b32.xlu0 %v14165_v9, %s11136_s8 }
0x1476   : > { %v6573_v37 = vpop.xlane.xlu1 %6572  ;;  %5245 = vrot.lane.b32.xlu1 %v14166_v10, %s11135_s7 }
0x1479   : > { %2053 = vrot.lane.b32.xlu0 %v14167_v25, %s11139_s9  ;;  %v10940_v54 = vpop.eup %10939 }
0x147a   : > { %v6571_v34 = vpop.xlane.xlu1 %6570  ;;  %2039 = vrot.lane.b32.xlu1 %v14168_v47, %s11139_s9  ;;  %v10942_v53 = vpop.eup %10941  ;;  %v6608_v22 = vmul.f32 %v10940_v54, %v13468_v63  ;;  %v14176_v63 = vld [vmem:[#allocation90_spill] sm:$0xff]  ;;  %v14191_v54 = vld [vmem:[#allocation93_spill] sm:$0xff] }
0x147b   : > { %v6575_v13 = vpop.xlane.xlu0 %6574  ;;  %10947 = vrcp.f32 %v6571_v34  ;;  %v6609_v51 = vmul.f32 %v10942_v53, %v13464_v27  ;;  %v14181_v34 = vld [vmem:[#allocation73_spill] sm:$0xff]  ;;  %v14193_v53 = vld [vmem:[#allocation34_spill] sm:$0xff] }
0x147c   : > { %10949 = vrcp.f32 %v6573_v37 }
0x147d   : > { %4460 = vrot.lane.b32.xlu0 %v14169_v1, %s11136_s8  ;;  %10951 = vrcp.f32 %v6575_v13  ;;  %v10944_v3 = vpop.eup %10943 }
0x147e   : > { %v6577_v31 = vpop.xlane.xlu1 %6576  ;;  %2840 = vrot.lane.b32.xlu1 %v14170_v59, %s11138_s6  ;;  %v6610_v49 = vmul.f32 %v10944_v3, %v13474_v0 }
0x147f   : > { %v10452_v42 = vpop.permute.xlu0 %10451  ;;  %10953 = vrcp.f32 %v6577_v31  ;;  %v14183_v31 = vld [vmem:[#allocation64_spill] sm:$0xff] }
0x1480   : > { %v10454_v32 = vunpack.i.h.bf16 %v10452_v42  ;;  %v10453_v14 = vunpack.i.l.bf16 %v10452_v42 }
0x1481   : > { %5261 = vrot.lane.b32.xlu0 %v14171_v17, %s11135_s7 }
0x1482   : > { %v6581_v12 = vpop.xlane.xlu1 %6580  ;;  %5247 = vrot.lane.b32.xlu1 %v14172_v2, %s11135_s7  ;;  %v9762_v45 = vpack.c.bf16 %v10454_v32, %v10453_v14  ;;  %v14187_v32 = vld [vmem:[#allocation35_spill] sm:$0xff]  ;;  %v14188_v14 = vld [vmem:[#allocation26_spill] sm:$0xff] }
0x1483   : > { %v14190_v2 = vld [vmem:[#allocation43_spill] sm:$0xff] }
0x1484   : > { %9763 = vmatprep.subr.bf16.mxu0 %v9762_v45 }
0x1485   : > { %2055 = vrot.lane.b32.xlu0 %v14173_v24, %s11139_s9  ;;  %9765 = vmatpush3.bf16.msra.mxu0 %v9762_v45  ;;  %v14192_v24 = vld [vmem:[#allocation16_spill] sm:$0xff] }
0x1486   : > { %v6579_v57 = vpop.xlane.xlu1 %6578  ;;  %6048 = vrot.lane.b32.xlu1 %v13407_v29, %s11134_s23  ;;  %v10946_v29 = vpop.eup %10945 }
0x1487   : > { %10955 = vrcp.f32 %v6579_v57  ;;  %v10948_v11 = vpop.eup %10947  ;;  %v6611_v6 = vmul.f32 %v10946_v29, %v13472_v23  ;;  %v14178_v23 = vld [vmem:[#allocation48_spill] sm:$0xff] }
0x1488   : > { %8983 = vmatmul.mubr.f32.vlgmr.msra.gmra.mrb[144].mxu0 %v6607_v28  ;;  %10957 = vrcp.f32 %v6581_v12  ;;  %v10950_v60 = vpop.eup %10949  ;;  %v6612_v27 = vmul.f32 %v10948_v11, %v13483_v20  ;;  %v14179_v20 = vld [vmem:[#allocation56_spill] sm:$0xff] }
0x1489   : > { %2856 = vrot.lane.b32.xlu0 %v14174_v38, %s11138_s6  ;;  %8985 = vmatprep.mubr.f32.mxu0 %v6608_v22  ;;  %v10952_v52 = vpop.eup %10951  ;;  %v6613_v48 = vmul.f32 %v10950_v60, %v13479_v18  ;;  %v14189_v12 = vld [vmem:[#allocation80_spill] sm:$0xff]  ;;  %v14194_v38 = vld [vmem:[#allocation51_spill] sm:$0xff] }
0x148a   : > { %v6583_v46 = vpop.xlane.xlu1 %6582  ;;  %2842 = vrot.lane.b32.xlu1 %v14175_v50, %s11138_s6  ;;  %v10954_v9 = vpop.eup %10953  ;;  %v6614_v37 = vmul.f32 %v10952_v52, %v13485_v26  ;;  %v14180_v26 = vld [vmem:[#allocation65_spill] sm:$0xff]  ;;  %v14195_v50 = vld [vmem:[#allocation42_spill] sm:$0xff] }
0x148b   : > { %10959 = vrcp.f32 %v6583_v46  ;;  %v6615_v40 = vmul.f32 %v10954_v9, %v13490_v19  ;;  %v14198_v52 = vld [vmem:[#allocation50_spill] sm:$0xff] }
0x148c   : > { %8986 = vmatmul.mubr.f32.gmra.mrb[146].mxu0 %v6609_v51 }
0x148d   : > { %5263 = vrot.lane.b32.xlu0 %v14176_v63, %s11135_s7  ;;  %8988 = vmatprep.mubr.f32.mxu0 %v6610_v49  ;;  %v14196_v63 = vld [vmem:[#allocation92_spill] sm:$0xff] }
0x148e   : > { %3643 = vrot.lane.b32.xlu1 %v14177_v5, %s11137_s30  ;;  %v6587_v62 = vpop.xlane.xlu1 %6586 }
0x148f   : > { %10961 = vrcp.f32 %v6587_v62  ;;  %v14197_v62 = vld [vmem:[#allocation59_spill] sm:$0xff] }
0x1490   : > { %8989 = vmatmul.mubr.f32.gmra.mrb[148].mxu0 %v6611_v6 }
0x1491   : > { %6064 = vrot.lane.b32.xlu0 %v13423_v21, %s11134_s23  ;;  %8991 = vmatprep.mubr.f32.mxu0 %v6612_v27  ;;  %v10956_v10 = vpop.eup %10955 }
0x1492   : > { %6050 = vrot.lane.b32.xlu1 %v13405_v55, %s11134_s23  ;;  %v6589_v0 = vpop.xlane.xlu1 %6588  ;;  %v10958_v55 = vpop.eup %10957  ;;  %v6616_v18 = vmul.f32 %v10956_v10, %v13497_v15  ;;  %v14182_v15 = vld [vmem:[#allocation27_spill] sm:$0xff]  ;;  %v14202_v10 = vld [vmem:[#allocation74_spill] sm:$0xff] }
0x1493   : > { %v6617_v13 = vmul.f32 %v10958_v55, %v13494_v36  ;;  %v14184_v36 = vld [vmem:[#allocation72_spill] sm:$0xff] }
0x1494   : > { %8992 = vmatmul.mubr.f32.gmra.mrb[150].mxu0 %v6613_v48  ;;  %v14201_v48 = vld [vmem:[#allocation75_spill] sm:$0xff] }
0x1495   : > { %2858 = vrot.lane.b32.xlu0 %v14178_v23, %s11138_s6  ;;  %8994 = vmatprep.mubr.f32.mxu0 %v6614_v37  ;;  %v10960_v25 = vpop.eup %10959 }
0x1496   : > { %3645 = vrot.lane.b32.xlu1 %v14179_v20, %s11137_s30  ;;  %v2030_v21 = vpop.permute.xlu1 %2029  ;;  %v6618_v19 = vmul.f32 %v10960_v25, %v13500_v30  ;;  %v14185_v30 = vld [vmem:[#allocation81_spill] sm:$0xff]  ;;  %v14206_v25 = vld [vmem:[#allocation86_spill] sm:$0xff] }
0x1497   : > { %2078 = vst.msk [vmem:[#allocation3] sm:$0xff] %vm2077_vm2, %v2030_v21  ;;  %v14203_v21 = vld [vmem:[#allocation66_spill] sm:$0xff] }
0x1498   : > { %8995 = vmatmul.mubr.f32.gmra.mrb[152].mxu0 %v6615_v40  ;;  %v14204_v40 = vld [vmem:[#allocation87_spill] sm:$0xff] }
0x1499   : > { %3659 = vrot.lane.b32.xlu0 %v14180_v26, %s11137_s30  ;;  %8997 = vmatprep.mubr.f32.mxu0 %v6616_v18  ;;  %v10962_v46 = vpop.eup %10961 }
0x149a   : > { %4446 = vrot.lane.b32.xlu1 %v14181_v34, %s11136_s8  ;;  %v2046_v47 = vpop.permute.xlu1 %2045  ;;  %v6620_v5 = vmul.f32 %v10962_v46, %v13503_v4 }
0x149b   : > { %2086 = vst.msk [vmem:[#allocation3 + $0x40] sm:$0xff] %vm2077_vm2, %v2046_v47  ;;  %v14207_v47 = vld [vmem:[#allocation82_spill] sm:$0xff] }
0x149c   : > { %8998 = vmatmul.mubr.f32.gmra.mrb[154].mxu0 %v6617_v13 }
0x149d   : > { %6066 = vrot.lane.b32.xlu0 %v13421_v56, %s11134_s23  ;;  %9000 = vmatprep.mubr.f32.mxu0 %v6618_v19  ;;  %v14186_v56 = vld [vmem:[#allocation85_spill] sm:$0xff] }
0x149e   : > { %2041 = vrot.lane.b32.xlu1 %v14182_v15, %s11139_s9  ;;  %v2048_v1 = vpop.permute.xlu1 %2047  ;;  %v14208_v15 = vld [vmem:[#allocation95_spill] sm:$0xff] }
0x149f   : > { %2087 = vst.msk [vmem:[#allocation3 + $0x48] sm:$0xff] %vm2077_vm2, %v2048_v1 }
0x14a1   : > { %3661 = vrot.lane.b32.xlu0 %v14183_v31, %s11137_s30 }
0x14a2   : > { %4448 = vrot.lane.b32.xlu1 %v14184_v36, %s11136_s8  ;;  %v2833_v59 = vpop.permute.xlu1 %2832 }
0x14a3   : > { %2881 = vst.msk [vmem:[#allocation3] sm:$0xff] %vm2880_vm3, %v2833_v59 }
0x14a5   : > { %4462 = vrot.lane.b32.xlu0 %v14185_v30, %s11136_s8 }
0x14a6   : > { %5249 = vrot.lane.b32.xlu1 %v14186_v56, %s11135_s7  ;;  %v2849_v42 = vpop.permute.xlu1 %2848 }
0x14a7   : > { %2889 = vst.msk [vmem:[#allocation3 + $0x40] sm:$0xff] %vm2880_vm3, %v2849_v42 }
0x14a9   : > { %2057 = vrot.lane.b32.xlu0 %v14187_v32, %s11139_s9 }
0x14aa   : > { %2043 = vrot.lane.b32.xlu1 %v14188_v14, %s11139_s9  ;;  %v2835_v17 = vpop.permute.xlu1 %2834 }
0x14ad   : > { %4464 = vrot.lane.b32.xlu0 %v14189_v12, %s11136_s8 }
0x14ae   : > { %2844 = vrot.lane.b32.xlu1 %v14190_v2, %s11138_s6  ;;  %v2851_v45 = vpop.permute.xlu1 %2850 }
0x14af   : > { %2890 = vst.msk [vmem:[#allocation3 + $0x48] sm:$0xff] %vm2880_vm3, %v2851_v45 }
0x14b0   : > { %v6585_v43 = vpop.xlane.xlu0 %6584 }
0x14b1   : > { %10963 = vrcp.f32 %v6585_v43  ;;  %5265 = vrot.lane.b32.xlu0 %v14191_v54, %s11135_s7 }
0x14b2   : > { %5251 = vrot.lane.b32.xlu1 %v14192_v24, %s11135_s7  ;;  %v3636_v57 = vpop.permute.xlu1 %3635  ;;  %10965 = vrcp.f32 %v6589_v0 }
0x14b3   : > { %3684 = vst.msk [vmem:[#allocation3] sm:$0xff] %vm3683_vm4, %v3636_v57 }
0x14b4   : > { %v2032_v28 = vpop.permute.xlu0 %2031 }
0x14b5   : > { %2079 = vst.msk [vmem:[#allocation3 + $0x8] sm:$0xff] %vm2077_vm2, %v2032_v28  ;;  %2059 = vrot.lane.b32.xlu0 %v14193_v53, %s11139_s9 }
0x14b6   : > { %2882 = vst.msk [vmem:[#allocation3 + $0x8] sm:$0xff] %vm2880_vm3, %v2835_v17  ;;  %6052 = vrot.lane.b32.xlu1 %v13411_v35, %s11134_s23  ;;  %v3638_v22 = vpop.permute.xlu1 %3637 }
0x14b7   : > { %3685 = vst.msk [vmem:[#allocation3 + $0x8] sm:$0xff] %vm3683_vm4, %v3638_v22 }
0x14b8   : > { %v3652_v3 = vpop.permute.xlu0 %3651 }
0x14b9   : > { %3692 = vst.msk [vmem:[#allocation3 + $0x40] sm:$0xff] %vm3683_vm4, %v3652_v3  ;;  %2860 = vrot.lane.b32.xlu0 %v14194_v38, %s11138_s6 }
0x14ba   : > { %2846 = vrot.lane.b32.xlu1 %v14195_v50, %s11138_s6  ;;  %v4439_v51 = vpop.permute.xlu1 %4438 }
0x14bb   : > { %v10964_v29 = vpop.eup %10963  ;;  %4487 = vst.msk [vmem:[#allocation3] sm:$0xff] %vm4486_vm5, %v4439_v51 }
0x14bc   : > { %v3654_v49 = vpop.permute.xlu0 %3653  ;;  %v6619_v35 = vmul.f32 %v10964_v29, %v13518_v7  ;;  %v10966_v11 = vpop.eup %10965 }
0x14bd   : > { %3693 = vst.msk [vmem:[#allocation3 + $0x48] sm:$0xff] %vm3683_vm4, %v3654_v49  ;;  %5267 = vrot.lane.b32.xlu0 %v14196_v63, %s11135_s7  ;;  %v6621_v27 = vmul.f32 %v10966_v11, %v13506_v8  ;;  %v14199_v8 = vld [vmem:[#allocation58_spill] sm:$0xff] }
0x14be   : > { %9001 = vmatmul.mubr.f32.gmra.mrb[156].mxu0 %v6619_v35  ;;  %3647 = vrot.lane.b32.xlu1 %v14197_v62, %s11137_s30  ;;  %v2034_v6 = vpop.permute.xlu1 %2033  ;;  %v310_v62 = vld [vmem:[#allocation9 + $0x8] sm:$0xff] }
0x14bf   : > { %2080 = vst.msk [vmem:[#allocation3 + $0x10] sm:$0xff] %vm2077_vm2, %v2034_v6  ;;  %9003 = vmatprep.mubr.f32.mxu0 %v6620_v5  ;;  %v309_v5 = vld [vmem:[#allocation9] sm:$0xff]  ;;  %v311_v6 = vld [vmem:[#allocation9 + $0x10] sm:$0xff] }
0x14c0   : > { %v4455_v60 = vpop.permute.xlu0 %4454 }
0x14c1   : > { %4495 = vst.msk [vmem:[#allocation3 + $0x40] sm:$0xff] %vm4486_vm5, %v4455_v60  ;;  %6068 = vrot.lane.b32.xlu0 %v13427_v41, %s11134_s23  ;;  %v9766_v60 = vpack.c.bf16 %v310_v62, %v309_v5 }
0x14c2   : > { %9004 = vmatmul.mubr.f32.gmra.mrb[158].mxu0 %v6621_v27  ;;  %6054 = vrot.lane.b32.xlu1 %v13409_v33, %s11134_s23  ;;  %v4441_v4 = vpop.permute.xlu1 %4440  ;;  %v14200_v33 = vld [vmem:[#allocation67_spill] sm:$0xff]  ;;  %v312_v27 = vld [vmem:[#allocation9 + $0x18] sm:$0xff] }
0x14c3   : > { %4488 = vst.msk [vmem:[#allocation3 + $0x8] sm:$0xff] %vm4486_vm5, %v4441_v4  ;;  %9767 = vmatprep.subr.bf16.mxu0 %v9766_v60  ;;  %9798 = vmatprep.subr.bf16.mxu1 %v9766_v60 }
0x14c4   : > { %v2050_v7 = vpop.permute.xlu0 %2049  ;;  %9769 = vmatpush3.bf16.msra.mxu0 %v9766_v60  ;;  %9806 = vmatpush3.bf16.msra.mxu1 %v9766_v60 }
0x14c5   : > { %2088 = vst.msk [vmem:[#allocation3 + $0x50] sm:$0xff] %vm2077_vm2, %v2050_v7  ;;  %2862 = vrot.lane.b32.xlu0 %v14198_v52, %s11138_s6  ;;  %v9770_v7 = vpack.c.bf16 %v312_v27, %v311_v6  ;;  %v313_v52 = vld [vmem:[#allocation9 + $0x20] sm:$0xff] }
0x14c6   : > { %3649 = vrot.lane.b32.xlu1 %v14199_v8, %s11137_s30  ;;  %v5242_v0 = vpop.permute.xlu1 %5241  ;;  %v314_v8 = vld [vmem:[#allocation9 + $0x28] sm:$0xff] }
0x14c7   : > { %5290 = vst.msk [vmem:[#allocation3] sm:$0xff] %vm5289_vm6, %v5242_v0  ;;  %9771 = vmatprep.subr.bf16.mxu0 %v9770_v7  ;;  %9799 = vmatprep.subr.bf16.mxu1 %v9770_v7 }
0x14c8   : > { %v4457_v41 = vpop.permute.xlu0 %4456  ;;  %9773 = vmatpush3.bf16.msra.mxu0 %v9770_v7  ;;  %9807 = vmatpush3.bf16.msra.mxu1 %v9770_v7 }
0x14c9   : > { %4496 = vst.msk [vmem:[#allocation3 + $0x48] sm:$0xff] %vm4486_vm5, %v4457_v41  ;;  %3663 = vrot.lane.b32.xlu0 %v14200_v33, %s11137_s30  ;;  %v9774_v41 = vpack.c.bf16 %v314_v8, %v313_v52 }
0x14ca   : > { %4450 = vrot.lane.b32.xlu1 %v14201_v48, %s11136_s8  ;;  %v2036_v9 = vpop.permute.xlu1 %2035  ;;  %v315_v48 = vld [vmem:[#allocation9 + $0x30] sm:$0xff] }
0x14cb   : > { %2081 = vst.msk [vmem:[#allocation3 + $0x18] sm:$0xff] %vm2077_vm2, %v2036_v9  ;;  %v316_v9 = vld [vmem:[#allocation9 + $0x38] sm:$0xff]  ;;  %9775 = vmatprep.subr.bf16.mxu0 %v9774_v41  ;;  %9800 = vmatprep.subr.bf16.mxu1 %v9774_v41 }
0x14cc   : > { %v5258_v37 = vpop.permute.xlu0 %5257  ;;  %9777 = vmatpush3.bf16.msra.mxu0 %v9774_v41  ;;  %9808 = vmatpush3.bf16.msra.mxu1 %v9774_v41 }
0x14cd   : > { %5298 = vst.msk [vmem:[#allocation3 + $0x40] sm:$0xff] %vm5289_vm6, %v5258_v37  ;;  %6070 = vrot.lane.b32.xlu0 %v13425_v58, %s11134_s23  ;;  %v14205_v58 = vld [vmem:[#allocation83_spill] sm:$0xff] }
0x14ce   : > { %4452 = vrot.lane.b32.xlu1 %v14202_v10, %s11136_s8  ;;  %v2837_v23 = vpop.permute.xlu1 %2836  ;;  %v9778_v10 = vpack.c.bf16 %v316_v9, %v315_v48 }
0x14cf   : > { %2883 = vst.msk [vmem:[#allocation3 + $0x10] sm:$0xff] %vm2880_vm3, %v2837_v23 }
0x14d0   : > { %v2052_v20 = vpop.permute.xlu0 %2051  ;;  %9779 = vmatprep.subr.bf16.mxu0 %v9778_v10  ;;  %9801 = vmatprep.subr.bf16.mxu1 %v9778_v10 }
0x14d1   : > { %2089 = vst.msk [vmem:[#allocation3 + $0x58] sm:$0xff] %vm2077_vm2, %v2052_v20  ;;  %3665 = vrot.lane.b32.xlu0 %v14203_v21, %s11137_s30  ;;  %v317_v20 = vld [vmem:[#allocation9 + $0x40] sm:$0xff]  ;;  %v318_v21 = vld [vmem:[#allocation9 + $0x48] sm:$0xff]  ;;  %9781 = vmatpush3.bf16.msra.mxu0 %v9778_v10 }
0x14d2   : > { %5253 = vrot.lane.b32.xlu1 %v14204_v40, %s11135_s7  ;;  %v5244_v55 = vpop.permute.xlu1 %5243  ;;  %9809 = vmatpush3.bf16.msra.mxu1 %v9778_v10 }
0x14d3   : > { %5291 = vst.msk [vmem:[#allocation3 + $0x8] sm:$0xff] %vm5289_vm6, %v5244_v55  ;;  %v9782_v55 = vpack.c.bf16 %v318_v21, %v317_v20 }
0x14d4   : > { %v2853_v18 = vpop.permute.xlu0 %2852 }
0x14d5   : > { %2891 = vst.msk [vmem:[#allocation3 + $0x50] sm:$0xff] %vm2880_vm3, %v2853_v18  ;;  %4466 = vrot.lane.b32.xlu0 %v14205_v58, %s11136_s8  ;;  %9783 = vmatprep.subr.bf16.mxu0 %v9782_v55 }
0x14d6   : > { %5255 = vrot.lane.b32.xlu1 %v14206_v25, %s11135_s7  ;;  %v6045_v26 = vpop.permute.xlu1 %6044  ;;  %9802 = vmatprep.subr.bf16.mxu1 %v9782_v55 }
0x14d7   : > { %6093 = vst.msk [vmem:[#allocation3] sm:$0xff] %vm6092_vm7, %v6045_v26  ;;  %9785 = vmatpush3.bf16.msra.mxu0 %v9782_v55  ;;  %9810 = vmatpush3.bf16.msra.mxu1 %v9782_v55 }
0x14d8   : > { %v5260_v34 = vpop.permute.xlu0 %5259 }
0x14d9   : > { %5299 = vst.msk [vmem:[#allocation3 + $0x48] sm:$0xff] %vm5289_vm6, %v5260_v34  ;;  %4468 = vrot.lane.b32.xlu0 %v14207_v47, %s11136_s8 }
0x14da   : > { %6056 = vrot.lane.b32.xlu1 %v13415_v44, %s11134_s23  ;;  %v2839_v13 = vpop.permute.xlu1 %2838  ;;  %v14209_v44 = vld [vmem:[#allocation94_spill] sm:$0xff] }
0x14db   : > { %2884 = vst.msk [vmem:[#allocation3 + $0x18] sm:$0xff] %vm2880_vm3, %v2839_v13 }
0x14dc   : > { %v6061_v19 = vpop.permute.xlu0 %6060 }
0x14dd   : > { %6101 = vst.msk [vmem:[#allocation3 + $0x40] sm:$0xff] %vm6092_vm7, %v6061_v19  ;;  %5269 = vrot.lane.b32.xlu0 %v14208_v15, %s11135_s7 }
0x14de   : > { %6058 = vrot.lane.b32.xlu1 %v13413_v39, %s11134_s23  ;;  %v3640_v1 = vpop.permute.xlu1 %3639 }
0x14df   : > { %3686 = vst.msk [vmem:[#allocation3 + $0x10] sm:$0xff] %vm3683_vm4, %v3640_v1 }
0x14e0   : > { %v2855_v31 = vpop.permute.xlu0 %2854 }
0x14e1   : > { %2892 = vst.msk [vmem:[#allocation3 + $0x58] sm:$0xff] %vm2880_vm3, %v2855_v31  ;;  %5271 = vrot.lane.b32.xlu0 %v14209_v44, %s11135_s7 }
0x14e2   : > { %v6047_v36 = vpop.permute.xlu1 %6046 }
0x14e3   : > { %6094 = vst.msk [vmem:[#allocation3 + $0x8] sm:$0xff] %vm6092_vm7, %v6047_v36 }
0x14e4   : > { %v3656_v59 = vpop.permute.xlu0 %3655 }
0x14e5   : > { %3694 = vst.msk [vmem:[#allocation3 + $0x50] sm:$0xff] %vm3683_vm4, %v3656_v59  ;;  %6072 = vrot.lane.b32.xlu0 %v13431_v16, %s11134_s23 }
0x14e6   : > { %v3642_v30 = vpop.permute.xlu1 %3641 }
0x14e7   : > { %3687 = vst.msk [vmem:[#allocation3 + $0x18] sm:$0xff] %vm3683_vm4, %v3642_v30 }
0x14e8   : > { %v6063_v39 = vpop.permute.xlu0 %6062 }
0x14e9   : > { %6102 = vst.msk [vmem:[#allocation3 + $0x48] sm:$0xff] %vm6092_vm7, %v6063_v39  ;;  %6074 = vrot.lane.b32.xlu0 %v13429_v61, %s11134_s23  ;;  %s11057_s23 = sshll.u32 %s11140_s19, 4  ;;  %s11058_s23 = int_to_ptr.vmem [resolvable:$false] %s11057_s23 }
0x14ea   : > { %v4443_v56 = vpop.permute.xlu1 %4442  ;;  %s11059_s7 = scalar_lea.vmem %s11058_s23, 4096  ;;  %p11060_p5 = scmp.lt.s32.totalorder %s13879_s5, %s11058_s23 }
0x14eb   : > { %4489 = vst.msk [vmem:[#allocation3 + $0x10] sm:$0xff] %vm4486_vm5, %v4443_v56 }
0x14ec   : > { %v3658_v42 = vpop.permute.xlu0 %3657 }
0x14ed   : > { %3695 = vst.msk [vmem:[#allocation3 + $0x58] sm:$0xff] %vm3683_vm4, %v3658_v42 }
0x14ee   : > { %v2038_v32 = vpop.permute.xlu1 %2037 }
0x14ef   : > { %2082 = vst.msk [vmem:[#allocation3 + $0x20] sm:$0xff] %vm2077_vm2, %v2038_v32  ;;  %v319_v32 = vld [vmem:[#allocation9 + $0x50] sm:$0xff] }
0x14f0   : > { %v4459_v14 = vpop.permute.xlu0 %4458 }
0x14f1   : > { %4497 = vst.msk [vmem:[#allocation3 + $0x50] sm:$0xff] %vm4486_vm5, %v4459_v14  ;;  %v320_v14 = vld [vmem:[#allocation9 + $0x58] sm:$0xff] }
0x14f2   : > { %v4445_v16 = vpop.permute.xlu1 %4444 }
0x14f3   : > { %4490 = vst.msk [vmem:[#allocation3 + $0x18] sm:$0xff] %vm4486_vm5, %v4445_v16  ;;  %v9786_v16 = vpack.c.bf16 %v320_v14, %v319_v32 }
0x14f4   : > { %v2054_v17 = vpop.permute.xlu0 %2053 }
0x14f5   : > { %2090 = vst.msk [vmem:[#allocation3 + $0x60] sm:$0xff] %vm2077_vm2, %v2054_v17  ;;  %9787 = vmatprep.subr.bf16.mxu0 %v9786_v16  ;;  %9803 = vmatprep.subr.bf16.mxu1 %v9786_v16 }
0x14f6   : > { %v5246_v12 = vpop.permute.xlu1 %5245  ;;  %9789 = vmatpush3.bf16.msra.mxu0 %v9786_v16  ;;  %9811 = vmatpush3.bf16.msra.mxu1 %v9786_v16 }
0x14f7   : > { %5292 = vst.msk [vmem:[#allocation3 + $0x10] sm:$0xff] %vm5289_vm6, %v5246_v12 }
0x14f8   : > { %v4461_v61 = vpop.permute.xlu0 %4460 }
0x14f9   : > { %4498 = vst.msk [vmem:[#allocation3 + $0x58] sm:$0xff] %vm4486_vm5, %v4461_v61  ;;  %v321_v61 = vld [vmem:[#allocation9 + $0x60] sm:$0xff] }
0x14fa   : > { %v2040_v2 = vpop.permute.xlu1 %2039 }
0x14fb   : > { %2083 = vst.msk [vmem:[#allocation3 + $0x28] sm:$0xff] %vm2077_vm2, %v2040_v2  ;;  %v322_v2 = vld [vmem:[#allocation9 + $0x68] sm:$0xff] }
0x14fc   : > { %v5262_v45 = vpop.permute.xlu0 %5261 }
0x14fd   : > { %5300 = vst.msk [vmem:[#allocation3 + $0x50] sm:$0xff] %vm5289_vm6, %v5262_v45  ;;  %v9790_v45 = vpack.c.bf16 %v322_v2, %v321_v61 }
0x14fe   : > { %v2841_v43 = vpop.permute.xlu1 %2840 }
0x14ff   : > { %2885 = vst.msk [vmem:[#allocation3 + $0x20] sm:$0xff] %vm2880_vm3, %v2841_v43  ;;  %9791 = vmatprep.subr.bf16.mxu0 %v9790_v45  ;;  %9804 = vmatprep.subr.bf16.mxu1 %v9790_v45 }
0x1500   : > { %v2056_v54 = vpop.permute.xlu0 %2055  ;;  %9793 = vmatpush3.bf16.msra.mxu0 %v9790_v45  ;;  %9812 = vmatpush3.bf16.msra.mxu1 %v9790_v45 }
0x1501   : > { %2091 = vst.msk [vmem:[#allocation3 + $0x68] sm:$0xff] %vm2077_vm2, %v2056_v54 }
0x1502   : > { %v5248_v24 = vpop.permute.xlu1 %5247 }
0x1503   : > { %5293 = vst.msk [vmem:[#allocation3 + $0x18] sm:$0xff] %vm5289_vm6, %v5248_v24  ;;  %v323_v24 = vld [vmem:[#allocation9 + $0x70] sm:$0xff] }
0x1504   : > { %v2857_v57 = vpop.permute.xlu0 %2856 }
0x1505   : > { %2893 = vst.msk [vmem:[#allocation3 + $0x60] sm:$0xff] %vm2880_vm3, %v2857_v57  ;;  %v324_v57 = vld [vmem:[#allocation9 + $0x78] sm:$0xff] }
0x1506   : > { %v6049_v28 = vpop.permute.xlu1 %6048 }
0x1507   : > { %6095 = vst.msk [vmem:[#allocation3 + $0x10] sm:$0xff] %vm6092_vm7, %v6049_v28  ;;  %v9794_v28 = vpack.c.bf16 %v324_v57, %v323_v24 }
0x1508   : > { %v5264_v53 = vpop.permute.xlu0 %5263 }
0x1509   : > { %5301 = vst.msk [vmem:[#allocation3 + $0x58] sm:$0xff] %vm5289_vm6, %v5264_v53  ;;  %9795 = vmatprep.subr.bf16.mxu0 %v9794_v28  ;;  %9805 = vmatprep.subr.bf16.mxu1 %v9794_v28 }
0x150a   : > { %v2843_v22 = vpop.permute.xlu1 %2842  ;;  %9797 = vmatpush3.bf16.msra.mxu0 %v9794_v28  ;;  %9813 = vmatpush3.bf16.msra.mxu1 %v9794_v28 }
0x150b   : > { %2886 = vst.msk [vmem:[#allocation3 + $0x28] sm:$0xff] %vm2880_vm3, %v2843_v22 }
0x150c   : > { %v6065_v3 = vpop.permute.xlu0 %6064 }
0x150d   : > { %6103 = vst.msk [vmem:[#allocation3 + $0x50] sm:$0xff] %vm6092_vm7, %v6065_v3 }
0x150e   : > { %v3644_v38 = vpop.permute.xlu1 %3643 }
0x150f   : > { %3688 = vst.msk [vmem:[#allocation3 + $0x20] sm:$0xff] %vm3683_vm4, %v3644_v38 }
0x1510   : > { %v2859_v46 = vpop.permute.xlu0 %2858 }
0x1511   : > { %2894 = vst.msk [vmem:[#allocation3 + $0x68] sm:$0xff] %vm2880_vm3, %v2859_v46 }
0x1512   : > { %v6051_v50 = vpop.permute.xlu1 %6050 }
0x1513   : > { %6096 = vst.msk [vmem:[#allocation3 + $0x18] sm:$0xff] %vm6092_vm7, %v6051_v50 }
0x1514   : > { %v3660_v51 = vpop.permute.xlu0 %3659 }
0x1515   : > { %3696 = vst.msk [vmem:[#allocation3 + $0x60] sm:$0xff] %vm3683_vm4, %v3660_v51 }
0x1516   : > { %v3646_v29 = vpop.permute.xlu1 %3645 }
0x1517   : > { %3689 = vst.msk [vmem:[#allocation3 + $0x28] sm:$0xff] %vm3683_vm4, %v3646_v29 }
0x1518   : > { %v6067_v49 = vpop.permute.xlu0 %6066 }
0x1519   : > { %6104 = vst.msk [vmem:[#allocation3 + $0x58] sm:$0xff] %vm6092_vm7, %v6067_v49 }
0x151a   : > { %v4447_v35 = vpop.permute.xlu1 %4446 }
0x151b   : > { %4491 = vst.msk [vmem:[#allocation3 + $0x20] sm:$0xff] %vm4486_vm5, %v4447_v35 }
0x151c   : > { %v3662_v11 = vpop.permute.xlu0 %3661 }
0x151d   : > { %3697 = vst.msk [vmem:[#allocation3 + $0x68] sm:$0xff] %vm3683_vm4, %v3662_v11 }
0x151e   : > { %v2042_v63 = vpop.permute.xlu1 %2041 }
0x151f   : > { %2084 = vst.msk [vmem:[#allocation3 + $0x30] sm:$0xff] %vm2077_vm2, %v2042_v63 }
0x1520   : > { %v4463_v4 = vpop.permute.xlu0 %4462 }
0x1521   : > { %4499 = vst.msk [vmem:[#allocation3 + $0x60] sm:$0xff] %vm4486_vm5, %v4463_v4 }
0x1522   : > { %v4449_v0 = vpop.permute.xlu1 %4448 }
0x1523   : > { %4492 = vst.msk [vmem:[#allocation3 + $0x28] sm:$0xff] %vm4486_vm5, %v4449_v0 }
0x1524   : > { %v2058_v33 = vpop.permute.xlu0 %2057 }
0x1525   : > { %2092 = vst.msk [vmem:[#allocation3 + $0x70] sm:$0xff] %vm2077_vm2, %v2058_v33 }
0x1526   : > { %v5250_v37 = vpop.permute.xlu1 %5249 }
0x1527   : > { %5294 = vst.msk [vmem:[#allocation3 + $0x20] sm:$0xff] %vm5289_vm6, %v5250_v37 }
0x1528   : > { %v4465_v23 = vpop.permute.xlu0 %4464 }
0x1529   : > { %4500 = vst.msk [vmem:[#allocation3 + $0x68] sm:$0xff] %vm4486_vm5, %v4465_v23 }
0x152a   : > { %v2044_v40 = vpop.permute.xlu1 %2043 }
0x152b   : > { %2085 = vst.msk [vmem:[#allocation3 + $0x38] sm:$0xff] %vm2077_vm2, %v2044_v40 }
0x152c   : > { %v5266_v18 = vpop.permute.xlu0 %5265 }
0x152d   : > { %5302 = vst.msk [vmem:[#allocation3 + $0x60] sm:$0xff] %vm5289_vm6, %v5266_v18 }
0x152e   : > { %v2845_v58 = vpop.permute.xlu1 %2844 }
0x152f   : > { %2887 = vst.msk [vmem:[#allocation3 + $0x30] sm:$0xff] %vm2880_vm3, %v2845_v58 }
0x1530   : > { %v2060_v25 = vpop.permute.xlu0 %2059 }
0x1531   : > { %2093 = vst.msk [vmem:[#allocation3 + $0x78] sm:$0xff] %vm2077_vm2, %v2060_v25 }
0x1532   : > { %v5252_v26 = vpop.permute.xlu1 %5251 }
0x1533   : > { %5295 = vst.msk [vmem:[#allocation3 + $0x28] sm:$0xff] %vm5289_vm6, %v5252_v26 }
0x1534   : > { %v2861_v34 = vpop.permute.xlu0 %2860 }
0x1535   : > { %2895 = vst.msk [vmem:[#allocation3 + $0x70] sm:$0xff] %vm2880_vm3, %v2861_v34 }
0x1536   : > { %v6053_v47 = vpop.permute.xlu1 %6052 }
0x1537   : > { %6097 = vst.msk [vmem:[#allocation3 + $0x20] sm:$0xff] %vm6092_vm7, %v6053_v47 }
0x1538   : > { %v5268_v13 = vpop.permute.xlu0 %5267 }
0x1539   : > { %5303 = vst.msk [vmem:[#allocation3 + $0x68] sm:$0xff] %vm5289_vm6, %v5268_v13 }
0x153a   : > { %v2847_v19 = vpop.permute.xlu1 %2846 }
0x153b   : > { %2888 = vst.msk [vmem:[#allocation3 + $0x38] sm:$0xff] %vm2880_vm3, %v2847_v19 }
0x153c   : > { %v6069_v15 = vpop.permute.xlu0 %6068 }
0x153d   : > { %6105 = vst.msk [vmem:[#allocation3 + $0x60] sm:$0xff] %vm6092_vm7, %v6069_v15 }
0x153e   : > { %v3648_v1 = vpop.permute.xlu1 %3647 }
0x153f   : > { %3690 = vst.msk [vmem:[#allocation3 + $0x30] sm:$0xff] %vm3683_vm4, %v3648_v1 }
0x1540   : > { %v2863_v31 = vpop.permute.xlu0 %2862 }
0x1541   : > { %2896 = vst.msk [vmem:[#allocation3 + $0x78] sm:$0xff] %vm2880_vm3, %v2863_v31 }
0x1542   : > { %v6055_v44 = vpop.permute.xlu1 %6054 }
0x1543   : > { %6098 = vst.msk [vmem:[#allocation3 + $0x28] sm:$0xff] %vm6092_vm7, %v6055_v44 }
0x1544   : > { %v3664_v36 = vpop.permute.xlu0 %3663 }
0x1545   : > { %3698 = vst.msk [vmem:[#allocation3 + $0x70] sm:$0xff] %vm3683_vm4, %v3664_v36 }
0x1546   : > { %v3650_v59 = vpop.permute.xlu1 %3649 }
0x1547   : > { %3691 = vst.msk [vmem:[#allocation3 + $0x38] sm:$0xff] %vm3683_vm4, %v3650_v59 }
0x1548   : > { %v6071_v30 = vpop.permute.xlu0 %6070 }
0x1549   : > { %6106 = vst.msk [vmem:[#allocation3 + $0x68] sm:$0xff] %vm6092_vm7, %v6071_v30 }
0x154a   : > { %v4451_v39 = vpop.permute.xlu1 %4450 }
0x154b   : > { %4493 = vst.msk [vmem:[#allocation3 + $0x30] sm:$0xff] %vm4486_vm5, %v4451_v39 }
0x154c   : > { %v3666_v56 = vpop.permute.xlu0 %3665 }
0x154d   : > { %3699 = vst.msk [vmem:[#allocation3 + $0x78] sm:$0xff] %vm3683_vm4, %v3666_v56 }
0x154e   : > { %v4453_v42 = vpop.permute.xlu1 %4452 }
0x154f   : > { %4494 = vst.msk [vmem:[#allocation3 + $0x38] sm:$0xff] %vm4486_vm5, %v4453_v42 }
0x1550   : > { %v4467_v17 = vpop.permute.xlu0 %4466 }
0x1551   : > { %4501 = vst.msk [vmem:[#allocation3 + $0x70] sm:$0xff] %vm4486_vm5, %v4467_v17  ;;  %v7470_v17 = vld [vmem:[%s13928_s3] ss:$0 sm:$0xff] }
0x1552   : > { %v5254_v12 = vpop.permute.xlu1 %5253 }
0x1553   : > { %5296 = vst.msk [vmem:[#allocation3 + $0x30] sm:$0xff] %vm5289_vm6, %v5254_v12 }
0x1554   : > { %v4469_v43 = vpop.permute.xlu0 %4468 }
0x1555   : > { %4502 = vst.msk [vmem:[#allocation3 + $0x78] sm:$0xff] %vm4486_vm5, %v4469_v43 }
0x1556   : > { %v5256_v54 = vpop.permute.xlu1 %5255 }
0x1557   : > { %5297 = vst.msk [vmem:[#allocation3 + $0x38] sm:$0xff] %vm5289_vm6, %v5256_v54 }
0x1558   : > { %v5270_v53 = vpop.permute.xlu0 %5269 }
0x1559   : > { %5304 = vst.msk [vmem:[#allocation3 + $0x70] sm:$0xff] %vm5289_vm6, %v5270_v53 }
0x155a   : > { %v6057_v22 = vpop.permute.xlu1 %6056 }
0x155b   : > { %6099 = vst.msk [vmem:[#allocation3 + $0x30] sm:$0xff] %vm6092_vm7, %v6057_v22  ;;  %v8984_v3 = vpop.f32.mrb[144].mxu0 }
0x155c   : > { %v5272_v38 = vpop.permute.xlu0 %5271  ;;  %6849 = vrot.lane.b32.xlu1 %v8984_v3, %s11133_s21  ;;  %v6752_v46 = vpop.f32.mrb[145].mxu0 }
0x155d   : > { %5305 = vst.msk [vmem:[#allocation3 + $0x78] sm:$0xff] %vm5289_vm6, %v5272_v38 }
0x155e   : > { %v6059_v50 = vpop.permute.xlu1 %6058 }
0x155f   : > { %6100 = vst.msk [vmem:[#allocation3 + $0x38] sm:$0xff] %vm6092_vm7, %v6059_v50  ;;  %v8987_v51 = vpop.f32.mrb[146].mxu0 }
0x1560   : > { %v6073_v29 = vpop.permute.xlu0 %6072  ;;  %6847 = vrot.lane.b32.xlu1 %v6752_v46, %s11133_s21  ;;  %v6762_v49 = vpop.f32.mrb[147].mxu0 }
0x1561   : > { %6107 = vst.msk [vmem:[#allocation3 + $0x70] sm:$0xff] %vm6092_vm7, %v6073_v29 }
0x1563   : > { %v8990_v35 = vpop.f32.mrb[148].mxu0 }
0x1564   : > { %v6075_v11 = vpop.permute.xlu0 %6074  ;;  %6853 = vrot.lane.b32.xlu1 %v8987_v51, %s11133_s21  ;;  %v6772_v63 = vpop.f32.mrb[149].mxu0 }
0x1565   : > { %6108 = vst.msk [vmem:[#allocation3 + $0x78] sm:$0xff] %vm6092_vm7, %v6075_v11 }
0x1567   : > { %v8993_v5 = vpop.f32.mrb[150].mxu0 }
0x1568   : > { %6851 = vrot.lane.b32.xlu1 %v6762_v49, %s11133_s21  ;;  %v6782_v62 = vpop.f32.mrb[151].mxu0 }
0x156b   : > { %v8996_v6 = vpop.f32.mrb[152].mxu0 }
0x156c   : > { %6857 = vrot.lane.b32.xlu1 %v8990_v35, %s11133_s21  ;;  %6865 = vrot.lane.b32.xlu0 %v8996_v6, %s11133_s21  ;;  %v6792_v60 = vpop.f32.mrb[153].mxu0 }
0x156f   : > { %v8999_v27 = vpop.f32.mrb[154].mxu0 }
0x1570   : > { %6855 = vrot.lane.b32.xlu1 %v6772_v63, %s11133_s21  ;;  %6863 = vrot.lane.b32.xlu0 %v6792_v60, %s11133_s21  ;;  %v6802_v4 = vpop.f32.mrb[155].mxu0 }
0x1574   : > { %6859 = vrot.lane.b32.xlu1 %v6782_v62, %s11133_s21  ;;  %6869 = vrot.lane.b32.xlu0 %v8999_v27, %s11133_s21 }
0x1578   : > { %6861 = vrot.lane.b32.xlu1 %v8993_v5, %s11133_s21  ;;  %6867 = vrot.lane.b32.xlu0 %v6802_v4, %s11133_s21 }
0x1591   : > { %v9002_v7 = vpop.f32.mrb[156].mxu0 }
0x1592   : > { %6873 = vrot.lane.b32.xlu0 %v9002_v7, %s11133_s21  ;;  %v6812_v52 = vpop.f32.mrb[157].mxu0 }
0x1595   : > { %v9005_v8 = vpop.f32.mrb[158].mxu0 }
0x1596   : > { %6871 = vrot.lane.b32.xlu0 %v6812_v52, %s11133_s21  ;;  %v6822_v0 = vpop.f32.mrb[159].mxu0 }
0x159a   : > { %6875 = vrot.lane.b32.xlu0 %v6822_v0, %s11133_s21 }
0x159e   : > { %6877 = vrot.lane.b32.xlu0 %v9005_v8, %s11133_s21  ;;  %s11053_s21 = scalar_lea.vmem %s13879_s5, 2048 }
0x159f   : > { %p11054_p11 = scmp.ne.s32.totalorder %s13879_s5, %s11053_s21  ;;  %p11061_p9 = scmp.lt.s32.totalorder %s11059_s7, %s11053_s21 }
0x15a1   : > { %p11055_p1 = pnand %p11054_p11, %p14210_p0  ;;  %p11062_p12 = por %p11061_p9, %p11060_p5 }
0x15a3   : > { %p11056_p3 = pneg %p11055_p1 }
0x15a5   : > { %p11063_p2 = pnand %p11062_p12, %p11056_p3 }
0x15ce   : > { %v6850_v41 = vpop.permute.xlu1 %6849 }
0x15cf   : > { %6897 = vst.msk [vmem:[#allocation3 + $0x8] sm:$0xff] %vm6895_vm8, %v6850_v41 }
0x15d2   : > { %v6848_v33 = vpop.permute.xlu1 %6847 }
0x15d3   : > { %6896 = vst.msk [vmem:[#allocation3] sm:$0xff] %vm6895_vm8, %v6848_v33 }
0x15d6   : > { %v6854_v48 = vpop.permute.xlu1 %6853  ;;  %v6913_v10 = vld [vmem:[#allocation3 + $0x8] sm:$0xff] }
0x15d7   : > { %6899 = vst.msk [vmem:[#allocation3 + $0x18] sm:$0xff] %vm6895_vm8, %v6854_v48 }
0x15da   : > { %v6852_v9 = vpop.permute.xlu1 %6851  ;;  %v6912_v37 = vld [vmem:[#allocation3] sm:$0xff] }
0x15db   : > { %6898 = vst.msk [vmem:[#allocation3 + $0x10] sm:$0xff] %vm6895_vm8, %v6852_v9  ;;  %9038 = vmatprep.mubr.f32.mxu0 %v6912_v37 }
0x15dc   : > { %9039 = vmatmul.mubr.f32.vlgmr.msra.gmra.mrb[160].mxu0 %v6913_v10 }
0x15de   : > { %v6858_v23 = vpop.permute.xlu1 %6857  ;;  %v6866_v20 = vpop.permute.xlu0 %6865  ;;  %v6915_v18 = vld [vmem:[#allocation3 + $0x18] sm:$0xff] }
0x15df   : > { %6901 = vst.msk [vmem:[#allocation3 + $0x28] sm:$0xff] %vm6895_vm8, %v6858_v23  ;;  %6905 = vst.msk [vmem:[#allocation3 + $0x48] sm:$0xff] %vm6895_vm8, %v6866_v20 }
0x15e2   : > { %v6856_v21 = vpop.permute.xlu1 %6855  ;;  %v6864_v40 = vpop.permute.xlu0 %6863  ;;  %v6914_v55 = vld [vmem:[#allocation3 + $0x10] sm:$0xff] }
0x15e3   : > { %6900 = vst.msk [vmem:[#allocation3 + $0x20] sm:$0xff] %vm6895_vm8, %v6856_v21  ;;  %6904 = vst.msk [vmem:[#allocation3 + $0x40] sm:$0xff] %vm6895_vm8, %v6864_v40  ;;  %9041 = vmatprep.mubr.f32.mxu0 %v6914_v55 }
0x15e4   : > { %9042 = vmatmul.mubr.f32.gmra.mrb[162].mxu0 %v6915_v18 }
0x15e6   : > { %v6860_v58 = vpop.permute.xlu1 %6859  ;;  %v6870_v25 = vpop.permute.xlu0 %6869  ;;  %v6917_v19 = vld [vmem:[#allocation3 + $0x28] sm:$0xff] }
0x15e7   : > { %6902 = vst.msk [vmem:[#allocation3 + $0x30] sm:$0xff] %vm6895_vm8, %v6860_v58  ;;  %6907 = vst.msk [vmem:[#allocation3 + $0x58] sm:$0xff] %vm6895_vm8, %v6870_v25  ;;  %v6921_v15 = vld [vmem:[#allocation3 + $0x48] sm:$0xff] }
0x15ea   : > { %v6862_v26 = vpop.permute.xlu1 %6861  ;;  %v6868_v34 = vpop.permute.xlu0 %6867  ;;  %v6916_v47 = vld [vmem:[#allocation3 + $0x20] sm:$0xff] }
0x15eb   : > { %v6920_v13 = vld [vmem:[#allocation3 + $0x40] sm:$0xff]  ;;  %6903 = vst.msk [vmem:[#allocation3 + $0x38] sm:$0xff] %vm6895_vm8, %v6862_v26  ;;  %6906 = vst.msk [vmem:[#allocation3 + $0x50] sm:$0xff] %vm6895_vm8, %v6868_v34  ;;  %9044 = vmatprep.mubr.f32.mxu0 %v6916_v47 }
0x15ec   : > { %9050 = vmatprep.mubr.f32.mxu1 %v6920_v13  ;;  %9045 = vmatmul.mubr.f32.gmra.mrb[164].mxu0 %v6917_v19 }
0x15ed   : > { %9051 = vmatmul.mubr.f32.vlgmr.msra.gmra.mrb[144].mxu1 %v6921_v15 }
0x15ee   : > { %v6918_v1 = vld [vmem:[#allocation3 + $0x30] sm:$0xff]  ;;  %v6923_v36 = vld [vmem:[#allocation3 + $0x58] sm:$0xff] }
0x15ef   : > { %9047 = vmatprep.mubr.f32.mxu0 %v6918_v1 }
0x15f2   : > { %v6919_v31 = vld [vmem:[#allocation3 + $0x38] sm:$0xff]  ;;  %v6922_v44 = vld [vmem:[#allocation3 + $0x50] sm:$0xff] }
0x15f3   : > { %9048 = vmatmul.mubr.f32.gmra.mrb[166].mxu0 %v6919_v31  ;;  %9053 = vmatprep.mubr.f32.mxu1 %v6922_v44 }
0x15f4   : > { %9054 = vmatmul.mubr.f32.gmra.mrb[146].mxu1 %v6923_v36 }
0x1604   : > { %v6874_v59 = vpop.permute.xlu0 %6873 }
0x1605   : > { %6909 = vst.msk [vmem:[#allocation3 + $0x68] sm:$0xff] %vm6895_vm8, %v6874_v59 }
0x1608   : > { %v6872_v30 = vpop.permute.xlu0 %6871 }
0x1609   : > { %6908 = vst.msk [vmem:[#allocation3 + $0x60] sm:$0xff] %vm6895_vm8, %v6872_v30 }
0x160c   : > { %v6876_v39 = vpop.permute.xlu0 %6875  ;;  %v6925_v32 = vld [vmem:[#allocation3 + $0x68] sm:$0xff] }
0x160d   : > { %6910 = vst.msk [vmem:[#allocation3 + $0x70] sm:$0xff] %vm6895_vm8, %v6876_v39 }
0x1610   : > { %v6878_v56 = vpop.permute.xlu0 %6877  ;;  %v6924_v42 = vld [vmem:[#allocation3 + $0x60] sm:$0xff] }
0x1611   : > { %6911 = vst.msk [vmem:[#allocation3 + $0x78] sm:$0xff] %vm6895_vm8, %v6878_v56  ;;  %9056 = vmatprep.mubr.f32.mxu1 %v6924_v42 }
0x1612   : > { %9057 = vmatmul.mubr.f32.gmra.mrb[148].mxu1 %v6925_v32 }
0x1614   : > { %v6926_v14 = vld [vmem:[#allocation3 + $0x70] sm:$0xff] }
0x1615   : > { %9059 = vmatprep.mubr.f32.mxu1 %v6926_v14 }
0x1618   : > { %v6927_v16 = vld [vmem:[#allocation3 + $0x78] sm:$0xff] }
0x1619   : > { %9060 = vmatmul.mubr.f32.gmra.mrb[150].mxu1 %v6927_v16 }
0x16af   : > { %v9040_v12 = vpop.f32.mrb[160].mxu0 }
0x16b0   : > { %v7006_v61 = vadd.f32 %v9040_v12, %v7470_v17  ;;  %v7000_v2 = vpop.f32.mrb[161].mxu0 }
0x16b1   : > { %v7001_v45 = vadd.f32 %v7470_v17, %v7000_v2 }
0x16b2   : > { %7080 = vst [vmem:[%s13856_s20 + $0x8] sm:$0xff] %v7006_v61 }
0x16b3   : > { %7079 = vst [vmem:[%s13856_s20] sm:$0xff] %v7001_v45 }
0x16b7   : > { %v9043_v43 = vpop.f32.mrb[162].mxu0 }
0x16b8   : > { %v7016_v54 = vadd.f32 %v9043_v43, %v7470_v17  ;;  %v7010_v24 = vpop.f32.mrb[163].mxu0 }
0x16b9   : > { %v7011_v57 = vadd.f32 %v7470_v17, %v7010_v24 }
0x16ba   : > { %7082 = vst [vmem:[%s13856_s20 + $0x18] sm:$0xff] %v7016_v54 }
0x16bb   : > { %7081 = vst [vmem:[%s13856_s20 + $0x10] sm:$0xff] %v7011_v57 }
0x16bf   : > { %v9046_v28 = vpop.f32.mrb[164].mxu0 }
0x16c0   : > { %v9052_v53 = vpop.f32.mrb[144].mxu1  ;;  %v7026_v22 = vadd.f32 %v9046_v28, %v7470_v17  ;;  %v7020_v38 = vpop.f32.mrb[165].mxu0 }
0x16c1   : > { %v7046_v3 = vadd.f32 %v9052_v53, %v7470_v17  ;;  %v7040_v46 = vpop.f32.mrb[145].mxu1  ;;  %v7021_v50 = vadd.f32 %v7470_v17, %v7020_v38 }
0x16c2   : > { %v7041_v51 = vadd.f32 %v7470_v17, %v7040_v46  ;;  %7084 = vst [vmem:[%s13856_s20 + $0x28] sm:$0xff] %v7026_v22 }
0x16c3   : > { %7088 = vst [vmem:[%s13856_s20 + $0x48] sm:$0xff] %v7046_v3  ;;  %7083 = vst [vmem:[%s13856_s20 + $0x20] sm:$0xff] %v7021_v50 }
0x16c4   : > { %7087 = vst [vmem:[%s13856_s20 + $0x40] sm:$0xff] %v7041_v51 }
0x16c6   : > { %v9049_v29 = vpop.f32.mrb[166].mxu0 }
0x16c7   : > { %v7036_v49 = vadd.f32 %v9049_v29, %v7470_v17  ;;  %v7030_v35 = vpop.f32.mrb[167].mxu0  ;;  %v9055_v11 = vpop.f32.mrb[146].mxu1 }
0x16c8   : > { %v7031_v63 = vadd.f32 %v7470_v17, %v7030_v35  ;;  %v7056_v5 = vadd.f32 %v9055_v11, %v7470_v17  ;;  %v7050_v62 = vpop.f32.mrb[147].mxu1 }
0x16c9   : > { %7086 = vst [vmem:[%s13856_s20 + $0x38] sm:$0xff] %v7036_v49  ;;  %v7051_v6 = vadd.f32 %v7470_v17, %v7050_v62 }
0x16ca   : > { %7085 = vst [vmem:[%s13856_s20 + $0x30] sm:$0xff] %v7031_v63  ;;  %7090 = vst [vmem:[%s13856_s20 + $0x58] sm:$0xff] %v7056_v5 }
0x16cb   : > { %7089 = vst [vmem:[%s13856_s20 + $0x50] sm:$0xff] %v7051_v6 }
0x16e5   : > { %v9058_v60 = vpop.f32.mrb[148].mxu1 }
0x16e6   : > { %v7066_v27 = vadd.f32 %v9058_v60, %v7470_v17  ;;  %v7060_v4 = vpop.f32.mrb[149].mxu1 }
0x16e7   : > { %v7061_v7 = vadd.f32 %v7470_v17, %v7060_v4 }
0x16e8   : > { %7092 = vst [vmem:[%s13856_s20 + $0x68] sm:$0xff] %v7066_v27 }
0x16e9   : > { %7091 = vst [vmem:[%s13856_s20 + $0x60] sm:$0xff] %v7061_v7 }
0x16ec   : > { %v9061_v52 = vpop.f32.mrb[150].mxu1 }
0x16ed   : > { %v7076_v8 = vadd.f32 %v9061_v52, %v7470_v17  ;;  %v7070_v0 = vpop.f32.mrb[151].mxu1 }
0x16ee   : > { %v7071_v41 = vadd.f32 %v7470_v17, %v7070_v0 }
0x16ef   : > { %7094 = vst [vmem:[%s13856_s20 + $0x78] sm:$0xff] %v7076_v8 }
0x16f0   : > { %7093 = vst [vmem:[%s13856_s20 + $0x70] sm:$0xff] %v7071_v41 }
0x16f1   : > { %11066 = shalt.err (!%p11063_p2)
}
0x16f2   : > { %s11067_s8 = scalar_lea.hbm %s13877_s24, 2048  ;;  %s11071_s9 = scalar_lea.hbm %s13929_s4, 4096 }
0x16f3   : > { %p11068_p13 = scmp.ne.s32.totalorder %s13877_s24, %s11067_s8  ;;  %p11072_p4 = scmp.lt.u32.totalorder %s13877_s24, %s13929_s4 }
0x16f4   : > { %p11073_p7 = scmp.lt.u32.totalorder %s11071_s9, %s11067_s8  ;;  %p11075_p11 = scmp.lt.u32.totalorder %s11067_s8, %s13877_s24 }
0x16f5   : > { %p11069_p6 = pnand %p11068_p13, %p14210_p0 }
0x16f6   : > { %p11074_p8 = por %p11073_p7, %p11072_p4 }
0x16f7   : > { %p11070_p10 = pneg %p11069_p6 }
0x16f8   : > { %p11076_p1 = por %p11075_p11, %p11074_p8 }
0x16fa   : > { %p11077_p3 = pnand %p11076_p1, %p11070_p10 }
0x16fc   : > { %11080 = shalt.err (!%p11077_p3)
}
0x16fd   : > { %s11141_s20 = smov 128   ;;  %s11142_s29 = smov 8  }
0x16fe   : > { %9824 = dma.vmem_to_hbm [thread:$0]  (%p14210_p0), %s13879_s5, 2048, %s13877_s24, %s7096_s25, %s11141_s20, %s11141_s20, %s11142_s29  }
0x16ff PF: > { %s7124_s12 = sand.u32 1, %s11111_s15   ;;  %p14211_p5 = scmp.ne.s32.totalorder %s13969_s22, 0 }
0x1700   : > { %p14212_p9 = scmp.ge.s32.totalorder %s11123_s18, 2  ;;  %s7125_s13 = scalar_lea.sflag [#allocation6], %s7124_s12 }
0x1702   : > { %p9838_p12 = pnand %p14212_p9, %p14211_p5 }
0x1704   : > { %11106 = dma.done.wait (!%p9838_p12), %s7125_s13, 2048  }
0x1705   : > { %11108 = vsyncadd (!%p9838_p12), %s7125_s13, 4294965248  ;;  %p18_p2 = scmp.ge.s32.totalorder %s11281_s11, 4   ;;  %s14213_s15 = smov %s11115_s16 }
0x1706   : > { %s14214_s16 = smov %s11119_s17  ;;  %s14215_s17 = smov %s11290_s14 }
0x1707   : > { %s14216_s18 = smov %s11281_s11  ;;  %20 = sbr.rel (!%p18_p2) target bundleno = 6 (0x6), region = 89 }
0x170e   :  { %7130 = vsyncpa [#allocation5], 1 }
0x170f   :  { %7132 = vsyncpa [#allocation5 + $0x1], 1 }
0x1710   :  { %7133 = vsyncpa [#allocation8], 1 }
0x1711   :  { %7134 = vsyncpa [#allocation6], 1 }
0x1712   :  { %7136 = vsyncpa [#allocation6 + $0x1], 1 }

</bundles_post_ra>
